<compile_context>
chip_gen: v6e
topology: v6e:2x2x1
jax: 0.10.0
libtpu: 0.0.40
codegen_flags: <defaults>
</compile_context>

<pallas_src>
import functools

import jax
import jax.numpy as jnp
from jax import lax
from jax.experimental import pallas as pl
from jax.experimental.pallas import tpu as pltpu


def _round_up(n, m):
    return ((n + m - 1) // m) * m


# ----------------------------------------------------------------------------- #
# Kernel
# ----------------------------------------------------------------------------- #
def _lstm_kernel(*refs, num_layers, hidden, batch, seq_len, has_rest, unroll):
    """Whole LSTM forward (all steps, all layers) + fused FC head.

    refs layout:
      has_rest=True : x2d, wih0, whh0, b0, wih_r, whh_r, b_r, wfc, bfc, out, gx_scratch
      has_rest=False: x2d, wih0, whh0, b0,                   wfc, bfc, out, gx_scratch
    """
    if has_rest:
        (x_ref, wih0_ref, whh0_ref, b0_ref, wihr_ref, whhr_ref, br_ref,
         wfc_ref, bfc_ref, out_ref, gx_ref) = refs
    else:
        (x_ref, wih0_ref, whh0_ref, b0_ref,
         wfc_ref, bfc_ref, out_ref, gx_ref) = refs
        wihr_ref = whhr_ref = br_ref = None

    Hp, Bp, S = hidden, batch, seq_len
    mm_dtype = x_ref.dtype  # matmul operand dtype (bf16 in production, f32 optional)

    # --- Hoisted layer-0 input projection (+ bias): one large-M MXU matmul, once.
    gx_ref[...] = (
        jnp.dot(x_ref[...], wih0_ref[...], preferred_element_type=jnp.float32)
        + b0_ref[...]
    )

    # --- Hoist the (1,4Hp)->(Bp,4Hp) bias broadcasts out of the (unrolled) loop.
    b_rest = (
        [jnp.broadcast_to(br_ref[l], (Bp, 4 * Hp)) for l in range(num_layers - 1)]
        if has_rest else []
    )

    def gate_math(gates, c_prev):
        # PyTorch gate order: i | f | g | o, each gate block lane-aligned to Hp.
        i = jax.nn.sigmoid(gates[:, 0 * Hp:1 * Hp])
        f = jax.nn.sigmoid(gates[:, 1 * Hp:2 * Hp])
        g = jnp.tanh(gates[:, 2 * Hp:3 * Hp])
        o = jax.nn.sigmoid(gates[:, 3 * Hp:4 * Hp])
        c_new = f * c_prev + i * g
        h_new = o * jnp.tanh(c_new)
        return h_new, c_new

    def step(t, carry):
        h, c = carry
        row = pl.multiple_of(t * Bp, 8)
        # Layer 0: only the K=Hp recurrent matmul sits on the serial path.
        gates0 = gx_ref[pl.ds(row, Bp), :] + jnp.dot(
            h[0].astype(mm_dtype), whh0_ref[...],
            preferred_element_type=jnp.float32)
        h0, c0 = gate_math(gates0, c[0])
        hs, cs = [h0], [c0]
        layer_in = h0
        for l in range(1, num_layers):  # static layer loop
            gates = (
                jnp.dot(layer_in.astype(mm_dtype), wihr_ref[l - 1],
                        preferred_element_type=jnp.float32)
                + jnp.dot(h[l].astype(mm_dtype), whhr_ref[l - 1],
                          preferred_element_type=jnp.float32)
                + b_rest[l - 1]
            )
            hl, cl = gate_math(gates, c[l])
            hs.append(hl)
            cs.append(cl)
            layer_in = hl
        return tuple(hs), tuple(cs)

    zeros = tuple(jnp.zeros((Bp, Hp), jnp.float32) for _ in range(num_layers))
    h_fin, _ = lax.fori_loop(0, S, step, (zeros, zeros), unroll=unroll)

    # Final FC on the last step's top-layer hidden state (lane-dense store).
    out_ref[...] = (
        jnp.dot(h_fin[num_layers - 1].astype(mm_dtype), wfc_ref[...],
                preferred_element_type=jnp.float32)
        + bfc_ref[...]
    ).astype(out_ref.dtype)


# ----------------------------------------------------------------------------- #
# Wrapper: layout padding, gate-block padding, dtype cast, pallas_call
# ----------------------------------------------------------------------------- #
def _gate_pad_cols(w_t, H, Hp):
    """w_t: (in_dim, 4H) in PyTorch gate order [i|f|g|o]; zero-pad each gate to Hp cols."""
    in_dim = w_t.shape[0]
    w4 = w_t.reshape(in_dim, 4, H)
    w4 = jnp.pad(w4, ((0, 0), (0, 0), (0, Hp - H)))
    return w4.reshape(in_dim, 4 * Hp)


def lstm_forward_pallas(x, params, *, num_layers, hidden_size, num_classes,
                        matmul_dtype=jnp.bfloat16):
    """x: (seq, batch, input_size) float32. Returns (batch, num_classes) float32."""
    S, B, I = x.shape
    H, C = hidden_size, num_classes

    Hp = _round_up(H, 128)   # per-gate blocks lane-aligned
    Ip = _round_up(I, 128)   # lane-aligned input features
    Bp = _round_up(B, 8)     # full sublane group
    Cp = _round_up(C, 128)   # lane-dense output store

    mm = matmul_dtype

    # --- Layer 0: ih / hh kept SEPARATE (no per-step concat on the serial path).
    wih0 = jnp.pad(_gate_pad_cols(params["w_ih"][0].T, H, Hp),
                   ((0, Ip - I), (0, 0))).astype(mm)                               # (Ip, 4Hp)
    whh0 = jnp.pad(_gate_pad_cols(params["w_hh"][0].T, H, Hp),
                   ((0, Hp - H), (0, 0))).astype(mm)                               # (Hp, 4Hp)
    b0 = _gate_pad_cols((params["b_ih"][0] + params["b_hh"][0]).reshape(1, 4 * H),
                        H, Hp)                                                     # (1, 4Hp) f32

    has_rest = num_layers > 1
    if has_rest:
        wih_r = jnp.stack([
            jnp.pad(_gate_pad_cols(params["w_ih"][l].T, H, Hp), ((0, Hp - H), (0, 0)))
            for l in range(1, num_layers)]).astype(mm)                             # (L-1, Hp, 4Hp)
        whh_r = jnp.stack([
            jnp.pad(_gate_pad_cols(params["w_hh"][l].T, H, Hp), ((0, Hp - H), (0, 0)))
            for l in range(1, num_layers)]).astype(mm)                             # (L-1, Hp, 4Hp)
        b_r = jnp.stack([
            _gate_pad_cols((params["b_ih"][l] + params["b_hh"][l]).reshape(1, 4 * H), H, Hp)
            for l in range(1, num_layers)])                                        # (L-1, 1, 4Hp) f32

    # --- FC head.
    wfc = jnp.pad(params["fc_w"].T, ((0, Hp - H), (0, Cp - C))).astype(mm)          # (Hp, Cp)
    bfc = jnp.pad(params["fc_b"].reshape(1, C), ((0, 0), (0, Cp - C)))               # (1, Cp) f32

    # --- Input: zero-pad batch/features and pre-flatten to (S*Bp, Ip) so the hoisted
    #     input projection is a single large-M matmul with no in-kernel reshape.
    x2d = jnp.pad(x, ((0, 0), (0, Bp - B), (0, Ip - I))).reshape(S * Bp, Ip).astype(mm)

    args = [x2d, wih0, whh0, b0]
    if has_rest:
        args += [wih_r, whh_r, b_r]
    args += [wfc, bfc]

    kernel = functools.partial(
        _lstm_kernel,
        num_layers=num_layers,
        hidden=Hp,
        batch=Bp,
        seq_len=S,
        has_rest=has_rest,
        unroll=True if S <= 16 else 4,   # full unroll for short S, partial otherwise
    )

    out_bytes = Bp * Cp * 4
    scratch_bytes = S * Bp * 4 * Hp * 4
    need = sum(int(a.size) * a.dtype.itemsize for a in args) + out_bytes + scratch_bytes
    vmem_limit = int(min(max(4 * need, 32 * 1024 * 1024), 64 * 1024 * 1024))

    out = pl.pallas_call(
        kernel,
        out_shape=jax.ShapeDtypeStruct((Bp, Cp), jnp.float32),
        scratch_shapes=[pltpu.VMEM((S * Bp, 4 * Hp), jnp.float32)],  # hoisted gates_x
        compiler_params=pltpu.CompilerParams(vmem_limit_bytes=vmem_limit),
    )(*args)

    return out[:B, :C]


# ----------------------------------------------------------------------------- #
# Pure-JAX reference matching PyTorch nn.LSTM + Linear semantics
# ----------------------------------------------------------------------------- #
def lstm_forward_ref(x, params, *, num_layers, hidden_size, num_classes):
    S, B, I = x.shape
    H = hidden_size
    h = jnp.zeros((num_layers, B, H), jnp.float32)
    c = jnp.zeros((num_layers, B, H), jnp.float32)
    for t in range(S):
        layer_in = x[t]
        for l in range(num_layers):
            gates = (layer_in @ params["w_ih"][l].T + params["b_ih"][l]
                     + h[l] @ params["w_hh"][l].T + params["b_hh"][l])
            i = jax.nn.sigmoid(gates[:, 0 * H:1 * H])
            f = jax.nn.sigmoid(gates[:, 1 * H:2 * H])
            g = jnp.tanh(gates[:, 2 * H:3 * H])
            o = jax.nn.sigmoid(gates[:, 3 * H:4 * H])
            c_new = f * c[l] + i * g
            h_new = o * jnp.tanh(c_new)
            h = h.at[l].set(h_new)
            c = c.at[l].set(c_new)
            layer_in = h_new
    last = h[num_layers - 1]   # == lstm_out[S-1]
    return last @ params["fc_w"].T + params["fc_b"]


def init_params(key, input_size, hidden_size, num_layers, num_classes):
    """Deterministic PyTorch-style init: U(-1/sqrt(H), 1/sqrt(H))."""
    H = hidden_size
    k = 1.0 / jnp.sqrt(jnp.float32(H))
    params = {"w_ih": [], "w_hh": [], "b_ih": [], "b_hh": []}
    for l in range(num_layers):
        in_l = input_size if l == 0 else H
        key, k1, k2, k3, k4 = jax.random.split(key, 5)
        params["w_ih"].append(jax.random.uniform(k1, (4 * H, in_l), jnp.float32, -k, k))
        params["w_hh"].append(jax.random.uniform(k2, (4 * H, H), jnp.float32, -k, k))
        params["b_ih"].append(jax.random.uniform(k3, (4 * H,), jnp.float32, -k, k))
        params["b_hh"].append(jax.random.uniform(k4, (4 * H,), jnp.float32, -k, k))
    key, k5, k6 = jax.random.split(key, 3)
    kf = 1.0 / jnp.sqrt(jnp.float32(H))
    params["fc_w"] = jax.random.uniform(k5, (num_classes, H), jnp.float32, -kf, kf)
    params["fc_b"] = jax.random.uniform(k6, (num_classes,), jnp.float32, -kf, kf)
    return params


if __name__ == "__main__":
    # Small shapes consistent with the module's forward: [sequence, batch, input_size].
    SEQ, BATCH = 8, 2
    INPUT_SIZE, HIDDEN_SIZE, NUM_LAYERS, NUM_CLASSES = 16, 32, 2, 10
    DROPOUT = 0.0  # identity at inference

    key = jax.random.PRNGKey(0)
    key, kx = jax.random.split(key)
    x = jax.random.normal(kx, (SEQ, BATCH, INPUT_SIZE), jnp.float32)

    params = init_params(key, INPUT_SIZE, HIDDEN_SIZE, NUM_LAYERS, NUM_CLASSES)

    ref = lstm_forward_ref(x, params,
                           num_layers=NUM_LAYERS,
                           hidden_size=HIDDEN_SIZE,
                           num_classes=NUM_CLASSES)

    # Exactness check with f32 MXU operands.
    out_f32 = lstm_forward_pallas(x, params,
                                  num_layers=NUM_LAYERS,
                                  hidden_size=HIDDEN_SIZE,
                                  num_classes=NUM_CLASSES,
                                  matmul_dtype=jnp.float32)
    out_f32 = jax.block_until_ready(out_f32)
    assert out_f32.shape == (BATCH, NUM_CLASSES)
    assert jnp.allclose(out_f32, ref, rtol=1e-4, atol=1e-4), "f32 Pallas LSTM mismatch"

    # Production path: bf16 MXU operands, f32 accumulation / elementwise math.
    out_bf16 = lstm_forward_pallas(x, params,
                                   num_layers=NUM_LAYERS,
                                   hidden_size=HIDDEN_SIZE,
                                   num_classes=NUM_CLASSES,
                                   matmul_dtype=jnp.bfloat16)
    out_bf16 = jax.block_until_ready(out_bf16)
    assert out_bf16.shape == (BATCH, NUM_CLASSES)
    assert jnp.allclose(out_bf16, ref, rtol=5e-2, atol=5e-2), "bf16 Pallas LSTM mismatch"

    print("KERNEL_OK")
</pallas_src>

<mosaic_0001>
module attributes {stable_mosaic.version = 11 : i64} {
  func.func @_lstm_kernel(%arg0: memref<64x128xf32, #tpu.memory_space<vmem>>, %arg1: memref<128x512xf32, #tpu.memory_space<vmem>>, %arg2: memref<128x512xf32, #tpu.memory_space<vmem>>, %arg3: memref<1x512xf32, #tpu.memory_space<vmem>>, %arg4: memref<1x128x512xf32, #tpu.memory_space<vmem>>, %arg5: memref<1x128x512xf32, #tpu.memory_space<vmem>>, %arg6: memref<1x1x512xf32, #tpu.memory_space<vmem>>, %arg7: memref<128x128xf32, #tpu.memory_space<vmem>>, %arg8: memref<1x128xf32, #tpu.memory_space<vmem>>, %arg9: memref<8x128xf32, #tpu.memory_space<vmem>>, %arg10: memref<64x512xf32, #tpu.memory_space<vmem>>) attributes {dimension_semantics = [], scalar_prefetch = 0 : i64, scratch_operands = 1 : i64, tpu.core_type = #tpu.core_type<tc>} {
    %c0 = arith.constant 0 : index
    %c0_0 = arith.constant 0 : index
    %0 = vector.load %arg0[%c0, %c0_0] : memref<64x128xf32, #tpu.memory_space<vmem>>, vector<64x128xf32>
    %c0_1 = arith.constant 0 : index
    %c0_2 = arith.constant 0 : index
    %1 = vector.load %arg1[%c0_1, %c0_2] : memref<128x512xf32, #tpu.memory_space<vmem>>, vector<128x512xf32>
    %cst = arith.constant dense<0.000000e+00> : vector<64x512xf32>
    %2 = tpu.matmul %0, %1, %cst {dimension_numbers = #tpu.dot_dimension_numbers<[1], [0], [0], [1], [0, 0, 1, 1], [], []>} : vector<64x128xf32>, vector<128x512xf32>, vector<64x512xf32> -> vector<64x512xf32>
    %c0_3 = arith.constant 0 : index
    %c0_4 = arith.constant 0 : index
    %3 = vector.load %arg3[%c0_3, %c0_4] : memref<1x512xf32, #tpu.memory_space<vmem>>, vector<1x512xf32>
    %4 = vector.broadcast %3 : vector<1x512xf32> to vector<64x512xf32>
    %5 = arith.addf %2, %4 : vector<64x512xf32>
    %c0_5 = arith.constant 0 : index
    %c0_6 = arith.constant 0 : index
    %6 = vector.load %arg10[%c0_5, %c0_6] : memref<64x512xf32, #tpu.memory_space<vmem>>, vector<64x512xf32>
    tpu.vector_store %arg10[%c0_5, %c0_6], %5 {strides = array<i32>} : memref<64x512xf32, #tpu.memory_space<vmem>>, vector<64x512xf32>,
    %c0_7 = arith.constant 0 : index
    %c0_8 = arith.constant 0 : index
    %c0_9 = arith.constant 0 : index
    %7 = vector.load %arg6[%c0_7, %c0_8, %c0_9] : memref<1x1x512xf32, #tpu.memory_space<vmem>>, vector<1x1x512xf32>
    %8 = vector.shape_cast %7 : vector<1x1x512xf32> to vector<1x512xf32>
    %9 = vector.shape_cast %8 : vector<1x512xf32> to vector<1x512xf32>
    %10 = vector.broadcast %9 : vector<1x512xf32> to vector<8x512xf32>
    %cst_10 = arith.constant 0.000000e+00 : f32
    %11 = vector.broadcast %cst_10 : f32 to vector<8x128xf32>
    %cst_11 = arith.constant 0.000000e+00 : f32
    %12 = vector.broadcast %cst_11 : f32 to vector<8x128xf32>
    %c0_i32 = arith.constant 0 : i32
    %c8_i32 = arith.constant 8 : i32
    %13 = arith.muli %c0_i32, %c8_i32 : i32
    %14 = tpu.assume_multiple %13, 8 : i32
    %15 = arith.index_cast %14 : i32 to index
    %c0_12 = arith.constant 0 : index
    %16 = vector.load %arg10[%15, %c0_12] : memref<64x512xf32, #tpu.memory_space<vmem>>, vector<8x512xf32>
    %c0_13 = arith.constant 0 : index
    %c0_14 = arith.constant 0 : index
    %17 = vector.load %arg2[%c0_13, %c0_14] : memref<128x512xf32, #tpu.memory_space<vmem>>, vector<128x512xf32>
    %cst_15 = arith.constant dense<0.000000e+00> : vector<8x512xf32>
    %18 = tpu.matmul %11, %17, %cst_15 {dimension_numbers = #tpu.dot_dimension_numbers<[1], [0], [0], [1], [0, 0, 1, 1], [], []>} : vector<8x128xf32>, vector<128x512xf32>, vector<8x512xf32> -> vector<8x512xf32>
    %19 = arith.addf %16, %18 : vector<8x512xf32>
    %20 = vector.extract_strided_slice %19 {offsets = [0, 0], sizes = [8, 128], strides = [1, 1]} : vector<8x512xf32> to vector<8x128xf32>
    %21 = arith.negf %20 : vector<8x128xf32>
    %22 = math.exp %21 : vector<8x128xf32>
    %cst_16 = arith.constant 1.000000e+00 : f32
    %23 = vector.broadcast %cst_16 : f32 to vector<8x128xf32>
    %24 = arith.addf %23, %22 : vector<8x128xf32>
    %25 = arith.divf %23, %24 : vector<8x128xf32>
    %26 = vector.extract_strided_slice %19 {offsets = [0, 128], sizes = [8, 128], strides = [1, 1]} : vector<8x512xf32> to vector<8x128xf32>
    %27 = arith.negf %26 : vector<8x128xf32>
    %28 = math.exp %27 : vector<8x128xf32>
    %cst_17 = arith.constant 1.000000e+00 : f32
    %29 = vector.broadcast %cst_17 : f32 to vector<8x128xf32>
    %30 = arith.addf %29, %28 : vector<8x128xf32>
    %31 = arith.divf %29, %30 : vector<8x128xf32>
    %32 = vector.extract_strided_slice %19 {offsets = [0, 256], sizes = [8, 128], strides = [1, 1]} : vector<8x512xf32> to vector<8x128xf32>
    %33 = math.tanh %32 : vector<8x128xf32>
    %34 = vector.extract_strided_slice %19 {offsets = [0, 384], sizes = [8, 128], strides = [1, 1]} : vector<8x512xf32> to vector<8x128xf32>
    %35 = arith.negf %34 : vector<8x128xf32>
    %36 = math.exp %35 : vector<8x128xf32>
    %cst_18 = arith.constant 1.000000e+00 : f32
    %37 = vector.broadcast %cst_18 : f32 to vector<8x128xf32>
    %38 = arith.addf %37, %36 : vector<8x128xf32>
    %39 = arith.divf %37, %38 : vector<8x128xf32>
    %40 = arith.mulf %31, %11 : vector<8x128xf32>
    %41 = arith.mulf %25, %33 : vector<8x128xf32>
    %42 = arith.addf %40, %41 : vector<8x128xf32>
    %43 = math.tanh %42 : vector<8x128xf32>
    %44 = arith.mulf %39, %43 : vector<8x128xf32>
    %c0_19 = arith.constant 0 : index
    %c0_20 = arith.constant 0 : index
    %c0_21 = arith.constant 0 : index
    %45 = vector.load %arg4[%c0_19, %c0_20, %c0_21] : memref<1x128x512xf32, #tpu.memory_space<vmem>>, vector<1x128x512xf32>
    %46 = vector.shape_cast %45 : vector<1x128x512xf32> to vector<128x512xf32>
    %cst_22 = arith.constant dense<0.000000e+00> : vector<8x512xf32>
    %47 = tpu.matmul %44, %46, %cst_22 {dimension_numbers = #tpu.dot_dimension_numbers<[1], [0], [0], [1], [0, 0, 1, 1], [], []>} : vector<8x128xf32>, vector<128x512xf32>, vector<8x512xf32> -> vector<8x512xf32>
    %c0_23 = arith.constant 0 : index
    %c0_24 = arith.constant 0 : index
    %c0_25 = arith.constant 0 : index
    %48 = vector.load %arg5[%c0_23, %c0_24, %c0_25] : memref<1x128x512xf32, #tpu.memory_space<vmem>>, vector<1x128x512xf32>
    %49 = vector.shape_cast %48 : vector<1x128x512xf32> to vector<128x512xf32>
    %cst_26 = arith.constant dense<0.000000e+00> : vector<8x512xf32>
    %50 = tpu.matmul %12, %49, %cst_26 {dimension_numbers = #tpu.dot_dimension_numbers<[1], [0], [0], [1], [0, 0, 1, 1], [], []>} : vector<8x128xf32>, vector<128x512xf32>, vector<8x512xf32> -> vector<8x512xf32>
    %51 = arith.addf %47, %50 : vector<8x512xf32>
    %52 = arith.addf %51, %10 : vector<8x512xf32>
    %53 = vector.extract_strided_slice %52 {offsets = [0, 0], sizes = [8, 128], strides = [1, 1]} : vector<8x512xf32> to vector<8x128xf32>
    %54 = arith.negf %53 : vector<8x128xf32>
    %55 = math.exp %54 : vector<8x128xf32>
    %cst_27 = arith.constant 1.000000e+00 : f32
    %56 = vector.broadcast %cst_27 : f32 to vector<8x128xf32>
    %57 = arith.addf %56, %55 : vector<8x128xf32>
    %58 = arith.divf %56, %57 : vector<8x128xf32>
    %59 = vector.extract_strided_slice %52 {offsets = [0, 128], sizes = [8, 128], strides = [1, 1]} : vector<8x512xf32> to vector<8x128xf32>
    %60 = arith.negf %59 : vector<8x128xf32>
    %61 = math.exp %60 : vector<8x128xf32>
    %cst_28 = arith.constant 1.000000e+00 : f32
    %62 = vector.broadcast %cst_28 : f32 to vector<8x128xf32>
    %63 = arith.addf %62, %61 : vector<8x128xf32>
    %64 = arith.divf %62, %63 : vector<8x128xf32>
    %65 = vector.extract_strided_slice %52 {offsets = [0, 256], sizes = [8, 128], strides = [1, 1]} : vector<8x512xf32> to vector<8x128xf32>
    %66 = math.tanh %65 : vector<8x128xf32>
    %67 = vector.extract_strided_slice %52 {offsets = [0, 384], sizes = [8, 128], strides = [1, 1]} : vector<8x512xf32> to vector<8x128xf32>
    %68 = arith.negf %67 : vector<8x128xf32>
    %69 = math.exp %68 : vector<8x128xf32>
    %cst_29 = arith.constant 1.000000e+00 : f32
    %70 = vector.broadcast %cst_29 : f32 to vector<8x128xf32>
    %71 = arith.addf %70, %69 : vector<8x128xf32>
    %72 = arith.divf %70, %71 : vector<8x128xf32>
    %73 = arith.mulf %64, %12 : vector<8x128xf32>
    %74 = arith.mulf %58, %66 : vector<8x128xf32>
    %75 = arith.addf %73, %74 : vector<8x128xf32>
    %76 = math.tanh %75 : vector<8x128xf32>
    %77 = arith.mulf %72, %76 : vector<8x128xf32>
    %c1_i32 = arith.constant 1 : i32
    %c8_i32_30 = arith.constant 8 : i32
    %78 = arith.muli %c1_i32, %c8_i32_30 : i32
    %79 = tpu.assume_multiple %78, 8 : i32
    %80 = arith.index_cast %79 : i32 to index
    %c0_31 = arith.constant 0 : index
    %81 = vector.load %arg10[%80, %c0_31] : memref<64x512xf32, #tpu.memory_space<vmem>>, vector<8x512xf32>
    %c0_32 = arith.constant 0 : index
    %c0_33 = arith.constant 0 : index
    %82 = vector.load %arg2[%c0_32, %c0_33] : memref<128x512xf32, #tpu.memory_space<vmem>>, vector<128x512xf32>
    %cst_34 = arith.constant dense<0.000000e+00> : vector<8x512xf32>
    %83 = tpu.matmul %44, %82, %cst_34 {dimension_numbers = #tpu.dot_dimension_numbers<[1], [0], [0], [1], [0, 0, 1, 1], [], []>} : vector<8x128xf32>, vector<128x512xf32>, vector<8x512xf32> -> vector<8x512xf32>
    %84 = arith.addf %81, %83 : vector<8x512xf32>
    %85 = vector.extract_strided_slice %84 {offsets = [0, 0], sizes = [8, 128], strides = [1, 1]} : vector<8x512xf32> to vector<8x128xf32>
    %86 = arith.negf %85 : vector<8x128xf32>
    %87 = math.exp %86 : vector<8x128xf32>
    %cst_35 = arith.constant 1.000000e+00 : f32
    %88 = vector.broadcast %cst_35 : f32 to vector<8x128xf32>
    %89 = arith.addf %88, %87 : vector<8x128xf32>
    %90 = arith.divf %88, %89 : vector<8x128xf32>
    %91 = vector.extract_strided_slice %84 {offsets = [0, 128], sizes = [8, 128], strides = [1, 1]} : vector<8x512xf32> to vector<8x128xf32>
    %92 = arith.negf %91 : vector<8x128xf32>
    %93 = math.exp %92 : vector<8x128xf32>
    %cst_36 = arith.constant 1.000000e+00 : f32
    %94 = vector.broadcast %cst_36 : f32 to vector<8x128xf32>
    %95 = arith.addf %94, %93 : vector<8x128xf32>
    %96 = arith.divf %94, %95 : vector<8x128xf32>
    %97 = vector.extract_strided_slice %84 {offsets = [0, 256], sizes = [8, 128], strides = [1, 1]} : vector<8x512xf32> to vector<8x128xf32>
    %98 = math.tanh %97 : vector<8x128xf32>
    %99 = vector.extract_strided_slice %84 {offsets = [0, 384], sizes = [8, 128], strides = [1, 1]} : vector<8x512xf32> to vector<8x128xf32>
    %100 = arith.negf %99 : vector<8x128xf32>
    %101 = math.exp %100 : vector<8x128xf32>
    %cst_37 = arith.constant 1.000000e+00 : f32
    %102 = vector.broadcast %cst_37 : f32 to vector<8x128xf32>
    %103 = arith.addf %102, %101 : vector<8x128xf32>
    %104 = arith.divf %102, %103 : vector<8x128xf32>
    %105 = arith.mulf %96, %42 : vector<8x128xf32>
    %106 = arith.mulf %90, %98 : vector<8x128xf32>
    %107 = arith.addf %105, %106 : vector<8x128xf32>
    %108 = math.tanh %107 : vector<8x128xf32>
    %109 = arith.mulf %104, %108 : vector<8x128xf32>
    %c0_38 = arith.constant 0 : index
    %c0_39 = arith.constant 0 : index
    %c0_40 = arith.constant 0 : index
    %110 = vector.load %arg4[%c0_38, %c0_39, %c0_40] : memref<1x128x512xf32, #tpu.memory_space<vmem>>, vector<1x128x512xf32>
    %111 = vector.shape_cast %110 : vector<1x128x512xf32> to vector<128x512xf32>
    %cst_41 = arith.constant dense<0.000000e+00> : vector<8x512xf32>
    %112 = tpu.matmul %109, %111, %cst_41 {dimension_numbers = #tpu.dot_dimension_numbers<[1], [0], [0], [1], [0, 0, 1, 1], [], []>} : vector<8x128xf32>, vector<128x512xf32>, vector<8x512xf32> -> vector<8x512xf32>
    %c0_42 = arith.constant 0 : index
    %c0_43 = arith.constant 0 : index
    %c0_44 = arith.constant 0 : index
    %113 = vector.load %arg5[%c0_42, %c0_43, %c0_44] : memref<1x128x512xf32, #tpu.memory_space<vmem>>, vector<1x128x512xf32>
    %114 = vector.shape_cast %113 : vector<1x128x512xf32> to vector<128x512xf32>
    %cst_45 = arith.constant dense<0.000000e+00> : vector<8x512xf32>
    %115 = tpu.matmul %77, %114, %cst_45 {dimension_numbers = #tpu.dot_dimension_numbers<[1], [0], [0], [1], [0, 0, 1, 1], [], []>} : vector<8x128xf32>, vector<128x512xf32>, vector<8x512xf32> -> vector<8x512xf32>
    %116 = arith.addf %112, %115 : vector<8x512xf32>
    %117 = arith.addf %116, %10 : vector<8x512xf32>
    %118 = vector.extract_strided_slice %117 {offsets = [0, 0], sizes = [8, 128], strides = [1, 1]} : vector<8x512xf32> to vector<8x128xf32>
    %119 = arith.negf %118 : vector<8x128xf32>
    %120 = math.exp %119 : vector<8x128xf32>
    %cst_46 = arith.constant 1.000000e+00 : f32
    %121 = vector.broadcast %cst_46 : f32 to vector<8x128xf32>
    %122 = arith.addf %121, %120 : vector<8x128xf32>
    %123 = arith.divf %121, %122 : vector<8x128xf32>
    %124 = vector.extract_strided_slice %117 {offsets = [0, 128], sizes = [8, 128], strides = [1, 1]} : vector<8x512xf32> to vector<8x128xf32>
    %125 = arith.negf %124 : vector<8x128xf32>
    %126 = math.exp %125 : vector<8x128xf32>
    %cst_47 = arith.constant 1.000000e+00 : f32
    %127 = vector.broadcast %cst_47 : f32 to vector<8x128xf32>
    %128 = arith.addf %127, %126 : vector<8x128xf32>
    %129 = arith.divf %127, %128 : vector<8x128xf32>
    %130 = vector.extract_strided_slice %117 {offsets = [0, 256], sizes = [8, 128], strides = [1, 1]} : vector<8x512xf32> to vector<8x128xf32>
    %131 = math.tanh %130 : vector<8x128xf32>
    %132 = vector.extract_strided_slice %117 {offsets = [0, 384], sizes = [8, 128], strides = [1, 1]} : vector<8x512xf32> to vector<8x128xf32>
    %133 = arith.negf %132 : vector<8x128xf32>
    %134 = math.exp %133 : vector<8x128xf32>
    %cst_48 = arith.constant 1.000000e+00 : f32
    %135 = vector.broadcast %cst_48 : f32 to vector<8x128xf32>
    %136 = arith.addf %135, %134 : vector<8x128xf32>
    %137 = arith.divf %135, %136 : vector<8x128xf32>
    %138 = arith.mulf %129, %75 : vector<8x128xf32>
    %139 = arith.mulf %123, %131 : vector<8x128xf32>
    %140 = arith.addf %138, %139 : vector<8x128xf32>
    %141 = math.tanh %140 : vector<8x128xf32>
    %142 = arith.mulf %137, %141 : vector<8x128xf32>
    %c2_i32 = arith.constant 2 : i32
    %c8_i32_49 = arith.constant 8 : i32
    %143 = arith.muli %c2_i32, %c8_i32_49 : i32
    %144 = tpu.assume_multiple %143, 8 : i32
    %145 = arith.index_cast %144 : i32 to index
    %c0_50 = arith.constant 0 : index
    %146 = vector.load %arg10[%145, %c0_50] : memref<64x512xf32, #tpu.memory_space<vmem>>, vector<8x512xf32>
    %c0_51 = arith.constant 0 : index
    %c0_52 = arith.constant 0 : index
    %147 = vector.load %arg2[%c0_51, %c0_52] : memref<128x512xf32, #tpu.memory_space<vmem>>, vector<128x512xf32>
    %cst_53 = arith.constant dense<0.000000e+00> : vector<8x512xf32>
    %148 = tpu.matmul %109, %147, %cst_53 {dimension_numbers = #tpu.dot_dimension_numbers<[1], [0], [0], [1], [0, 0, 1, 1], [], []>} : vector<8x128xf32>, vector<128x512xf32>, vector<8x512xf32> -> vector<8x512xf32>
    %149 = arith.addf %146, %148 : vector<8x512xf32>
    %150 = vector.extract_strided_slice %149 {offsets = [0, 0], sizes = [8, 128], strides = [1, 1]} : vector<8x512xf32> to vector<8x128xf32>
    %151 = arith.negf %150 : vector<8x128xf32>
    %152 = math.exp %151 : vector<8x128xf32>
    %cst_54 = arith.constant 1.000000e+00 : f32
    %153 = vector.broadcast %cst_54 : f32 to vector<8x128xf32>
    %154 = arith.addf %153, %152 : vector<8x128xf32>
    %155 = arith.divf %153, %154 : vector<8x128xf32>
    %156 = vector.extract_strided_slice %149 {offsets = [0, 128], sizes = [8, 128], strides = [1, 1]} : vector<8x512xf32> to vector<8x128xf32>
    %157 = arith.negf %156 : vector<8x128xf32>
    %158 = math.exp %157 : vector<8x128xf32>
    %cst_55 = arith.constant 1.000000e+00 : f32
    %159 = vector.broadcast %cst_55 : f32 to vector<8x128xf32>
    %160 = arith.addf %159, %158 : vector<8x128xf32>
    %161 = arith.divf %159, %160 : vector<8x128xf32>
    %162 = vector.extract_strided_slice %149 {offsets = [0, 256], sizes = [8, 128], strides = [1, 1]} : vector<8x512xf32> to vector<8x128xf32>
    %163 = math.tanh %162 : vector<8x128xf32>
    %164 = vector.extract_strided_slice %149 {offsets = [0, 384], sizes = [8, 128], strides = [1, 1]} : vector<8x512xf32> to vector<8x128xf32>
    %165 = arith.negf %164 : vector<8x128xf32>
    %166 = math.exp %165 : vector<8x128xf32>
    %cst_56 = arith.constant 1.000000e+00 : f32
    %167 = vector.broadcast %cst_56 : f32 to vector<8x128xf32>
    %168 = arith.addf %167, %166 : vector<8x128xf32>
    %169 = arith.divf %167, %168 : vector<8x128xf32>
    %170 = arith.mulf %161, %107 : vector<8x128xf32>
    %171 = arith.mulf %155, %163 : vector<8x128xf32>
    %172 = arith.addf %170, %171 : vector<8x128xf32>
    %173 = math.tanh %172 : vector<8x128xf32>
    %174 = arith.mulf %169, %173 : vector<8x128xf32>
    %c0_57 = arith.constant 0 : index
    %c0_58 = arith.constant 0 : index
    %c0_59 = arith.constant 0 : index
    %175 = vector.load %arg4[%c0_57, %c0_58, %c0_59] : memref<1x128x512xf32, #tpu.memory_space<vmem>>, vector<1x128x512xf32>
    %176 = vector.shape_cast %175 : vector<1x128x512xf32> to vector<128x512xf32>
    %cst_60 = arith.constant dense<0.000000e+00> : vector<8x512xf32>
    %177 = tpu.matmul %174, %176, %cst_60 {dimension_numbers = #tpu.dot_dimension_numbers<[1], [0], [0], [1], [0, 0, 1, 1], [], []>} : vector<8x128xf32>, vector<128x512xf32>, vector<8x512xf32> -> vector<8x512xf32>
    %c0_61 = arith.constant 0 : index
    %c0_62 = arith.constant 0 : index
    %c0_63 = arith.constant 0 : index
    %178 = vector.load %arg5[%c0_61, %c0_62, %c0_63] : memref<1x128x512xf32, #tpu.memory_space<vmem>>, vector<1x128x512xf32>
    %179 = vector.shape_cast %178 : vector<1x128x512xf32> to vector<128x512xf32>
    %cst_64 = arith.constant dense<0.000000e+00> : vector<8x512xf32>
    %180 = tpu.matmul %142, %179, %cst_64 {dimension_numbers = #tpu.dot_dimension_numbers<[1], [0], [0], [1], [0, 0, 1, 1], [], []>} : vector<8x128xf32>, vector<128x512xf32>, vector<8x512xf32> -> vector<8x512xf32>
    %181 = arith.addf %177, %180 : vector<8x512xf32>
    %182 = arith.addf %181, %10 : vector<8x512xf32>
    %183 = vector.extract_strided_slice %182 {offsets = [0, 0], sizes = [8, 128], strides = [1, 1]} : vector<8x512xf32> to vector<8x128xf32>
    %184 = arith.negf %183 : vector<8x128xf32>
    %185 = math.exp %184 : vector<8x128xf32>
    %cst_65 = arith.constant 1.000000e+00 : f32
    %186 = vector.broadcast %cst_65 : f32 to vector<8x128xf32>
    %187 = arith.addf %186, %185 : vector<8x128xf32>
    %188 = arith.divf %186, %187 : vector<8x128xf32>
    %189 = vector.extract_strided_slice %182 {offsets = [0, 128], sizes = [8, 128], strides = [1, 1]} : vector<8x512xf32> to vector<8x128xf32>
    %190 = arith.negf %189 : vector<8x128xf32>
    %191 = math.exp %190 : vector<8x128xf32>
    %cst_66 = arith.constant 1.000000e+00 : f32
    %192 = vector.broadcast %cst_66 : f32 to vector<8x128xf32>
    %193 = arith.addf %192, %191 : vector<8x128xf32>
    %194 = arith.divf %192, %193 : vector<8x128xf32>
    %195 = vector.extract_strided_slice %182 {offsets = [0, 256], sizes = [8, 128], strides = [1, 1]} : vector<8x512xf32> to vector<8x128xf32>
    %196 = math.tanh %195 : vector<8x128xf32>
    %197 = vector.extract_strided_slice %182 {offsets = [0, 384], sizes = [8, 128], strides = [1, 1]} : vector<8x512xf32> to vector<8x128xf32>
    %198 = arith.negf %197 : vector<8x128xf32>
    %199 = math.exp %198 : vector<8x128xf32>
    %cst_67 = arith.constant 1.000000e+00 : f32
    %200 = vector.broadcast %cst_67 : f32 to vector<8x128xf32>
    %201 = arith.addf %200, %199 : vector<8x128xf32>
    %202 = arith.divf %200, %201 : vector<8x128xf32>
    %203 = arith.mulf %194, %140 : vector<8x128xf32>
    %204 = arith.mulf %188, %196 : vector<8x128xf32>
    %205 = arith.addf %203, %204 : vector<8x128xf32>
    %206 = math.tanh %205 : vector<8x128xf32>
    %207 = arith.mulf %202, %206 : vector<8x128xf32>
    %c3_i32 = arith.constant 3 : i32
    %c8_i32_68 = arith.constant 8 : i32
    %208 = arith.muli %c3_i32, %c8_i32_68 : i32
    %209 = tpu.assume_multiple %208, 8 : i32
    %210 = arith.index_cast %209 : i32 to index
    %c0_69 = arith.constant 0 : index
    %211 = vector.load %arg10[%210, %c0_69] : memref<64x512xf32, #tpu.memory_space<vmem>>, vector<8x512xf32>
    %c0_70 = arith.constant 0 : index
    %c0_71 = arith.constant 0 : index
    %212 = vector.load %arg2[%c0_70, %c0_71] : memref<128x512xf32, #tpu.memory_space<vmem>>, vector<128x512xf32>
    %cst_72 = arith.constant dense<0.000000e+00> : vector<8x512xf32>
    %213 = tpu.matmul %174, %212, %cst_72 {dimension_numbers = #tpu.dot_dimension_numbers<[1], [0], [0], [1], [0, 0, 1, 1], [], []>} : vector<8x128xf32>, vector<128x512xf32>, vector<8x512xf32> -> vector<8x512xf32>
    %214 = arith.addf %211, %213 : vector<8x512xf32>
    %215 = vector.extract_strided_slice %214 {offsets = [0, 0], sizes = [8, 128], strides = [1, 1]} : vector<8x512xf32> to vector<8x128xf32>
    %216 = arith.negf %215 : vector<8x128xf32>
    %217 = math.exp %216 : vector<8x128xf32>
    %cst_73 = arith.constant 1.000000e+00 : f32
    %218 = vector.broadcast %cst_73 : f32 to vector<8x128xf32>
    %219 = arith.addf %218, %217 : vector<8x128xf32>
    %220 = arith.divf %218, %219 : vector<8x128xf32>
    %221 = vector.extract_strided_slice %214 {offsets = [0, 128], sizes = [8, 128], strides = [1, 1]} : vector<8x512xf32> to vector<8x128xf32>
    %222 = arith.negf %221 : vector<8x128xf32>
    %223 = math.exp %222 : vector<8x128xf32>
    %cst_74 = arith.constant 1.000000e+00 : f32
    %224 = vector.broadcast %cst_74 : f32 to vector<8x128xf32>
    %225 = arith.addf %224, %223 : vector<8x128xf32>
    %226 = arith.divf %224, %225 : vector<8x128xf32>
    %227 = vector.extract_strided_slice %214 {offsets = [0, 256], sizes = [8, 128], strides = [1, 1]} : vector<8x512xf32> to vector<8x128xf32>
    %228 = math.tanh %227 : vector<8x128xf32>
    %229 = vector.extract_strided_slice %214 {offsets = [0, 384], sizes = [8, 128], strides = [1, 1]} : vector<8x512xf32> to vector<8x128xf32>
    %230 = arith.negf %229 : vector<8x128xf32>
    %231 = math.exp %230 : vector<8x128xf32>
    %cst_75 = arith.constant 1.000000e+00 : f32
    %232 = vector.broadcast %cst_75 : f32 to vector<8x128xf32>
    %233 = arith.addf %232, %231 : vector<8x128xf32>
    %234 = arith.divf %232, %233 : vector<8x128xf32>
    %235 = arith.mulf %226, %172 : vector<8x128xf32>
    %236 = arith.mulf %220, %228 : vector<8x128xf32>
    %237 = arith.addf %235, %236 : vector<8x128xf32>
    %238 = math.tanh %237 : vector<8x128xf32>
    %239 = arith.mulf %234, %238 : vector<8x128xf32>
    %c0_76 = arith.constant 0 : index
    %c0_77 = arith.constant 0 : index
    %c0_78 = arith.constant 0 : index
    %240 = vector.load %arg4[%c0_76, %c0_77, %c0_78] : memref<1x128x512xf32, #tpu.memory_space<vmem>>, vector<1x128x512xf32>
    %241 = vector.shape_cast %240 : vector<1x128x512xf32> to vector<128x512xf32>
    %cst_79 = arith.constant dense<0.000000e+00> : vector<8x512xf32>
    %242 = tpu.matmul %239, %241, %cst_79 {dimension_numbers = #tpu.dot_dimension_numbers<[1], [0], [0], [1], [0, 0, 1, 1], [], []>} : vector<8x128xf32>, vector<128x512xf32>, vector<8x512xf32> -> vector<8x512xf32>
    %c0_80 = arith.constant 0 : index
    %c0_81 = arith.constant 0 : index
    %c0_82 = arith.constant 0 : index
    %243 = vector.load %arg5[%c0_80, %c0_81, %c0_82] : memref<1x128x512xf32, #tpu.memory_space<vmem>>, vector<1x128x512xf32>
    %244 = vector.shape_cast %243 : vector<1x128x512xf32> to vector<128x512xf32>
    %cst_83 = arith.constant dense<0.000000e+00> : vector<8x512xf32>
    %245 = tpu.matmul %207, %244, %cst_83 {dimension_numbers = #tpu.dot_dimension_numbers<[1], [0], [0], [1], [0, 0, 1, 1], [], []>} : vector<8x128xf32>, vector<128x512xf32>, vector<8x512xf32> -> vector<8x512xf32>
    %246 = arith.addf %242, %245 : vector<8x512xf32>
    %247 = arith.addf %246, %10 : vector<8x512xf32>
    %248 = vector.extract_strided_slice %247 {offsets = [0, 0], sizes = [8, 128], strides = [1, 1]} : vector<8x512xf32> to vector<8x128xf32>
    %249 = arith.negf %248 : vector<8x128xf32>
    %250 = math.exp %249 : vector<8x128xf32>
    %cst_84 = arith.constant 1.000000e+00 : f32
    %251 = vector.broadcast %cst_84 : f32 to vector<8x128xf32>
    %252 = arith.addf %251, %250 : vector<8x128xf32>
    %253 = arith.divf %251, %252 : vector<8x128xf32>
    %254 = vector.extract_strided_slice %247 {offsets = [0, 128], sizes = [8, 128], strides = [1, 1]} : vector<8x512xf32> to vector<8x128xf32>
    %255 = arith.negf %254 : vector<8x128xf32>
    %256 = math.exp %255 : vector<8x128xf32>
    %cst_85 = arith.constant 1.000000e+00 : f32
    %257 = vector.broadcast %cst_85 : f32 to vector<8x128xf32>
    %258 = arith.addf %257, %256 : vector<8x128xf32>
    %259 = arith.divf %257, %258 : vector<8x128xf32>
    %260 = vector.extract_strided_slice %247 {offsets = [0, 256], sizes = [8, 128], strides = [1, 1]} : vector<8x512xf32> to vector<8x128xf32>
    %261 = math.tanh %260 : vector<8x128xf32>
    %262 = vector.extract_strided_slice %247 {offsets = [0, 384], sizes = [8, 128], strides = [1, 1]} : vector<8x512xf32> to vector<8x128xf32>
    %263 = arith.negf %262 : vector<8x128xf32>
    %264 = math.exp %263 : vector<8x128xf32>
    %cst_86 = arith.constant 1.000000e+00 : f32
    %265 = vector.broadcast %cst_86 : f32 to vector<8x128xf32>
    %266 = arith.addf %265, %264 : vector<8x128xf32>
    %267 = arith.divf %265, %266 : vector<8x128xf32>
    %268 = arith.mulf %259, %205 : vector<8x128xf32>
    %269 = arith.mulf %253, %261 : vector<8x128xf32>
    %270 = arith.addf %268, %269 : vector<8x128xf32>
    %271 = math.tanh %270 : vector<8x128xf32>
    %272 = arith.mulf %267, %271 : vector<8x128xf32>
    %c4_i32 = arith.constant 4 : i32
    %c8_i32_87 = arith.constant 8 : i32
    %273 = arith.muli %c4_i32, %c8_i32_87 : i32
    %274 = tpu.assume_multiple %273, 8 : i32
    %275 = arith.index_cast %274 : i32 to index
    %c0_88 = arith.constant 0 : index
    %276 = vector.load %arg10[%275, %c0_88] : memref<64x512xf32, #tpu.memory_space<vmem>>, vector<8x512xf32>
    %c0_89 = arith.constant 0 : index
    %c0_90 = arith.constant 0 : index
    %277 = vector.load %arg2[%c0_89, %c0_90] : memref<128x512xf32, #tpu.memory_space<vmem>>, vector<128x512xf32>
    %cst_91 = arith.constant dense<0.000000e+00> : vector<8x512xf32>
    %278 = tpu.matmul %239, %277, %cst_91 {dimension_numbers = #tpu.dot_dimension_numbers<[1], [0], [0], [1], [0, 0, 1, 1], [], []>} : vector<8x128xf32>, vector<128x512xf32>, vector<8x512xf32> -> vector<8x512xf32>
    %279 = arith.addf %276, %278 : vector<8x512xf32>
    %280 = vector.extract_strided_slice %279 {offsets = [0, 0], sizes = [8, 128], strides = [1, 1]} : vector<8x512xf32> to vector<8x128xf32>
    %281 = arith.negf %280 : vector<8x128xf32>
    %282 = math.exp %281 : vector<8x128xf32>
    %cst_92 = arith.constant 1.000000e+00 : f32
    %283 = vector.broadcast %cst_92 : f32 to vector<8x128xf32>
    %284 = arith.addf %283, %282 : vector<8x128xf32>
    %285 = arith.divf %283, %284 : vector<8x128xf32>
    %286 = vector.extract_strided_slice %279 {offsets = [0, 128], sizes = [8, 128], strides = [1, 1]} : vector<8x512xf32> to vector<8x128xf32>
    %287 = arith.negf %286 : vector<8x128xf32>
    %288 = math.exp %287 : vector<8x128xf32>
    %cst_93 = arith.constant 1.000000e+00 : f32
    %289 = vector.broadcast %cst_93 : f32 to vector<8x128xf32>
    %290 = arith.addf %289, %288 : vector<8x128xf32>
    %291 = arith.divf %289, %290 : vector<8x128xf32>
    %292 = vector.extract_strided_slice %279 {offsets = [0, 256], sizes = [8, 128], strides = [1, 1]} : vector<8x512xf32> to vector<8x128xf32>
    %293 = math.tanh %292 : vector<8x128xf32>
    %294 = vector.extract_strided_slice %279 {offsets = [0, 384], sizes = [8, 128], strides = [1, 1]} : vector<8x512xf32> to vector<8x128xf32>
    %295 = arith.negf %294 : vector<8x128xf32>
    %296 = math.exp %295 : vector<8x128xf32>
    %cst_94 = arith.constant 1.000000e+00 : f32
    %297 = vector.broadcast %cst_94 : f32 to vector<8x128xf32>
    %298 = arith.addf %297, %296 : vector<8x128xf32>
    %299 = arith.divf %297, %298 : vector<8x128xf32>
    %300 = arith.mulf %291, %237 : vector<8x128xf32>
    %301 = arith.mulf %285, %293 : vector<8x128xf32>
    %302 = arith.addf %300, %301 : vector<8x128xf32>
    %303 = math.tanh %302 : vector<8x128xf32>
    %304 = arith.mulf %299, %303 : vector<8x128xf32>
    %c0_95 = arith.constant 0 : index
    %c0_96 = arith.constant 0 : index
    %c0_97 = arith.constant 0 : index
    %305 = vector.load %arg4[%c0_95, %c0_96, %c0_97] : memref<1x128x512xf32, #tpu.memory_space<vmem>>, vector<1x128x512xf32>
    %306 = vector.shape_cast %305 : vector<1x128x512xf32> to vector<128x512xf32>
    %cst_98 = arith.constant dense<0.000000e+00> : vector<8x512xf32>
    %307 = tpu.matmul %304, %306, %cst_98 {dimension_numbers = #tpu.dot_dimension_numbers<[1], [0], [0], [1], [0, 0, 1, 1], [], []>} : vector<8x128xf32>, vector<128x512xf32>, vector<8x512xf32> -> vector<8x512xf32>
    %c0_99 = arith.constant 0 : index
    %c0_100 = arith.constant 0 : index
    %c0_101 = arith.constant 0 : index
    %308 = vector.load %arg5[%c0_99, %c0_100, %c0_101] : memref<1x128x512xf32, #tpu.memory_space<vmem>>, vector<1x128x512xf32>
    %309 = vector.shape_cast %308 : vector<1x128x512xf32> to vector<128x512xf32>
    %cst_102 = arith.constant dense<0.000000e+00> : vector<8x512xf32>
    %310 = tpu.matmul %272, %309, %cst_102 {dimension_numbers = #tpu.dot_dimension_numbers<[1], [0], [0], [1], [0, 0, 1, 1], [], []>} : vector<8x128xf32>, vector<128x512xf32>, vector<8x512xf32> -> vector<8x512xf32>
    %311 = arith.addf %307, %310 : vector<8x512xf32>
    %312 = arith.addf %311, %10 : vector<8x512xf32>
    %313 = vector.extract_strided_slice %312 {offsets = [0, 0], sizes = [8, 128], strides = [1, 1]} : vector<8x512xf32> to vector<8x128xf32>
    %314 = arith.negf %313 : vector<8x128xf32>
    %315 = math.exp %314 : vector<8x128xf32>
    %cst_103 = arith.constant 1.000000e+00 : f32
    %316 = vector.broadcast %cst_103 : f32 to vector<8x128xf32>
    %317 = arith.addf %316, %315 : vector<8x128xf32>
    %318 = arith.divf %316, %317 : vector<8x128xf32>
    %319 = vector.extract_strided_slice %312 {offsets = [0, 128], sizes = [8, 128], strides = [1, 1]} : vector<8x512xf32> to vector<8x128xf32>
    %320 = arith.negf %319 : vector<8x128xf32>
    %321 = math.exp %320 : vector<8x128xf32>
    %cst_104 = arith.constant 1.000000e+00 : f32
    %322 = vector.broadcast %cst_104 : f32 to vector<8x128xf32>
    %323 = arith.addf %322, %321 : vector<8x128xf32>
    %324 = arith.divf %322, %323 : vector<8x128xf32>
    %325 = vector.extract_strided_slice %312 {offsets = [0, 256], sizes = [8, 128], strides = [1, 1]} : vector<8x512xf32> to vector<8x128xf32>
    %326 = math.tanh %325 : vector<8x128xf32>
    %327 = vector.extract_strided_slice %312 {offsets = [0, 384], sizes = [8, 128], strides = [1, 1]} : vector<8x512xf32> to vector<8x128xf32>
    %328 = arith.negf %327 : vector<8x128xf32>
    %329 = math.exp %328 : vector<8x128xf32>
    %cst_105 = arith.constant 1.000000e+00 : f32
    %330 = vector.broadcast %cst_105 : f32 to vector<8x128xf32>
    %331 = arith.addf %330, %329 : vector<8x128xf32>
    %332 = arith.divf %330, %331 : vector<8x128xf32>
    %333 = arith.mulf %324, %270 : vector<8x128xf32>
    %334 = arith.mulf %318, %326 : vector<8x128xf32>
    %335 = arith.addf %333, %334 : vector<8x128xf32>
    %336 = math.tanh %335 : vector<8x128xf32>
    %337 = arith.mulf %332, %336 : vector<8x128xf32>
    %c5_i32 = arith.constant 5 : i32
    %c8_i32_106 = arith.constant 8 : i32
    %338 = arith.muli %c5_i32, %c8_i32_106 : i32
    %339 = tpu.assume_multiple %338, 8 : i32
    %340 = arith.index_cast %339 : i32 to index
    %c0_107 = arith.constant 0 : index
    %341 = vector.load %arg10[%340, %c0_107] : memref<64x512xf32, #tpu.memory_space<vmem>>, vector<8x512xf32>
    %c0_108 = arith.constant 0 : index
    %c0_109 = arith.constant 0 : index
    %342 = vector.load %arg2[%c0_108, %c0_109] : memref<128x512xf32, #tpu.memory_space<vmem>>, vector<128x512xf32>
    %cst_110 = arith.constant dense<0.000000e+00> : vector<8x512xf32>
    %343 = tpu.matmul %304, %342, %cst_110 {dimension_numbers = #tpu.dot_dimension_numbers<[1], [0], [0], [1], [0, 0, 1, 1], [], []>} : vector<8x128xf32>, vector<128x512xf32>, vector<8x512xf32> -> vector<8x512xf32>
    %344 = arith.addf %341, %343 : vector<8x512xf32>
    %345 = vector.extract_strided_slice %344 {offsets = [0, 0], sizes = [8, 128], strides = [1, 1]} : vector<8x512xf32> to vector<8x128xf32>
    %346 = arith.negf %345 : vector<8x128xf32>
    %347 = math.exp %346 : vector<8x128xf32>
    %cst_111 = arith.constant 1.000000e+00 : f32
    %348 = vector.broadcast %cst_111 : f32 to vector<8x128xf32>
    %349 = arith.addf %348, %347 : vector<8x128xf32>
    %350 = arith.divf %348, %349 : vector<8x128xf32>
    %351 = vector.extract_strided_slice %344 {offsets = [0, 128], sizes = [8, 128], strides = [1, 1]} : vector<8x512xf32> to vector<8x128xf32>
    %352 = arith.negf %351 : vector<8x128xf32>
    %353 = math.exp %352 : vector<8x128xf32>
    %cst_112 = arith.constant 1.000000e+00 : f32
    %354 = vector.broadcast %cst_112 : f32 to vector<8x128xf32>
    %355 = arith.addf %354, %353 : vector<8x128xf32>
    %356 = arith.divf %354, %355 : vector<8x128xf32>
    %357 = vector.extract_strided_slice %344 {offsets = [0, 256], sizes = [8, 128], strides = [1, 1]} : vector<8x512xf32> to vector<8x128xf32>
    %358 = math.tanh %357 : vector<8x128xf32>
    %359 = vector.extract_strided_slice %344 {offsets = [0, 384], sizes = [8, 128], strides = [1, 1]} : vector<8x512xf32> to vector<8x128xf32>
    %360 = arith.negf %359 : vector<8x128xf32>
    %361 = math.exp %360 : vector<8x128xf32>
    %cst_113 = arith.constant 1.000000e+00 : f32
    %362 = vector.broadcast %cst_113 : f32 to vector<8x128xf32>
    %363 = arith.addf %362, %361 : vector<8x128xf32>
    %364 = arith.divf %362, %363 : vector<8x128xf32>
    %365 = arith.mulf %356, %302 : vector<8x128xf32>
    %366 = arith.mulf %350, %358 : vector<8x128xf32>
    %367 = arith.addf %365, %366 : vector<8x128xf32>
    %368 = math.tanh %367 : vector<8x128xf32>
    %369 = arith.mulf %364, %368 : vector<8x128xf32>
    %c0_114 = arith.constant 0 : index
    %c0_115 = arith.constant 0 : index
    %c0_116 = arith.constant 0 : index
    %370 = vector.load %arg4[%c0_114, %c0_115, %c0_116] : memref<1x128x512xf32, #tpu.memory_space<vmem>>, vector<1x128x512xf32>
    %371 = vector.shape_cast %370 : vector<1x128x512xf32> to vector<128x512xf32>
    %cst_117 = arith.constant dense<0.000000e+00> : vector<8x512xf32>
    %372 = tpu.matmul %369, %371, %cst_117 {dimension_numbers = #tpu.dot_dimension_numbers<[1], [0], [0], [1], [0, 0, 1, 1], [], []>} : vector<8x128xf32>, vector<128x512xf32>, vector<8x512xf32> -> vector<8x512xf32>
    %c0_118 = arith.constant 0 : index
    %c0_119 = arith.constant 0 : index
    %c0_120 = arith.constant 0 : index
    %373 = vector.load %arg5[%c0_118, %c0_119, %c0_120] : memref<1x128x512xf32, #tpu.memory_space<vmem>>, vector<1x128x512xf32>
    %374 = vector.shape_cast %373 : vector<1x128x512xf32> to vector<128x512xf32>
    %cst_121 = arith.constant dense<0.000000e+00> : vector<8x512xf32>
    %375 = tpu.matmul %337, %374, %cst_121 {dimension_numbers = #tpu.dot_dimension_numbers<[1], [0], [0], [1], [0, 0, 1, 1], [], []>} : vector<8x128xf32>, vector<128x512xf32>, vector<8x512xf32> -> vector<8x512xf32>
    %376 = arith.addf %372, %375 : vector<8x512xf32>
    %377 = arith.addf %376, %10 : vector<8x512xf32>
    %378 = vector.extract_strided_slice %377 {offsets = [0, 0], sizes = [8, 128], strides = [1, 1]} : vector<8x512xf32> to vector<8x128xf32>
    %379 = arith.negf %378 : vector<8x128xf32>
    %380 = math.exp %379 : vector<8x128xf32>
    %cst_122 = arith.constant 1.000000e+00 : f32
    %381 = vector.broadcast %cst_122 : f32 to vector<8x128xf32>
    %382 = arith.addf %381, %380 : vector<8x128xf32>
    %383 = arith.divf %381, %382 : vector<8x128xf32>
    %384 = vector.extract_strided_slice %377 {offsets = [0, 128], sizes = [8, 128], strides = [1, 1]} : vector<8x512xf32> to vector<8x128xf32>
    %385 = arith.negf %384 : vector<8x128xf32>
    %386 = math.exp %385 : vector<8x128xf32>
    %cst_123 = arith.constant 1.000000e+00 : f32
    %387 = vector.broadcast %cst_123 : f32 to vector<8x128xf32>
    %388 = arith.addf %387, %386 : vector<8x128xf32>
    %389 = arith.divf %387, %388 : vector<8x128xf32>
    %390 = vector.extract_strided_slice %377 {offsets = [0, 256], sizes = [8, 128], strides = [1, 1]} : vector<8x512xf32> to vector<8x128xf32>
    %391 = math.tanh %390 : vector<8x128xf32>
    %392 = vector.extract_strided_slice %377 {offsets = [0, 384], sizes = [8, 128], strides = [1, 1]} : vector<8x512xf32> to vector<8x128xf32>
    %393 = arith.negf %392 : vector<8x128xf32>
    %394 = math.exp %393 : vector<8x128xf32>
    %cst_124 = arith.constant 1.000000e+00 : f32
    %395 = vector.broadcast %cst_124 : f32 to vector<8x128xf32>
    %396 = arith.addf %395, %394 : vector<8x128xf32>
    %397 = arith.divf %395, %396 : vector<8x128xf32>
    %398 = arith.mulf %389, %335 : vector<8x128xf32>
    %399 = arith.mulf %383, %391 : vector<8x128xf32>
    %400 = arith.addf %398, %399 : vector<8x128xf32>
    %401 = math.tanh %400 : vector<8x128xf32>
    %402 = arith.mulf %397, %401 : vector<8x128xf32>
    %c6_i32 = arith.constant 6 : i32
    %c8_i32_125 = arith.constant 8 : i32
    %403 = arith.muli %c6_i32, %c8_i32_125 : i32
    %404 = tpu.assume_multiple %403, 8 : i32
    %405 = arith.index_cast %404 : i32 to index
    %c0_126 = arith.constant 0 : index
    %406 = vector.load %arg10[%405, %c0_126] : memref<64x512xf32, #tpu.memory_space<vmem>>, vector<8x512xf32>
    %c0_127 = arith.constant 0 : index
    %c0_128 = arith.constant 0 : index
    %407 = vector.load %arg2[%c0_127, %c0_128] : memref<128x512xf32, #tpu.memory_space<vmem>>, vector<128x512xf32>
    %cst_129 = arith.constant dense<0.000000e+00> : vector<8x512xf32>
    %408 = tpu.matmul %369, %407, %cst_129 {dimension_numbers = #tpu.dot_dimension_numbers<[1], [0], [0], [1], [0, 0, 1, 1], [], []>} : vector<8x128xf32>, vector<128x512xf32>, vector<8x512xf32> -> vector<8x512xf32>
    %409 = arith.addf %406, %408 : vector<8x512xf32>
    %410 = vector.extract_strided_slice %409 {offsets = [0, 0], sizes = [8, 128], strides = [1, 1]} : vector<8x512xf32> to vector<8x128xf32>
    %411 = arith.negf %410 : vector<8x128xf32>
    %412 = math.exp %411 : vector<8x128xf32>
    %cst_130 = arith.constant 1.000000e+00 : f32
    %413 = vector.broadcast %cst_130 : f32 to vector<8x128xf32>
    %414 = arith.addf %413, %412 : vector<8x128xf32>
    %415 = arith.divf %413, %414 : vector<8x128xf32>
    %416 = vector.extract_strided_slice %409 {offsets = [0, 128], sizes = [8, 128], strides = [1, 1]} : vector<8x512xf32> to vector<8x128xf32>
    %417 = arith.negf %416 : vector<8x128xf32>
    %418 = math.exp %417 : vector<8x128xf32>
    %cst_131 = arith.constant 1.000000e+00 : f32
    %419 = vector.broadcast %cst_131 : f32 to vector<8x128xf32>
    %420 = arith.addf %419, %418 : vector<8x128xf32>
    %421 = arith.divf %419, %420 : vector<8x128xf32>
    %422 = vector.extract_strided_slice %409 {offsets = [0, 256], sizes = [8, 128], strides = [1, 1]} : vector<8x512xf32> to vector<8x128xf32>
    %423 = math.tanh %422 : vector<8x128xf32>
    %424 = vector.extract_strided_slice %409 {offsets = [0, 384], sizes = [8, 128], strides = [1, 1]} : vector<8x512xf32> to vector<8x128xf32>
    %425 = arith.negf %424 : vector<8x128xf32>
    %426 = math.exp %425 : vector<8x128xf32>
    %cst_132 = arith.constant 1.000000e+00 : f32
    %427 = vector.broadcast %cst_132 : f32 to vector<8x128xf32>
    %428 = arith.addf %427, %426 : vector<8x128xf32>
    %429 = arith.divf %427, %428 : vector<8x128xf32>
    %430 = arith.mulf %421, %367 : vector<8x128xf32>
    %431 = arith.mulf %415, %423 : vector<8x128xf32>
    %432 = arith.addf %430, %431 : vector<8x128xf32>
    %433 = math.tanh %432 : vector<8x128xf32>
    %434 = arith.mulf %429, %433 : vector<8x128xf32>
    %c0_133 = arith.constant 0 : index
    %c0_134 = arith.constant 0 : index
    %c0_135 = arith.constant 0 : index
    %435 = vector.load %arg4[%c0_133, %c0_134, %c0_135] : memref<1x128x512xf32, #tpu.memory_space<vmem>>, vector<1x128x512xf32>
    %436 = vector.shape_cast %435 : vector<1x128x512xf32> to vector<128x512xf32>
    %cst_136 = arith.constant dense<0.000000e+00> : vector<8x512xf32>
    %437 = tpu.matmul %434, %436, %cst_136 {dimension_numbers = #tpu.dot_dimension_numbers<[1], [0], [0], [1], [0, 0, 1, 1], [], []>} : vector<8x128xf32>, vector<128x512xf32>, vector<8x512xf32> -> vector<8x512xf32>
    %c0_137 = arith.constant 0 : index
    %c0_138 = arith.constant 0 : index
    %c0_139 = arith.constant 0 : index
    %438 = vector.load %arg5[%c0_137, %c0_138, %c0_139] : memref<1x128x512xf32, #tpu.memory_space<vmem>>, vector<1x128x512xf32>
    %439 = vector.shape_cast %438 : vector<1x128x512xf32> to vector<128x512xf32>
    %cst_140 = arith.constant dense<0.000000e+00> : vector<8x512xf32>
    %440 = tpu.matmul %402, %439, %cst_140 {dimension_numbers = #tpu.dot_dimension_numbers<[1], [0], [0], [1], [0, 0, 1, 1], [], []>} : vector<8x128xf32>, vector<128x512xf32>, vector<8x512xf32> -> vector<8x512xf32>
    %441 = arith.addf %437, %440 : vector<8x512xf32>
    %442 = arith.addf %441, %10 : vector<8x512xf32>
    %443 = vector.extract_strided_slice %442 {offsets = [0, 0], sizes = [8, 128], strides = [1, 1]} : vector<8x512xf32> to vector<8x128xf32>
    %444 = arith.negf %443 : vector<8x128xf32>
    %445 = math.exp %444 : vector<8x128xf32>
    %cst_141 = arith.constant 1.000000e+00 : f32
    %446 = vector.broadcast %cst_141 : f32 to vector<8x128xf32>
    %447 = arith.addf %446, %445 : vector<8x128xf32>
    %448 = arith.divf %446, %447 : vector<8x128xf32>
    %449 = vector.extract_strided_slice %442 {offsets = [0, 128], sizes = [8, 128], strides = [1, 1]} : vector<8x512xf32> to vector<8x128xf32>
    %450 = arith.negf %449 : vector<8x128xf32>
    %451 = math.exp %450 : vector<8x128xf32>
    %cst_142 = arith.constant 1.000000e+00 : f32
    %452 = vector.broadcast %cst_142 : f32 to vector<8x128xf32>
    %453 = arith.addf %452, %451 : vector<8x128xf32>
    %454 = arith.divf %452, %453 : vector<8x128xf32>
    %455 = vector.extract_strided_slice %442 {offsets = [0, 256], sizes = [8, 128], strides = [1, 1]} : vector<8x512xf32> to vector<8x128xf32>
    %456 = math.tanh %455 : vector<8x128xf32>
    %457 = vector.extract_strided_slice %442 {offsets = [0, 384], sizes = [8, 128], strides = [1, 1]} : vector<8x512xf32> to vector<8x128xf32>
    %458 = arith.negf %457 : vector<8x128xf32>
    %459 = math.exp %458 : vector<8x128xf32>
    %cst_143 = arith.constant 1.000000e+00 : f32
    %460 = vector.broadcast %cst_143 : f32 to vector<8x128xf32>
    %461 = arith.addf %460, %459 : vector<8x128xf32>
    %462 = arith.divf %460, %461 : vector<8x128xf32>
    %463 = arith.mulf %454, %400 : vector<8x128xf32>
    %464 = arith.mulf %448, %456 : vector<8x128xf32>
    %465 = arith.addf %463, %464 : vector<8x128xf32>
    %466 = math.tanh %465 : vector<8x128xf32>
    %467 = arith.mulf %462, %466 : vector<8x128xf32>
    %c7_i32 = arith.constant 7 : i32
    %c8_i32_144 = arith.constant 8 : i32
    %468 = arith.muli %c7_i32, %c8_i32_144 : i32
    %469 = tpu.assume_multiple %468, 8 : i32
    %470 = arith.index_cast %469 : i32 to index
    %c0_145 = arith.constant 0 : index
    %471 = vector.load %arg10[%470, %c0_145] : memref<64x512xf32, #tpu.memory_space<vmem>>, vector<8x512xf32>
    %c0_146 = arith.constant 0 : index
    %c0_147 = arith.constant 0 : index
    %472 = vector.load %arg2[%c0_146, %c0_147] : memref<128x512xf32, #tpu.memory_space<vmem>>, vector<128x512xf32>
    %cst_148 = arith.constant dense<0.000000e+00> : vector<8x512xf32>
    %473 = tpu.matmul %434, %472, %cst_148 {dimension_numbers = #tpu.dot_dimension_numbers<[1], [0], [0], [1], [0, 0, 1, 1], [], []>} : vector<8x128xf32>, vector<128x512xf32>, vector<8x512xf32> -> vector<8x512xf32>
    %474 = arith.addf %471, %473 : vector<8x512xf32>
    %475 = vector.extract_strided_slice %474 {offsets = [0, 0], sizes = [8, 128], strides = [1, 1]} : vector<8x512xf32> to vector<8x128xf32>
    %476 = arith.negf %475 : vector<8x128xf32>
    %477 = math.exp %476 : vector<8x128xf32>
    %cst_149 = arith.constant 1.000000e+00 : f32
    %478 = vector.broadcast %cst_149 : f32 to vector<8x128xf32>
    %479 = arith.addf %478, %477 : vector<8x128xf32>
    %480 = arith.divf %478, %479 : vector<8x128xf32>
    %481 = vector.extract_strided_slice %474 {offsets = [0, 128], sizes = [8, 128], strides = [1, 1]} : vector<8x512xf32> to vector<8x128xf32>
    %482 = arith.negf %481 : vector<8x128xf32>
    %483 = math.exp %482 : vector<8x128xf32>
    %cst_150 = arith.constant 1.000000e+00 : f32
    %484 = vector.broadcast %cst_150 : f32 to vector<8x128xf32>
    %485 = arith.addf %484, %483 : vector<8x128xf32>
    %486 = arith.divf %484, %485 : vector<8x128xf32>
    %487 = vector.extract_strided_slice %474 {offsets = [0, 256], sizes = [8, 128], strides = [1, 1]} : vector<8x512xf32> to vector<8x128xf32>
    %488 = math.tanh %487 : vector<8x128xf32>
    %489 = vector.extract_strided_slice %474 {offsets = [0, 384], sizes = [8, 128], strides = [1, 1]} : vector<8x512xf32> to vector<8x128xf32>
    %490 = arith.negf %489 : vector<8x128xf32>
    %491 = math.exp %490 : vector<8x128xf32>
    %cst_151 = arith.constant 1.000000e+00 : f32
    %492 = vector.broadcast %cst_151 : f32 to vector<8x128xf32>
    %493 = arith.addf %492, %491 : vector<8x128xf32>
    %494 = arith.divf %492, %493 : vector<8x128xf32>
    %495 = arith.mulf %486, %432 : vector<8x128xf32>
    %496 = arith.mulf %480, %488 : vector<8x128xf32>
    %497 = arith.addf %495, %496 : vector<8x128xf32>
    %498 = math.tanh %497 : vector<8x128xf32>
    %499 = arith.mulf %494, %498 : vector<8x128xf32>
    %c0_152 = arith.constant 0 : index
    %c0_153 = arith.constant 0 : index
    %c0_154 = arith.constant 0 : index
    %500 = vector.load %arg4[%c0_152, %c0_153, %c0_154] : memref<1x128x512xf32, #tpu.memory_space<vmem>>, vector<1x128x512xf32>
    %501 = vector.shape_cast %500 : vector<1x128x512xf32> to vector<128x512xf32>
    %cst_155 = arith.constant dense<0.000000e+00> : vector<8x512xf32>
    %502 = tpu.matmul %499, %501, %cst_155 {dimension_numbers = #tpu.dot_dimension_numbers<[1], [0], [0], [1], [0, 0, 1, 1], [], []>} : vector<8x128xf32>, vector<128x512xf32>, vector<8x512xf32> -> vector<8x512xf32>
    %c0_156 = arith.constant 0 : index
    %c0_157 = arith.constant 0 : index
    %c0_158 = arith.constant 0 : index
    %503 = vector.load %arg5[%c0_156, %c0_157, %c0_158] : memref<1x128x512xf32, #tpu.memory_space<vmem>>, vector<1x128x512xf32>
    %504 = vector.shape_cast %503 : vector<1x128x512xf32> to vector<128x512xf32>
    %cst_159 = arith.constant dense<0.000000e+00> : vector<8x512xf32>
    %505 = tpu.matmul %467, %504, %cst_159 {dimension_numbers = #tpu.dot_dimension_numbers<[1], [0], [0], [1], [0, 0, 1, 1], [], []>} : vector<8x128xf32>, vector<128x512xf32>, vector<8x512xf32> -> vector<8x512xf32>
    %506 = arith.addf %502, %505 : vector<8x512xf32>
    %507 = arith.addf %506, %10 : vector<8x512xf32>
    %508 = vector.extract_strided_slice %507 {offsets = [0, 0], sizes = [8, 128], strides = [1, 1]} : vector<8x512xf32> to vector<8x128xf32>
    %509 = arith.negf %508 : vector<8x128xf32>
    %510 = math.exp %509 : vector<8x128xf32>
    %cst_160 = arith.constant 1.000000e+00 : f32
    %511 = vector.broadcast %cst_160 : f32 to vector<8x128xf32>
    %512 = arith.addf %511, %510 : vector<8x128xf32>
    %513 = arith.divf %511, %512 : vector<8x128xf32>
    %514 = vector.extract_strided_slice %507 {offsets = [0, 128], sizes = [8, 128], strides = [1, 1]} : vector<8x512xf32> to vector<8x128xf32>
    %515 = arith.negf %514 : vector<8x128xf32>
    %516 = math.exp %515 : vector<8x128xf32>
    %cst_161 = arith.constant 1.000000e+00 : f32
    %517 = vector.broadcast %cst_161 : f32 to vector<8x128xf32>
    %518 = arith.addf %517, %516 : vector<8x128xf32>
    %519 = arith.divf %517, %518 : vector<8x128xf32>
    %520 = vector.extract_strided_slice %507 {offsets = [0, 256], sizes = [8, 128], strides = [1, 1]} : vector<8x512xf32> to vector<8x128xf32>
    %521 = math.tanh %520 : vector<8x128xf32>
    %522 = vector.extract_strided_slice %507 {offsets = [0, 384], sizes = [8, 128], strides = [1, 1]} : vector<8x512xf32> to vector<8x128xf32>
    %523 = arith.negf %522 : vector<8x128xf32>
    %524 = math.exp %523 : vector<8x128xf32>
    %cst_162 = arith.constant 1.000000e+00 : f32
    %525 = vector.broadcast %cst_162 : f32 to vector<8x128xf32>
    %526 = arith.addf %525, %524 : vector<8x128xf32>
    %527 = arith.divf %525, %526 : vector<8x128xf32>
    %528 = arith.mulf %519, %465 : vector<8x128xf32>
    %529 = arith.mulf %513, %521 : vector<8x128xf32>
    %530 = arith.addf %528, %529 : vector<8x128xf32>
    %531 = math.tanh %530 : vector<8x128xf32>
    %532 = arith.mulf %527, %531 : vector<8x128xf32>
    %c8_i32_163 = arith.constant 8 : i32
    %c0_164 = arith.constant 0 : index
    %c0_165 = arith.constant 0 : index
    %533 = vector.load %arg7[%c0_164, %c0_165] : memref<128x128xf32, #tpu.memory_space<vmem>>, vector<128x128xf32>
    %cst_166 = arith.constant dense<0.000000e+00> : vector<8x128xf32>
    %534 = tpu.matmul %532, %533, %cst_166 {dimension_numbers = #tpu.dot_dimension_numbers<[1], [0], [0], [1], [0, 0, 1, 1], [], []>} : vector<8x128xf32>, vector<128x128xf32>, vector<8x128xf32> -> vector<8x128xf32>
    %c0_167 = arith.constant 0 : index
    %c0_168 = arith.constant 0 : index
    %535 = vector.load %arg8[%c0_167, %c0_168] : memref<1x128xf32, #tpu.memory_space<vmem>>, vector<1x128xf32>
    %536 = vector.broadcast %535 : vector<1x128xf32> to vector<8x128xf32>
    %537 = arith.addf %534, %536 : vector<8x128xf32>
    %c0_169 = arith.constant 0 : index
    %c0_170 = arith.constant 0 : index
    %538 = vector.load %arg9[%c0_169, %c0_170] : memref<8x128xf32, #tpu.memory_space<vmem>>, vector<8x128xf32>
    tpu.vector_store %arg9[%c0_169, %c0_170], %537 {strides = array<i32>} : memref<8x128xf32, #tpu.memory_space<vmem>>, vector<8x128xf32>,
    return
  }
}

</mosaic_0001>

<bundles_post_ra>
// kernel: tpu_custom_call.1
= control target key start
LH: loop header
LB: loop body
LE: loop exit
PB: predicated region body
PF: predicated region fallthrough
CT: control target
= control target key end

     0   :  { %14 = vsyncpa [#allocation4], 0  ;;  %s9292_s0 = inlined_call_operand.hbm [shape: f32[64,128], index: 0, kind: input, shape index: {}]   ;;  %s9293_s1 = inlined_call_operand.hbm [shape: f32[128,512], index: 1, kind: input, shape index: {}]   ;;  %s9294_s2 = inlined_call_operand.hbm [shape: f32[128,512], index: 2, kind: input, shape index: {}]   ;;  %s9295_s3 = inlined_call_operand.vmem [shape: f32[1,512], index: 3, kind: input, shape index: {}]   ;;  %s9296_s4 = inlined_call_operand.hbm [shape: f32[1,128,512], index: 4, kind: input, shape index: {}]   ;;  %s9297_s5 = inlined_call_operand.hbm [shape: f32[1,128,512], index: 5, kind: input, shape index: {}]   ;;  %s9298_s6 = inlined_call_operand.vmem [shape: f32[1,1,512], index: 6, kind: input, shape index: {}]   ;;  %s9299_s7 = inlined_call_operand.hbm [shape: f32[128,128], index: 7, kind: input, shape index: {}]   ;;  %s9300_s8 = inlined_call_operand.vmem [shape: f32[1,128], index: 8, kind: input, shape index: {}]   ;;  %s9301_s9 = inlined_call_operand.hbm [shape: f32[8,128], index: 9, kind: output, shape index: {}]  }
   0x1   :  { %15 = vsyncpa [#allocation7], 0 }
   0x2   :  { %16 = vsyncpa [#allocation10], 0 }
   0x3   :  { %17 = vsyncpa [#allocation13], 0 }
   0x4   :  { %18 = vsyncpa [#allocation5], 0  ;;  %s5828_s30 = smov [#allocation6]  }
   0x5   :  { %s36_s10 = sshll.u32 %s5828_s30, 4  ;;  %s37_s10 = int_to_ptr.vmem [resolvable:$true] %s36_s10 }
   0x6   :  { %s5686_s11 = scalar_lea.vmem %s37_s10, 8192  ;;  %p5691_p1 = scmp.lt.s32.totalorder %s37_s10, %s37_s10 }
   0x7   :  { %p5687_p0 = scmp.ne.s32.totalorder %s37_s10, %s5686_s11  ;;  %p5692_p2 = scmp.lt.s32.totalorder %s5686_s11, %s5686_s11 }
   0x9   :  { %p5693_p3 = por %p5692_p2, %p5691_p1 }
   0xb   :  { %p5694_p4 = pnand %p5693_p3, %p5687_p0 }
   0xd   :  { %5697 = shalt.err (!%p5694_p4)
}
   0xe   :  { %s5829_s12 = smov 512   ;;  %s5830_s13 = smov 32  }
   0xf   :  { %42 = dma.hbm_to_vmem [thread:$0]  %s9293_s1, 8192, %s37_s10, [#allocation7], %s5829_s12, %s5829_s12, %s5830_s13  }
  0x10   :  { %s5831_s16 = smov [#allocation9]   ;;  %s5832_s18 = smov [#allocation3]  }
  0x11   :  { %s62_s17 = sshll.u32 %s5831_s16, 4  ;;  %s24_s19 = sshll.u32 %s5832_s18, 4  ;;  %s63_s17 = int_to_ptr.vmem [resolvable:$true] %s62_s17  ;;  %s25_s19 = int_to_ptr.vmem [resolvable:$true] %s24_s19 }
  0x12   :  { %s5706_s20 = scalar_lea.vmem %s63_s17, 8192  ;;  %p5711_p6 = scmp.lt.s32.totalorder %s63_s17, %s63_s17 }
  0x13   :  { %p5707_p5 = scmp.ne.s32.totalorder %s63_s17, %s5706_s20  ;;  %p5712_p7 = scmp.lt.s32.totalorder %s5706_s20, %s5706_s20 }
  0x15   :  { %p5713_p8 = por %p5712_p7, %p5711_p6 }
  0x17   :  { %p5714_p9 = pnand %p5713_p8, %p5707_p5 }
  0x19   :  { %5717 = shalt.err (!%p5714_p9)
}
  0x1a   :  { %68 = dma.hbm_to_vmem [thread:$0]  %s9296_s4, 8192, %s63_s17, [#allocation10], %s5829_s12, %s5829_s12, %s5830_s13  }
  0x1b   :  { %s5726_s1 = scalar_lea.vmem %s25_s19, 1024  ;;  %p5731_p11 = scmp.lt.s32.totalorder %s25_s19, %s25_s19 }
  0x1c   :  { %p5727_p10 = scmp.ne.s32.totalorder %s25_s19, %s5726_s1  ;;  %p5732_p12 = scmp.lt.s32.totalorder %s5726_s1, %s5726_s1 }
  0x1e   :  { %p5733_p13 = por %p5732_p12, %p5731_p11 }
  0x20   :  { %p5734_p0 = pnand %p5733_p13, %p5727_p10 }
  0x22   :  { %5737 = shalt.err (!%p5734_p0)
}
  0x23   :  { %s5833_s23 = smov 128   ;;  %s5834_s24 = smov 8  }
  0x24   :  { %30 = dma.hbm_to_vmem [thread:$0]  %s9292_s0, 1024, %s25_s19, [#allocation4], %s5833_s23, %s5833_s23, %s5834_s24  }
  0x25   :  { %s5835_s27 = smov [#allocation8]   ;;  %s5836_s4 = smov [#allocation11]  }
  0x26   :  { %s48_s28 = sshll.u32 %s5835_s27, 4  ;;  %s74_s29 = sshll.u32 %s5836_s4, 4  ;;  %s49_s28 = int_to_ptr.vmem [resolvable:$true] %s48_s28  ;;  %s75_s29 = int_to_ptr.vmem [resolvable:$true] %s74_s29 }
  0x27   :  { %s5746_s30 = scalar_lea.vmem %s49_s28, 8192  ;;  %p5751_p2 = scmp.lt.s32.totalorder %s49_s28, %s49_s28 }
  0x28   :  { %p5747_p1 = scmp.ne.s32.totalorder %s49_s28, %s5746_s30  ;;  %p5752_p3 = scmp.lt.s32.totalorder %s5746_s30, %s5746_s30 }
  0x2a   :  { %p5753_p4 = por %p5752_p3, %p5751_p2 }
  0x2c   :  { %p5754_p5 = pnand %p5753_p4, %p5747_p1 }
  0x2e   :  { %5757 = shalt.err (!%p5754_p5)
}
  0x2f   :  { %54 = dma.hbm_to_vmem [thread:$0]  %s9294_s2, 8192, %s49_s28, [#allocation7], %s5829_s12, %s5829_s12, %s5830_s13  }
  0x30   :  { %s5766_s0 = scalar_lea.vmem %s75_s29, 8192  ;;  %p5771_p7 = scmp.lt.s32.totalorder %s75_s29, %s75_s29 }
  0x31   :  { %p5767_p6 = scmp.ne.s32.totalorder %s75_s29, %s5766_s0  ;;  %p5772_p8 = scmp.lt.s32.totalorder %s5766_s0, %s5766_s0 }
  0x33   :  { %p5773_p9 = por %p5772_p8, %p5771_p7 }
  0x35   :  { %p5774_p10 = pnand %p5773_p9, %p5767_p6 }
  0x37   :  { %5777 = shalt.err (!%p5774_p10)
}
  0x38   :  { %80 = dma.hbm_to_vmem [thread:$0]  %s9297_s5, 8192, %s75_s29, [#allocation10], %s5829_s12, %s5829_s12, %s5830_s13  }
  0x39   :  { %s5837_s16 = smov [#allocation12]  }
  0x3a   :  { %s88_s17 = sshll.u32 %s5837_s16, 4  ;;  %s89_s17 = int_to_ptr.vmem [resolvable:$true] %s88_s17 }
  0x3b   :  { %s5786_s18 = scalar_lea.vmem %s89_s17, 2048  ;;  %p5791_p12 = scmp.lt.s32.totalorder %s89_s17, %s89_s17 }
  0x3c   :  { %p5787_p11 = scmp.ne.s32.totalorder %s89_s17, %s5786_s18  ;;  %p5792_p13 = scmp.lt.s32.totalorder %s5786_s18, %s5786_s18 }
  0x3e   :  { %p5793_p0 = por %p5792_p13, %p5791_p12 }
  0x40   :  { %p5794_p1 = pnand %p5793_p0, %p5787_p11 }
  0x42   :  { %5797 = shalt.err (!%p5794_p1)
}
  0x43   :  { %94 = dma.hbm_to_vmem [thread:$0]  %s9299_s7, 2048, %s89_s17, [#allocation13], %s5833_s23, %s5833_s23, %s5834_s24  }
  0x44   :  { %5818 = dma.done.wait [#allocation4], 1024  }
  0x45   :  { %5819 = vsyncadd [#allocation4], 4294966272 }
  0x46   :  { %5820 = dma.done.wait [#allocation7], 16384  }
  0x47   :  { %5821 = vsyncadd [#allocation7], 4294950912 }
  0x48   :  { %5822 = dma.done.wait [#allocation10], 16384  }
  0x49   :  { %5823 = vsyncadd [#allocation10], 4294950912 }
  0x4a   :  { %5824 = dma.done.wait [#allocation13], 2048  }
  0x4b   :  { %5825 = vsyncadd [#allocation13], 4294965248  ;;  %v9302_v0 = vmov 0.0   ;;  %v184_v1 = vld [vmem:[#allocation6 + $0x1e8] sm:$0xff]  ;;  %v186_v2 = vld [vmem:[#allocation6 + $0x1f8] sm:$0xff]  ;;  %vm5839_vm0 = vmmov 0  }
  0x4c   :  { %273 = vmatprep.mubr.f32.mxu0 %v9302_v0  ;;  %386 = vmatprep.mubr.f32.mxu1 %v9302_v0  ;;  %v183_v3 = vld [vmem:[#allocation6 + $0x1e0] sm:$0xff]  ;;  %v185_v4 = vld [vmem:[#allocation6 + $0x1f0] sm:$0xff]  ;;  %v180_v5 = vld [vmem:[#allocation6 + $0x1c8] sm:$0xff]  ;;  %s5840_s20 = smov [#allocation14]  }
  0x4d   :  { %209 = vmatprep.subr.mxu0 %v184_v1  ;;  %322 = vmatprep.subr.mxu1 %v186_v2  ;;  %v182_v6 = vld [vmem:[#allocation6 + $0x1d8] sm:$0xff]  ;;  %v179_v7 = vld [vmem:[#allocation6 + $0x1c0] sm:$0xff]  ;;  %v181_v8 = vld [vmem:[#allocation6 + $0x1d0] sm:$0xff]  ;;  %s4693_s21 = sshll.u32 %s5840_s20, 4  ;;  %s4694_s21 = int_to_ptr.vmem [resolvable:$true] %s4693_s21 }
  0x4e   :  { %210 = vmatpush1.msra.mxu0 %v183_v3  ;;  %323 = vmatpush1.msra.mxu1 %v185_v4  ;;  %v176_v9 = vld [vmem:[#allocation6 + $0x1a8] sm:$0xff]  ;;  %v178_v10 = vld [vmem:[#allocation6 + $0x1b8] sm:$0xff]  ;;  %v175_v11 = vld [vmem:[#allocation6 + $0x1a0] sm:$0xff]  ;;  %s5798_s22 = scalar_lea.vmem %s4694_s21, 128  ;;  %p5803_p3 = scmp.lt.s32.totalorder %s4694_s21, %s4694_s21 }
  0x4f   :  { %211 = vmatprep.subr.mxu0 %v180_v5  ;;  %324 = vmatprep.subr.mxu1 %v182_v6  ;;  %v177_v12 = vld [vmem:[#allocation6 + $0x1b0] sm:$0xff]  ;;  %v172_v13 = vld [vmem:[#allocation6 + $0x188] sm:$0xff]  ;;  %v174_v14 = vld [vmem:[#allocation6 + $0x198] sm:$0xff]  ;;  %p5799_p2 = scmp.ne.s32.totalorder %s4694_s21, %s5798_s22  ;;  %p5804_p4 = scmp.lt.s32.totalorder %s5798_s22, %s5798_s22 }
  0x50   :  { %212 = vmatpush1.msra.mxu0 %v179_v7  ;;  %325 = vmatpush1.msra.mxu1 %v181_v8  ;;  %v171_v15 = vld [vmem:[#allocation6 + $0x180] sm:$0xff]  ;;  %v173_v16 = vld [vmem:[#allocation6 + $0x190] sm:$0xff]  ;;  %v168_v17 = vld [vmem:[#allocation6 + $0x168] sm:$0xff] }
  0x51   :  { %213 = vmatprep.subr.mxu0 %v176_v9  ;;  %326 = vmatprep.subr.mxu1 %v178_v10  ;;  %v170_v18 = vld [vmem:[#allocation6 + $0x178] sm:$0xff]  ;;  %v167_v19 = vld [vmem:[#allocation6 + $0x160] sm:$0xff]  ;;  %v169_v20 = vld [vmem:[#allocation6 + $0x170] sm:$0xff]  ;;  %p5805_p5 = por %p5804_p4, %p5803_p3 }
  0x52   :  { %214 = vmatpush1.msra.mxu0 %v175_v11  ;;  %327 = vmatpush1.msra.mxu1 %v177_v12  ;;  %v164_v21 = vld [vmem:[#allocation6 + $0x148] sm:$0xff]  ;;  %v166_v22 = vld [vmem:[#allocation6 + $0x158] sm:$0xff]  ;;  %v163_v23 = vld [vmem:[#allocation6 + $0x140] sm:$0xff] }
  0x53   :  { %215 = vmatprep.subr.mxu0 %v172_v13  ;;  %328 = vmatprep.subr.mxu1 %v174_v14  ;;  %v165_v24 = vld [vmem:[#allocation6 + $0x150] sm:$0xff]  ;;  %v160_v25 = vld [vmem:[#allocation6 + $0x128] sm:$0xff]  ;;  %v162_v26 = vld [vmem:[#allocation6 + $0x138] sm:$0xff]  ;;  %p5806_p6 = pnand %p5805_p5, %p5799_p2 }
  0x54   :  { %216 = vmatpush1.msra.mxu0 %v171_v15  ;;  %329 = vmatpush1.msra.mxu1 %v173_v16  ;;  %v159_v27 = vld [vmem:[#allocation6 + $0x120] sm:$0xff]  ;;  %v161_v28 = vld [vmem:[#allocation6 + $0x130] sm:$0xff]  ;;  %v156_v29 = vld [vmem:[#allocation6 + $0x108] sm:$0xff] }
  0x55   :  { %217 = vmatprep.subr.mxu0 %v168_v17  ;;  %330 = vmatprep.subr.mxu1 %v170_v18  ;;  %v158_v30 = vld [vmem:[#allocation6 + $0x118] sm:$0xff]  ;;  %v155_v31 = vld [vmem:[#allocation6 + $0x100] sm:$0xff]  ;;  %v157_v32 = vld [vmem:[#allocation6 + $0x110] sm:$0xff] }
  0x56   :  { %218 = vmatpush1.msra.mxu0 %v167_v19  ;;  %331 = vmatpush1.msra.mxu1 %v169_v20  ;;  %v152_v33 = vld [vmem:[#allocation6 + $0xe8] sm:$0xff]  ;;  %v154_v34 = vld [vmem:[#allocation6 + $0xf8] sm:$0xff]  ;;  %v151_v35 = vld [vmem:[#allocation6 + $0xe0] sm:$0xff] }
  0x57   :  { %219 = vmatprep.subr.mxu0 %v164_v21  ;;  %332 = vmatprep.subr.mxu1 %v166_v22  ;;  %v153_v36 = vld [vmem:[#allocation6 + $0xf0] sm:$0xff]  ;;  %v148_v37 = vld [vmem:[#allocation6 + $0xc8] sm:$0xff]  ;;  %v150_v38 = vld [vmem:[#allocation6 + $0xd8] sm:$0xff] }
  0x58   :  { %220 = vmatpush1.msra.mxu0 %v163_v23  ;;  %333 = vmatpush1.msra.mxu1 %v165_v24  ;;  %v147_v39 = vld [vmem:[#allocation6 + $0xc0] sm:$0xff]  ;;  %v149_v40 = vld [vmem:[#allocation6 + $0xd0] sm:$0xff]  ;;  %v144_v41 = vld [vmem:[#allocation6 + $0xa8] sm:$0xff] }
  0x59   :  { %221 = vmatprep.subr.mxu0 %v160_v25  ;;  %334 = vmatprep.subr.mxu1 %v162_v26  ;;  %v146_v42 = vld [vmem:[#allocation6 + $0xb8] sm:$0xff]  ;;  %v143_v43 = vld [vmem:[#allocation6 + $0xa0] sm:$0xff]  ;;  %v145_v44 = vld [vmem:[#allocation6 + $0xb0] sm:$0xff] }
  0x5a   :  { %222 = vmatpush1.msra.mxu0 %v159_v27  ;;  %335 = vmatpush1.msra.mxu1 %v161_v28  ;;  %v140_v45 = vld [vmem:[#allocation6 + $0x88] sm:$0xff]  ;;  %v142_v46 = vld [vmem:[#allocation6 + $0x98] sm:$0xff]  ;;  %v139_v47 = vld [vmem:[#allocation6 + $0x80] sm:$0xff] }
  0x5b   :  { %223 = vmatprep.subr.mxu0 %v156_v29  ;;  %336 = vmatprep.subr.mxu1 %v158_v30  ;;  %v141_v48 = vld [vmem:[#allocation6 + $0x90] sm:$0xff]  ;;  %v136_v49 = vld [vmem:[#allocation6 + $0x68] sm:$0xff]  ;;  %v138_v50 = vld [vmem:[#allocation6 + $0x78] sm:$0xff] }
  0x5c   :  { %224 = vmatpush1.msra.mxu0 %v155_v31  ;;  %337 = vmatpush1.msra.mxu1 %v157_v32  ;;  %v135_v51 = vld [vmem:[#allocation6 + $0x60] sm:$0xff]  ;;  %v137_v52 = vld [vmem:[#allocation6 + $0x70] sm:$0xff]  ;;  %v132_v53 = vld [vmem:[#allocation6 + $0x48] sm:$0xff] }
  0x5d   :  { %225 = vmatprep.subr.mxu0 %v152_v33  ;;  %338 = vmatprep.subr.mxu1 %v154_v34  ;;  %v134_v54 = vld [vmem:[#allocation6 + $0x58] sm:$0xff]  ;;  %v131_v55 = vld [vmem:[#allocation6 + $0x40] sm:$0xff]  ;;  %v133_v56 = vld [vmem:[#allocation6 + $0x50] sm:$0xff] }
  0x5e   :  { %226 = vmatpush1.msra.mxu0 %v151_v35  ;;  %339 = vmatpush1.msra.mxu1 %v153_v36  ;;  %v128_v57 = vld [vmem:[#allocation6 + $0x28] sm:$0xff]  ;;  %v130_v58 = vld [vmem:[#allocation6 + $0x38] sm:$0xff]  ;;  %v127_v59 = vld [vmem:[#allocation6 + $0x20] sm:$0xff] }
  0x5f   :  { %227 = vmatprep.subr.mxu0 %v148_v37  ;;  %340 = vmatprep.subr.mxu1 %v150_v38  ;;  %v129_v60 = vld [vmem:[#allocation6 + $0x30] sm:$0xff]  ;;  %v124_v61 = vld [vmem:[#allocation6 + $0x8] sm:$0xff]  ;;  %v126_v62 = vld [vmem:[#allocation6 + $0x18] sm:$0xff] }
  0x60   :  { %228 = vmatpush1.msra.mxu0 %v147_v39  ;;  %341 = vmatpush1.msra.mxu1 %v149_v40  ;;  %v123_v63 = vld [vmem:[#allocation6] sm:$0xff]  ;;  %v125_v1 = vld [vmem:[#allocation6 + $0x10] sm:$0xff]  ;;  %v5929_v3 = vld [vmem:[#allocation8 + $0x1e8] sm:$0xff] }
  0x61   :  { %229 = vmatprep.subr.mxu0 %v144_v41  ;;  %342 = vmatprep.subr.mxu1 %v146_v42  ;;  %v115_v2 = vld [vmem:[#allocation3] sm:$0xff]  ;;  %v5931_v4 = vld [vmem:[#allocation8 + $0x1f8] sm:$0xff]  ;;  %v558_v6 = vld [vmem:[#allocation8 + $0x1f0] sm:$0xff] }
  0x62   :  { %230 = vmatpush1.msra.mxu0 %v143_v43  ;;  %343 = vmatpush1.msra.mxu1 %v145_v44  ;;  %v556_v5 = vld [vmem:[#allocation8 + $0x1e0] sm:$0xff]  ;;  %v553_v7 = vld [vmem:[#allocation8 + $0x1c8] sm:$0xff]  ;;  %v555_v8 = vld [vmem:[#allocation8 + $0x1d8] sm:$0xff] }
  0x63   :  { %231 = vmatprep.subr.mxu0 %v140_v45  ;;  %344 = vmatprep.subr.mxu1 %v142_v46  ;;  %v552_v9 = vld [vmem:[#allocation8 + $0x1c0] sm:$0xff]  ;;  %v554_v10 = vld [vmem:[#allocation8 + $0x1d0] sm:$0xff]  ;;  %v116_v11 = vld [vmem:[#allocation3 + $0x8] sm:$0xff] }
  0x64   :  { %232 = vmatpush1.msra.mxu0 %v139_v47  ;;  %345 = vmatpush1.msra.mxu1 %v141_v48  ;;  %v549_v12 = vld [vmem:[#allocation8 + $0x1a8] sm:$0xff]  ;;  %v551_v13 = vld [vmem:[#allocation8 + $0x1b8] sm:$0xff]  ;;  %v548_v14 = vld [vmem:[#allocation8 + $0x1a0] sm:$0xff] }
  0x65   :  { %233 = vmatprep.subr.mxu0 %v136_v49  ;;  %346 = vmatprep.subr.mxu1 %v138_v50  ;;  %v550_v15 = vld [vmem:[#allocation8 + $0x1b0] sm:$0xff]  ;;  %v545_v16 = vld [vmem:[#allocation8 + $0x188] sm:$0xff]  ;;  %v547_v17 = vld [vmem:[#allocation8 + $0x198] sm:$0xff] }
  0x66   :  { %234 = vmatpush1.msra.mxu0 %v135_v51  ;;  %347 = vmatpush1.msra.mxu1 %v137_v52  ;;  %v544_v18 = vld [vmem:[#allocation8 + $0x180] sm:$0xff]  ;;  %v546_v19 = vld [vmem:[#allocation8 + $0x190] sm:$0xff]  ;;  %v541_v21 = vld [vmem:[#allocation8 + $0x168] sm:$0xff] }
  0x67   :  { %235 = vmatprep.subr.mxu0 %v132_v53  ;;  %348 = vmatprep.subr.mxu1 %v134_v54  ;;  %v117_v20 = vld [vmem:[#allocation3 + $0x10] sm:$0xff]  ;;  %v543_v22 = vld [vmem:[#allocation8 + $0x178] sm:$0xff]  ;;  %v540_v23 = vld [vmem:[#allocation8 + $0x160] sm:$0xff] }
  0x68   :  { %236 = vmatpush1.msra.mxu0 %v131_v55  ;;  %349 = vmatpush1.msra.mxu1 %v133_v56  ;;  %v542_v24 = vld [vmem:[#allocation8 + $0x170] sm:$0xff]  ;;  %v537_v25 = vld [vmem:[#allocation8 + $0x148] sm:$0xff]  ;;  %v539_v26 = vld [vmem:[#allocation8 + $0x158] sm:$0xff] }
  0x69   :  { %237 = vmatprep.subr.mxu0 %v128_v57  ;;  %350 = vmatprep.subr.mxu1 %v130_v58  ;;  %v5939_v27 = vld [vmem:[#allocation8 + $0x140] sm:$0xff]  ;;  %v5941_v28 = vld [vmem:[#allocation8 + $0x150] sm:$0xff]  ;;  %v118_v29 = vld [vmem:[#allocation3 + $0x18] sm:$0xff] }
  0x6a   :  { %238 = vmatpush1.msra.mxu0 %v127_v59  ;;  %351 = vmatpush1.msra.mxu1 %v129_v60  ;;  %v5945_v30 = vld [vmem:[#allocation8 + $0x128] sm:$0xff]  ;;  %v5947_v31 = vld [vmem:[#allocation8 + $0x138] sm:$0xff]  ;;  %v5951_v32 = vld [vmem:[#allocation8 + $0x120] sm:$0xff] }
  0x6b   :  { %239 = vmatprep.subr.mxu0 %v124_v61  ;;  %352 = vmatprep.subr.mxu1 %v126_v62  ;;  %v5953_v33 = vld [vmem:[#allocation8 + $0x130] sm:$0xff]  ;;  %v5955_v34 = vld [vmem:[#allocation8 + $0x108] sm:$0xff]  ;;  %v5957_v35 = vld [vmem:[#allocation8 + $0x118] sm:$0xff] }
  0x6c   :  { %240 = vmatpush1.msra.mxu0 %v123_v63  ;;  %353 = vmatpush1.msra.mxu1 %v125_v1  ;;  %v5963_v36 = vld [vmem:[#allocation8 + $0x100] sm:$0xff]  ;;  %v5965_v37 = vld [vmem:[#allocation8 + $0x110] sm:$0xff]  ;;  %v5971_v39 = vld [vmem:[#allocation8 + $0xe8] sm:$0xff] }
  0x6d   :  { %274 = vmatmul.mubr.f32.vlgmr.msra.gmra.mxu0 %v115_v2  ;;  %387 = vmatmul.mubr.f32.vlgmr.msra.gmra.mxu1 %v115_v2  ;;  %v119_v38 = vld [vmem:[#allocation3 + $0x20] sm:$0xff]  ;;  %v5973_v40 = vld [vmem:[#allocation8 + $0xf8] sm:$0xff]  ;;  %v5979_v42 = vld [vmem:[#allocation8 + $0xf0] sm:$0xff] }
  0x6e   :  { %560 = vmatprep.subr.mxu0 %v5929_v3  ;;  %631 = vmatprep.subr.mxu1 %v5931_v4  ;;  %v5977_v41 = vld [vmem:[#allocation8 + $0xe0] sm:$0xff]  ;;  %v5981_v43 = vld [vmem:[#allocation8 + $0xc8] sm:$0xff]  ;;  %v5983_v44 = vld [vmem:[#allocation8 + $0xd8] sm:$0xff] }
  0x6f   :  { %561 = vmatpush1.msra.mxu0 %v556_v5  ;;  %632 = vmatpush1.msra.mxu1 %v558_v6  ;;  %v5989_v45 = vld [vmem:[#allocation8 + $0xc0] sm:$0xff]  ;;  %v5991_v46 = vld [vmem:[#allocation8 + $0xd0] sm:$0xff]  ;;  %v120_v47 = vld [vmem:[#allocation3 + $0x28] sm:$0xff] }
  0x70   :  { %562 = vmatprep.subr.mxu0 %v553_v7  ;;  %633 = vmatprep.subr.mxu1 %v555_v8  ;;  %v5997_v48 = vld [vmem:[#allocation8 + $0xa8] sm:$0xff]  ;;  %v5999_v49 = vld [vmem:[#allocation8 + $0xb8] sm:$0xff]  ;;  %v6003_v50 = vld [vmem:[#allocation8 + $0xa0] sm:$0xff] }
  0x71   :  { %279 = vmatprep.mubr.f32.mxu0 %v9302_v0  ;;  %392 = vmatprep.mubr.f32.mxu1 %v9302_v0  ;;  %v6005_v51 = vld [vmem:[#allocation8 + $0xb0] sm:$0xff]  ;;  %v6007_v52 = vld [vmem:[#allocation8 + $0x88] sm:$0xff]  ;;  %v6009_v53 = vld [vmem:[#allocation8 + $0x98] sm:$0xff] }
  0x72   :  { %563 = vmatpush1.msra.mxu0 %v552_v9  ;;  %634 = vmatpush1.msra.mxu1 %v554_v10  ;;  %v6015_v54 = vld [vmem:[#allocation8 + $0x80] sm:$0xff]  ;;  %v6017_v55 = vld [vmem:[#allocation8 + $0x90] sm:$0xff]  ;;  %v6023_v57 = vld [vmem:[#allocation8 + $0x68] sm:$0xff] }
  0x73   :  { %280 = vmatmul.mubr.f32.gmra.mxu0 %v116_v11  ;;  %393 = vmatmul.mubr.f32.gmra.mxu1 %v116_v11  ;;  %v121_v56 = vld [vmem:[#allocation3 + $0x30] sm:$0xff]  ;;  %v6025_v58 = vld [vmem:[#allocation8 + $0x78] sm:$0xff]  ;;  %v6029_v59 = vld [vmem:[#allocation8 + $0x60] sm:$0xff] }
  0x74   :  { %564 = vmatprep.subr.mxu0 %v549_v12  ;;  %635 = vmatprep.subr.mxu1 %v551_v13  ;;  %v6031_v60 = vld [vmem:[#allocation8 + $0x70] sm:$0xff]  ;;  %v6033_v61 = vld [vmem:[#allocation8 + $0x48] sm:$0xff]  ;;  %v6035_v62 = vld [vmem:[#allocation8 + $0x58] sm:$0xff] }
  0x75   :  { %565 = vmatpush1.msra.mxu0 %v548_v14  ;;  %636 = vmatpush1.msra.mxu1 %v550_v15  ;;  %v6041_v63 = vld [vmem:[#allocation8 + $0x40] sm:$0xff]  ;;  %v6043_v1 = vld [vmem:[#allocation8 + $0x50] sm:$0xff]  ;;  %v122_v2 = vld [vmem:[#allocation3 + $0x38] sm:$0xff] }
  0x76   :  { %566 = vmatprep.subr.mxu0 %v545_v16  ;;  %637 = vmatprep.subr.mxu1 %v547_v17  ;;  %v6049_v5 = vld [vmem:[#allocation8 + $0x28] sm:$0xff]  ;;  %v6051_v6 = vld [vmem:[#allocation8 + $0x38] sm:$0xff]  ;;  %v6055_v7 = vld [vmem:[#allocation8 + $0x20] sm:$0xff] }
  0x77   :  { %285 = vmatprep.mubr.f32.mxu0 %v9302_v0  ;;  %398 = vmatprep.mubr.f32.mxu1 %v9302_v0  ;;  %v6057_v8 = vld [vmem:[#allocation8 + $0x30] sm:$0xff]  ;;  %v6059_v9 = vld [vmem:[#allocation8 + $0x8] sm:$0xff]  ;;  %v6061_v10 = vld [vmem:[#allocation8 + $0x18] sm:$0xff] }
  0x78   :  { %567 = vmatpush1.msra.mxu0 %v544_v18  ;;  %638 = vmatpush1.msra.mxu1 %v546_v19  ;;  %v6065_v11 = vld [vmem:[#allocation8] sm:$0xff]  ;;  %v6069_v12 = vld [vmem:[#allocation8 + $0x10] sm:$0xff]  ;;  %v6081_v13 = vld [vmem:[#allocation11 + $0x1e8] sm:$0xff] }
  0x79   :  { %286 = vmatmul.mubr.f32.gmra.mxu0 %v117_v20  ;;  %399 = vmatmul.mubr.f32.gmra.mxu1 %v117_v20  ;;  %9831 = vst [vmem:[#allocation20_spill] sm:$0xff] %v6069_v12  ;;  %9832 = vst [vmem:[#allocation21_spill] sm:$0xff] %v6081_v13  ;;  %v6083_v14 = vld [vmem:[#allocation11 + $0x1f8] sm:$0xff]  ;;  %v6085_v15 = vld [vmem:[#allocation11 + $0x1e0] sm:$0xff] }
  0x7a   :  { %568 = vmatprep.subr.mxu0 %v541_v21  ;;  %639 = vmatprep.subr.mxu1 %v543_v22  ;;  %9833 = vst [vmem:[#allocation22_spill] sm:$0xff] %v6083_v14  ;;  %9834 = vst [vmem:[#allocation23_spill] sm:$0xff] %v6085_v15  ;;  %v6089_v16 = vld [vmem:[#allocation11 + $0x1f0] sm:$0xff]  ;;  %v6093_v17 = vld [vmem:[#allocation11 + $0x1c8] sm:$0xff] }
  0x7b   :  { %569 = vmatpush1.msra.mxu0 %v540_v23  ;;  %640 = vmatpush1.msra.mxu1 %v542_v24  ;;  %9835 = vst [vmem:[#allocation24_spill] sm:$0xff] %v6089_v16  ;;  %9836 = vst [vmem:[#allocation25_spill] sm:$0xff] %v6093_v17  ;;  %v6095_v18 = vld [vmem:[#allocation11 + $0x1d8] sm:$0xff]  ;;  %v6097_v19 = vld [vmem:[#allocation11 + $0x1c0] sm:$0xff] }
  0x7c   :  { %570 = vmatprep.subr.mxu0 %v537_v25  ;;  %641 = vmatprep.subr.mxu1 %v539_v26  ;;  %9837 = vst [vmem:[#allocation26_spill] sm:$0xff] %v6095_v18  ;;  %9838 = vst [vmem:[#allocation27_spill] sm:$0xff] %v6097_v19  ;;  %v6101_v20 = vld [vmem:[#allocation11 + $0x1d0] sm:$0xff]  ;;  %v6105_v21 = vld [vmem:[#allocation11 + $0x1a8] sm:$0xff] }
  0x7d   :  { %291 = vmatprep.mubr.f32.mxu0 %v9302_v0  ;;  %404 = vmatprep.mubr.f32.mxu1 %v9302_v0  ;;  %9839 = vst [vmem:[#allocation28_spill] sm:$0xff] %v6101_v20  ;;  %9840 = vst [vmem:[#allocation29_spill] sm:$0xff] %v6105_v21  ;;  %v6107_v22 = vld [vmem:[#allocation11 + $0x1b8] sm:$0xff]  ;;  %v6109_v23 = vld [vmem:[#allocation11 + $0x1a0] sm:$0xff] }
  0x7e   :  { %571 = vmatpush1.msra.mxu0 %v5939_v27  ;;  %642 = vmatpush1.msra.mxu1 %v5941_v28  ;;  %9841 = vst [vmem:[#allocation30_spill] sm:$0xff] %v6107_v22  ;;  %9842 = vst [vmem:[#allocation31_spill] sm:$0xff] %v6109_v23  ;;  %v6113_v24 = vld [vmem:[#allocation11 + $0x1b0] sm:$0xff]  ;;  %v6117_v25 = vld [vmem:[#allocation11 + $0x188] sm:$0xff] }
  0x7f   :  { %292 = vmatmul.mubr.f32.gmra.mxu0 %v118_v29  ;;  %405 = vmatmul.mubr.f32.gmra.mxu1 %v118_v29  ;;  %9843 = vst [vmem:[#allocation32_spill] sm:$0xff] %v6113_v24  ;;  %9844 = vst [vmem:[#allocation33_spill] sm:$0xff] %v6117_v25  ;;  %v6119_v26 = vld [vmem:[#allocation11 + $0x198] sm:$0xff]  ;;  %v6121_v29 = vld [vmem:[#allocation11 + $0x180] sm:$0xff] }
  0x80   :  { %572 = vmatprep.subr.mxu0 %v5945_v30  ;;  %643 = vmatprep.subr.mxu1 %v5947_v31  ;;  %9845 = vst [vmem:[#allocation34_spill] sm:$0xff] %v6119_v26  ;;  %9846 = vst [vmem:[#allocation35_spill] sm:$0xff] %v6121_v29 }
  0x81   :  { %573 = vmatpush1.msra.mxu0 %v5951_v32  ;;  %644 = vmatpush1.msra.mxu1 %v5953_v33 }
  0x82   :  { %574 = vmatprep.subr.mxu0 %v5955_v34  ;;  %645 = vmatprep.subr.mxu1 %v5957_v35 }
  0x83   :  { %297 = vmatprep.mubr.f32.mxu0 %v9302_v0  ;;  %410 = vmatprep.mubr.f32.mxu1 %v9302_v0 }
  0x84   :  { %575 = vmatpush1.msra.mxu0 %v5963_v36  ;;  %646 = vmatpush1.msra.mxu1 %v5965_v37 }
  0x85   :  { %298 = vmatmul.mubr.f32.gmra.mxu0 %v119_v38  ;;  %411 = vmatmul.mubr.f32.gmra.mxu1 %v119_v38  ;;  %v6125_v38 = vld [vmem:[#allocation11 + $0x190] sm:$0xff] }
  0x86   :  { %576 = vmatprep.subr.mxu0 %v5971_v39  ;;  %647 = vmatprep.subr.mxu1 %v5973_v40  ;;  %9847 = vst [vmem:[#allocation36_spill] sm:$0xff] %v6125_v38 }
  0x87   :  { %577 = vmatpush1.msra.mxu0 %v5977_v41  ;;  %648 = vmatpush1.msra.mxu1 %v5979_v42 }
  0x88   :  { %578 = vmatprep.subr.mxu0 %v5981_v43  ;;  %649 = vmatprep.subr.mxu1 %v5983_v44 }
  0x89   :  { %303 = vmatprep.mubr.f32.mxu0 %v9302_v0  ;;  %416 = vmatprep.mubr.f32.mxu1 %v9302_v0 }
  0x8a   :  { %579 = vmatpush1.msra.mxu0 %v5989_v45  ;;  %650 = vmatpush1.msra.mxu1 %v5991_v46 }
  0x8b   :  { %304 = vmatmul.mubr.f32.gmra.mxu0 %v120_v47  ;;  %417 = vmatmul.mubr.f32.gmra.mxu1 %v120_v47  ;;  %v6129_v47 = vld [vmem:[#allocation11 + $0x168] sm:$0xff] }
  0x8c   :  { %580 = vmatprep.subr.mxu0 %v5997_v48  ;;  %651 = vmatprep.subr.mxu1 %v5999_v49  ;;  %9848 = vst [vmem:[#allocation37_spill] sm:$0xff] %v6129_v47 }
  0x8d   :  { %581 = vmatpush1.msra.mxu0 %v6003_v50  ;;  %652 = vmatpush1.msra.mxu1 %v6005_v51 }
  0x8e   :  { %582 = vmatprep.subr.mxu0 %v6007_v52  ;;  %653 = vmatprep.subr.mxu1 %v6009_v53 }
  0x8f   :  { %309 = vmatprep.mubr.f32.mxu0 %v9302_v0  ;;  %422 = vmatprep.mubr.f32.mxu1 %v9302_v0 }
  0x90   :  { %583 = vmatpush1.msra.mxu0 %v6015_v54  ;;  %654 = vmatpush1.msra.mxu1 %v6017_v55 }
  0x91   :  { %310 = vmatmul.mubr.f32.gmra.mxu0 %v121_v56  ;;  %423 = vmatmul.mubr.f32.gmra.mxu1 %v121_v56  ;;  %v6131_v56 = vld [vmem:[#allocation11 + $0x178] sm:$0xff] }
  0x92   :  { %584 = vmatprep.subr.mxu0 %v6023_v57  ;;  %655 = vmatprep.subr.mxu1 %v6025_v58  ;;  %9849 = vst [vmem:[#allocation38_spill] sm:$0xff] %v6131_v56 }
  0x93   :  { %585 = vmatpush1.msra.mxu0 %v6029_v59  ;;  %656 = vmatpush1.msra.mxu1 %v6031_v60 }
  0x94   :  { %586 = vmatprep.subr.mxu0 %v6033_v61  ;;  %657 = vmatprep.subr.mxu1 %v6035_v62 }
  0x95   :  { %315 = vmatprep.mubr.f32.mxu0 %v9302_v0  ;;  %428 = vmatprep.mubr.f32.mxu1 %v9302_v0 }
  0x96   :  { %587 = vmatpush1.msra.mxu0 %v6041_v63  ;;  %658 = vmatpush1.msra.mxu1 %v6043_v1 }
  0x97   :  { %316 = vmatmul.mubr.f32.gmra.mxu0 %v122_v2  ;;  %429 = vmatmul.mubr.f32.gmra.mxu1 %v122_v2  ;;  %v6135_v2 = vld [vmem:[#allocation11 + $0x160] sm:$0xff] }
  0x98   :  { %588 = vmatprep.subr.mxu0 %v6049_v5  ;;  %659 = vmatprep.subr.mxu1 %v6051_v6  ;;  %9850 = vst [vmem:[#allocation39_spill] sm:$0xff] %v6135_v2 }
  0x99   :  { %589 = vmatpush1.msra.mxu0 %v6055_v7  ;;  %660 = vmatpush1.msra.mxu1 %v6057_v8 }
  0x9a   :  { %590 = vmatprep.subr.mxu0 %v6059_v9  ;;  %661 = vmatprep.subr.mxu1 %v6061_v10 }
  0x9b   :  { %591 = vmatpush1.msra.mxu0 %v6065_v11  ;;  %624 = vmatprep.mubr.f32.mxu0 %v9302_v0 }
  0x9c   :  { %662 = vmatpush1.msra.mxu1 %v6069_v12  ;;  %695 = vmatprep.mubr.f32.mxu1 %v9302_v0 }
  0x9d   :  { %625 = vmatmul.mubr.f32.vlgmr.msra.gmra.mxu0 %v9302_v0  ;;  %696 = vmatmul.mubr.f32.vlgmr.msra.gmra.mxu1 %v9302_v0 }
  0x9e   :  { %922 = vmatprep.mubr.f32.mxu0 %v9302_v0  ;;  %993 = vmatprep.mubr.f32.mxu1 %v9302_v0  ;;  %v6137_v0 = vld [vmem:[#allocation11 + $0x170] sm:$0xff] }
  0x9f   :  { %858 = vmatprep.subr.mxu0 %v6081_v13  ;;  %929 = vmatprep.subr.mxu1 %v6083_v14  ;;  %9851 = vst [vmem:[#allocation40_spill] sm:$0xff] %v6137_v0 }
  0xa0   :  { %859 = vmatpush1.msra.mxu0 %v6085_v15  ;;  %930 = vmatpush1.msra.mxu1 %v6089_v16 }
  0xa1   :  { %860 = vmatprep.subr.mxu0 %v6093_v17  ;;  %931 = vmatprep.subr.mxu1 %v6095_v18 }
  0xa2   :  { %861 = vmatpush1.msra.mxu0 %v6097_v19  ;;  %932 = vmatpush1.msra.mxu1 %v6101_v20 }
  0xa3   :  { %862 = vmatprep.subr.mxu0 %v6105_v21  ;;  %933 = vmatprep.subr.mxu1 %v6107_v22  ;;  %v6387_v22 = vld [vmem:[#allocation9 + $0xd0] sm:$0xff]  ;;  %v6403_v21 = vld [vmem:[#allocation9 + $0x88] sm:$0xff] }
  0xa4   :  { %863 = vmatpush1.msra.mxu0 %v6109_v23  ;;  %934 = vmatpush1.msra.mxu1 %v6113_v24  ;;  %v6299_v24 = vld [vmem:[#allocation9 + $0x1b8] sm:$0xff]  ;;  %v6303_v23 = vld [vmem:[#allocation9 + $0x1a0] sm:$0xff]  ;;  %9936 = vst [vmem:[#allocation124_spill] sm:$0xff] %v6387_v22  ;;  %9941 = vst [vmem:[#allocation129_spill] sm:$0xff] %v6403_v21 }
  0xa5   :  { %864 = vmatprep.subr.mxu0 %v6117_v25  ;;  %935 = vmatprep.subr.mxu1 %v6119_v26  ;;  %v6141_v26 = vld [vmem:[#allocation11 + $0x148] sm:$0xff]  ;;  %9906 = vst [vmem:[#allocation94_spill] sm:$0xff] %v6299_v24  ;;  %9907 = vst [vmem:[#allocation95_spill] sm:$0xff] %v6303_v23 }
  0xa6   :  { %865 = vmatpush1.msra.mxu0 %v6121_v29  ;;  %936 = vmatpush1.msra.mxu1 %v6125_v38  ;;  %9852 = vst [vmem:[#allocation41_spill] sm:$0xff] %v6141_v26  ;;  %v6143_v29 = vld [vmem:[#allocation11 + $0x158] sm:$0xff]  ;;  %v6147_v38 = vld [vmem:[#allocation11 + $0x140] sm:$0xff]  ;;  %v6285_v25 = vld [vmem:[#allocation9 + $0x1c8] sm:$0xff] }
  0xa7   :  { %866 = vmatprep.subr.mxu0 %v6129_v47  ;;  %937 = vmatprep.subr.mxu1 %v6131_v56  ;;  %9853 = vst [vmem:[#allocation42_spill] sm:$0xff] %v6143_v29  ;;  %9854 = vst [vmem:[#allocation43_spill] sm:$0xff] %v6147_v38  ;;  %v6149_v47 = vld [vmem:[#allocation11 + $0x150] sm:$0xff]  ;;  %v6153_v56 = vld [vmem:[#allocation11 + $0x128] sm:$0xff] }
  0xa8   :  { %867 = vmatpush1.msra.mxu0 %v6135_v2  ;;  %938 = vmatpush1.msra.mxu1 %v6137_v0  ;;  %9855 = vst [vmem:[#allocation44_spill] sm:$0xff] %v6149_v47  ;;  %9856 = vst [vmem:[#allocation45_spill] sm:$0xff] %v6153_v56  ;;  %v6155_v2 = vld [vmem:[#allocation11 + $0x138] sm:$0xff]  ;;  %v6159_v0 = vld [vmem:[#allocation11 + $0x120] sm:$0xff] }
  0xa9   :  { %868 = vmatprep.subr.mxu0 %v6141_v26  ;;  %939 = vmatprep.subr.mxu1 %v6143_v29  ;;  %9857 = vst [vmem:[#allocation46_spill] sm:$0xff] %v6155_v2  ;;  %9858 = vst [vmem:[#allocation47_spill] sm:$0xff] %v6159_v0  ;;  %v6161_v26 = vld [vmem:[#allocation11 + $0x130] sm:$0xff]  ;;  %v6165_v29 = vld [vmem:[#allocation11 + $0x108] sm:$0xff] }
  0xaa   :  { %869 = vmatpush1.msra.mxu0 %v6147_v38  ;;  %940 = vmatpush1.msra.mxu1 %v6149_v47  ;;  %9859 = vst [vmem:[#allocation48_spill] sm:$0xff] %v6161_v26  ;;  %9860 = vst [vmem:[#allocation49_spill] sm:$0xff] %v6165_v29  ;;  %v6167_v38 = vld [vmem:[#allocation11 + $0x118] sm:$0xff]  ;;  %v6171_v47 = vld [vmem:[#allocation11 + $0x100] sm:$0xff] }
  0xab   :  { %870 = vmatprep.subr.mxu0 %v6153_v56  ;;  %941 = vmatprep.subr.mxu1 %v6155_v2  ;;  %9861 = vst [vmem:[#allocation50_spill] sm:$0xff] %v6167_v38  ;;  %9862 = vst [vmem:[#allocation51_spill] sm:$0xff] %v6171_v47  ;;  %v6173_v56 = vld [vmem:[#allocation11 + $0x110] sm:$0xff]  ;;  %v6177_v2 = vld [vmem:[#allocation11 + $0xe8] sm:$0xff] }
  0xac   :  { %871 = vmatpush1.msra.mxu0 %v6159_v0  ;;  %942 = vmatpush1.msra.mxu1 %v6161_v26  ;;  %9863 = vst [vmem:[#allocation52_spill] sm:$0xff] %v6173_v56  ;;  %9864 = vst [vmem:[#allocation53_spill] sm:$0xff] %v6177_v2  ;;  %v6179_v0 = vld [vmem:[#allocation11 + $0xf8] sm:$0xff]  ;;  %v6183_v26 = vld [vmem:[#allocation11 + $0xe0] sm:$0xff] }
  0xad   :  { %872 = vmatprep.subr.mxu0 %v6165_v29  ;;  %943 = vmatprep.subr.mxu1 %v6167_v38  ;;  %9865 = vst [vmem:[#allocation54_spill] sm:$0xff] %v6179_v0  ;;  %9866 = vst [vmem:[#allocation55_spill] sm:$0xff] %v6183_v26  ;;  %v6185_v29 = vld [vmem:[#allocation11 + $0xf0] sm:$0xff]  ;;  %v6189_v38 = vld [vmem:[#allocation11 + $0xc8] sm:$0xff] }
  0xae   :  { %873 = vmatpush1.msra.mxu0 %v6171_v47  ;;  %944 = vmatpush1.msra.mxu1 %v6173_v56  ;;  %9867 = vst [vmem:[#allocation56_spill] sm:$0xff] %v6185_v29  ;;  %9868 = vst [vmem:[#allocation57_spill] sm:$0xff] %v6189_v38  ;;  %v6191_v47 = vld [vmem:[#allocation11 + $0xd8] sm:$0xff]  ;;  %v6195_v56 = vld [vmem:[#allocation11 + $0xc0] sm:$0xff] }
  0xaf   :  { %874 = vmatprep.subr.mxu0 %v6177_v2  ;;  %945 = vmatprep.subr.mxu1 %v6179_v0  ;;  %9869 = vst [vmem:[#allocation58_spill] sm:$0xff] %v6191_v47  ;;  %9870 = vst [vmem:[#allocation59_spill] sm:$0xff] %v6195_v56  ;;  %v6197_v2 = vld [vmem:[#allocation11 + $0xd0] sm:$0xff]  ;;  %v6201_v0 = vld [vmem:[#allocation11 + $0xa8] sm:$0xff] }
  0xb0   :  { %875 = vmatpush1.msra.mxu0 %v6183_v26  ;;  %946 = vmatpush1.msra.mxu1 %v6185_v29  ;;  %9871 = vst [vmem:[#allocation60_spill] sm:$0xff] %v6197_v2  ;;  %9872 = vst [vmem:[#allocation61_spill] sm:$0xff] %v6201_v0  ;;  %v6203_v26 = vld [vmem:[#allocation11 + $0xb8] sm:$0xff]  ;;  %v6207_v29 = vld [vmem:[#allocation11 + $0xa0] sm:$0xff] }
  0xb1   :  { %876 = vmatprep.subr.mxu0 %v6189_v38  ;;  %947 = vmatprep.subr.mxu1 %v6191_v47  ;;  %9873 = vst [vmem:[#allocation62_spill] sm:$0xff] %v6203_v26  ;;  %9874 = vst [vmem:[#allocation63_spill] sm:$0xff] %v6207_v29  ;;  %v6209_v38 = vld [vmem:[#allocation11 + $0xb0] sm:$0xff]  ;;  %v6213_v47 = vld [vmem:[#allocation11 + $0x88] sm:$0xff] }
  0xb2   :  { %877 = vmatpush1.msra.mxu0 %v6195_v56  ;;  %948 = vmatpush1.msra.mxu1 %v6197_v2  ;;  %9875 = vst [vmem:[#allocation64_spill] sm:$0xff] %v6209_v38  ;;  %9876 = vst [vmem:[#allocation65_spill] sm:$0xff] %v6213_v47  ;;  %v6215_v56 = vld [vmem:[#allocation11 + $0x98] sm:$0xff]  ;;  %v6219_v2 = vld [vmem:[#allocation11 + $0x80] sm:$0xff] }
  0xb3   :  { %878 = vmatprep.subr.mxu0 %v6201_v0  ;;  %949 = vmatprep.subr.mxu1 %v6203_v26  ;;  %9877 = vst [vmem:[#allocation66_spill] sm:$0xff] %v6215_v56  ;;  %9878 = vst [vmem:[#allocation67_spill] sm:$0xff] %v6219_v2  ;;  %v6221_v0 = vld [vmem:[#allocation11 + $0x90] sm:$0xff]  ;;  %v6225_v26 = vld [vmem:[#allocation11 + $0x68] sm:$0xff] }
  0xb4   :  { %879 = vmatpush1.msra.mxu0 %v6207_v29  ;;  %950 = vmatpush1.msra.mxu1 %v6209_v38  ;;  %9879 = vst [vmem:[#allocation68_spill] sm:$0xff] %v6221_v0  ;;  %9880 = vst [vmem:[#allocation69_spill] sm:$0xff] %v6225_v26  ;;  %v6227_v29 = vld [vmem:[#allocation11 + $0x78] sm:$0xff]  ;;  %v6231_v38 = vld [vmem:[#allocation11 + $0x60] sm:$0xff] }
  0xb5   :  { %880 = vmatprep.subr.mxu0 %v6213_v47  ;;  %951 = vmatprep.subr.mxu1 %v6215_v56  ;;  %9881 = vst [vmem:[#allocation70_spill] sm:$0xff] %v6227_v29  ;;  %9882 = vst [vmem:[#allocation71_spill] sm:$0xff] %v6231_v38  ;;  %v6233_v47 = vld [vmem:[#allocation11 + $0x70] sm:$0xff]  ;;  %v6237_v56 = vld [vmem:[#allocation11 + $0x48] sm:$0xff] }
  0xb6   :  { %881 = vmatpush1.msra.mxu0 %v6219_v2  ;;  %952 = vmatpush1.msra.mxu1 %v6221_v0  ;;  %9883 = vst [vmem:[#allocation72_spill] sm:$0xff] %v6233_v47  ;;  %9884 = vst [vmem:[#allocation73_spill] sm:$0xff] %v6237_v56  ;;  %v6239_v2 = vld [vmem:[#allocation11 + $0x58] sm:$0xff]  ;;  %v6243_v0 = vld [vmem:[#allocation11 + $0x40] sm:$0xff] }
  0xb7   :  { %882 = vmatprep.subr.mxu0 %v6225_v26  ;;  %953 = vmatprep.subr.mxu1 %v6227_v29  ;;  %9885 = vst [vmem:[#allocation74_spill] sm:$0xff] %v6239_v2  ;;  %9886 = vst [vmem:[#allocation75_spill] sm:$0xff] %v6243_v0  ;;  %v6245_v26 = vld [vmem:[#allocation11 + $0x50] sm:$0xff]  ;;  %v6249_v29 = vld [vmem:[#allocation11 + $0x28] sm:$0xff] }
  0xb8   :  { %883 = vmatpush1.msra.mxu0 %v6231_v38  ;;  %954 = vmatpush1.msra.mxu1 %v6233_v47  ;;  %9887 = vst [vmem:[#allocation76_spill] sm:$0xff] %v6245_v26  ;;  %9888 = vst [vmem:[#allocation77_spill] sm:$0xff] %v6249_v29  ;;  %v6251_v38 = vld [vmem:[#allocation11 + $0x38] sm:$0xff]  ;;  %v6255_v47 = vld [vmem:[#allocation11 + $0x20] sm:$0xff] }
  0xb9   :  { %884 = vmatprep.subr.mxu0 %v6237_v56  ;;  %955 = vmatprep.subr.mxu1 %v6239_v2  ;;  %9889 = vst [vmem:[#allocation78_spill] sm:$0xff] %v6251_v38  ;;  %9890 = vst [vmem:[#allocation79_spill] sm:$0xff] %v6255_v47  ;;  %v6257_v56 = vld [vmem:[#allocation11 + $0x30] sm:$0xff]  ;;  %v6261_v2 = vld [vmem:[#allocation11 + $0x8] sm:$0xff] }
  0xba   :  { %885 = vmatpush1.msra.mxu0 %v6243_v0  ;;  %956 = vmatpush1.msra.mxu1 %v6245_v26  ;;  %9891 = vst [vmem:[#allocation80_spill] sm:$0xff] %v6257_v56  ;;  %9892 = vst [vmem:[#allocation81_spill] sm:$0xff] %v6261_v2  ;;  %v6263_v0 = vld [vmem:[#allocation11 + $0x18] sm:$0xff]  ;;  %v6267_v26 = vld [vmem:[#allocation11] sm:$0xff] }
  0xbb   :  { %886 = vmatprep.subr.mxu0 %v6249_v29  ;;  %957 = vmatprep.subr.mxu1 %v6251_v38  ;;  %9893 = vst [vmem:[#allocation82_spill] sm:$0xff] %v6263_v0  ;;  %9894 = vst [vmem:[#allocation83_spill] sm:$0xff] %v6267_v26  ;;  %v6269_v29 = vld [vmem:[#allocation11 + $0x10] sm:$0xff]  ;;  %v6273_v38 = vld [vmem:[#allocation9 + $0x1e8] sm:$0xff] }
  0xbc   :  { %887 = vmatpush1.msra.mxu0 %v6255_v47  ;;  %958 = vmatpush1.msra.mxu1 %v6257_v56  ;;  %9895 = vst [vmem:[#allocation84_spill] sm:$0xff] %v6269_v29  ;;  %9896 = vst [vmem:[#allocation85_spill] sm:$0xff] %v6273_v38  ;;  %v6275_v47 = vld [vmem:[#allocation9 + $0x1f8] sm:$0xff]  ;;  %v6279_v56 = vld [vmem:[#allocation9 + $0x1e0] sm:$0xff] }
  0xbd   :  { %888 = vmatprep.subr.mxu0 %v6261_v2  ;;  %959 = vmatprep.subr.mxu1 %v6263_v0  ;;  %9897 = vst [vmem:[#allocation86_spill] sm:$0xff] %v6275_v47  ;;  %9898 = vst [vmem:[#allocation87_spill] sm:$0xff] %v6279_v56  ;;  %v6281_v2 = vld [vmem:[#allocation9 + $0x1f0] sm:$0xff]  ;;  %v9900_v0 = vmov 0.0  }
  0xbe   :  { %889 = vmatpush1.msra.mxu0 %v6267_v26  ;;  %960 = vmatpush1.msra.mxu1 %v6269_v29  ;;  %9899 = vst [vmem:[#allocation88_spill] sm:$0xff] %v6281_v2  ;;  %9901 = vst [vmem:[#allocation89_spill] sm:$0xff] %v6285_v25  ;;  %v6287_v26 = vld [vmem:[#allocation9 + $0x1d8] sm:$0xff]  ;;  %v6291_v29 = vld [vmem:[#allocation9 + $0x1c0] sm:$0xff] }
  0xbf   :  { %1000 = vmatprep.subr.mxu0 %v6273_v38  ;;  %1071 = vmatprep.subr.mxu1 %v6275_v47  ;;  %9902 = vst [vmem:[#allocation90_spill] sm:$0xff] %v6287_v26  ;;  %9903 = vst [vmem:[#allocation91_spill] sm:$0xff] %v6291_v29  ;;  %v6293_v38 = vld [vmem:[#allocation9 + $0x1d0] sm:$0xff]  ;;  %v6297_v47 = vld [vmem:[#allocation9 + $0x1a8] sm:$0xff] }
  0xc0   :  { %923 = vmatmul.mubr.f32.vlgmr.msra.gmra.mxu0 %v9900_v0  ;;  %994 = vmatmul.mubr.f32.vlgmr.msra.gmra.mxu1 %v9900_v0  ;;  %9904 = vst [vmem:[#allocation92_spill] sm:$0xff] %v6293_v38  ;;  %9905 = vst [vmem:[#allocation93_spill] sm:$0xff] %v6297_v47 }
  0xc1   :  { %1001 = vmatpush1.msra.mxu0 %v6279_v56  ;;  %1072 = vmatpush1.msra.mxu1 %v6281_v2  ;;  %v6305_v56 = vld [vmem:[#allocation9 + $0x1b0] sm:$0xff]  ;;  %v6309_v2 = vld [vmem:[#allocation9 + $0x188] sm:$0xff] }
  0xc2   :  { %1002 = vmatprep.subr.mxu0 %v6285_v25  ;;  %1073 = vmatprep.subr.mxu1 %v6287_v26  ;;  %9908 = vst [vmem:[#allocation96_spill] sm:$0xff] %v6305_v56  ;;  %9909 = vst [vmem:[#allocation97_spill] sm:$0xff] %v6309_v2  ;;  %v6311_v25 = vld [vmem:[#allocation9 + $0x198] sm:$0xff]  ;;  %v6315_v26 = vld [vmem:[#allocation9 + $0x180] sm:$0xff] }
  0xc3   :  { %1003 = vmatpush1.msra.mxu0 %v6291_v29  ;;  %1074 = vmatpush1.msra.mxu1 %v6293_v38  ;;  %9910 = vst [vmem:[#allocation98_spill] sm:$0xff] %v6311_v25  ;;  %9911 = vst [vmem:[#allocation99_spill] sm:$0xff] %v6315_v26  ;;  %v6317_v29 = vld [vmem:[#allocation9 + $0x190] sm:$0xff]  ;;  %v6321_v38 = vld [vmem:[#allocation9 + $0x168] sm:$0xff] }
  0xc4   :  { %1004 = vmatprep.subr.mxu0 %v6297_v47  ;;  %1075 = vmatprep.subr.mxu1 %v6299_v24  ;;  %9912 = vst [vmem:[#allocation100_spill] sm:$0xff] %v6317_v29  ;;  %9913 = vst [vmem:[#allocation101_spill] sm:$0xff] %v6321_v38  ;;  %v6323_v47 = vld [vmem:[#allocation9 + $0x178] sm:$0xff]  ;;  %v6327_v24 = vld [vmem:[#allocation9 + $0x160] sm:$0xff] }
  0xc5   :  { %1005 = vmatpush1.msra.mxu0 %v6303_v23  ;;  %1076 = vmatpush1.msra.mxu1 %v6305_v56  ;;  %9914 = vst [vmem:[#allocation102_spill] sm:$0xff] %v6323_v47  ;;  %9915 = vst [vmem:[#allocation103_spill] sm:$0xff] %v6327_v24  ;;  %v6329_v23 = vld [vmem:[#allocation9 + $0x170] sm:$0xff]  ;;  %v6333_v56 = vld [vmem:[#allocation9 + $0x148] sm:$0xff] }
  0xc6   :  { %1006 = vmatprep.subr.mxu0 %v6309_v2  ;;  %1077 = vmatprep.subr.mxu1 %v6311_v25  ;;  %9916 = vst [vmem:[#allocation104_spill] sm:$0xff] %v6329_v23  ;;  %9917 = vst [vmem:[#allocation105_spill] sm:$0xff] %v6333_v56  ;;  %v6335_v2 = vld [vmem:[#allocation9 + $0x158] sm:$0xff]  ;;  %v6339_v25 = vld [vmem:[#allocation9 + $0x140] sm:$0xff] }
  0xc7   :  { %1007 = vmatpush1.msra.mxu0 %v6315_v26  ;;  %1078 = vmatpush1.msra.mxu1 %v6317_v29  ;;  %9918 = vst [vmem:[#allocation106_spill] sm:$0xff] %v6335_v2  ;;  %9919 = vst [vmem:[#allocation107_spill] sm:$0xff] %v6339_v25  ;;  %v6341_v26 = vld [vmem:[#allocation9 + $0x150] sm:$0xff]  ;;  %v6345_v29 = vld [vmem:[#allocation9 + $0x128] sm:$0xff] }
  0xc8   :  { %1008 = vmatprep.subr.mxu0 %v6321_v38  ;;  %1079 = vmatprep.subr.mxu1 %v6323_v47  ;;  %9920 = vst [vmem:[#allocation108_spill] sm:$0xff] %v6341_v26  ;;  %9921 = vst [vmem:[#allocation109_spill] sm:$0xff] %v6345_v29  ;;  %v6347_v38 = vld [vmem:[#allocation9 + $0x138] sm:$0xff]  ;;  %v6351_v47 = vld [vmem:[#allocation9 + $0x120] sm:$0xff] }
  0xc9   :  { %1009 = vmatpush1.msra.mxu0 %v6327_v24  ;;  %1080 = vmatpush1.msra.mxu1 %v6329_v23  ;;  %9922 = vst [vmem:[#allocation110_spill] sm:$0xff] %v6347_v38  ;;  %9923 = vst [vmem:[#allocation111_spill] sm:$0xff] %v6351_v47  ;;  %v6353_v24 = vld [vmem:[#allocation9 + $0x130] sm:$0xff]  ;;  %v6357_v23 = vld [vmem:[#allocation9 + $0x108] sm:$0xff] }
  0xca   :  { %1010 = vmatprep.subr.mxu0 %v6333_v56  ;;  %1081 = vmatprep.subr.mxu1 %v6335_v2  ;;  %9924 = vst [vmem:[#allocation112_spill] sm:$0xff] %v6353_v24  ;;  %9925 = vst [vmem:[#allocation113_spill] sm:$0xff] %v6357_v23  ;;  %v6359_v56 = vld [vmem:[#allocation9 + $0x118] sm:$0xff]  ;;  %v6363_v2 = vld [vmem:[#allocation9 + $0x100] sm:$0xff] }
  0xcb   :  { %1011 = vmatpush1.msra.mxu0 %v6339_v25  ;;  %1082 = vmatpush1.msra.mxu1 %v6341_v26  ;;  %9926 = vst [vmem:[#allocation114_spill] sm:$0xff] %v6359_v56  ;;  %9927 = vst [vmem:[#allocation115_spill] sm:$0xff] %v6363_v2  ;;  %v6365_v25 = vld [vmem:[#allocation9 + $0x110] sm:$0xff]  ;;  %v6369_v26 = vld [vmem:[#allocation9 + $0xe8] sm:$0xff] }
  0xcc   :  { %1012 = vmatprep.subr.mxu0 %v6345_v29  ;;  %1083 = vmatprep.subr.mxu1 %v6347_v38  ;;  %9928 = vst [vmem:[#allocation116_spill] sm:$0xff] %v6365_v25  ;;  %9929 = vst [vmem:[#allocation117_spill] sm:$0xff] %v6369_v26  ;;  %v6371_v29 = vld [vmem:[#allocation9 + $0xf8] sm:$0xff]  ;;  %v6375_v38 = vld [vmem:[#allocation9 + $0xe0] sm:$0xff] }
  0xcd   :  { %1013 = vmatpush1.msra.mxu0 %v6351_v47  ;;  %1084 = vmatpush1.msra.mxu1 %v6353_v24  ;;  %9930 = vst [vmem:[#allocation118_spill] sm:$0xff] %v6371_v29  ;;  %9931 = vst [vmem:[#allocation119_spill] sm:$0xff] %v6375_v38  ;;  %v6377_v47 = vld [vmem:[#allocation9 + $0xf0] sm:$0xff]  ;;  %v6379_v24 = vld [vmem:[#allocation9 + $0xc8] sm:$0xff] }
  0xce   :  { %1014 = vmatprep.subr.mxu0 %v6357_v23  ;;  %1085 = vmatprep.subr.mxu1 %v6359_v56  ;;  %9932 = vst [vmem:[#allocation120_spill] sm:$0xff] %v6377_v47  ;;  %9933 = vst [vmem:[#allocation121_spill] sm:$0xff] %v6379_v24  ;;  %v6383_v23 = vld [vmem:[#allocation9 + $0xd8] sm:$0xff]  ;;  %v6385_v56 = vld [vmem:[#allocation9 + $0xc0] sm:$0xff] }
  0xcf   :  { %1015 = vmatpush1.msra.mxu0 %v6363_v2  ;;  %1086 = vmatpush1.msra.mxu1 %v6365_v25  ;;  %9934 = vst [vmem:[#allocation122_spill] sm:$0xff] %v6383_v23  ;;  %9935 = vst [vmem:[#allocation123_spill] sm:$0xff] %v6385_v56  ;;  %v6391_v25 = vld [vmem:[#allocation9 + $0xa8] sm:$0xff]  ;;  %v6393_v2 = vld [vmem:[#allocation9 + $0xb8] sm:$0xff] }
  0xd0   :  { %1016 = vmatprep.subr.mxu0 %v6369_v26  ;;  %1087 = vmatprep.subr.mxu1 %v6371_v29  ;;  %9937 = vst [vmem:[#allocation125_spill] sm:$0xff] %v6391_v25  ;;  %9938 = vst [vmem:[#allocation126_spill] sm:$0xff] %v6393_v2  ;;  %v6397_v26 = vld [vmem:[#allocation9 + $0xa0] sm:$0xff]  ;;  %v6399_v29 = vld [vmem:[#allocation9 + $0xb0] sm:$0xff] }
  0xd1   :  { %1017 = vmatpush1.msra.mxu0 %v6375_v38  ;;  %1088 = vmatpush1.msra.mxu1 %v6377_v47  ;;  %9939 = vst [vmem:[#allocation127_spill] sm:$0xff] %v6397_v26  ;;  %9940 = vst [vmem:[#allocation128_spill] sm:$0xff] %v6399_v29  ;;  %v6405_v38 = vld [vmem:[#allocation9 + $0x98] sm:$0xff]  ;;  %v6409_v47 = vld [vmem:[#allocation9 + $0x80] sm:$0xff] }
  0xd2   :  { %1018 = vmatprep.subr.mxu0 %v6379_v24  ;;  %1089 = vmatprep.subr.mxu1 %v6383_v23  ;;  %9942 = vst [vmem:[#allocation130_spill] sm:$0xff] %v6405_v38  ;;  %9943 = vst [vmem:[#allocation131_spill] sm:$0xff] %v6409_v47  ;;  %v6411_v24 = vld [vmem:[#allocation9 + $0x90] sm:$0xff]  ;;  %v6415_v23 = vld [vmem:[#allocation9 + $0x68] sm:$0xff] }
  0xd3   :  { %1019 = vmatpush1.msra.mxu0 %v6385_v56  ;;  %1090 = vmatpush1.msra.mxu1 %v6387_v22  ;;  %9944 = vst [vmem:[#allocation132_spill] sm:$0xff] %v6411_v24  ;;  %9945 = vst [vmem:[#allocation133_spill] sm:$0xff] %v6415_v23  ;;  %v6417_v56 = vld [vmem:[#allocation9 + $0x78] sm:$0xff]  ;;  %v6421_v22 = vld [vmem:[#allocation9 + $0x60] sm:$0xff] }
  0xd4   :  { %1020 = vmatprep.subr.mxu0 %v6391_v25  ;;  %1091 = vmatprep.subr.mxu1 %v6393_v2  ;;  %9946 = vst [vmem:[#allocation134_spill] sm:$0xff] %v6417_v56  ;;  %9947 = vst [vmem:[#allocation135_spill] sm:$0xff] %v6421_v22  ;;  %v6423_v25 = vld [vmem:[#allocation9 + $0x70] sm:$0xff]  ;;  %v6427_v2 = vld [vmem:[#allocation9 + $0x48] sm:$0xff] }
  0xd5   :  { %1021 = vmatpush1.msra.mxu0 %v6397_v26  ;;  %1092 = vmatpush1.msra.mxu1 %v6399_v29  ;;  %9948 = vst [vmem:[#allocation136_spill] sm:$0xff] %v6423_v25  ;;  %9949 = vst [vmem:[#allocation137_spill] sm:$0xff] %v6427_v2  ;;  %v6429_v26 = vld [vmem:[#allocation9 + $0x58] sm:$0xff]  ;;  %v6433_v29 = vld [vmem:[#allocation9 + $0x40] sm:$0xff] }
  0xd6   :  { %1022 = vmatprep.subr.mxu0 %v6403_v21  ;;  %1093 = vmatprep.subr.mxu1 %v6405_v38  ;;  %9950 = vst [vmem:[#allocation138_spill] sm:$0xff] %v6429_v26  ;;  %9951 = vst [vmem:[#allocation139_spill] sm:$0xff] %v6433_v29  ;;  %v6435_v21 = vld [vmem:[#allocation9 + $0x50] sm:$0xff]  ;;  %v6439_v38 = vld [vmem:[#allocation9 + $0x28] sm:$0xff] }
  0xd7   :  { %1023 = vmatpush1.msra.mxu0 %v6409_v47  ;;  %1094 = vmatpush1.msra.mxu1 %v6411_v24  ;;  %9952 = vst [vmem:[#allocation140_spill] sm:$0xff] %v6435_v21  ;;  %9953 = vst [vmem:[#allocation141_spill] sm:$0xff] %v6439_v38  ;;  %v6441_v47 = vld [vmem:[#allocation9 + $0x38] sm:$0xff]  ;;  %v6445_v24 = vld [vmem:[#allocation9 + $0x20] sm:$0xff] }
  0xd8   :  { %1024 = vmatprep.subr.mxu0 %v6415_v23  ;;  %1095 = vmatprep.subr.mxu1 %v6417_v56  ;;  %9954 = vst [vmem:[#allocation142_spill] sm:$0xff] %v6441_v47  ;;  %9955 = vst [vmem:[#allocation143_spill] sm:$0xff] %v6445_v24  ;;  %v6447_v23 = vld [vmem:[#allocation9 + $0x30] sm:$0xff]  ;;  %v6451_v56 = vld [vmem:[#allocation9 + $0x8] sm:$0xff] }
  0xd9   :  { %1025 = vmatpush1.msra.mxu0 %v6421_v22  ;;  %1096 = vmatpush1.msra.mxu1 %v6423_v25  ;;  %9956 = vst [vmem:[#allocation144_spill] sm:$0xff] %v6447_v23  ;;  %9957 = vst [vmem:[#allocation145_spill] sm:$0xff] %v6451_v56  ;;  %v6453_v22 = vld [vmem:[#allocation9 + $0x18] sm:$0xff]  ;;  %v6457_v25 = vld [vmem:[#allocation9] sm:$0xff] }
  0xda   :  { %1026 = vmatprep.subr.mxu0 %v6427_v2  ;;  %1097 = vmatprep.subr.mxu1 %v6429_v26  ;;  %9958 = vst [vmem:[#allocation146_spill] sm:$0xff] %v6453_v22  ;;  %9959 = vst [vmem:[#allocation147_spill] sm:$0xff] %v6457_v25  ;;  %v6459_v2 = vld [vmem:[#allocation9 + $0x10] sm:$0xff] }
  0xdb   :  { %1027 = vmatpush1.msra.mxu0 %v6433_v29  ;;  %1098 = vmatpush1.msra.mxu1 %v6435_v21  ;;  %9960 = vst [vmem:[#allocation148_spill] sm:$0xff] %v6459_v2 }
  0xdc   :  { %1028 = vmatprep.subr.mxu0 %v6439_v38  ;;  %1099 = vmatprep.subr.mxu1 %v6441_v47  ;;  %v189_v47 = vlaneseq }
  0xdd   :  { %1029 = vmatpush1.msra.mxu0 %v6445_v24  ;;  %1100 = vmatpush1.msra.mxu1 %v6447_v23 }
  0xde   :  { %1030 = vmatprep.subr.mxu0 %v6451_v56  ;;  %1101 = vmatprep.subr.mxu1 %v6453_v22  ;;  %v6471_v24 = vshrl.u32 %v189_v47, 7 }
  0xdf   :  { %1031 = vmatpush1.msra.mxu0 %v6457_v25  ;;  %1102 = vmatpush1.msra.mxu1 %v6459_v2  ;;  %v187_v2 = vld [vmem:[%s9295_s3] sm:$0xf] }
  0xe0   :  { %1064 = vmatprep.mubr.f32.mxu0 %v9900_v0  ;;  %1135 = vmatprep.mubr.f32.mxu1 %v9900_v0  ;;  %v9430_v22 = vsub.s32 0, %v6471_v24  ;;  %v9432_v25 = vsub.s32 2, %v6471_v24  ;;  %v9437_v47 = vsub.s32 3, %v6471_v24 }
  0xe1   :  { %1177 = vmatprep.subr.mxu0 %v5929_v3  ;;  %1248 = vmatprep.subr.mxu1 %v5931_v4  ;;  %v9436_v4 = vsub.s32 1, %v6471_v24 }
  0xe2   :  { %v192_v21 = vrot.slane %v187_v2, %v9430_v22  ;;  %v6492_v29 = vrot.slane %v187_v2, %v9432_v25  ;;  %v6498_v18 = vrot.slane %v187_v2, %v9437_v47 }
  0xe3   :  { %v196_v19 = vrot.slane %v187_v2, %v9436_v4 }
 0x12d   :  { %v6473_v23 = vpop.f32.mrf.mxu0  ;;  %v6475_v56 = vpop.f32.mrf.mxu1 }
 0x12f   :  { %v6482_v38 = vpop.f32.mrf.mxu0  ;;  %v6484_v3 = vpop.f32.mrf.mxu1 }
 0x133   :  { %v281_v26 = vpop.f32.mrf.mxu0  ;;  %v394_v20 = vpop.f32.mrf.mxu1 }
 0x134   :  { %v6500_v17 = vadd.f32 %v281_v26, %v192_v21  ;;  %v6503_v16 = vadd.f32 %v394_v20, %v6492_v29 }
 0x135   :  { %v283_v15 = vpop.f32.mrf.mxu0  ;;  %v396_v22 = vpop.f32.mrf.mxu1 }
 0x136   :  { %9961 = vst [vmem:[#allocation149_spill] sm:$0xff] %v6500_v17  ;;  %9962 = vst [vmem:[#allocation150_spill] sm:$0xff] %v6503_v16  ;;  %v6505_v14 = vadd.f32 %v283_v15, %v196_v19  ;;  %v6508_v25 = vadd.f32 %v396_v22, %v6498_v18 }
 0x138   :  { %9963 = vst [vmem:[#allocation151_spill] sm:$0xff] %v6505_v14  ;;  %9964 = vst [vmem:[#allocation152_spill] sm:$0xff] %v6508_v25 }
 0x139   :  { %v287_v13 = vpop.f32.mrf.mxu0  ;;  %v400_v12 = vpop.f32.mrf.mxu1 }
 0x13a   :  { %v6510_v0 = vadd.f32 %v287_v13, %v192_v21  ;;  %v6513_v4 = vadd.f32 %v400_v12, %v6492_v29 }
 0x13b   :  { %v289_v2 = vpop.f32.mrf.mxu0  ;;  %v402_v26 = vpop.f32.mrf.mxu1 }
 0x13c   :  { %9965 = vst [vmem:[#allocation153_spill] sm:$0xff] %v6510_v0  ;;  %9966 = vst [vmem:[#allocation154_spill] sm:$0xff] %v6513_v4  ;;  %v6515_v47 = vadd.f32 %v289_v2, %v196_v19  ;;  %v6518_v20 = vadd.f32 %v402_v26, %v6498_v18 }
 0x13e   :  { %9967 = vst [vmem:[#allocation155_spill] sm:$0xff] %v6515_v47  ;;  %9968 = vst [vmem:[#allocation156_spill] sm:$0xff] %v6518_v20 }
 0x13f   :  { %v293_v16 = vpop.f32.mrf.mxu0  ;;  %v406_v15 = vpop.f32.mrf.mxu1 }
 0x140   :  { %v6520_v14 = vadd.f32 %v293_v16, %v192_v21  ;;  %v6523_v22 = vadd.f32 %v406_v15, %v6492_v29 }
 0x141   :  { %v295_v25 = vpop.f32.mrf.mxu0  ;;  %v408_v13 = vpop.f32.mrf.mxu1 }
 0x142   :  { %9969 = vst [vmem:[#allocation157_spill] sm:$0xff] %v6520_v14  ;;  %9970 = vst [vmem:[#allocation158_spill] sm:$0xff] %v6523_v22  ;;  %v6525_v0 = vadd.f32 %v295_v25, %v196_v19  ;;  %v6528_v12 = vadd.f32 %v408_v13, %v6498_v18 }
 0x144   :  { %9971 = vst [vmem:[#allocation159_spill] sm:$0xff] %v6525_v0  ;;  %9972 = vst [vmem:[#allocation160_spill] sm:$0xff] %v6528_v12 }
 0x145   :  { %v299_v4 = vpop.f32.mrf.mxu0  ;;  %v412_v2 = vpop.f32.mrf.mxu1 }
 0x146   :  { %v6530_v47 = vadd.f32 %v299_v4, %v192_v21  ;;  %v6533_v26 = vadd.f32 %v412_v2, %v6492_v29 }
 0x147   :  { %v301_v20 = vpop.f32.mrf.mxu0  ;;  %v414_v16 = vpop.f32.mrf.mxu1 }
 0x148   :  { %9973 = vst [vmem:[#allocation161_spill] sm:$0xff] %v6530_v47  ;;  %9974 = vst [vmem:[#allocation162_spill] sm:$0xff] %v6533_v26  ;;  %v6535_v14 = vadd.f32 %v301_v20, %v196_v19  ;;  %v6538_v15 = vadd.f32 %v414_v16, %v6498_v18 }
 0x14a   :  { %9975 = vst [vmem:[#allocation163_spill] sm:$0xff] %v6535_v14  ;;  %9976 = vst [vmem:[#allocation164_spill] sm:$0xff] %v6538_v15 }
 0x14b   :  { %v305_v22 = vpop.f32.mrf.mxu0  ;;  %v418_v25 = vpop.f32.mrf.mxu1 }
 0x14c   :  { %v6540_v0 = vadd.f32 %v305_v22, %v192_v21  ;;  %v6543_v13 = vadd.f32 %v418_v25, %v6492_v29 }
 0x14d   :  { %v307_v12 = vpop.f32.mrf.mxu0  ;;  %v420_v4 = vpop.f32.mrf.mxu1 }
 0x14e   :  { %9977 = vst [vmem:[#allocation165_spill] sm:$0xff] %v6540_v0  ;;  %9978 = vst [vmem:[#allocation166_spill] sm:$0xff] %v6543_v13  ;;  %v6545_v47 = vadd.f32 %v307_v12, %v196_v19  ;;  %v6548_v2 = vadd.f32 %v420_v4, %v6498_v18 }
 0x150   :  { %9979 = vst [vmem:[#allocation167_spill] sm:$0xff] %v6545_v47  ;;  %9980 = vst [vmem:[#allocation168_spill] sm:$0xff] %v6548_v2 }
 0x151   :  { %v311_v26 = vpop.f32.mrf.mxu0  ;;  %v424_v20 = vpop.f32.mrf.mxu1 }
 0x152   :  { %v6550_v14 = vadd.f32 %v311_v26, %v192_v21  ;;  %v6553_v16 = vadd.f32 %v424_v20, %v6492_v29 }
 0x153   :  { %v313_v15 = vpop.f32.mrf.mxu0  ;;  %v426_v22 = vpop.f32.mrf.mxu1 }
 0x154   :  { %9981 = vst [vmem:[#allocation169_spill] sm:$0xff] %v6550_v14  ;;  %9982 = vst [vmem:[#allocation170_spill] sm:$0xff] %v6553_v16  ;;  %v6555_v0 = vadd.f32 %v313_v15, %v196_v19  ;;  %v6558_v25 = vadd.f32 %v426_v22, %v6498_v18  ;;  %v276_v15 = vadd.f32 %v6473_v23, %v192_v21 }
 0x155   :  { %v278_v22 = vadd.f32 %v6482_v38, %v196_v19 }
 0x156   :  { %9983 = vst [vmem:[#allocation171_spill] sm:$0xff] %v6555_v0  ;;  %9984 = vst [vmem:[#allocation172_spill] sm:$0xff] %v6558_v25 }
 0x157   :  { %v317_v13 = vpop.f32.mrf.mxu0  ;;  %v430_v12 = vpop.f32.mrf.mxu1 }
 0x158   :  { %v6560_v47 = vadd.f32 %v317_v13, %v192_v21  ;;  %v6563_v4 = vadd.f32 %v430_v12, %v6492_v29 }
 0x159   :  { %v319_v2 = vpop.f32.mrf.mxu0  ;;  %v432_v26 = vpop.f32.mrf.mxu1 }
 0x15a   :  { %9985 = vst [vmem:[#allocation173_spill] sm:$0xff] %v6560_v47  ;;  %9986 = vst [vmem:[#allocation174_spill] sm:$0xff] %v6563_v4  ;;  %v6565_v14 = vadd.f32 %v319_v2, %v196_v19  ;;  %v6568_v20 = vadd.f32 %v432_v26, %v6498_v18  ;;  %v391_v2 = vadd.f32 %v6484_v3, %v6498_v18 }
 0x15b   :  { %v389_v26 = vadd.f32 %v6475_v56, %v6492_v29 }
 0x15c   :  { %9987 = vst [vmem:[#allocation175_spill] sm:$0xff] %v6565_v14  ;;  %9988 = vst [vmem:[#allocation176_spill] sm:$0xff] %v6568_v20 }
 0x15d   :  { %v626_v16 = vpop.f32.mrf.mxu0  ;;  %v697_v47 = vpop.f32.mrf.mxu1 }
 0x15e   :  { %v702_v25 = vadd.f32 %v626_v16, %v276_v15  ;;  %v704_v20 = vadd.f32 %v697_v47, %v389_v26  ;;  %v6583_v47 = vld [vmem:[#allocation8 + $0x1e0] sm:$0xff]  ;;  %v6598_v26 = vld [vmem:[#allocation8 + $0x1d0] sm:$0xff] }
 0x15f   :  { %v628_v0 = vpop.f32.mrf.mxu0  ;;  %v699_v4 = vpop.f32.mrf.mxu1 }
 0x160   :  { %v4712_v17 = vmul.f32 -1.442695, %v702_v25  ;;  %v703_v13 = vadd.f32 %v628_v0, %v278_v22  ;;  %v705_v14 = vadd.f32 %v699_v4, %v391_v2  ;;  %v6595_v2 = vld [vmem:[#allocation8 + $0x1c0] sm:$0xff] }
 0x162   :  { %4826 = vpow2.f32 %v4712_v17  ;;  %v4713_v12 = vmul.f32 -1.442695, %v703_v13  ;;  %v4714_v21 = vmul.f32 -1.442695, %v705_v14  ;;  %v6589_v13 = vld [vmem:[#allocation8 + $0x1c8] sm:$0xff] }
 0x164   :  { %4828 = vpow2.f32 %v4713_v12  ;;  %v6592_v12 = vld [vmem:[#allocation8 + $0x1d8] sm:$0xff] }
 0x165   :  { %4830 = vpow2.f32 %v4714_v21  ;;  %v6601_v21 = vld [vmem:[#allocation8 + $0x1a8] sm:$0xff] }
 0x16f   :  { %v4827_v23 = vpop.eup %4826 }
 0x170   :  { %v709_v19 = vadd.f32 1.0, %v4827_v23  ;;  %v6604_v23 = vld [vmem:[#allocation8 + $0x1b8] sm:$0xff] }
 0x171   :  { %v4829_v38 = vpop.eup %4828 }
 0x172   :  { %4832 = vrcp.f32 %v709_v19  ;;  %v715_v0 = vadd.f32 1.0, %v4829_v38  ;;  %v4831_v17 = vpop.eup %4830  ;;  %v6607_v19 = vld [vmem:[#allocation8 + $0x1a0] sm:$0xff]  ;;  %v6610_v38 = vld [vmem:[#allocation8 + $0x1b0] sm:$0xff] }
 0x173   :  { %4834 = vtanh.f32 %v704_v20  ;;  %v722_v22 = vadd.f32 1.0, %v4831_v17  ;;  %v6586_v20 = vld [vmem:[#allocation8 + $0x1f0] sm:$0xff]  ;;  %v6616_v17 = vld [vmem:[#allocation8 + $0x198] sm:$0xff] }
 0x174   :  { %4836 = vrcp.f32 %v715_v0  ;;  %v6613_v0 = vld [vmem:[#allocation8 + $0x188] sm:$0xff] }
 0x175   :  { %4838 = vrcp.f32 %v722_v22  ;;  %v6628_v22 = vld [vmem:[#allocation8 + $0x178] sm:$0xff] }
 0x17f   :  { %v4833_v16 = vpop.eup %4832 }
 0x180   :  { %v4835_v25 = vpop.eup %4834 }
 0x181   :  { %v4837_v15 = vpop.eup %4836  ;;  %v726_v3 = vmul.f32 %v4835_v25, %v4833_v16  ;;  %v6619_v16 = vld [vmem:[#allocation8 + $0x180] sm:$0xff]  ;;  %v6622_v25 = vld [vmem:[#allocation8 + $0x190] sm:$0xff] }
 0x182   :  { %v725_v18 = vmul.f32 0.0, %v4837_v15  ;;  %v4839_v14 = vpop.eup %4838  ;;  %v6625_v15 = vld [vmem:[#allocation8 + $0x168] sm:$0xff] }
 0x184   :  { %v6576_v4 = vadd.f32 %v726_v3, %v725_v18  ;;  %v6631_v18 = vld [vmem:[#allocation8 + $0x160] sm:$0xff]  ;;  %v6634_v3 = vld [vmem:[#allocation8 + $0x170] sm:$0xff] }
 0x186   :  { %4840 = vtanh.f32 %v6576_v4 }
 0x193   :  { %v4841_v29 = vpop.eup %4840 }
 0x194   :  { %v6579_v56 = vmul.f32 %v4841_v29, %v4839_v14  ;;  %v6637_v14 = vld [vmem:[#allocation8 + $0x148] sm:$0xff]  ;;  %v6640_v29 = vld [vmem:[#allocation8 + $0x158] sm:$0xff] }
 0x196   :  { %1065 = vmatmul.mubr.f32.vlgmr.msra.gmra.mxu0 %v6579_v56  ;;  %1136 = vmatmul.mubr.f32.vlgmr.msra.gmra.mxu1 %v6579_v56 }
 0x197   :  { %1178 = vmatpush1.msra.mxu0 %v6583_v47  ;;  %1249 = vmatpush1.msra.mxu1 %v6586_v20 }
 0x198   :  { %1179 = vmatprep.subr.mxu0 %v6589_v13  ;;  %1250 = vmatprep.subr.mxu1 %v6592_v12 }
 0x199   :  { %1180 = vmatpush1.msra.mxu0 %v6595_v2  ;;  %1251 = vmatpush1.msra.mxu1 %v6598_v26 }
 0x19a   :  { %1181 = vmatprep.subr.mxu0 %v6601_v21  ;;  %1252 = vmatprep.subr.mxu1 %v6604_v23 }
 0x19b   :  { %1182 = vmatpush1.msra.mxu0 %v6607_v19  ;;  %1253 = vmatpush1.msra.mxu1 %v6610_v38 }
 0x19c   :  { %1183 = vmatprep.subr.mxu0 %v6613_v0  ;;  %1254 = vmatprep.subr.mxu1 %v6616_v17 }
 0x19d   :  { %1184 = vmatpush1.msra.mxu0 %v6619_v16  ;;  %1255 = vmatpush1.msra.mxu1 %v6622_v25 }
 0x19e   :  { %1185 = vmatprep.subr.mxu0 %v6625_v15  ;;  %1256 = vmatprep.subr.mxu1 %v6628_v22 }
 0x19f   :  { %1186 = vmatpush1.msra.mxu0 %v6631_v18  ;;  %1257 = vmatpush1.msra.mxu1 %v6634_v3 }
 0x1a0   :  { %1187 = vmatprep.subr.mxu0 %v6637_v14  ;;  %1258 = vmatprep.subr.mxu1 %v6640_v29 }
 0x1a1   :  { %1188 = vmatpush1.msra.mxu0 %v5939_v27  ;;  %1259 = vmatpush1.msra.mxu1 %v5941_v28  ;;  %v9989_v27 = vmov 0.0   ;;  %v9990_v28 = vld [vmem:[#allocation20_spill] sm:$0xff] }
 0x1a2   :  { %1189 = vmatprep.subr.mxu0 %v5945_v30  ;;  %1260 = vmatprep.subr.mxu1 %v5947_v31  ;;  %v9991_v30 = vld [vmem:[#allocation21_spill] sm:$0xff]  ;;  %v9992_v31 = vld [vmem:[#allocation22_spill] sm:$0xff] }
 0x1a3   :  { %1190 = vmatpush1.msra.mxu0 %v5951_v32  ;;  %1261 = vmatpush1.msra.mxu1 %v5953_v33  ;;  %v9993_v32 = vld [vmem:[#allocation23_spill] sm:$0xff]  ;;  %v9994_v33 = vld [vmem:[#allocation24_spill] sm:$0xff] }
 0x1a4   :  { %1191 = vmatprep.subr.mxu0 %v5955_v34  ;;  %1262 = vmatprep.subr.mxu1 %v5957_v35  ;;  %v9995_v34 = vld [vmem:[#allocation25_spill] sm:$0xff]  ;;  %v9996_v35 = vld [vmem:[#allocation26_spill] sm:$0xff] }
 0x1a5   :  { %1192 = vmatpush1.msra.mxu0 %v5963_v36  ;;  %1263 = vmatpush1.msra.mxu1 %v5965_v37  ;;  %v9997_v36 = vld [vmem:[#allocation27_spill] sm:$0xff]  ;;  %v9998_v37 = vld [vmem:[#allocation28_spill] sm:$0xff] }
 0x1a6   :  { %1193 = vmatprep.subr.mxu0 %v5971_v39  ;;  %1264 = vmatprep.subr.mxu1 %v5973_v40  ;;  %v9999_v39 = vld [vmem:[#allocation29_spill] sm:$0xff]  ;;  %v10000_v40 = vld [vmem:[#allocation30_spill] sm:$0xff] }
 0x1a7   :  { %1194 = vmatpush1.msra.mxu0 %v5977_v41  ;;  %1265 = vmatpush1.msra.mxu1 %v5979_v42  ;;  %v10001_v41 = vld [vmem:[#allocation31_spill] sm:$0xff]  ;;  %v10002_v42 = vld [vmem:[#allocation32_spill] sm:$0xff] }
 0x1a8   :  { %1195 = vmatprep.subr.mxu0 %v5981_v43  ;;  %1266 = vmatprep.subr.mxu1 %v5983_v44  ;;  %v10003_v43 = vld [vmem:[#allocation33_spill] sm:$0xff]  ;;  %v10004_v44 = vld [vmem:[#allocation34_spill] sm:$0xff] }
 0x1a9   :  { %1196 = vmatpush1.msra.mxu0 %v5989_v45  ;;  %1267 = vmatpush1.msra.mxu1 %v5991_v46  ;;  %v10005_v45 = vld [vmem:[#allocation35_spill] sm:$0xff]  ;;  %v10006_v46 = vld [vmem:[#allocation36_spill] sm:$0xff] }
 0x1aa   :  { %1197 = vmatprep.subr.mxu0 %v5997_v48  ;;  %1268 = vmatprep.subr.mxu1 %v5999_v49  ;;  %v10007_v48 = vld [vmem:[#allocation37_spill] sm:$0xff]  ;;  %v10008_v49 = vld [vmem:[#allocation38_spill] sm:$0xff] }
 0x1ab   :  { %1198 = vmatpush1.msra.mxu0 %v6003_v50  ;;  %1269 = vmatpush1.msra.mxu1 %v6005_v51  ;;  %v10009_v50 = vld [vmem:[#allocation39_spill] sm:$0xff]  ;;  %v10010_v51 = vld [vmem:[#allocation40_spill] sm:$0xff] }
 0x1ac   :  { %1199 = vmatprep.subr.mxu0 %v6007_v52  ;;  %1270 = vmatprep.subr.mxu1 %v6009_v53  ;;  %v10011_v52 = vld [vmem:[#allocation41_spill] sm:$0xff]  ;;  %v10012_v53 = vld [vmem:[#allocation42_spill] sm:$0xff] }
 0x1ad   :  { %1200 = vmatpush1.msra.mxu0 %v6015_v54  ;;  %1271 = vmatpush1.msra.mxu1 %v6017_v55  ;;  %v10013_v54 = vld [vmem:[#allocation43_spill] sm:$0xff]  ;;  %v10014_v55 = vld [vmem:[#allocation44_spill] sm:$0xff] }
 0x1ae   :  { %1201 = vmatprep.subr.mxu0 %v6023_v57  ;;  %1272 = vmatprep.subr.mxu1 %v6025_v58  ;;  %v10015_v57 = vld [vmem:[#allocation45_spill] sm:$0xff]  ;;  %v10016_v58 = vld [vmem:[#allocation46_spill] sm:$0xff] }
 0x1af   :  { %1202 = vmatpush1.msra.mxu0 %v6029_v59  ;;  %1273 = vmatpush1.msra.mxu1 %v6031_v60  ;;  %v10017_v59 = vld [vmem:[#allocation47_spill] sm:$0xff]  ;;  %v10018_v60 = vld [vmem:[#allocation48_spill] sm:$0xff] }
 0x1b0   :  { %1203 = vmatprep.subr.mxu0 %v6033_v61  ;;  %1274 = vmatprep.subr.mxu1 %v6035_v62  ;;  %v10019_v61 = vld [vmem:[#allocation49_spill] sm:$0xff]  ;;  %v10020_v62 = vld [vmem:[#allocation50_spill] sm:$0xff] }
 0x1b1   :  { %1204 = vmatpush1.msra.mxu0 %v6041_v63  ;;  %1275 = vmatpush1.msra.mxu1 %v6043_v1  ;;  %v10021_v63 = vld [vmem:[#allocation51_spill] sm:$0xff]  ;;  %v10022_v1 = vld [vmem:[#allocation52_spill] sm:$0xff] }
 0x1b2   :  { %1205 = vmatprep.subr.mxu0 %v6049_v5  ;;  %1276 = vmatprep.subr.mxu1 %v6051_v6  ;;  %v10023_v5 = vld [vmem:[#allocation53_spill] sm:$0xff]  ;;  %v10024_v6 = vld [vmem:[#allocation54_spill] sm:$0xff] }
 0x1b3   :  { %1206 = vmatpush1.msra.mxu0 %v6055_v7  ;;  %1277 = vmatpush1.msra.mxu1 %v6057_v8  ;;  %v10025_v7 = vld [vmem:[#allocation55_spill] sm:$0xff]  ;;  %v10026_v8 = vld [vmem:[#allocation56_spill] sm:$0xff] }
 0x1b4   :  { %1207 = vmatprep.subr.mxu0 %v6059_v9  ;;  %1278 = vmatprep.subr.mxu1 %v6061_v10  ;;  %v10027_v9 = vld [vmem:[#allocation57_spill] sm:$0xff]  ;;  %v10028_v10 = vld [vmem:[#allocation58_spill] sm:$0xff] }
 0x1b5   :  { %1208 = vmatpush1.msra.mxu0 %v6065_v11  ;;  %1241 = vmatprep.mubr.f32.mxu0 %v9989_v27  ;;  %v10029_v11 = vld [vmem:[#allocation59_spill] sm:$0xff] }
 0x1b6   :  { %1279 = vmatpush1.msra.mxu1 %v9990_v28  ;;  %1312 = vmatprep.mubr.f32.mxu1 %v9989_v27  ;;  %v10031_v28 = vld [vmem:[#allocation61_spill] sm:$0xff] }
 0x1b7   :  { %1242 = vmatmul.mubr.f32.vlgmr.msra.gmra.mxu0 %v6579_v56  ;;  %1313 = vmatmul.mubr.f32.vlgmr.msra.gmra.mxu1 %v6579_v56  ;;  %v10030_v56 = vld [vmem:[#allocation60_spill] sm:$0xff] }
 0x1b8   :  { %1347 = vmatprep.subr.mxu0 %v9991_v30  ;;  %1418 = vmatprep.subr.mxu1 %v9992_v31  ;;  %v10032_v30 = vld [vmem:[#allocation62_spill] sm:$0xff]  ;;  %v10033_v31 = vld [vmem:[#allocation63_spill] sm:$0xff] }
 0x1b9   :  { %1348 = vmatpush1.msra.mxu0 %v9993_v32  ;;  %1419 = vmatpush1.msra.mxu1 %v9994_v33  ;;  %v10034_v32 = vld [vmem:[#allocation64_spill] sm:$0xff]  ;;  %v10035_v33 = vld [vmem:[#allocation65_spill] sm:$0xff] }
 0x1ba   :  { %1349 = vmatprep.subr.mxu0 %v9995_v34  ;;  %1420 = vmatprep.subr.mxu1 %v9996_v35  ;;  %v10036_v34 = vld [vmem:[#allocation66_spill] sm:$0xff]  ;;  %v10037_v35 = vld [vmem:[#allocation67_spill] sm:$0xff] }
 0x1bb   :  { %1350 = vmatpush1.msra.mxu0 %v9997_v36  ;;  %1421 = vmatpush1.msra.mxu1 %v9998_v37  ;;  %v10038_v36 = vld [vmem:[#allocation68_spill] sm:$0xff]  ;;  %v10039_v37 = vld [vmem:[#allocation69_spill] sm:$0xff] }
 0x1bc   :  { %1351 = vmatprep.subr.mxu0 %v9999_v39  ;;  %1422 = vmatprep.subr.mxu1 %v10000_v40  ;;  %v10040_v39 = vld [vmem:[#allocation70_spill] sm:$0xff]  ;;  %v10041_v40 = vld [vmem:[#allocation71_spill] sm:$0xff] }
 0x1bd   :  { %1352 = vmatpush1.msra.mxu0 %v10001_v41  ;;  %1423 = vmatpush1.msra.mxu1 %v10002_v42  ;;  %v10042_v41 = vld [vmem:[#allocation72_spill] sm:$0xff]  ;;  %v10043_v42 = vld [vmem:[#allocation73_spill] sm:$0xff] }
 0x1be   :  { %1353 = vmatprep.subr.mxu0 %v10003_v43  ;;  %1424 = vmatprep.subr.mxu1 %v10004_v44  ;;  %v10044_v43 = vld [vmem:[#allocation74_spill] sm:$0xff]  ;;  %v10045_v44 = vld [vmem:[#allocation75_spill] sm:$0xff] }
 0x1bf   :  { %1354 = vmatpush1.msra.mxu0 %v10005_v45  ;;  %1425 = vmatpush1.msra.mxu1 %v10006_v46  ;;  %v10046_v45 = vld [vmem:[#allocation76_spill] sm:$0xff]  ;;  %v10047_v46 = vld [vmem:[#allocation77_spill] sm:$0xff] }
 0x1c0   :  { %1355 = vmatprep.subr.mxu0 %v10007_v48  ;;  %1426 = vmatprep.subr.mxu1 %v10008_v49  ;;  %v10048_v48 = vld [vmem:[#allocation78_spill] sm:$0xff]  ;;  %v10049_v49 = vld [vmem:[#allocation79_spill] sm:$0xff] }
 0x1c1   :  { %1356 = vmatpush1.msra.mxu0 %v10009_v50  ;;  %1427 = vmatpush1.msra.mxu1 %v10010_v51  ;;  %v10050_v50 = vld [vmem:[#allocation80_spill] sm:$0xff]  ;;  %v10051_v51 = vld [vmem:[#allocation81_spill] sm:$0xff] }
 0x1c2   :  { %1357 = vmatprep.subr.mxu0 %v10011_v52  ;;  %1428 = vmatprep.subr.mxu1 %v10012_v53  ;;  %v10052_v52 = vld [vmem:[#allocation82_spill] sm:$0xff]  ;;  %v10053_v53 = vld [vmem:[#allocation83_spill] sm:$0xff] }
 0x1c3   :  { %1358 = vmatpush1.msra.mxu0 %v10013_v54  ;;  %1429 = vmatpush1.msra.mxu1 %v10014_v55  ;;  %v10054_v54 = vld [vmem:[#allocation84_spill] sm:$0xff]  ;;  %v10055_v55 = vld [vmem:[#allocation85_spill] sm:$0xff] }
 0x1c4   :  { %1359 = vmatprep.subr.mxu0 %v10015_v57  ;;  %1430 = vmatprep.subr.mxu1 %v10016_v58  ;;  %v10056_v57 = vld [vmem:[#allocation86_spill] sm:$0xff]  ;;  %v924_v58 = vpop.f32.mrf.mxu0 }
 0x1c5   :  { %1360 = vmatpush1.msra.mxu0 %v10017_v59  ;;  %1431 = vmatpush1.msra.mxu1 %v10018_v60  ;;  %v467_v59 = vld [vmem:[%s9298_s6] sm:$0xf]  ;;  %v995_v60 = vpop.f32.mrf.mxu1 }
 0x1c6   :  { %1361 = vmatprep.subr.mxu0 %v10019_v61  ;;  %1432 = vmatprep.subr.mxu1 %v10020_v62  ;;  %v926_v61 = vpop.f32.mrf.mxu0  ;;  %v10057_v62 = vsub.s32 0, %v6471_v24 }
 0x1c7   :  { %1362 = vmatpush1.msra.mxu0 %v10021_v63  ;;  %1433 = vmatpush1.msra.mxu1 %v10022_v1 }
 0x1c8   :  { %1363 = vmatprep.subr.mxu0 %v10023_v5  ;;  %1434 = vmatprep.subr.mxu1 %v10024_v6  ;;  %v6762_v63 = vrot.slane %v467_v59, %v10057_v62  ;;  %v997_v5 = vpop.f32.mrf.mxu1 }
 0x1c9   :  { %1364 = vmatpush1.msra.mxu0 %v10025_v7  ;;  %1435 = vmatpush1.msra.mxu1 %v10026_v8  ;;  %v10058_v7 = vsub.s32 1, %v6471_v24 }
 0x1ca   :  { %1365 = vmatprep.subr.mxu0 %v10027_v9  ;;  %1436 = vmatprep.subr.mxu1 %v10028_v10 }
 0x1cb   :  { %1366 = vmatpush1.msra.mxu0 %v10029_v11  ;;  %1437 = vmatpush1.msra.mxu1 %v10030_v56  ;;  %v6766_v8 = vrot.slane %v467_v59, %v10058_v7  ;;  %v10063_v7 = vld [vmem:[#allocation152_spill] sm:$0xff] }
 0x1cc   :  { %1367 = vmatprep.subr.mxu0 %v10031_v28  ;;  %1438 = vmatprep.subr.mxu1 %v10032_v30 }
 0x1cd   :  { %1368 = vmatpush1.msra.mxu0 %v10033_v31  ;;  %1439 = vmatpush1.msra.mxu1 %v10034_v32 }
 0x1ce   :  { %1369 = vmatprep.subr.mxu0 %v10035_v33  ;;  %1440 = vmatprep.subr.mxu1 %v10036_v34  ;;  %v10059_v33 = vsub.s32 3, %v6471_v24 }
 0x1cf   :  { %1370 = vmatpush1.msra.mxu0 %v10037_v35  ;;  %1441 = vmatpush1.msra.mxu1 %v10038_v36 }
 0x1d0   :  { %1371 = vmatprep.subr.mxu0 %v10039_v37  ;;  %1442 = vmatprep.subr.mxu1 %v10040_v39  ;;  %v6772_v34 = vrot.slane %v467_v59, %v10059_v33  ;;  %v10060_v37 = vsub.s32 2, %v6471_v24 }
 0x1d1   :  { %1372 = vmatpush1.msra.mxu0 %v10041_v40  ;;  %1443 = vmatpush1.msra.mxu1 %v10042_v41 }
 0x1d2   :  { %1373 = vmatprep.subr.mxu0 %v10043_v42  ;;  %1444 = vmatprep.subr.mxu1 %v10044_v43  ;;  %v6777_v39 = vrot.slane %v467_v59, %v10060_v37  ;;  %v10065_v37 = vld [vmem:[#allocation87_spill] sm:$0xff] }
 0x1d3   :  { %1374 = vmatpush1.msra.mxu0 %v10045_v44  ;;  %1445 = vmatpush1.msra.mxu1 %v10046_v45 }
 0x1d4   :  { %1375 = vmatprep.subr.mxu0 %v10047_v46  ;;  %1446 = vmatprep.subr.mxu1 %v10048_v48 }
 0x1d5   :  { %1376 = vmatpush1.msra.mxu0 %v10049_v49  ;;  %1447 = vmatpush1.msra.mxu1 %v10050_v50  ;;  %v10061_v49 = vld [vmem:[#allocation149_spill] sm:$0xff] }
 0x1d6   :  { %1377 = vmatprep.subr.mxu0 %v10051_v51  ;;  %1448 = vmatprep.subr.mxu1 %v10052_v52 }
 0x1d7   :  { %1378 = vmatpush1.msra.mxu0 %v10053_v53  ;;  %1449 = vmatpush1.msra.mxu1 %v10054_v54  ;;  %v10062_v54 = vld [vmem:[#allocation151_spill] sm:$0xff] }
 0x1d8   :  { %1411 = vmatprep.mubr.f32.mxu0 %v9989_v27  ;;  %1482 = vmatprep.mubr.f32.mxu1 %v9989_v27 }
 0x1d9   :  { %1489 = vmatprep.subr.mxu0 %v10055_v55  ;;  %1560 = vmatprep.subr.mxu1 %v10056_v57 }
 0x256   :  { %v1066_v1 = vpop.f32.mrf.mxu0  ;;  %v1137_v11 = vpop.f32.mrf.mxu1 }
 0x257   :  { %v1067_v6 = vadd.f32 %v1066_v1, %v924_v58  ;;  %v1138_v40 = vadd.f32 %v1137_v11, %v995_v60 }
 0x258   :  { %v1068_v9 = vpop.f32.mrf.mxu0  ;;  %v1139_v32 = vpop.f32.mrf.mxu1 }
 0x259   :  { %v1142_v10 = vadd.f32 %v1067_v6, %v6762_v63  ;;  %v1069_v56 = vadd.f32 %v1068_v9, %v926_v61  ;;  %v1140_v35 = vadd.f32 %v1139_v32, %v997_v5  ;;  %v1144_v43 = vadd.f32 %v1138_v40, %v6777_v39  ;;  %v10066_v40 = vld [vmem:[#allocation88_spill] sm:$0xff] }
 0x25b   :  { %v4715_v28 = vmul.f32 -1.442695, %v1142_v10  ;;  %v1143_v30 = vadd.f32 %v1069_v56, %v6766_v8  ;;  %v1145_v36 = vadd.f32 %v1140_v35, %v6772_v34  ;;  %v10064_v10 = vld [vmem:[#allocation150_spill] sm:$0xff] }
 0x25d   :  { %4842 = vpow2.f32 %v4715_v28  ;;  %v4716_v31 = vmul.f32 -1.442695, %v1143_v30  ;;  %v4717_v41 = vmul.f32 -1.442695, %v1145_v36 }
 0x25f   :  { %4844 = vpow2.f32 %v4716_v31 }
 0x260   :  { %4846 = vpow2.f32 %v4717_v41  ;;  %v10067_v41 = vld [vmem:[#allocation89_spill] sm:$0xff] }
 0x26a   :  { %v4843_v42 = vpop.eup %4842 }
 0x26b   :  { %v1149_v44 = vadd.f32 1.0, %v4843_v42  ;;  %v10068_v42 = vld [vmem:[#allocation90_spill] sm:$0xff] }
 0x26c   :  { %v4845_v45 = vpop.eup %4844 }
 0x26d   :  { %4848 = vrcp.f32 %v1149_v44  ;;  %v1155_v46 = vadd.f32 1.0, %v4845_v45  ;;  %v4847_v51 = vpop.eup %4846  ;;  %v10070_v44 = vld [vmem:[#allocation92_spill] sm:$0xff]  ;;  %v10071_v45 = vld [vmem:[#allocation93_spill] sm:$0xff] }
 0x26e   :  { %4850 = vtanh.f32 %v1144_v43  ;;  %v1162_v59 = vadd.f32 1.0, %v4847_v51  ;;  %v10069_v43 = vld [vmem:[#allocation91_spill] sm:$0xff]  ;;  %v10076_v51 = vld [vmem:[#allocation98_spill] sm:$0xff] }
 0x26f   :  { %4852 = vrcp.f32 %v1155_v46  ;;  %v10072_v46 = vld [vmem:[#allocation94_spill] sm:$0xff] }
 0x277   :  { %v1243_v48 = vpop.f32.mrf.mxu0  ;;  %v1314_v1 = vpop.f32.mrf.mxu1 }
 0x278   :  { %v1319_v50 = vadd.f32 %v1243_v48, %v10061_v49  ;;  %v1321_v11 = vadd.f32 %v1314_v1, %v10064_v10  ;;  %v10073_v48 = vld [vmem:[#allocation95_spill] sm:$0xff]  ;;  %v10074_v49 = vld [vmem:[#allocation96_spill] sm:$0xff]  ;;  %v10083_v1 = vld [vmem:[#allocation105_spill] sm:$0xff] }
 0x279   :  { %v1245_v52 = vpop.f32.mrf.mxu0  ;;  %v1316_v6 = vpop.f32.mrf.mxu1  ;;  %v10086_v10 = vld [vmem:[#allocation108_spill] sm:$0xff] }
 0x27a   :  { %v4849_v24 = vpop.eup %4848  ;;  %v4718_v53 = vmul.f32 -1.442695, %v1319_v50  ;;  %v1320_v55 = vadd.f32 %v1245_v52, %v10062_v54  ;;  %v1322_v9 = vadd.f32 %v1316_v6, %v10063_v7  ;;  %v10075_v50 = vld [vmem:[#allocation97_spill] sm:$0xff]  ;;  %v10084_v6 = vld [vmem:[#allocation106_spill] sm:$0xff] }
 0x27b   :  { %v4851_v57 = vpop.eup %4850 }
 0x27c   :  { %v4853_v58 = vpop.eup %4852  ;;  %4854 = vpow2.f32 %v4718_v53  ;;  %v4719_v60 = vmul.f32 -1.442695, %v1320_v55  ;;  %v1166_v62 = vmul.f32 %v4851_v57, %v4849_v24  ;;  %v4720_v28 = vmul.f32 -1.442695, %v1322_v9  ;;  %v10077_v24 = vld [vmem:[#allocation99_spill] sm:$0xff]  ;;  %v10078_v53 = vld [vmem:[#allocation100_spill] sm:$0xff] }
 0x27d   :  { %v1165_v61 = vmul.f32 0.0, %v4853_v58  ;;  %v10079_v55 = vld [vmem:[#allocation101_spill] sm:$0xff]  ;;  %v10080_v57 = vld [vmem:[#allocation102_spill] sm:$0xff]  ;;  %v10085_v9 = vld [vmem:[#allocation107_spill] sm:$0xff] }
 0x27e   :  { %4856 = vpow2.f32 %v4719_v60  ;;  %v10081_v60 = vld [vmem:[#allocation103_spill] sm:$0xff] }
 0x27f   :  { %v6782_v5 = vadd.f32 %v1166_v62, %v1165_v61  ;;  %4858 = vrcp.f32 %v1162_v59  ;;  %v10082_v61 = vld [vmem:[#allocation104_spill] sm:$0xff] }
 0x281   :  { %4860 = vtanh.f32 %v6782_v5 }
 0x282   :  { %4862 = vtanh.f32 %v1321_v11  ;;  %v10087_v11 = vld [vmem:[#allocation109_spill] sm:$0xff] }
 0x289   :  { %v4855_v56 = vpop.eup %4854 }
 0x28a   :  { %v1326_v30 = vadd.f32 1.0, %v4855_v56  ;;  %v10088_v56 = vld [vmem:[#allocation110_spill] sm:$0xff] }
 0x28b   :  { %v4857_v31 = vpop.eup %4856 }
 0x28c   :  { %4864 = vrcp.f32 %v1326_v30  ;;  %v1332_v32 = vadd.f32 1.0, %v4857_v31  ;;  %v4859_v33 = vpop.eup %4858  ;;  %v10089_v31 = vld [vmem:[#allocation111_spill] sm:$0xff] }
 0x28d   :  { %4866 = vpow2.f32 %v4720_v28 }
 0x28e   :  { %v4861_v35 = vpop.eup %4860  ;;  %4868 = vrcp.f32 %v1332_v32  ;;  %v10090_v32 = vld [vmem:[#allocation112_spill] sm:$0xff] }
 0x28f   :  { %v1169_v36 = vmul.f32 %v4861_v35, %v4859_v33  ;;  %v4863_v52 = vpop.eup %4862  ;;  %v10091_v33 = vld [vmem:[#allocation113_spill] sm:$0xff]  ;;  %v10092_v35 = vld [vmem:[#allocation114_spill] sm:$0xff] }
 0x291   :  { %1412 = vmatmul.mubr.f32.vlgmr.msra.gmra.mxu0 %v1169_v36  ;;  %1483 = vmatmul.mubr.f32.vlgmr.msra.gmra.mxu1 %v1169_v36  ;;  %v10094_v36 = vld [vmem:[#allocation116_spill] sm:$0xff] }
 0x292   :  { %1490 = vmatpush1.msra.mxu0 %v10065_v37  ;;  %1561 = vmatpush1.msra.mxu1 %v10066_v40  ;;  %v10095_v37 = vld [vmem:[#allocation117_spill] sm:$0xff]  ;;  %v10096_v40 = vld [vmem:[#allocation118_spill] sm:$0xff] }
 0x293   :  { %1491 = vmatprep.subr.mxu0 %v10067_v41  ;;  %1562 = vmatprep.subr.mxu1 %v10068_v42  ;;  %v10097_v41 = vld [vmem:[#allocation119_spill] sm:$0xff]  ;;  %v10098_v42 = vld [vmem:[#allocation120_spill] sm:$0xff] }
 0x294   :  { %1492 = vmatpush1.msra.mxu0 %v10069_v43  ;;  %1563 = vmatpush1.msra.mxu1 %v10070_v44  ;;  %v10099_v43 = vld [vmem:[#allocation121_spill] sm:$0xff]  ;;  %v10100_v44 = vld [vmem:[#allocation122_spill] sm:$0xff] }
 0x295   :  { %1493 = vmatprep.subr.mxu0 %v10071_v45  ;;  %1564 = vmatprep.subr.mxu1 %v10072_v46  ;;  %v10101_v45 = vld [vmem:[#allocation123_spill] sm:$0xff]  ;;  %v10102_v46 = vld [vmem:[#allocation124_spill] sm:$0xff] }
 0x296   :  { %1494 = vmatpush1.msra.mxu0 %v10073_v48  ;;  %1565 = vmatpush1.msra.mxu1 %v10074_v49  ;;  %v10103_v48 = vld [vmem:[#allocation125_spill] sm:$0xff]  ;;  %v10104_v49 = vld [vmem:[#allocation126_spill] sm:$0xff] }
 0x297   :  { %1495 = vmatprep.subr.mxu0 %v10075_v50  ;;  %1566 = vmatprep.subr.mxu1 %v10076_v51  ;;  %v10105_v50 = vld [vmem:[#allocation127_spill] sm:$0xff]  ;;  %v10106_v51 = vld [vmem:[#allocation128_spill] sm:$0xff] }
 0x298   :  { %1496 = vmatpush1.msra.mxu0 %v10077_v24  ;;  %1567 = vmatpush1.msra.mxu1 %v10078_v53  ;;  %v10108_v24 = vld [vmem:[#allocation130_spill] sm:$0xff]  ;;  %v10109_v53 = vld [vmem:[#allocation131_spill] sm:$0xff] }
 0x299   :  { %v4865_v54 = vpop.eup %4864  ;;  %1497 = vmatprep.subr.mxu0 %v10079_v55  ;;  %1568 = vmatprep.subr.mxu1 %v10080_v57  ;;  %v10111_v55 = vld [vmem:[#allocation133_spill] sm:$0xff]  ;;  %v10112_v57 = vld [vmem:[#allocation134_spill] sm:$0xff] }
 0x29a   :  { %v4867_v58 = vpop.eup %4866  ;;  %v1343_v59 = vmul.f32 %v4865_v54, %v4863_v52  ;;  %1498 = vmatpush1.msra.mxu0 %v10081_v60  ;;  %1569 = vmatpush1.msra.mxu1 %v10082_v61  ;;  %v10107_v52 = vld [vmem:[#allocation129_spill] sm:$0xff]  ;;  %v10110_v54 = vld [vmem:[#allocation132_spill] sm:$0xff]  ;;  %v10116_v61 = vld [vmem:[#allocation138_spill] sm:$0xff] }
 0x29b   :  { %v4869_v62 = vpop.eup %4868  ;;  %1499 = vmatprep.subr.mxu0 %v10083_v1  ;;  %1570 = vmatprep.subr.mxu1 %v10084_v6  ;;  %v1339_v30 = vadd.f32 1.0, %v4867_v58  ;;  %v10113_v58 = vld [vmem:[#allocation135_spill] sm:$0xff]  ;;  %v10115_v60 = vld [vmem:[#allocation137_spill] sm:$0xff]  ;;  %v10118_v1 = vld [vmem:[#allocation140_spill] sm:$0xff] }
 0x29c   :  { %v1342_v7 = vmul.f32 %v4869_v62, %v6576_v4  ;;  %1500 = vmatpush1.msra.mxu0 %v10085_v9  ;;  %1571 = vmatpush1.msra.mxu1 %v10086_v10  ;;  %v10093_v4 = vld [vmem:[#allocation115_spill] sm:$0xff]  ;;  %v10120_v9 = vld [vmem:[#allocation142_spill] sm:$0xff] }
 0x29d   :  { %1501 = vmatprep.subr.mxu0 %v10087_v11  ;;  %1572 = vmatprep.subr.mxu1 %v10088_v56  ;;  %v10117_v62 = vld [vmem:[#allocation139_spill] sm:$0xff]  ;;  %v10122_v11 = vld [vmem:[#allocation144_spill] sm:$0xff] }
 0x29e   :  { %v6812_v28 = vadd.f32 %v1343_v59, %v1342_v7  ;;  %1502 = vmatpush1.msra.mxu0 %v10089_v31  ;;  %1573 = vmatpush1.msra.mxu1 %v10090_v32  ;;  %v10114_v59 = vld [vmem:[#allocation136_spill] sm:$0xff]  ;;  %v10119_v7 = vld [vmem:[#allocation141_spill] sm:$0xff]  ;;  %v10121_v10 = vld [vmem:[#allocation143_spill] sm:$0xff] }
 0x29f   :  { %1503 = vmatprep.subr.mxu0 %v10091_v33  ;;  %1574 = vmatprep.subr.mxu1 %v10092_v35  ;;  %v10124_v31 = vld [vmem:[#allocation146_spill] sm:$0xff]  ;;  %v10125_v32 = vld [vmem:[#allocation147_spill] sm:$0xff]  ;;  %v10126_v35 = vld [vmem:[#allocation148_spill] sm:$0xff] }
 0x2a0   :  { %1504 = vmatpush1.msra.mxu0 %v10093_v4  ;;  %1575 = vmatpush1.msra.mxu1 %v10094_v36  ;;  %4870 = vtanh.f32 %v6812_v28  ;;  %v6859_v4 = vld [vmem:[#allocation8 + $0x1e8] sm:$0xff]  ;;  %v6862_v36 = vld [vmem:[#allocation8 + $0x1f8] sm:$0xff] }
 0x2a1   :  { %1505 = vmatprep.subr.mxu0 %v10095_v37  ;;  %1576 = vmatprep.subr.mxu1 %v10096_v40  ;;  %4872 = vrcp.f32 %v1339_v30  ;;  %v10123_v30 = vld [vmem:[#allocation145_spill] sm:$0xff]  ;;  %v6945_v37 = vld [vmem:[#allocation8 + $0xa0] sm:$0xff] }
 0x2a2   :  { %1506 = vmatpush1.msra.mxu0 %v10097_v41  ;;  %1577 = vmatpush1.msra.mxu1 %v10098_v42  ;;  %v6948_v40 = vld [vmem:[#allocation8 + $0xb0] sm:$0xff]  ;;  %v6951_v41 = vld [vmem:[#allocation8 + $0x88] sm:$0xff]  ;;  %v6954_v42 = vld [vmem:[#allocation8 + $0x98] sm:$0xff] }
 0x2a3   :  { %1507 = vmatprep.subr.mxu0 %v10099_v43  ;;  %1578 = vmatprep.subr.mxu1 %v10100_v44  ;;  %v6957_v43 = vld [vmem:[#allocation8 + $0x80] sm:$0xff]  ;;  %v6960_v44 = vld [vmem:[#allocation8 + $0x90] sm:$0xff] }
 0x2a4   :  { %1508 = vmatpush1.msra.mxu0 %v10101_v45  ;;  %1579 = vmatpush1.msra.mxu1 %v10102_v46  ;;  %v6963_v45 = vld [vmem:[#allocation8 + $0x68] sm:$0xff]  ;;  %v6966_v46 = vld [vmem:[#allocation8 + $0x78] sm:$0xff] }
 0x2a5   :  { %1509 = vmatprep.subr.mxu0 %v10103_v48  ;;  %1580 = vmatprep.subr.mxu1 %v10104_v49  ;;  %v6969_v48 = vld [vmem:[#allocation8 + $0x60] sm:$0xff]  ;;  %v6972_v49 = vld [vmem:[#allocation8 + $0x70] sm:$0xff] }
 0x2a6   :  { %1510 = vmatpush1.msra.mxu0 %v10105_v50  ;;  %1581 = vmatpush1.msra.mxu1 %v10106_v51  ;;  %v6975_v50 = vld [vmem:[#allocation8 + $0x48] sm:$0xff]  ;;  %v6978_v51 = vld [vmem:[#allocation8 + $0x58] sm:$0xff] }
 0x2a7   :  { %1511 = vmatprep.subr.mxu0 %v10107_v52  ;;  %1582 = vmatprep.subr.mxu1 %v10108_v24  ;;  %v6981_v52 = vld [vmem:[#allocation8 + $0x40] sm:$0xff]  ;;  %v6984_v24 = vld [vmem:[#allocation8 + $0x50] sm:$0xff] }
 0x2a8   :  { %1512 = vmatpush1.msra.mxu0 %v10109_v53  ;;  %1583 = vmatpush1.msra.mxu1 %v10110_v54  ;;  %v6987_v53 = vld [vmem:[#allocation8 + $0x28] sm:$0xff]  ;;  %v6990_v54 = vld [vmem:[#allocation8 + $0x38] sm:$0xff] }
 0x2a9   :  { %1513 = vmatprep.subr.mxu0 %v10111_v55  ;;  %1584 = vmatprep.subr.mxu1 %v10112_v57  ;;  %10127 = vst [vmem:[#allocation20_spill] sm:$0xff] %v6990_v54  ;;  %v6993_v55 = vld [vmem:[#allocation8 + $0x20] sm:$0xff]  ;;  %v6996_v57 = vld [vmem:[#allocation8 + $0x30] sm:$0xff] }
 0x2aa   :  { %1514 = vmatpush1.msra.mxu0 %v10113_v58  ;;  %1585 = vmatpush1.msra.mxu1 %v10114_v59  ;;  %10128 = vst [vmem:[#allocation21_spill] sm:$0xff] %v6993_v55  ;;  %10129 = vst [vmem:[#allocation22_spill] sm:$0xff] %v6996_v57  ;;  %v6999_v58 = vld [vmem:[#allocation8 + $0x8] sm:$0xff]  ;;  %v7002_v59 = vld [vmem:[#allocation8 + $0x18] sm:$0xff] }
 0x2ab   :  { %1515 = vmatprep.subr.mxu0 %v10115_v60  ;;  %1586 = vmatprep.subr.mxu1 %v10116_v61  ;;  %10130 = vst [vmem:[#allocation23_spill] sm:$0xff] %v6999_v58  ;;  %10131 = vst [vmem:[#allocation24_spill] sm:$0xff] %v7002_v59  ;;  %v7005_v60 = vld [vmem:[#allocation8] sm:$0xff]  ;;  %v7009_v61 = vld [vmem:[#allocation8 + $0x10] sm:$0xff] }
 0x2ac   :  { %1516 = vmatpush1.msra.mxu0 %v10117_v62  ;;  %1587 = vmatpush1.msra.mxu1 %v10118_v1  ;;  %10132 = vst [vmem:[#allocation25_spill] sm:$0xff] %v7005_v60  ;;  %10133 = vst [vmem:[#allocation26_spill] sm:$0xff] %v7009_v61  ;;  %v7015_v62 = vld [vmem:[#allocation11 + $0x1e8] sm:$0xff]  ;;  %v7018_v1 = vld [vmem:[#allocation11 + $0x1f8] sm:$0xff] }
 0x2ad   :  { %v4871_v6 = vpop.eup %4870  ;;  %1517 = vmatprep.subr.mxu0 %v10119_v7  ;;  %1588 = vmatprep.subr.mxu1 %v10120_v9  ;;  %10134 = vst [vmem:[#allocation27_spill] sm:$0xff] %v7015_v62  ;;  %10135 = vst [vmem:[#allocation28_spill] sm:$0xff] %v7018_v1  ;;  %v7024_v7 = vld [vmem:[#allocation11 + $0x1f0] sm:$0xff]  ;;  %v7027_v9 = vld [vmem:[#allocation11 + $0x1c8] sm:$0xff] }
 0x2ae   :  { %1518 = vmatpush1.msra.mxu0 %v10121_v10  ;;  %1589 = vmatpush1.msra.mxu1 %v10122_v11  ;;  %v4873_v56 = vpop.eup %4872  ;;  %10137 = vst [vmem:[#allocation30_spill] sm:$0xff] %v7024_v7  ;;  %10138 = vst [vmem:[#allocation31_spill] sm:$0xff] %v7027_v9  ;;  %v7030_v10 = vld [vmem:[#allocation11 + $0x1d8] sm:$0xff]  ;;  %v7033_v11 = vld [vmem:[#allocation11 + $0x1c0] sm:$0xff] }
 0x2af   :  { %1519 = vmatprep.subr.mxu0 %v10123_v30  ;;  %1590 = vmatprep.subr.mxu1 %v10124_v31  ;;  %v6853_v33 = vmul.f32 %v4873_v56, %v4871_v6  ;;  %v7021_v6 = vld [vmem:[#allocation11 + $0x1e0] sm:$0xff]  ;;  %10139 = vst [vmem:[#allocation32_spill] sm:$0xff] %v7030_v10  ;;  %10140 = vst [vmem:[#allocation33_spill] sm:$0xff] %v7033_v11  ;;  %v7036_v56 = vld [vmem:[#allocation11 + $0x1d0] sm:$0xff] }
 0x2b0   :  { %1520 = vmatpush1.msra.mxu0 %v10125_v32  ;;  %1553 = vmatprep.mubr.f32.mxu0 %v9989_v27  ;;  %10136 = vst [vmem:[#allocation29_spill] sm:$0xff] %v7021_v6  ;;  %10141 = vst [vmem:[#allocation34_spill] sm:$0xff] %v7036_v56  ;;  %v7039_v30 = vld [vmem:[#allocation11 + $0x1a8] sm:$0xff]  ;;  %v7042_v31 = vld [vmem:[#allocation11 + $0x1b8] sm:$0xff] }
 0x2b1   :  { %1591 = vmatpush1.msra.mxu1 %v10126_v35  ;;  %1624 = vmatprep.mubr.f32.mxu1 %v9989_v27  ;;  %10142 = vst [vmem:[#allocation35_spill] sm:$0xff] %v7039_v30  ;;  %10143 = vst [vmem:[#allocation36_spill] sm:$0xff] %v7042_v31  ;;  %v7045_v32 = vld [vmem:[#allocation11 + $0x1a0] sm:$0xff]  ;;  %v7051_v35 = vld [vmem:[#allocation11 + $0x188] sm:$0xff] }
 0x2b2   :  { %1554 = vmatmul.mubr.f32.vlgmr.msra.gmra.mxu0 %v6853_v33  ;;  %1625 = vmatmul.mubr.f32.vlgmr.msra.gmra.mxu1 %v6853_v33  ;;  %10144 = vst [vmem:[#allocation37_spill] sm:$0xff] %v7045_v32  ;;  %10146 = vst [vmem:[#allocation39_spill] sm:$0xff] %v7051_v35 }
 0x2b3   :  { %1666 = vmatprep.subr.mxu0 %v6859_v4  ;;  %1737 = vmatprep.subr.mxu1 %v6862_v36 }
 0x2b4   :  { %1667 = vmatpush1.msra.mxu0 %v6583_v47  ;;  %1738 = vmatpush1.msra.mxu1 %v6586_v20  ;;  %v6885_v47 = vld [vmem:[#allocation8 + $0x140] sm:$0xff]  ;;  %v6888_v20 = vld [vmem:[#allocation8 + $0x150] sm:$0xff] }
 0x2b5   :  { %1668 = vmatprep.subr.mxu0 %v6589_v13  ;;  %1739 = vmatprep.subr.mxu1 %v6592_v12  ;;  %v6891_v13 = vld [vmem:[#allocation8 + $0x128] sm:$0xff]  ;;  %v6894_v12 = vld [vmem:[#allocation8 + $0x138] sm:$0xff] }
 0x2b6   :  { %1669 = vmatpush1.msra.mxu0 %v6595_v2  ;;  %1740 = vmatpush1.msra.mxu1 %v6598_v26  ;;  %v6897_v2 = vld [vmem:[#allocation8 + $0x120] sm:$0xff]  ;;  %v6900_v26 = vld [vmem:[#allocation8 + $0x130] sm:$0xff] }
 0x2b7   :  { %1670 = vmatprep.subr.mxu0 %v6601_v21  ;;  %1741 = vmatprep.subr.mxu1 %v6604_v23  ;;  %v6903_v21 = vld [vmem:[#allocation8 + $0x108] sm:$0xff]  ;;  %v6906_v23 = vld [vmem:[#allocation8 + $0x118] sm:$0xff] }
 0x2b8   :  { %1671 = vmatpush1.msra.mxu0 %v6607_v19  ;;  %1742 = vmatpush1.msra.mxu1 %v6610_v38  ;;  %v6909_v19 = vld [vmem:[#allocation8 + $0x100] sm:$0xff]  ;;  %v6912_v38 = vld [vmem:[#allocation8 + $0x110] sm:$0xff] }
 0x2b9   :  { %1672 = vmatprep.subr.mxu0 %v6613_v0  ;;  %1743 = vmatprep.subr.mxu1 %v6616_v17  ;;  %v6915_v0 = vld [vmem:[#allocation8 + $0xe8] sm:$0xff]  ;;  %v6918_v17 = vld [vmem:[#allocation8 + $0xf8] sm:$0xff] }
 0x2ba   :  { %1673 = vmatpush1.msra.mxu0 %v6619_v16  ;;  %1744 = vmatpush1.msra.mxu1 %v6622_v25  ;;  %v6921_v16 = vld [vmem:[#allocation8 + $0xe0] sm:$0xff]  ;;  %v6924_v25 = vld [vmem:[#allocation8 + $0xf0] sm:$0xff] }
 0x2bb   :  { %1674 = vmatprep.subr.mxu0 %v6625_v15  ;;  %1745 = vmatprep.subr.mxu1 %v6628_v22  ;;  %v6927_v15 = vld [vmem:[#allocation8 + $0xc8] sm:$0xff]  ;;  %v6930_v22 = vld [vmem:[#allocation8 + $0xd8] sm:$0xff] }
 0x2bc   :  { %1675 = vmatpush1.msra.mxu0 %v6631_v18  ;;  %1746 = vmatpush1.msra.mxu1 %v6634_v3  ;;  %v6933_v18 = vld [vmem:[#allocation8 + $0xc0] sm:$0xff]  ;;  %v6936_v3 = vld [vmem:[#allocation8 + $0xd0] sm:$0xff] }
 0x2bd   :  { %1676 = vmatprep.subr.mxu0 %v6637_v14  ;;  %1747 = vmatprep.subr.mxu1 %v6640_v29  ;;  %v6939_v14 = vld [vmem:[#allocation8 + $0xa8] sm:$0xff]  ;;  %v6942_v29 = vld [vmem:[#allocation8 + $0xb8] sm:$0xff] }
 0x2be   :  { %1677 = vmatpush1.msra.mxu0 %v6885_v47  ;;  %1748 = vmatpush1.msra.mxu1 %v6888_v20 }
 0x2bf   :  { %1678 = vmatprep.subr.mxu0 %v6891_v13  ;;  %1749 = vmatprep.subr.mxu1 %v6894_v12 }
 0x2c0   :  { %1679 = vmatpush1.msra.mxu0 %v6897_v2  ;;  %1750 = vmatpush1.msra.mxu1 %v6900_v26 }
 0x2c1   :  { %1680 = vmatprep.subr.mxu0 %v6903_v21  ;;  %1751 = vmatprep.subr.mxu1 %v6906_v23 }
 0x2c2   :  { %1681 = vmatpush1.msra.mxu0 %v6909_v19  ;;  %1752 = vmatpush1.msra.mxu1 %v6912_v38 }
 0x2c3   :  { %1682 = vmatprep.subr.mxu0 %v6915_v0  ;;  %1753 = vmatprep.subr.mxu1 %v6918_v17 }
 0x2c4   :  { %1683 = vmatpush1.msra.mxu0 %v6921_v16  ;;  %1754 = vmatpush1.msra.mxu1 %v6924_v25 }
 0x2c5   :  { %1684 = vmatprep.subr.mxu0 %v6927_v15  ;;  %1755 = vmatprep.subr.mxu1 %v6930_v22 }
 0x2c6   :  { %1685 = vmatpush1.msra.mxu0 %v6933_v18  ;;  %1756 = vmatpush1.msra.mxu1 %v6936_v3 }
 0x2c7   :  { %1686 = vmatprep.subr.mxu0 %v6939_v14  ;;  %1757 = vmatprep.subr.mxu1 %v6942_v29 }
 0x2c8   :  { %1687 = vmatpush1.msra.mxu0 %v6945_v37  ;;  %1758 = vmatpush1.msra.mxu1 %v6948_v40 }
 0x2c9   :  { %1688 = vmatprep.subr.mxu0 %v6951_v41  ;;  %1759 = vmatprep.subr.mxu1 %v6954_v42 }
 0x2ca   :  { %1689 = vmatpush1.msra.mxu0 %v6957_v43  ;;  %1760 = vmatpush1.msra.mxu1 %v6960_v44 }
 0x2cb   :  { %1690 = vmatprep.subr.mxu0 %v6963_v45  ;;  %1761 = vmatprep.subr.mxu1 %v6966_v46 }
 0x2cc   :  { %1691 = vmatpush1.msra.mxu0 %v6969_v48  ;;  %1762 = vmatpush1.msra.mxu1 %v6972_v49 }
 0x2cd   :  { %1692 = vmatprep.subr.mxu0 %v6975_v50  ;;  %1763 = vmatprep.subr.mxu1 %v6978_v51 }
 0x2ce   :  { %1693 = vmatpush1.msra.mxu0 %v6981_v52  ;;  %1764 = vmatpush1.msra.mxu1 %v6984_v24 }
 0x2cf   :  { %1694 = vmatprep.subr.mxu0 %v6987_v53  ;;  %1765 = vmatprep.subr.mxu1 %v6990_v54 }
 0x2d0   :  { %1695 = vmatpush1.msra.mxu0 %v6993_v55  ;;  %1766 = vmatpush1.msra.mxu1 %v6996_v57 }
 0x2d1   :  { %1696 = vmatprep.subr.mxu0 %v6999_v58  ;;  %1767 = vmatprep.subr.mxu1 %v7002_v59 }
 0x2d2   :  { %1697 = vmatpush1.msra.mxu0 %v7005_v60  ;;  %1730 = vmatprep.mubr.f32.mxu0 %v9989_v27 }
 0x2d3   :  { %1768 = vmatpush1.msra.mxu1 %v7009_v61  ;;  %1801 = vmatprep.mubr.f32.mxu1 %v9989_v27 }
 0x2d4   :  { %1731 = vmatmul.mubr.f32.vlgmr.msra.gmra.mxu0 %v6853_v33  ;;  %1802 = vmatmul.mubr.f32.vlgmr.msra.gmra.mxu1 %v6853_v33  ;;  %v7048_v33 = vld [vmem:[#allocation11 + $0x1b0] sm:$0xff] }
 0x2d5   :  { %1836 = vmatprep.subr.mxu0 %v7015_v62  ;;  %1907 = vmatprep.subr.mxu1 %v7018_v1  ;;  %10145 = vst [vmem:[#allocation38_spill] sm:$0xff] %v7048_v33 }
 0x2d6   :  { %1837 = vmatpush1.msra.mxu0 %v7021_v6  ;;  %1908 = vmatpush1.msra.mxu1 %v7024_v7 }
 0x2d7   :  { %1838 = vmatprep.subr.mxu0 %v7027_v9  ;;  %1909 = vmatprep.subr.mxu1 %v7030_v10 }
 0x2d8   :  { %1839 = vmatpush1.msra.mxu0 %v7033_v11  ;;  %1910 = vmatpush1.msra.mxu1 %v7036_v56  ;;  %v7054_v56 = vld [vmem:[#allocation11 + $0x198] sm:$0xff] }
 0x2d9   :  { %1840 = vmatprep.subr.mxu0 %v7039_v30  ;;  %1911 = vmatprep.subr.mxu1 %v7042_v31  ;;  %10147 = vst [vmem:[#allocation40_spill] sm:$0xff] %v7054_v56  ;;  %v7057_v30 = vld [vmem:[#allocation11 + $0x180] sm:$0xff]  ;;  %v7060_v31 = vld [vmem:[#allocation11 + $0x190] sm:$0xff] }
 0x2da   :  { %1841 = vmatpush1.msra.mxu0 %v7045_v32  ;;  %1912 = vmatpush1.msra.mxu1 %v7048_v33  ;;  %10148 = vst [vmem:[#allocation41_spill] sm:$0xff] %v7057_v30  ;;  %10149 = vst [vmem:[#allocation42_spill] sm:$0xff] %v7060_v31  ;;  %v7063_v32 = vld [vmem:[#allocation11 + $0x168] sm:$0xff]  ;;  %v7066_v33 = vld [vmem:[#allocation11 + $0x178] sm:$0xff] }
 0x2db   :  { %1842 = vmatprep.subr.mxu0 %v7051_v35  ;;  %1913 = vmatprep.subr.mxu1 %v7054_v56  ;;  %10150 = vst [vmem:[#allocation43_spill] sm:$0xff] %v7063_v32  ;;  %10151 = vst [vmem:[#allocation44_spill] sm:$0xff] %v7066_v33  ;;  %v7069_v35 = vld [vmem:[#allocation11 + $0x160] sm:$0xff]  ;;  %v7072_v56 = vld [vmem:[#allocation11 + $0x170] sm:$0xff] }
 0x2dc   :  { %1843 = vmatpush1.msra.mxu0 %v7057_v30  ;;  %1914 = vmatpush1.msra.mxu1 %v7060_v31  ;;  %10152 = vst [vmem:[#allocation45_spill] sm:$0xff] %v7069_v35  ;;  %10153 = vst [vmem:[#allocation46_spill] sm:$0xff] %v7072_v56  ;;  %v7075_v30 = vld [vmem:[#allocation11 + $0x148] sm:$0xff]  ;;  %v7078_v31 = vld [vmem:[#allocation11 + $0x158] sm:$0xff] }
 0x2dd   :  { %1844 = vmatprep.subr.mxu0 %v7063_v32  ;;  %1915 = vmatprep.subr.mxu1 %v7066_v33  ;;  %10154 = vst [vmem:[#allocation47_spill] sm:$0xff] %v7075_v30  ;;  %10155 = vst [vmem:[#allocation48_spill] sm:$0xff] %v7078_v31  ;;  %v7081_v32 = vld [vmem:[#allocation11 + $0x140] sm:$0xff]  ;;  %v7084_v33 = vld [vmem:[#allocation11 + $0x150] sm:$0xff] }
 0x2de   :  { %1845 = vmatpush1.msra.mxu0 %v7069_v35  ;;  %1916 = vmatpush1.msra.mxu1 %v7072_v56  ;;  %10156 = vst [vmem:[#allocation49_spill] sm:$0xff] %v7081_v32  ;;  %10157 = vst [vmem:[#allocation50_spill] sm:$0xff] %v7084_v33  ;;  %v7087_v35 = vld [vmem:[#allocation11 + $0x128] sm:$0xff]  ;;  %v7090_v56 = vld [vmem:[#allocation11 + $0x138] sm:$0xff] }
 0x2df   :  { %1846 = vmatprep.subr.mxu0 %v7075_v30  ;;  %1917 = vmatprep.subr.mxu1 %v7078_v31  ;;  %10158 = vst [vmem:[#allocation51_spill] sm:$0xff] %v7087_v35  ;;  %10159 = vst [vmem:[#allocation52_spill] sm:$0xff] %v7090_v56  ;;  %v7093_v30 = vld [vmem:[#allocation11 + $0x120] sm:$0xff]  ;;  %v7096_v31 = vld [vmem:[#allocation11 + $0x130] sm:$0xff] }
 0x2e0   :  { %1847 = vmatpush1.msra.mxu0 %v7081_v32  ;;  %1918 = vmatpush1.msra.mxu1 %v7084_v33  ;;  %10160 = vst [vmem:[#allocation53_spill] sm:$0xff] %v7093_v30  ;;  %10161 = vst [vmem:[#allocation54_spill] sm:$0xff] %v7096_v31  ;;  %v7099_v32 = vld [vmem:[#allocation11 + $0x108] sm:$0xff]  ;;  %v7102_v33 = vld [vmem:[#allocation11 + $0x118] sm:$0xff] }
 0x2e1   :  { %1848 = vmatprep.subr.mxu0 %v7087_v35  ;;  %1919 = vmatprep.subr.mxu1 %v7090_v56  ;;  %10162 = vst [vmem:[#allocation55_spill] sm:$0xff] %v7099_v32  ;;  %10163 = vst [vmem:[#allocation56_spill] sm:$0xff] %v7102_v33  ;;  %v7105_v35 = vld [vmem:[#allocation11 + $0x100] sm:$0xff]  ;;  %v7108_v56 = vld [vmem:[#allocation11 + $0x110] sm:$0xff] }
 0x2e2   :  { %1849 = vmatpush1.msra.mxu0 %v7093_v30  ;;  %1920 = vmatpush1.msra.mxu1 %v7096_v31  ;;  %10164 = vst [vmem:[#allocation57_spill] sm:$0xff] %v7105_v35  ;;  %10165 = vst [vmem:[#allocation58_spill] sm:$0xff] %v7108_v56  ;;  %v7111_v30 = vld [vmem:[#allocation11 + $0xe8] sm:$0xff]  ;;  %v7114_v31 = vld [vmem:[#allocation11 + $0xf8] sm:$0xff] }
 0x2e3   :  { %1850 = vmatprep.subr.mxu0 %v7099_v32  ;;  %1921 = vmatprep.subr.mxu1 %v7102_v33  ;;  %10166 = vst [vmem:[#allocation59_spill] sm:$0xff] %v7111_v30  ;;  %10167 = vst [vmem:[#allocation60_spill] sm:$0xff] %v7114_v31  ;;  %v7117_v32 = vld [vmem:[#allocation11 + $0xe0] sm:$0xff]  ;;  %v7120_v33 = vld [vmem:[#allocation11 + $0xf0] sm:$0xff] }
 0x2e4   :  { %1851 = vmatpush1.msra.mxu0 %v7105_v35  ;;  %1922 = vmatpush1.msra.mxu1 %v7108_v56  ;;  %10168 = vst [vmem:[#allocation61_spill] sm:$0xff] %v7117_v32  ;;  %10169 = vst [vmem:[#allocation62_spill] sm:$0xff] %v7120_v33  ;;  %v7123_v35 = vld [vmem:[#allocation11 + $0xc8] sm:$0xff]  ;;  %v7126_v56 = vld [vmem:[#allocation11 + $0xd8] sm:$0xff] }
 0x2e5   :  { %1852 = vmatprep.subr.mxu0 %v7111_v30  ;;  %1923 = vmatprep.subr.mxu1 %v7114_v31  ;;  %10170 = vst [vmem:[#allocation63_spill] sm:$0xff] %v7123_v35  ;;  %10171 = vst [vmem:[#allocation64_spill] sm:$0xff] %v7126_v56  ;;  %v7129_v30 = vld [vmem:[#allocation11 + $0xc0] sm:$0xff]  ;;  %v7132_v31 = vld [vmem:[#allocation11 + $0xd0] sm:$0xff] }
 0x2e6   :  { %1853 = vmatpush1.msra.mxu0 %v7117_v32  ;;  %1924 = vmatpush1.msra.mxu1 %v7120_v33  ;;  %10172 = vst [vmem:[#allocation65_spill] sm:$0xff] %v7129_v30  ;;  %10173 = vst [vmem:[#allocation66_spill] sm:$0xff] %v7132_v31  ;;  %v7135_v32 = vld [vmem:[#allocation11 + $0xa8] sm:$0xff]  ;;  %v7138_v33 = vld [vmem:[#allocation11 + $0xb8] sm:$0xff] }
 0x2e7   :  { %1854 = vmatprep.subr.mxu0 %v7123_v35  ;;  %1925 = vmatprep.subr.mxu1 %v7126_v56  ;;  %10174 = vst [vmem:[#allocation67_spill] sm:$0xff] %v7135_v32  ;;  %10175 = vst [vmem:[#allocation68_spill] sm:$0xff] %v7138_v33  ;;  %v7141_v35 = vld [vmem:[#allocation11 + $0xa0] sm:$0xff]  ;;  %v7144_v56 = vld [vmem:[#allocation11 + $0xb0] sm:$0xff] }
 0x2e8   :  { %1855 = vmatpush1.msra.mxu0 %v7129_v30  ;;  %1926 = vmatpush1.msra.mxu1 %v7132_v31  ;;  %10176 = vst [vmem:[#allocation69_spill] sm:$0xff] %v7141_v35  ;;  %10177 = vst [vmem:[#allocation70_spill] sm:$0xff] %v7144_v56  ;;  %v7147_v30 = vld [vmem:[#allocation11 + $0x88] sm:$0xff]  ;;  %v7150_v31 = vld [vmem:[#allocation11 + $0x98] sm:$0xff] }
 0x2e9   :  { %1856 = vmatprep.subr.mxu0 %v7135_v32  ;;  %1927 = vmatprep.subr.mxu1 %v7138_v33  ;;  %10178 = vst [vmem:[#allocation71_spill] sm:$0xff] %v7147_v30  ;;  %10179 = vst [vmem:[#allocation72_spill] sm:$0xff] %v7150_v31  ;;  %v7153_v32 = vld [vmem:[#allocation11 + $0x80] sm:$0xff]  ;;  %v7156_v33 = vld [vmem:[#allocation11 + $0x90] sm:$0xff] }
 0x2ea   :  { %1857 = vmatpush1.msra.mxu0 %v7141_v35  ;;  %1928 = vmatpush1.msra.mxu1 %v7144_v56  ;;  %10180 = vst [vmem:[#allocation73_spill] sm:$0xff] %v7153_v32  ;;  %10181 = vst [vmem:[#allocation74_spill] sm:$0xff] %v7156_v33  ;;  %v7159_v35 = vld [vmem:[#allocation11 + $0x68] sm:$0xff]  ;;  %v7162_v56 = vld [vmem:[#allocation11 + $0x78] sm:$0xff] }
 0x2eb   :  { %1858 = vmatprep.subr.mxu0 %v7147_v30  ;;  %1929 = vmatprep.subr.mxu1 %v7150_v31  ;;  %10182 = vst [vmem:[#allocation75_spill] sm:$0xff] %v7159_v35  ;;  %10183 = vst [vmem:[#allocation76_spill] sm:$0xff] %v7162_v56  ;;  %v7165_v30 = vld [vmem:[#allocation11 + $0x60] sm:$0xff]  ;;  %v7168_v31 = vld [vmem:[#allocation11 + $0x70] sm:$0xff] }
 0x2ec   :  { %1859 = vmatpush1.msra.mxu0 %v7153_v32  ;;  %1930 = vmatpush1.msra.mxu1 %v7156_v33  ;;  %10184 = vst [vmem:[#allocation77_spill] sm:$0xff] %v7165_v30  ;;  %10185 = vst [vmem:[#allocation78_spill] sm:$0xff] %v7168_v31  ;;  %v7171_v32 = vld [vmem:[#allocation11 + $0x48] sm:$0xff]  ;;  %v7174_v33 = vld [vmem:[#allocation11 + $0x58] sm:$0xff] }
 0x2ed   :  { %1860 = vmatprep.subr.mxu0 %v7159_v35  ;;  %1931 = vmatprep.subr.mxu1 %v7162_v56  ;;  %10186 = vst [vmem:[#allocation79_spill] sm:$0xff] %v7171_v32  ;;  %10187 = vst [vmem:[#allocation80_spill] sm:$0xff] %v7174_v33  ;;  %v7177_v35 = vld [vmem:[#allocation11 + $0x40] sm:$0xff]  ;;  %v7180_v56 = vld [vmem:[#allocation11 + $0x50] sm:$0xff] }
 0x2ee   :  { %1861 = vmatpush1.msra.mxu0 %v7165_v30  ;;  %1932 = vmatpush1.msra.mxu1 %v7168_v31  ;;  %10188 = vst [vmem:[#allocation81_spill] sm:$0xff] %v7177_v35  ;;  %10189 = vst [vmem:[#allocation82_spill] sm:$0xff] %v7180_v56  ;;  %v7183_v30 = vld [vmem:[#allocation11 + $0x28] sm:$0xff]  ;;  %v7186_v31 = vld [vmem:[#allocation11 + $0x38] sm:$0xff] }
 0x2ef   :  { %1862 = vmatprep.subr.mxu0 %v7171_v32  ;;  %1933 = vmatprep.subr.mxu1 %v7174_v33  ;;  %10190 = vst [vmem:[#allocation83_spill] sm:$0xff] %v7183_v30  ;;  %10191 = vst [vmem:[#allocation84_spill] sm:$0xff] %v7186_v31  ;;  %v7189_v32 = vld [vmem:[#allocation11 + $0x20] sm:$0xff]  ;;  %v7192_v33 = vld [vmem:[#allocation11 + $0x30] sm:$0xff] }
 0x2f0   :  { %1863 = vmatpush1.msra.mxu0 %v7177_v35  ;;  %1934 = vmatpush1.msra.mxu1 %v7180_v56  ;;  %10192 = vst [vmem:[#allocation85_spill] sm:$0xff] %v7189_v32  ;;  %10193 = vst [vmem:[#allocation86_spill] sm:$0xff] %v7192_v33  ;;  %v7195_v35 = vld [vmem:[#allocation11 + $0x8] sm:$0xff]  ;;  %v7198_v56 = vld [vmem:[#allocation11 + $0x18] sm:$0xff] }
 0x2f1   :  { %1864 = vmatprep.subr.mxu0 %v7183_v30  ;;  %1935 = vmatprep.subr.mxu1 %v7186_v31  ;;  %10194 = vst [vmem:[#allocation149_spill] sm:$0xff] %v7195_v35  ;;  %10195 = vst [vmem:[#allocation151_spill] sm:$0xff] %v7198_v56  ;;  %v7201_v30 = vld [vmem:[#allocation11] sm:$0xff]  ;;  %v7204_v31 = vld [vmem:[#allocation11 + $0x10] sm:$0xff] }
 0x2f2   :  { %1865 = vmatpush1.msra.mxu0 %v7189_v32  ;;  %1936 = vmatpush1.msra.mxu1 %v7192_v33  ;;  %10196 = vst [vmem:[#allocation152_spill] sm:$0xff] %v7201_v30  ;;  %10197 = vst [vmem:[#allocation150_spill] sm:$0xff] %v7204_v31  ;;  %v7209_v33 = vld [vmem:[#allocation9 + $0x1e8] sm:$0xff] }
 0x2f3   :  { %1866 = vmatprep.subr.mxu0 %v7195_v35  ;;  %1937 = vmatprep.subr.mxu1 %v7198_v56  ;;  %10198 = vst [vmem:[#allocation87_spill] sm:$0xff] %v7209_v33  ;;  %v7212_v35 = vld [vmem:[#allocation9 + $0x1f8] sm:$0xff] }
 0x2f4   :  { %1867 = vmatpush1.msra.mxu0 %v7201_v30  ;;  %1938 = vmatpush1.msra.mxu1 %v7204_v31  ;;  %10199 = vst [vmem:[#allocation88_spill] sm:$0xff] %v7212_v35 }
 0x2f5   :  { %1900 = vmatprep.mubr.f32.mxu0 %v9989_v27  ;;  %1971 = vmatprep.mubr.f32.mxu1 %v9989_v27 }
 0x2f6   :  { %1978 = vmatprep.subr.mxu0 %v7209_v33  ;;  %2049 = vmatprep.subr.mxu1 %v7212_v35 }
 0x351   :  { %v1413_v56 = vpop.f32.mrf.mxu0  ;;  %v1484_v32 = vpop.f32.mrf.mxu1 }
 0x353   :  { %v1415_v11 = vpop.f32.mrf.mxu0  ;;  %v1486_v10 = vpop.f32.mrf.mxu1 }
 0x372   :  { %v1555_v30 = vpop.f32.mrf.mxu0  ;;  %v1626_v6 = vpop.f32.mrf.mxu1 }
 0x373   :  { %v1556_v9 = vadd.f32 %v1555_v30, %v1413_v56  ;;  %v1627_v58 = vadd.f32 %v1626_v6, %v1484_v32  ;;  %v10201_v6 = vld [vmem:[#allocation155_spill] sm:$0xff] }
 0x374   :  { %v1557_v7 = vpop.f32.mrf.mxu0  ;;  %v1628_v60 = vpop.f32.mrf.mxu1 }
 0x375   :  { %v1631_v31 = vadd.f32 %v1556_v9, %v6762_v63  ;;  %v1558_v1 = vadd.f32 %v1557_v7, %v1415_v11  ;;  %v1629_v59 = vadd.f32 %v1628_v60, %v1486_v10  ;;  %v1633_v56 = vadd.f32 %v1627_v58, %v6777_v39 }
 0x377   :  { %v4721_v62 = vmul.f32 -1.442695, %v1631_v31  ;;  %v1632_v61 = vadd.f32 %v1558_v1, %v6766_v8  ;;  %v1634_v35 = vadd.f32 %v1629_v59, %v6772_v34 }
 0x379   :  { %4874 = vpow2.f32 %v4721_v62  ;;  %v4722_v33 = vmul.f32 -1.442695, %v1632_v61  ;;  %v4723_v57 = vmul.f32 -1.442695, %v1634_v35  ;;  %v10200_v61 = vld [vmem:[#allocation153_spill] sm:$0xff] }
 0x37b   :  { %4876 = vpow2.f32 %v4722_v33 }
 0x37c   :  { %4878 = vpow2.f32 %v4723_v57 }
 0x386   :  { %v4875_v55 = vpop.eup %4874 }
 0x387   :  { %v1638_v30 = vadd.f32 1.0, %v4875_v55 }
 0x388   :  { %v4877_v54 = vpop.eup %4876 }
 0x389   :  { %4880 = vrcp.f32 %v1638_v30  ;;  %v1644_v7 = vadd.f32 1.0, %v4877_v54  ;;  %v4879_v62 = vpop.eup %4878  ;;  %v10202_v30 = vld [vmem:[#allocation156_spill] sm:$0xff] }
 0x38a   :  { %4882 = vtanh.f32 %v1633_v56  ;;  %v1651_v33 = vadd.f32 1.0, %v4879_v62 }
 0x38b   :  { %4884 = vrcp.f32 %v1644_v7 }
 0x394   :  { %v1732_v1 = vpop.f32.mrf.mxu0  ;;  %v1803_v57 = vpop.f32.mrf.mxu1 }
 0x395   :  { %v1808_v9 = vadd.f32 %v1732_v1, %v10200_v61  ;;  %v10203_v1 = vld [vmem:[#allocation154_spill] sm:$0xff] }
 0x396   :  { %v4881_v11 = vpop.eup %4880  ;;  %v1734_v60 = vpop.f32.mrf.mxu0  ;;  %v1810_v61 = vadd.f32 %v1803_v57, %v10203_v1  ;;  %v7242_v57 = vld [vmem:[#allocation9 + $0x1d0] sm:$0xff]  ;;  %v7257_v1 = vld [vmem:[#allocation9 + $0x188] sm:$0xff] }
 0x397   :  { %v4883_v10 = vpop.eup %4882  ;;  %v4724_v59 = vmul.f32 -1.442695, %v1808_v9  ;;  %v1809_v31 = vadd.f32 %v1734_v60, %v10201_v6  ;;  %v1805_v56 = vpop.f32.mrf.mxu1  ;;  %10205 = vst [vmem:[#allocation90_spill] sm:$0xff] %v7257_v1 }
 0x398   :  { %v4885_v32 = vpop.eup %4884  ;;  %v1655_v58 = vmul.f32 %v4883_v10, %v4881_v11  ;;  %v1811_v7 = vadd.f32 %v1805_v56, %v10202_v30  ;;  %v7248_v56 = vld [vmem:[#allocation9 + $0x1b8] sm:$0xff]  ;;  %v7251_v30 = vld [vmem:[#allocation9 + $0x1a0] sm:$0xff] }
 0x399   :  { %v1654_v55 = vmul.f32 %v4885_v32, %v6782_v5  ;;  %4886 = vpow2.f32 %v4724_v59  ;;  %v4725_v54 = vmul.f32 -1.442695, %v1809_v31  ;;  %v7227_v31 = vld [vmem:[#allocation9 + $0x1e0] sm:$0xff]  ;;  %v7230_v32 = vld [vmem:[#allocation9 + $0x1f0] sm:$0xff] }
 0x39a   :  { %v4726_v9 = vmul.f32 -1.442695, %v1811_v7  ;;  %v7254_v7 = vld [vmem:[#allocation9 + $0x1b0] sm:$0xff] }
 0x39b   :  { %4888 = vpow2.f32 %v4725_v54  ;;  %v7222_v35 = vadd.f32 %v1655_v58, %v1654_v55  ;;  %v7236_v58 = vld [vmem:[#allocation9 + $0x1d8] sm:$0xff]  ;;  %v7239_v55 = vld [vmem:[#allocation9 + $0x1c0] sm:$0xff]  ;;  %v7245_v54 = vld [vmem:[#allocation9 + $0x1a8] sm:$0xff]  ;;  %10204 = vst [vmem:[#allocation89_spill] sm:$0xff] %v7254_v7 }
 0x39c   :  { %4890 = vrcp.f32 %v1651_v33  ;;  %v7233_v33 = vld [vmem:[#allocation9 + $0x1c8] sm:$0xff] }
 0x39d   :  { %4892 = vtanh.f32 %v7222_v35 }
 0x39e   :  { %4894 = vtanh.f32 %v1810_v61  ;;  %v7260_v61 = vld [vmem:[#allocation9 + $0x198] sm:$0xff] }
 0x39f   :  { %4896 = vpow2.f32 %v4726_v9  ;;  %10206 = vst [vmem:[#allocation91_spill] sm:$0xff] %v7260_v61 }
 0x3a6   :  { %v4887_v60 = vpop.eup %4886 }
 0x3a7   :  { %v1815_v62 = vadd.f32 1.0, %v4887_v60  ;;  %v7263_v60 = vld [vmem:[#allocation9 + $0x180] sm:$0xff] }
 0x3a8   :  { %v4889_v11 = vpop.eup %4888  ;;  %10207 = vst [vmem:[#allocation92_spill] sm:$0xff] %v7263_v60 }
 0x3a9   :  { %v4891_v5 = vpop.eup %4890  ;;  %4898 = vrcp.f32 %v1815_v62  ;;  %v1821_v10 = vadd.f32 1.0, %v4889_v11  ;;  %v7266_v62 = vld [vmem:[#allocation9 + $0x190] sm:$0xff] }
 0x3aa   :  { %v4893_v59 = vpop.eup %4892  ;;  %10208 = vst [vmem:[#allocation93_spill] sm:$0xff] %v7266_v62 }
 0x3ab   :  { %4900 = vrcp.f32 %v1821_v10  ;;  %v1658_v6 = vmul.f32 %v4893_v59, %v4891_v5  ;;  %v4895_v9 = vpop.eup %4894  ;;  %v7269_v5 = vld [vmem:[#allocation9 + $0x168] sm:$0xff]  ;;  %v7272_v10 = vld [vmem:[#allocation9 + $0x178] sm:$0xff] }
 0x3ac   :  { %v4897_v11 = vpop.eup %4896  ;;  %10209 = vst [vmem:[#allocation94_spill] sm:$0xff] %v7269_v5  ;;  %10210 = vst [vmem:[#allocation95_spill] sm:$0xff] %v7272_v10 }
 0x3ad   :  { %1901 = vmatmul.mubr.f32.vlgmr.msra.gmra.mxu0 %v1658_v6  ;;  %1972 = vmatmul.mubr.f32.vlgmr.msra.gmra.mxu1 %v1658_v6  ;;  %v7275_v6 = vld [vmem:[#allocation9 + $0x160] sm:$0xff] }
 0x3ae   :  { %1979 = vmatpush1.msra.mxu0 %v7227_v31  ;;  %2050 = vmatpush1.msra.mxu1 %v7230_v32  ;;  %10211 = vst [vmem:[#allocation96_spill] sm:$0xff] %v7275_v6 }
 0x3af   :  { %1980 = vmatprep.subr.mxu0 %v7233_v33  ;;  %2051 = vmatprep.subr.mxu1 %v7236_v58 }
 0x3b0   :  { %1981 = vmatpush1.msra.mxu0 %v7239_v55  ;;  %2052 = vmatpush1.msra.mxu1 %v7242_v57 }
 0x3b1   :  { %1982 = vmatprep.subr.mxu0 %v7245_v54  ;;  %2053 = vmatprep.subr.mxu1 %v7248_v56 }
 0x3b2   :  { %1983 = vmatpush1.msra.mxu0 %v7251_v30  ;;  %2054 = vmatpush1.msra.mxu1 %v7254_v7  ;;  %v7287_v7 = vld [vmem:[#allocation9 + $0x140] sm:$0xff] }
 0x3b3   :  { %1984 = vmatprep.subr.mxu0 %v7257_v1  ;;  %2055 = vmatprep.subr.mxu1 %v7260_v61  ;;  %v7278_v61 = vld [vmem:[#allocation9 + $0x170] sm:$0xff]  ;;  %v7284_v1 = vld [vmem:[#allocation9 + $0x158] sm:$0xff]  ;;  %10214 = vst [vmem:[#allocation99_spill] sm:$0xff] %v7287_v7 }
 0x3b4   :  { %1985 = vmatpush1.msra.mxu0 %v7263_v60  ;;  %2056 = vmatpush1.msra.mxu1 %v7266_v62  ;;  %v7281_v62 = vld [vmem:[#allocation9 + $0x148] sm:$0xff]  ;;  %10213 = vst [vmem:[#allocation98_spill] sm:$0xff] %v7284_v1 }
 0x3b5   :  { %1986 = vmatprep.subr.mxu0 %v7269_v5  ;;  %2057 = vmatprep.subr.mxu1 %v7272_v10  ;;  %10212 = vst [vmem:[#allocation97_spill] sm:$0xff] %v7281_v62  ;;  %v1828_v10 = vadd.f32 1.0, %v4897_v11  ;;  %v7303_v11 = vld [vmem:[#allocation9 + $0x130] sm:$0xff] }
 0x3b6   :  { %v4899_v59 = vpop.eup %4898  ;;  %1987 = vmatpush1.msra.mxu0 %v7275_v6  ;;  %2058 = vmatpush1.msra.mxu1 %v7278_v61  ;;  %v7290_v6 = vld [vmem:[#allocation9 + $0x150] sm:$0xff]  ;;  %10217 = vst [vmem:[#allocation102_spill] sm:$0xff] %v7303_v11 }
 0x3b7   :  { %v1832_v60 = vmul.f32 %v4899_v59, %v4895_v9  ;;  %1988 = vmatprep.subr.mxu0 %v7281_v62  ;;  %2059 = vmatprep.subr.mxu1 %v7284_v1  ;;  %10215 = vst [vmem:[#allocation100_spill] sm:$0xff] %v7290_v6  ;;  %v7294_v59 = vld [vmem:[#allocation9 + $0x128] sm:$0xff]  ;;  %v7297_v62 = vld [vmem:[#allocation9 + $0x138] sm:$0xff]  ;;  %v7300_v1 = vld [vmem:[#allocation9 + $0x120] sm:$0xff]  ;;  %4902 = vrcp.f32 %v1828_v10 }
 0x3b8   :  { %v4901_v5 = vpop.eup %4900  ;;  %1989 = vmatpush1.msra.mxu0 %v7287_v7  ;;  %2060 = vmatpush1.msra.mxu1 %v7290_v6  ;;  %10216 = vst [vmem:[#allocation101_spill] sm:$0xff] %v7300_v1  ;;  %v7308_v6 = vld [vmem:[#allocation9 + $0x108] sm:$0xff]  ;;  %v7330_v10 = vld [vmem:[#allocation9 + $0xf0] sm:$0xff] }
 0x3b9   :  { %v1831_v9 = vmul.f32 %v4901_v5, %v6812_v28  ;;  %1990 = vmatprep.subr.mxu0 %v7294_v59  ;;  %2061 = vmatprep.subr.mxu1 %v7297_v62  ;;  %10218 = vst [vmem:[#allocation103_spill] sm:$0xff] %v7308_v6  ;;  %v7311_v28 = vld [vmem:[#allocation9 + $0x118] sm:$0xff]  ;;  %v7314_v5 = vld [vmem:[#allocation9 + $0x100] sm:$0xff]  ;;  %10225 = vst [vmem:[#allocation110_spill] sm:$0xff] %v7330_v10 }
 0x3ba   :  { %1991 = vmatpush1.msra.mxu0 %v7300_v1  ;;  %2062 = vmatpush1.msra.mxu1 %v7303_v11  ;;  %10219 = vst [vmem:[#allocation104_spill] sm:$0xff] %v7311_v28  ;;  %10220 = vst [vmem:[#allocation105_spill] sm:$0xff] %v7314_v5  ;;  %v7317_v1 = vld [vmem:[#allocation9 + $0x110] sm:$0xff]  ;;  %v7320_v11 = vld [vmem:[#allocation9 + $0xe8] sm:$0xff] }
 0x3bb   :  { %v7306_v7 = vadd.f32 %v1832_v60, %v1831_v9  ;;  %1992 = vmatprep.subr.mxu0 %v7308_v6  ;;  %2063 = vmatprep.subr.mxu1 %v7311_v28  ;;  %10221 = vst [vmem:[#allocation106_spill] sm:$0xff] %v7317_v1  ;;  %10222 = vst [vmem:[#allocation107_spill] sm:$0xff] %v7320_v11  ;;  %v7323_v60 = vld [vmem:[#allocation9 + $0xf8] sm:$0xff]  ;;  %v7327_v9 = vld [vmem:[#allocation9 + $0xe0] sm:$0xff] }
 0x3bc   :  { %1993 = vmatpush1.msra.mxu0 %v7314_v5  ;;  %2064 = vmatpush1.msra.mxu1 %v7317_v1  ;;  %10223 = vst [vmem:[#allocation108_spill] sm:$0xff] %v7323_v60  ;;  %10224 = vst [vmem:[#allocation109_spill] sm:$0xff] %v7327_v9  ;;  %v7333_v5 = vld [vmem:[#allocation9 + $0xc8] sm:$0xff]  ;;  %v7336_v1 = vld [vmem:[#allocation9 + $0xd8] sm:$0xff] }
 0x3bd   :  { %1994 = vmatprep.subr.mxu0 %v7320_v11  ;;  %2065 = vmatprep.subr.mxu1 %v7323_v60  ;;  %4904 = vtanh.f32 %v7306_v7  ;;  %10226 = vst [vmem:[#allocation111_spill] sm:$0xff] %v7333_v5  ;;  %10227 = vst [vmem:[#allocation112_spill] sm:$0xff] %v7336_v1  ;;  %v7339_v11 = vld [vmem:[#allocation9 + $0xc0] sm:$0xff]  ;;  %v7342_v60 = vld [vmem:[#allocation9 + $0xd0] sm:$0xff] }
 0x3be   :  { %1995 = vmatpush1.msra.mxu0 %v7327_v9  ;;  %2066 = vmatpush1.msra.mxu1 %v7330_v10  ;;  %10228 = vst [vmem:[#allocation113_spill] sm:$0xff] %v7339_v11  ;;  %10229 = vst [vmem:[#allocation114_spill] sm:$0xff] %v7342_v60  ;;  %v7345_v9 = vld [vmem:[#allocation9 + $0xa8] sm:$0xff]  ;;  %v7348_v10 = vld [vmem:[#allocation9 + $0xb8] sm:$0xff] }
 0x3bf   :  { %1996 = vmatprep.subr.mxu0 %v7333_v5  ;;  %2067 = vmatprep.subr.mxu1 %v7336_v1  ;;  %10230 = vst [vmem:[#allocation115_spill] sm:$0xff] %v7345_v9  ;;  %10231 = vst [vmem:[#allocation116_spill] sm:$0xff] %v7348_v10  ;;  %v7351_v5 = vld [vmem:[#allocation9 + $0xa0] sm:$0xff]  ;;  %v7354_v1 = vld [vmem:[#allocation9 + $0xb0] sm:$0xff] }
 0x3c0   :  { %1997 = vmatpush1.msra.mxu0 %v7339_v11  ;;  %2068 = vmatpush1.msra.mxu1 %v7342_v60  ;;  %10232 = vst [vmem:[#allocation117_spill] sm:$0xff] %v7351_v5  ;;  %10233 = vst [vmem:[#allocation118_spill] sm:$0xff] %v7354_v1  ;;  %v7357_v11 = vld [vmem:[#allocation9 + $0x88] sm:$0xff]  ;;  %v7360_v60 = vld [vmem:[#allocation9 + $0x98] sm:$0xff] }
 0x3c1   :  { %1998 = vmatprep.subr.mxu0 %v7345_v9  ;;  %2069 = vmatprep.subr.mxu1 %v7348_v10  ;;  %10234 = vst [vmem:[#allocation119_spill] sm:$0xff] %v7357_v11  ;;  %10235 = vst [vmem:[#allocation120_spill] sm:$0xff] %v7360_v60  ;;  %v7363_v9 = vld [vmem:[#allocation9 + $0x80] sm:$0xff]  ;;  %v7366_v10 = vld [vmem:[#allocation9 + $0x90] sm:$0xff] }
 0x3c2   :  { %1999 = vmatpush1.msra.mxu0 %v7351_v5  ;;  %2070 = vmatpush1.msra.mxu1 %v7354_v1  ;;  %10236 = vst [vmem:[#allocation121_spill] sm:$0xff] %v7363_v9  ;;  %10237 = vst [vmem:[#allocation122_spill] sm:$0xff] %v7366_v10  ;;  %v7369_v5 = vld [vmem:[#allocation9 + $0x68] sm:$0xff]  ;;  %v7372_v1 = vld [vmem:[#allocation9 + $0x78] sm:$0xff] }
 0x3c3   :  { %2000 = vmatprep.subr.mxu0 %v7357_v11  ;;  %2071 = vmatprep.subr.mxu1 %v7360_v60  ;;  %10238 = vst [vmem:[#allocation123_spill] sm:$0xff] %v7369_v5  ;;  %10239 = vst [vmem:[#allocation124_spill] sm:$0xff] %v7372_v1  ;;  %v7375_v11 = vld [vmem:[#allocation9 + $0x60] sm:$0xff]  ;;  %v7378_v60 = vld [vmem:[#allocation9 + $0x70] sm:$0xff] }
 0x3c4   :  { %2001 = vmatpush1.msra.mxu0 %v7363_v9  ;;  %2072 = vmatpush1.msra.mxu1 %v7366_v10  ;;  %10240 = vst [vmem:[#allocation125_spill] sm:$0xff] %v7375_v11  ;;  %10241 = vst [vmem:[#allocation126_spill] sm:$0xff] %v7378_v60  ;;  %v7381_v9 = vld [vmem:[#allocation9 + $0x48] sm:$0xff]  ;;  %v7384_v10 = vld [vmem:[#allocation9 + $0x58] sm:$0xff] }
 0x3c5   :  { %2002 = vmatprep.subr.mxu0 %v7369_v5  ;;  %2073 = vmatprep.subr.mxu1 %v7372_v1  ;;  %10242 = vst [vmem:[#allocation127_spill] sm:$0xff] %v7381_v9  ;;  %10243 = vst [vmem:[#allocation128_spill] sm:$0xff] %v7384_v10  ;;  %v7387_v5 = vld [vmem:[#allocation9 + $0x40] sm:$0xff]  ;;  %v7390_v1 = vld [vmem:[#allocation9 + $0x50] sm:$0xff] }
 0x3c6   :  { %2003 = vmatpush1.msra.mxu0 %v7375_v11  ;;  %2074 = vmatpush1.msra.mxu1 %v7378_v60  ;;  %10244 = vst [vmem:[#allocation129_spill] sm:$0xff] %v7387_v5  ;;  %10245 = vst [vmem:[#allocation130_spill] sm:$0xff] %v7390_v1  ;;  %v4903_v11 = vpop.eup %4902  ;;  %v7393_v28 = vld [vmem:[#allocation9 + $0x28] sm:$0xff]  ;;  %v7396_v60 = vld [vmem:[#allocation9 + $0x38] sm:$0xff] }
 0x3c7   :  { %2004 = vmatprep.subr.mxu0 %v7381_v9  ;;  %2075 = vmatprep.subr.mxu1 %v7384_v10  ;;  %10246 = vst [vmem:[#allocation131_spill] sm:$0xff] %v7393_v28  ;;  %10247 = vst [vmem:[#allocation132_spill] sm:$0xff] %v7396_v60  ;;  %v7399_v6 = vld [vmem:[#allocation9 + $0x20] sm:$0xff]  ;;  %v7402_v10 = vld [vmem:[#allocation9 + $0x30] sm:$0xff] }
 0x3c8   :  { %2005 = vmatpush1.msra.mxu0 %v7387_v5  ;;  %2076 = vmatpush1.msra.mxu1 %v7390_v1  ;;  %10248 = vst [vmem:[#allocation133_spill] sm:$0xff] %v7399_v6  ;;  %v7405_v5 = vld [vmem:[#allocation9 + $0x8] sm:$0xff]  ;;  %v7408_v1 = vld [vmem:[#allocation9 + $0x18] sm:$0xff] }
 0x3c9   :  { %2006 = vmatprep.subr.mxu0 %v7393_v28  ;;  %2077 = vmatprep.subr.mxu1 %v7396_v60  ;;  %10249 = vst [vmem:[#allocation134_spill] sm:$0xff] %v7408_v1  ;;  %v7413_v60 = vld [vmem:[#allocation9] sm:$0xff] }
 0x3ca   :  { %v4905_v9 = vpop.eup %4904  ;;  %2007 = vmatpush1.msra.mxu0 %v7399_v6  ;;  %2078 = vmatpush1.msra.mxu1 %v7402_v10  ;;  %10250 = vst [vmem:[#allocation135_spill] sm:$0xff] %v7413_v60  ;;  %v7417_v6 = vld [vmem:[#allocation9 + $0x10] sm:$0xff] }
 0x3cb   :  { %2008 = vmatprep.subr.mxu0 %v7405_v5  ;;  %2079 = vmatprep.subr.mxu1 %v7408_v1  ;;  %v7411_v28 = vmul.f32 %v4905_v9, %v4903_v11  ;;  %10251 = vst [vmem:[#allocation136_spill] sm:$0xff] %v7417_v6  ;;  %v7425_v11 = vld [vmem:[#allocation8 + $0x1e0] sm:$0xff]  ;;  %v7428_v9 = vld [vmem:[#allocation8 + $0x1f0] sm:$0xff] }
 0x3cc   :  { %2009 = vmatpush1.msra.mxu0 %v7413_v60  ;;  %2042 = vmatprep.mubr.f32.mxu0 %v9989_v27  ;;  %10252 = vst [vmem:[#allocation137_spill] sm:$0xff] %v7428_v9  ;;  %v7431_v60 = vld [vmem:[#allocation8 + $0x1c8] sm:$0xff]  ;;  %v7437_v1 = vld [vmem:[#allocation8 + $0x1c0] sm:$0xff] }
 0x3cd   :  { %2080 = vmatpush1.msra.mxu1 %v7417_v6  ;;  %2113 = vmatprep.mubr.f32.mxu1 %v9989_v27  ;;  %10253 = vst [vmem:[#allocation138_spill] sm:$0xff] %v7431_v60  ;;  %v7434_v6 = vld [vmem:[#allocation8 + $0x1d8] sm:$0xff]  ;;  %10255 = vst [vmem:[#allocation140_spill] sm:$0xff] %v7437_v1 }
 0x3ce   :  { %2043 = vmatmul.mubr.f32.vlgmr.msra.gmra.mxu0 %v7411_v28  ;;  %2114 = vmatmul.mubr.f32.vlgmr.msra.gmra.mxu1 %v7411_v28  ;;  %10254 = vst [vmem:[#allocation139_spill] sm:$0xff] %v7434_v6 }
 0x3cf   :  { %2155 = vmatprep.subr.mxu0 %v6859_v4  ;;  %2226 = vmatprep.subr.mxu1 %v6862_v36  ;;  %v7440_v4 = vld [vmem:[#allocation8 + $0x1d0] sm:$0xff]  ;;  %v7443_v36 = vld [vmem:[#allocation8 + $0x1a8] sm:$0xff] }
 0x3d0   :  { %2156 = vmatpush1.msra.mxu0 %v7425_v11  ;;  %2227 = vmatpush1.msra.mxu1 %v7428_v9  ;;  %10256 = vst [vmem:[#allocation141_spill] sm:$0xff] %v7440_v4  ;;  %10257 = vst [vmem:[#allocation142_spill] sm:$0xff] %v7443_v36  ;;  %v7446_v9 = vld [vmem:[#allocation8 + $0x1b8] sm:$0xff] }
 0x3d1   :  { %2157 = vmatprep.subr.mxu0 %v7431_v60  ;;  %2228 = vmatprep.subr.mxu1 %v7434_v6  ;;  %10258 = vst [vmem:[#allocation143_spill] sm:$0xff] %v7446_v9  ;;  %v7449_v60 = vld [vmem:[#allocation8 + $0x1a0] sm:$0xff]  ;;  %v7452_v6 = vld [vmem:[#allocation8 + $0x1b0] sm:$0xff] }
 0x3d2   :  { %2158 = vmatpush1.msra.mxu0 %v7437_v1  ;;  %2229 = vmatpush1.msra.mxu1 %v7440_v4  ;;  %10259 = vst [vmem:[#allocation144_spill] sm:$0xff] %v7449_v60  ;;  %10260 = vst [vmem:[#allocation145_spill] sm:$0xff] %v7452_v6  ;;  %v7455_v1 = vld [vmem:[#allocation8 + $0x188] sm:$0xff]  ;;  %v7458_v4 = vld [vmem:[#allocation8 + $0x198] sm:$0xff] }
 0x3d3   :  { %2159 = vmatprep.subr.mxu0 %v7443_v36  ;;  %2230 = vmatprep.subr.mxu1 %v7446_v9  ;;  %10261 = vst [vmem:[#allocation146_spill] sm:$0xff] %v7455_v1  ;;  %10262 = vst [vmem:[#allocation147_spill] sm:$0xff] %v7458_v4  ;;  %v7461_v36 = vld [vmem:[#allocation8 + $0x180] sm:$0xff]  ;;  %v7464_v9 = vld [vmem:[#allocation8 + $0x190] sm:$0xff] }
 0x3d4   :  { %2160 = vmatpush1.msra.mxu0 %v7449_v60  ;;  %2231 = vmatpush1.msra.mxu1 %v7452_v6  ;;  %10263 = vst [vmem:[#allocation148_spill] sm:$0xff] %v7461_v36  ;;  %10264 = vst [vmem:[#allocation153_spill] sm:$0xff] %v7464_v9  ;;  %v7467_v60 = vld [vmem:[#allocation8 + $0x168] sm:$0xff]  ;;  %v7470_v6 = vld [vmem:[#allocation8 + $0x178] sm:$0xff] }
 0x3d5   :  { %2161 = vmatprep.subr.mxu0 %v7455_v1  ;;  %2232 = vmatprep.subr.mxu1 %v7458_v4  ;;  %v7473_v1 = vld [vmem:[#allocation8 + $0x160] sm:$0xff]  ;;  %v7476_v4 = vld [vmem:[#allocation8 + $0x170] sm:$0xff] }
 0x3d6   :  { %2162 = vmatpush1.msra.mxu0 %v7461_v36  ;;  %2233 = vmatpush1.msra.mxu1 %v7464_v9  ;;  %v7479_v36 = vld [vmem:[#allocation8 + $0x148] sm:$0xff]  ;;  %v7482_v9 = vld [vmem:[#allocation8 + $0x158] sm:$0xff] }
 0x3d7   :  { %2163 = vmatprep.subr.mxu0 %v7467_v60  ;;  %2234 = vmatprep.subr.mxu1 %v7470_v6 }
 0x3d8   :  { %2164 = vmatpush1.msra.mxu0 %v7473_v1  ;;  %2235 = vmatpush1.msra.mxu1 %v7476_v4 }
 0x3d9   :  { %2165 = vmatprep.subr.mxu0 %v7479_v36  ;;  %2236 = vmatprep.subr.mxu1 %v7482_v9 }
 0x3da   :  { %2166 = vmatpush1.msra.mxu0 %v6885_v47  ;;  %2237 = vmatpush1.msra.mxu1 %v6888_v20  ;;  %v10265_v47 = vld [vmem:[#allocation20_spill] sm:$0xff]  ;;  %v10266_v20 = vld [vmem:[#allocation21_spill] sm:$0xff] }
 0x3db   :  { %2167 = vmatprep.subr.mxu0 %v6891_v13  ;;  %2238 = vmatprep.subr.mxu1 %v6894_v12  ;;  %v10267_v13 = vld [vmem:[#allocation22_spill] sm:$0xff]  ;;  %v10268_v12 = vld [vmem:[#allocation23_spill] sm:$0xff] }
 0x3dc   :  { %2168 = vmatpush1.msra.mxu0 %v6897_v2  ;;  %2239 = vmatpush1.msra.mxu1 %v6900_v26  ;;  %v10269_v2 = vld [vmem:[#allocation24_spill] sm:$0xff]  ;;  %v10270_v26 = vld [vmem:[#allocation25_spill] sm:$0xff] }
 0x3dd   :  { %2169 = vmatprep.subr.mxu0 %v6903_v21  ;;  %2240 = vmatprep.subr.mxu1 %v6906_v23  ;;  %v10271_v21 = vld [vmem:[#allocation26_spill] sm:$0xff]  ;;  %v10272_v23 = vld [vmem:[#allocation27_spill] sm:$0xff] }
 0x3de   :  { %2170 = vmatpush1.msra.mxu0 %v6909_v19  ;;  %2241 = vmatpush1.msra.mxu1 %v6912_v38  ;;  %v10273_v19 = vld [vmem:[#allocation28_spill] sm:$0xff]  ;;  %v10274_v38 = vld [vmem:[#allocation29_spill] sm:$0xff] }
 0x3df   :  { %2171 = vmatprep.subr.mxu0 %v6915_v0  ;;  %2242 = vmatprep.subr.mxu1 %v6918_v17  ;;  %v10275_v0 = vld [vmem:[#allocation30_spill] sm:$0xff]  ;;  %v10276_v17 = vld [vmem:[#allocation31_spill] sm:$0xff] }
 0x3e0   :  { %2172 = vmatpush1.msra.mxu0 %v6921_v16  ;;  %2243 = vmatpush1.msra.mxu1 %v6924_v25  ;;  %v10277_v16 = vld [vmem:[#allocation32_spill] sm:$0xff]  ;;  %v10278_v25 = vld [vmem:[#allocation33_spill] sm:$0xff] }
 0x3e1   :  { %2173 = vmatprep.subr.mxu0 %v6927_v15  ;;  %2244 = vmatprep.subr.mxu1 %v6930_v22  ;;  %v10279_v15 = vld [vmem:[#allocation34_spill] sm:$0xff]  ;;  %v10280_v22 = vld [vmem:[#allocation35_spill] sm:$0xff] }
 0x3e2   :  { %2174 = vmatpush1.msra.mxu0 %v6933_v18  ;;  %2245 = vmatpush1.msra.mxu1 %v6936_v3  ;;  %v10281_v18 = vld [vmem:[#allocation36_spill] sm:$0xff]  ;;  %v10282_v3 = vld [vmem:[#allocation37_spill] sm:$0xff] }
 0x3e3   :  { %2175 = vmatprep.subr.mxu0 %v6939_v14  ;;  %2246 = vmatprep.subr.mxu1 %v6942_v29  ;;  %v10283_v14 = vld [vmem:[#allocation38_spill] sm:$0xff]  ;;  %v10284_v29 = vld [vmem:[#allocation39_spill] sm:$0xff] }
 0x3e4   :  { %2176 = vmatpush1.msra.mxu0 %v6945_v37  ;;  %2247 = vmatpush1.msra.mxu1 %v6948_v40  ;;  %v10285_v37 = vld [vmem:[#allocation40_spill] sm:$0xff]  ;;  %v10286_v40 = vld [vmem:[#allocation41_spill] sm:$0xff] }
 0x3e5   :  { %2177 = vmatprep.subr.mxu0 %v6951_v41  ;;  %2248 = vmatprep.subr.mxu1 %v6954_v42  ;;  %v10287_v41 = vld [vmem:[#allocation42_spill] sm:$0xff]  ;;  %v10288_v42 = vld [vmem:[#allocation43_spill] sm:$0xff] }
 0x3e6   :  { %2178 = vmatpush1.msra.mxu0 %v6957_v43  ;;  %2249 = vmatpush1.msra.mxu1 %v6960_v44  ;;  %v10289_v43 = vld [vmem:[#allocation44_spill] sm:$0xff]  ;;  %v10290_v44 = vld [vmem:[#allocation45_spill] sm:$0xff] }
 0x3e7   :  { %2179 = vmatprep.subr.mxu0 %v6963_v45  ;;  %2250 = vmatprep.subr.mxu1 %v6966_v46  ;;  %v10291_v45 = vld [vmem:[#allocation46_spill] sm:$0xff]  ;;  %v10292_v46 = vld [vmem:[#allocation47_spill] sm:$0xff] }
 0x3e8   :  { %2180 = vmatpush1.msra.mxu0 %v6969_v48  ;;  %2251 = vmatpush1.msra.mxu1 %v6972_v49  ;;  %v10293_v48 = vld [vmem:[#allocation48_spill] sm:$0xff]  ;;  %v10294_v49 = vld [vmem:[#allocation49_spill] sm:$0xff] }
 0x3e9   :  { %2181 = vmatprep.subr.mxu0 %v6975_v50  ;;  %2252 = vmatprep.subr.mxu1 %v6978_v51  ;;  %v10295_v50 = vld [vmem:[#allocation50_spill] sm:$0xff]  ;;  %v10296_v51 = vld [vmem:[#allocation51_spill] sm:$0xff] }
 0x3ea   :  { %2182 = vmatpush1.msra.mxu0 %v6981_v52  ;;  %2253 = vmatpush1.msra.mxu1 %v6984_v24  ;;  %v10297_v52 = vld [vmem:[#allocation52_spill] sm:$0xff]  ;;  %v10298_v24 = vld [vmem:[#allocation53_spill] sm:$0xff] }
 0x3eb   :  { %2183 = vmatprep.subr.mxu0 %v6987_v53  ;;  %2254 = vmatprep.subr.mxu1 %v10265_v47  ;;  %v10299_v53 = vld [vmem:[#allocation54_spill] sm:$0xff]  ;;  %v10301_v47 = vld [vmem:[#allocation56_spill] sm:$0xff] }
 0x3ec   :  { %2184 = vmatpush1.msra.mxu0 %v10266_v20  ;;  %2255 = vmatpush1.msra.mxu1 %v10267_v13  ;;  %v10302_v20 = vld [vmem:[#allocation57_spill] sm:$0xff]  ;;  %v10303_v13 = vld [vmem:[#allocation58_spill] sm:$0xff] }
 0x3ed   :  { %2185 = vmatprep.subr.mxu0 %v10268_v12  ;;  %2256 = vmatprep.subr.mxu1 %v10269_v2  ;;  %v10304_v12 = vld [vmem:[#allocation59_spill] sm:$0xff]  ;;  %v10305_v2 = vld [vmem:[#allocation60_spill] sm:$0xff] }
 0x3ee   :  { %2186 = vmatpush1.msra.mxu0 %v10270_v26  ;;  %2219 = vmatprep.mubr.f32.mxu0 %v9989_v27  ;;  %v10306_v26 = vld [vmem:[#allocation61_spill] sm:$0xff] }
 0x3ef   :  { %2257 = vmatpush1.msra.mxu1 %v10271_v21  ;;  %2290 = vmatprep.mubr.f32.mxu1 %v9989_v27  ;;  %v10307_v21 = vld [vmem:[#allocation62_spill] sm:$0xff] }
 0x3f0   :  { %2220 = vmatmul.mubr.f32.vlgmr.msra.gmra.mxu0 %v7411_v28  ;;  %2291 = vmatmul.mubr.f32.vlgmr.msra.gmra.mxu1 %v7411_v28  ;;  %v10300_v28 = vld [vmem:[#allocation55_spill] sm:$0xff] }
 0x3f1   :  { %2325 = vmatprep.subr.mxu0 %v10272_v23  ;;  %2396 = vmatprep.subr.mxu1 %v10273_v19  ;;  %v10308_v23 = vld [vmem:[#allocation63_spill] sm:$0xff]  ;;  %v10309_v19 = vld [vmem:[#allocation64_spill] sm:$0xff] }
 0x3f2   :  { %2326 = vmatpush1.msra.mxu0 %v10274_v38  ;;  %2397 = vmatpush1.msra.mxu1 %v10275_v0  ;;  %v10310_v38 = vld [vmem:[#allocation65_spill] sm:$0xff]  ;;  %v10311_v0 = vld [vmem:[#allocation66_spill] sm:$0xff] }
 0x3f3   :  { %2327 = vmatprep.subr.mxu0 %v10276_v17  ;;  %2398 = vmatprep.subr.mxu1 %v10277_v16  ;;  %v10312_v17 = vld [vmem:[#allocation67_spill] sm:$0xff]  ;;  %v10313_v16 = vld [vmem:[#allocation68_spill] sm:$0xff] }
 0x3f4   :  { %2328 = vmatpush1.msra.mxu0 %v10278_v25  ;;  %2399 = vmatpush1.msra.mxu1 %v10279_v15  ;;  %v10314_v25 = vld [vmem:[#allocation69_spill] sm:$0xff]  ;;  %v10315_v15 = vld [vmem:[#allocation70_spill] sm:$0xff] }
 0x3f5   :  { %2329 = vmatprep.subr.mxu0 %v10280_v22  ;;  %2400 = vmatprep.subr.mxu1 %v10281_v18  ;;  %v10316_v22 = vld [vmem:[#allocation71_spill] sm:$0xff]  ;;  %v10317_v18 = vld [vmem:[#allocation72_spill] sm:$0xff] }
 0x3f6   :  { %2330 = vmatpush1.msra.mxu0 %v10282_v3  ;;  %2401 = vmatpush1.msra.mxu1 %v10283_v14  ;;  %v10318_v3 = vld [vmem:[#allocation73_spill] sm:$0xff]  ;;  %v10319_v14 = vld [vmem:[#allocation74_spill] sm:$0xff] }
 0x3f7   :  { %2331 = vmatprep.subr.mxu0 %v10284_v29  ;;  %2402 = vmatprep.subr.mxu1 %v10285_v37  ;;  %v10320_v29 = vld [vmem:[#allocation75_spill] sm:$0xff]  ;;  %v10321_v37 = vld [vmem:[#allocation76_spill] sm:$0xff] }
 0x3f8   :  { %2332 = vmatpush1.msra.mxu0 %v10286_v40  ;;  %2403 = vmatpush1.msra.mxu1 %v10287_v41  ;;  %v10322_v40 = vld [vmem:[#allocation77_spill] sm:$0xff]  ;;  %v10323_v41 = vld [vmem:[#allocation78_spill] sm:$0xff] }
 0x3f9   :  { %2333 = vmatprep.subr.mxu0 %v10288_v42  ;;  %2404 = vmatprep.subr.mxu1 %v10289_v43  ;;  %v10324_v42 = vld [vmem:[#allocation79_spill] sm:$0xff]  ;;  %v10325_v43 = vld [vmem:[#allocation80_spill] sm:$0xff] }
 0x3fa   :  { %2334 = vmatpush1.msra.mxu0 %v10290_v44  ;;  %2405 = vmatpush1.msra.mxu1 %v10291_v45  ;;  %v10326_v44 = vld [vmem:[#allocation81_spill] sm:$0xff]  ;;  %v10327_v45 = vld [vmem:[#allocation82_spill] sm:$0xff] }
 0x3fb   :  { %2335 = vmatprep.subr.mxu0 %v10292_v46  ;;  %2406 = vmatprep.subr.mxu1 %v10293_v48  ;;  %v10328_v46 = vld [vmem:[#allocation83_spill] sm:$0xff]  ;;  %v10329_v48 = vld [vmem:[#allocation84_spill] sm:$0xff] }
 0x3fc   :  { %2336 = vmatpush1.msra.mxu0 %v10294_v49  ;;  %2407 = vmatpush1.msra.mxu1 %v10295_v50  ;;  %v10330_v49 = vld [vmem:[#allocation85_spill] sm:$0xff]  ;;  %v10331_v50 = vld [vmem:[#allocation86_spill] sm:$0xff] }
 0x3fd   :  { %2337 = vmatprep.subr.mxu0 %v10296_v51  ;;  %2408 = vmatprep.subr.mxu1 %v10297_v52  ;;  %v10332_v51 = vld [vmem:[#allocation149_spill] sm:$0xff]  ;;  %v10333_v52 = vld [vmem:[#allocation151_spill] sm:$0xff] }
 0x3fe   :  { %2338 = vmatpush1.msra.mxu0 %v10298_v24  ;;  %2409 = vmatpush1.msra.mxu1 %v10299_v53  ;;  %v10334_v24 = vld [vmem:[#allocation152_spill] sm:$0xff]  ;;  %v10335_v53 = vld [vmem:[#allocation150_spill] sm:$0xff] }
 0x3ff   :  { %2339 = vmatprep.subr.mxu0 %v10300_v28  ;;  %2410 = vmatprep.subr.mxu1 %v10301_v47  ;;  %v10336_v28 = vld [vmem:[#allocation87_spill] sm:$0xff]  ;;  %v10337_v47 = vld [vmem:[#allocation88_spill] sm:$0xff] }
 0x400   :  { %2340 = vmatpush1.msra.mxu0 %v10302_v20  ;;  %2411 = vmatpush1.msra.mxu1 %v10303_v13 }
 0x401   :  { %2341 = vmatprep.subr.mxu0 %v10304_v12  ;;  %2412 = vmatprep.subr.mxu1 %v10305_v2 }
 0x402   :  { %2342 = vmatpush1.msra.mxu0 %v10306_v26  ;;  %2413 = vmatpush1.msra.mxu1 %v10307_v21 }
 0x403   :  { %2343 = vmatprep.subr.mxu0 %v10308_v23  ;;  %2414 = vmatprep.subr.mxu1 %v10309_v19 }
 0x404   :  { %2344 = vmatpush1.msra.mxu0 %v10310_v38  ;;  %2415 = vmatpush1.msra.mxu1 %v10311_v0 }
 0x405   :  { %2345 = vmatprep.subr.mxu0 %v10312_v17  ;;  %2416 = vmatprep.subr.mxu1 %v10313_v16 }
 0x406   :  { %2346 = vmatpush1.msra.mxu0 %v10314_v25  ;;  %2417 = vmatpush1.msra.mxu1 %v10315_v15 }
 0x407   :  { %2347 = vmatprep.subr.mxu0 %v10316_v22  ;;  %2418 = vmatprep.subr.mxu1 %v10317_v18 }
 0x408   :  { %2348 = vmatpush1.msra.mxu0 %v10318_v3  ;;  %2419 = vmatpush1.msra.mxu1 %v10319_v14 }
 0x409   :  { %2349 = vmatprep.subr.mxu0 %v10320_v29  ;;  %2420 = vmatprep.subr.mxu1 %v10321_v37 }
 0x40a   :  { %2350 = vmatpush1.msra.mxu0 %v10322_v40  ;;  %2421 = vmatpush1.msra.mxu1 %v10323_v41 }
 0x40b   :  { %2351 = vmatprep.subr.mxu0 %v10324_v42  ;;  %2422 = vmatprep.subr.mxu1 %v10325_v43 }
 0x40c   :  { %2352 = vmatpush1.msra.mxu0 %v10326_v44  ;;  %2423 = vmatpush1.msra.mxu1 %v10327_v45  ;;  %v10338_v45 = vld [vmem:[#allocation157_spill] sm:$0xff] }
 0x40d   :  { %2353 = vmatprep.subr.mxu0 %v10328_v46  ;;  %2424 = vmatprep.subr.mxu1 %v10329_v48 }
 0x40e   :  { %2354 = vmatpush1.msra.mxu0 %v10330_v49  ;;  %2425 = vmatpush1.msra.mxu1 %v10331_v50 }
 0x40f   :  { %2355 = vmatprep.subr.mxu0 %v10332_v51  ;;  %2426 = vmatprep.subr.mxu1 %v10333_v52  ;;  %v10339_v52 = vld [vmem:[#allocation159_spill] sm:$0xff] }
 0x410   :  { %2356 = vmatpush1.msra.mxu0 %v10334_v24  ;;  %2427 = vmatpush1.msra.mxu1 %v10335_v53 }
 0x411   :  { %2389 = vmatprep.mubr.f32.mxu0 %v9989_v27  ;;  %2460 = vmatprep.mubr.f32.mxu1 %v9989_v27 }
 0x412   :  { %2467 = vmatprep.subr.mxu0 %v10336_v28  ;;  %2538 = vmatprep.subr.mxu1 %v10337_v47 }
 0x46d   :  { %v1902_v20 = vpop.f32.mrf.mxu0  ;;  %v1973_v13 = vpop.f32.mrf.mxu1 }
 0x46f   :  { %v1904_v12 = vpop.f32.mrf.mxu0  ;;  %v1975_v26 = vpop.f32.mrf.mxu1 }
 0x48e   :  { %v2044_v2 = vpop.f32.mrf.mxu0  ;;  %v2115_v38 = vpop.f32.mrf.mxu1 }
 0x48f   :  { %v2045_v21 = vadd.f32 %v2044_v2, %v1902_v20  ;;  %v2116_v3 = vadd.f32 %v2115_v38, %v1973_v13 }
 0x490   :  { %v2046_v23 = vpop.f32.mrf.mxu0  ;;  %v2117_v15 = vpop.f32.mrf.mxu1 }
 0x491   :  { %v2120_v19 = vadd.f32 %v2045_v21, %v6762_v63  ;;  %v2047_v0 = vadd.f32 %v2046_v23, %v1904_v12  ;;  %v2118_v22 = vadd.f32 %v2117_v15, %v1975_v26  ;;  %v2122_v37 = vadd.f32 %v2116_v3, %v6777_v39  ;;  %v10340_v21 = vld [vmem:[#allocation160_spill] sm:$0xff]  ;;  %v10342_v3 = vld [vmem:[#allocation89_spill] sm:$0xff] }
 0x493   :  { %v4727_v17 = vmul.f32 -1.442695, %v2120_v19  ;;  %v2121_v16 = vadd.f32 %v2047_v0, %v6766_v8  ;;  %v2123_v18 = vadd.f32 %v2118_v22, %v6772_v34  ;;  %v10341_v19 = vld [vmem:[#allocation158_spill] sm:$0xff] }
 0x495   :  { %4906 = vpow2.f32 %v4727_v17  ;;  %v4728_v25 = vmul.f32 -1.442695, %v2121_v16  ;;  %v4729_v14 = vmul.f32 -1.442695, %v2123_v18 }
 0x497   :  { %4908 = vpow2.f32 %v4728_v25 }
 0x498   :  { %4910 = vpow2.f32 %v4729_v14  ;;  %v10343_v14 = vld [vmem:[#allocation90_spill] sm:$0xff] }
 0x4a2   :  { %v4907_v29 = vpop.eup %4906 }
 0x4a3   :  { %v2127_v40 = vadd.f32 1.0, %v4907_v29  ;;  %v10347_v29 = vld [vmem:[#allocation94_spill] sm:$0xff] }
 0x4a4   :  { %v4909_v41 = vpop.eup %4908 }
 0x4a5   :  { %4912 = vrcp.f32 %v2127_v40  ;;  %v2133_v42 = vadd.f32 1.0, %v4909_v41  ;;  %v4911_v44 = vpop.eup %4910  ;;  %v10351_v40 = vld [vmem:[#allocation98_spill] sm:$0xff] }
 0x4a6   :  { %4914 = vtanh.f32 %v2122_v37  ;;  %v2140_v28 = vadd.f32 1.0, %v4911_v44  ;;  %v10350_v37 = vld [vmem:[#allocation97_spill] sm:$0xff]  ;;  %v10353_v44 = vld [vmem:[#allocation100_spill] sm:$0xff] }
 0x4a7   :  { %4916 = vrcp.f32 %v2133_v42 }
 0x4b0   :  { %v2221_v43 = vpop.f32.mrf.mxu0  ;;  %v2292_v13 = vpop.f32.mrf.mxu1 }
 0x4b1   :  { %v2297_v46 = vadd.f32 %v2221_v43, %v10338_v45  ;;  %v2299_v38 = vadd.f32 %v2292_v13, %v10341_v19  ;;  %v10352_v43 = vld [vmem:[#allocation99_spill] sm:$0xff]  ;;  %v10373_v19 = vld [vmem:[#allocation120_spill] sm:$0xff] }
 0x4b2   :  { %v4913_v48 = vpop.eup %4912  ;;  %v2223_v49 = vpop.f32.mrf.mxu0  ;;  %v10368_v13 = vld [vmem:[#allocation115_spill] sm:$0xff] }
 0x4b3   :  { %v4915_v50 = vpop.eup %4914  ;;  %v4730_v51 = vmul.f32 -1.442695, %v2297_v46  ;;  %v2298_v24 = vadd.f32 %v2223_v49, %v10339_v52  ;;  %v2294_v26 = vpop.f32.mrf.mxu1  ;;  %v10354_v46 = vld [vmem:[#allocation101_spill] sm:$0xff]  ;;  %v10356_v49 = vld [vmem:[#allocation103_spill] sm:$0xff]  ;;  %v10359_v52 = vld [vmem:[#allocation106_spill] sm:$0xff] }
 0x4b4   :  { %v4917_v53 = vpop.eup %4916  ;;  %v2144_v47 = vmul.f32 %v4915_v50, %v4913_v48  ;;  %v2300_v23 = vadd.f32 %v2294_v26, %v10340_v21  ;;  %v10357_v50 = vld [vmem:[#allocation104_spill] sm:$0xff]  ;;  %v10370_v26 = vld [vmem:[#allocation117_spill] sm:$0xff]  ;;  %v10371_v21 = vld [vmem:[#allocation118_spill] sm:$0xff] }
 0x4b5   :  { %v2143_v20 = vmul.f32 %v4917_v53, %v7222_v35  ;;  %4918 = vpow2.f32 %v4730_v51  ;;  %v4731_v12 = vmul.f32 -1.442695, %v2298_v24  ;;  %v10358_v51 = vld [vmem:[#allocation105_spill] sm:$0xff]  ;;  %v10363_v24 = vld [vmem:[#allocation110_spill] sm:$0xff]  ;;  %v10364_v53 = vld [vmem:[#allocation111_spill] sm:$0xff] }
 0x4b6   :  { %v4732_v0 = vmul.f32 -1.442695, %v2300_v23  ;;  %v10372_v23 = vld [vmem:[#allocation119_spill] sm:$0xff] }
 0x4b7   :  { %4920 = vpow2.f32 %v4731_v12  ;;  %v7606_v2 = vadd.f32 %v2144_v47, %v2143_v20  ;;  %v10366_v47 = vld [vmem:[#allocation113_spill] sm:$0xff]  ;;  %v10367_v20 = vld [vmem:[#allocation114_spill] sm:$0xff]  ;;  %v10369_v12 = vld [vmem:[#allocation116_spill] sm:$0xff] }
 0x4b8   :  { %4922 = vrcp.f32 %v2140_v28  ;;  %v10365_v28 = vld [vmem:[#allocation112_spill] sm:$0xff] }
 0x4b9   :  { %4924 = vtanh.f32 %v7606_v2 }
 0x4ba   :  { %4926 = vtanh.f32 %v2299_v38  ;;  %v10374_v38 = vld [vmem:[#allocation121_spill] sm:$0xff] }
 0x4bb   :  { %4928 = vpow2.f32 %v4732_v0  ;;  %v10375_v0 = vld [vmem:[#allocation122_spill] sm:$0xff] }
 0x4c2   :  { %v4919_v17 = vpop.eup %4918 }
 0x4c3   :  { %v2304_v16 = vadd.f32 1.0, %v4919_v17  ;;  %v10376_v17 = vld [vmem:[#allocation123_spill] sm:$0xff] }
 0x4c4   :  { %v4921_v25 = vpop.eup %4920 }
 0x4c5   :  { %v4923_v35 = vpop.eup %4922  ;;  %4930 = vrcp.f32 %v2304_v16  ;;  %v2310_v15 = vadd.f32 1.0, %v4921_v25  ;;  %v10377_v16 = vld [vmem:[#allocation124_spill] sm:$0xff]  ;;  %v10378_v25 = vld [vmem:[#allocation125_spill] sm:$0xff] }
 0x4c6   :  { %v4925_v22 = vpop.eup %4924 }
 0x4c7   :  { %4932 = vrcp.f32 %v2310_v15  ;;  %v2147_v18 = vmul.f32 %v4925_v22, %v4923_v35  ;;  %v10379_v35 = vld [vmem:[#allocation126_spill] sm:$0xff]  ;;  %v10380_v15 = vld [vmem:[#allocation127_spill] sm:$0xff]  ;;  %v10381_v22 = vld [vmem:[#allocation128_spill] sm:$0xff] }
 0x4c9   :  { %2390 = vmatmul.mubr.f32.vlgmr.msra.gmra.mxu0 %v2147_v18  ;;  %2461 = vmatmul.mubr.f32.vlgmr.msra.gmra.mxu1 %v2147_v18  ;;  %v10382_v18 = vld [vmem:[#allocation129_spill] sm:$0xff] }
 0x4ca   :  { %2468 = vmatpush1.msra.mxu0 %v7227_v31  ;;  %2539 = vmatpush1.msra.mxu1 %v7230_v32  ;;  %v10344_v31 = vld [vmem:[#allocation91_spill] sm:$0xff]  ;;  %v4927_v32 = vpop.eup %4926 }
 0x4cb   :  { %2469 = vmatprep.subr.mxu0 %v7233_v33  ;;  %2540 = vmatprep.subr.mxu1 %v7236_v58  ;;  %v10345_v33 = vld [vmem:[#allocation92_spill] sm:$0xff]  ;;  %v10346_v58 = vld [vmem:[#allocation93_spill] sm:$0xff] }
 0x4cc   :  { %2470 = vmatpush1.msra.mxu0 %v7239_v55  ;;  %2541 = vmatpush1.msra.mxu1 %v7242_v57  ;;  %v4929_v55 = vpop.eup %4928  ;;  %v10348_v57 = vld [vmem:[#allocation95_spill] sm:$0xff] }
 0x4cd   :  { %2471 = vmatprep.subr.mxu0 %v7245_v54  ;;  %2542 = vmatprep.subr.mxu1 %v7248_v56  ;;  %v10349_v56 = vld [vmem:[#allocation96_spill] sm:$0xff]  ;;  %v2317_v42 = vadd.f32 1.0, %v4929_v55  ;;  %v10387_v55 = vld [vmem:[#allocation134_spill] sm:$0xff] }
 0x4ce   :  { %2472 = vmatpush1.msra.mxu0 %v7251_v30  ;;  %2543 = vmatpush1.msra.mxu1 %v10342_v3  ;;  %v10383_v3 = vld [vmem:[#allocation130_spill] sm:$0xff] }
 0x4cf   :  { %2473 = vmatprep.subr.mxu0 %v10343_v14  ;;  %2544 = vmatprep.subr.mxu1 %v10344_v31  ;;  %4934 = vrcp.f32 %v2317_v42  ;;  %v10384_v31 = vld [vmem:[#allocation131_spill] sm:$0xff]  ;;  %v10395_v42 = vld [vmem:[#allocation142_spill] sm:$0xff] }
 0x4d0   :  { %2474 = vmatpush1.msra.mxu0 %v10345_v33  ;;  %2545 = vmatpush1.msra.mxu1 %v10346_v58  ;;  %v10386_v58 = vld [vmem:[#allocation133_spill] sm:$0xff] }
 0x4d1   :  { %2475 = vmatprep.subr.mxu0 %v10347_v29  ;;  %2546 = vmatprep.subr.mxu1 %v10348_v57  ;;  %v10388_v57 = vld [vmem:[#allocation135_spill] sm:$0xff] }
 0x4d2   :  { %v4931_v54 = vpop.eup %4930  ;;  %2476 = vmatpush1.msra.mxu0 %v10349_v56  ;;  %2547 = vmatpush1.msra.mxu1 %v7278_v61  ;;  %v10355_v61 = vld [vmem:[#allocation102_spill] sm:$0xff]  ;;  %v7683_v56 = vld [vmem:[#allocation8 + $0x1e8] sm:$0xff] }
 0x4d3   :  { %v2321_v30 = vmul.f32 %v4931_v54, %v4927_v32  ;;  %2477 = vmatprep.subr.mxu0 %v10350_v37  ;;  %2548 = vmatprep.subr.mxu1 %v10351_v40  ;;  %v10385_v32 = vld [vmem:[#allocation132_spill] sm:$0xff]  ;;  %v10392_v37 = vld [vmem:[#allocation139_spill] sm:$0xff] }
 0x4d4   :  { %v4933_v41 = vpop.eup %4932  ;;  %2478 = vmatpush1.msra.mxu0 %v10352_v43  ;;  %2549 = vmatpush1.msra.mxu1 %v10353_v44  ;;  %v10389_v54 = vld [vmem:[#allocation136_spill] sm:$0xff]  ;;  %v10396_v43 = vld [vmem:[#allocation143_spill] sm:$0xff] }
 0x4d5   :  { %v2320_v45 = vmul.f32 %v4933_v41, %v7306_v7  ;;  %2479 = vmatprep.subr.mxu0 %v7294_v59  ;;  %2550 = vmatprep.subr.mxu1 %v7297_v62  ;;  %v10360_v7 = vld [vmem:[#allocation107_spill] sm:$0xff]  ;;  %v10361_v59 = vld [vmem:[#allocation108_spill] sm:$0xff]  ;;  %v10362_v62 = vld [vmem:[#allocation109_spill] sm:$0xff] }
 0x4d6   :  { %2480 = vmatpush1.msra.mxu0 %v10354_v46  ;;  %2551 = vmatpush1.msra.mxu1 %v10355_v61  ;;  %v10393_v40 = vld [vmem:[#allocation140_spill] sm:$0xff]  ;;  %v10394_v41 = vld [vmem:[#allocation141_spill] sm:$0xff]  ;;  %v10399_v46 = vld [vmem:[#allocation146_spill] sm:$0xff] }
 0x4d7   :  { %v7638_v48 = vadd.f32 %v2321_v30, %v2320_v45  ;;  %2481 = vmatprep.subr.mxu0 %v10356_v49  ;;  %2552 = vmatprep.subr.mxu1 %v10357_v50  ;;  %v10391_v30 = vld [vmem:[#allocation138_spill] sm:$0xff]  ;;  %v10397_v44 = vld [vmem:[#allocation144_spill] sm:$0xff]  ;;  %v10398_v45 = vld [vmem:[#allocation145_spill] sm:$0xff] }
 0x4d8   :  { %2482 = vmatpush1.msra.mxu0 %v10358_v51  ;;  %2553 = vmatpush1.msra.mxu1 %v10359_v52  ;;  %v10401_v61 = vld [vmem:[#allocation148_spill] sm:$0xff]  ;;  %v10402_v49 = vld [vmem:[#allocation153_spill] sm:$0xff]  ;;  %v7709_v50 = vld [vmem:[#allocation8 + $0x140] sm:$0xff] }
 0x4d9   :  { %2483 = vmatprep.subr.mxu0 %v10360_v7  ;;  %2554 = vmatprep.subr.mxu1 %v10361_v59  ;;  %4936 = vtanh.f32 %v7638_v48  ;;  %v7712_v51 = vld [vmem:[#allocation8 + $0x150] sm:$0xff]  ;;  %v7715_v52 = vld [vmem:[#allocation8 + $0x128] sm:$0xff] }
 0x4da   :  { %2484 = vmatpush1.msra.mxu0 %v10362_v62  ;;  %2555 = vmatpush1.msra.mxu1 %v10363_v24  ;;  %v7736_v7 = vld [vmem:[#allocation8 + $0x110] sm:$0xff]  ;;  %v7739_v59 = vld [vmem:[#allocation8 + $0xe8] sm:$0xff]  ;;  %v7742_v62 = vld [vmem:[#allocation8 + $0xf8] sm:$0xff] }
 0x4db   :  { %2485 = vmatprep.subr.mxu0 %v10364_v53  ;;  %2556 = vmatprep.subr.mxu1 %v10365_v28  ;;  %v7745_v24 = vld [vmem:[#allocation8 + $0xe0] sm:$0xff]  ;;  %v7748_v53 = vld [vmem:[#allocation8 + $0xf0] sm:$0xff]  ;;  %v7751_v28 = vld [vmem:[#allocation8 + $0xc8] sm:$0xff] }
 0x4dc   :  { %2486 = vmatpush1.msra.mxu0 %v10366_v47  ;;  %2557 = vmatpush1.msra.mxu1 %v10367_v20  ;;  %v4935_v14 = vpop.eup %4934  ;;  %v7754_v47 = vld [vmem:[#allocation8 + $0xd8] sm:$0xff]  ;;  %v7757_v20 = vld [vmem:[#allocation8 + $0xc0] sm:$0xff] }
 0x4dd   :  { %2487 = vmatprep.subr.mxu0 %v10368_v13  ;;  %2558 = vmatprep.subr.mxu1 %v10369_v12  ;;  %v7760_v13 = vld [vmem:[#allocation8 + $0xd0] sm:$0xff]  ;;  %v7763_v12 = vld [vmem:[#allocation8 + $0xa8] sm:$0xff] }
 0x4de   :  { %2488 = vmatpush1.msra.mxu0 %v10370_v26  ;;  %2559 = vmatpush1.msra.mxu1 %v10371_v21  ;;  %v7766_v26 = vld [vmem:[#allocation8 + $0xb8] sm:$0xff]  ;;  %v7769_v21 = vld [vmem:[#allocation8 + $0xa0] sm:$0xff] }
 0x4df   :  { %2489 = vmatprep.subr.mxu0 %v10372_v23  ;;  %2560 = vmatprep.subr.mxu1 %v10373_v19  ;;  %v7772_v23 = vld [vmem:[#allocation8 + $0xb0] sm:$0xff]  ;;  %v7775_v19 = vld [vmem:[#allocation8 + $0x88] sm:$0xff] }
 0x4e0   :  { %2490 = vmatpush1.msra.mxu0 %v10374_v38  ;;  %2561 = vmatpush1.msra.mxu1 %v10375_v0  ;;  %v7778_v38 = vld [vmem:[#allocation8 + $0x98] sm:$0xff]  ;;  %v7781_v0 = vld [vmem:[#allocation8 + $0x80] sm:$0xff] }
 0x4e1   :  { %2491 = vmatprep.subr.mxu0 %v10376_v17  ;;  %2562 = vmatprep.subr.mxu1 %v10377_v16  ;;  %v7784_v17 = vld [vmem:[#allocation8 + $0x90] sm:$0xff]  ;;  %v7787_v16 = vld [vmem:[#allocation8 + $0x68] sm:$0xff] }
 0x4e2   :  { %2492 = vmatpush1.msra.mxu0 %v10378_v25  ;;  %2563 = vmatpush1.msra.mxu1 %v10379_v35  ;;  %v7790_v25 = vld [vmem:[#allocation8 + $0x78] sm:$0xff]  ;;  %v7793_v35 = vld [vmem:[#allocation8 + $0x60] sm:$0xff] }
 0x4e3   :  { %2493 = vmatprep.subr.mxu0 %v10380_v15  ;;  %2564 = vmatprep.subr.mxu1 %v10381_v22  ;;  %v7796_v15 = vld [vmem:[#allocation8 + $0x70] sm:$0xff]  ;;  %v7799_v22 = vld [vmem:[#allocation8 + $0x48] sm:$0xff] }
 0x4e4   :  { %2494 = vmatpush1.msra.mxu0 %v10382_v18  ;;  %2565 = vmatpush1.msra.mxu1 %v10383_v3  ;;  %v7802_v18 = vld [vmem:[#allocation8 + $0x58] sm:$0xff]  ;;  %v7805_v3 = vld [vmem:[#allocation8 + $0x40] sm:$0xff] }
 0x4e5   :  { %2495 = vmatprep.subr.mxu0 %v10384_v31  ;;  %2566 = vmatprep.subr.mxu1 %v10385_v32  ;;  %v7811_v31 = vld [vmem:[#allocation8 + $0x28] sm:$0xff]  ;;  %v7814_v32 = vld [vmem:[#allocation8 + $0x38] sm:$0xff] }
 0x4e6   :  { %v4937_v33 = vpop.eup %4936  ;;  %2496 = vmatpush1.msra.mxu0 %v10386_v58  ;;  %2567 = vmatpush1.msra.mxu1 %v7402_v10  ;;  %v10390_v10 = vld [vmem:[#allocation137_spill] sm:$0xff]  ;;  %10403 = vst [vmem:[#allocation155_spill] sm:$0xff] %v7814_v32 }
 0x4e7   :  { %2497 = vmatprep.subr.mxu0 %v7405_v5  ;;  %2568 = vmatprep.subr.mxu1 %v10387_v55  ;;  %v7675_v29 = vmul.f32 %v4937_v33, %v4935_v14  ;;  %v7686_v5 = vld [vmem:[#allocation8 + $0x1f8] sm:$0xff]  ;;  %v7808_v14 = vld [vmem:[#allocation8 + $0x50] sm:$0xff]  ;;  %v7817_v33 = vld [vmem:[#allocation8 + $0x20] sm:$0xff] }
 0x4e8   :  { %2498 = vmatpush1.msra.mxu0 %v10388_v57  ;;  %2531 = vmatprep.mubr.f32.mxu0 %v9989_v27  ;;  %10404 = vst [vmem:[#allocation156_spill] sm:$0xff] %v7817_v33  ;;  %v7820_v58 = vld [vmem:[#allocation8 + $0x30] sm:$0xff]  ;;  %v7823_v55 = vld [vmem:[#allocation8 + $0x8] sm:$0xff]  ;;  %v7826_v57 = vld [vmem:[#allocation8 + $0x18] sm:$0xff] }
 0x4e9   :  { %2569 = vmatpush1.msra.mxu1 %v10389_v54  ;;  %2602 = vmatprep.mubr.f32.mxu1 %v9989_v27  ;;  %10405 = vst [vmem:[#allocation154_spill] sm:$0xff] %v7820_v58  ;;  %10406 = vst [vmem:[#allocation20_spill] sm:$0xff] %v7823_v55  ;;  %v7829_v54 = vld [vmem:[#allocation8] sm:$0xff] }
 0x4ea   :  { %2532 = vmatmul.mubr.f32.vlgmr.msra.gmra.mxu0 %v7675_v29  ;;  %2603 = vmatmul.mubr.f32.vlgmr.msra.gmra.mxu1 %v7675_v29  ;;  %10407 = vst [vmem:[#allocation21_spill] sm:$0xff] %v7826_v57  ;;  %10408 = vst [vmem:[#allocation22_spill] sm:$0xff] %v7829_v54 }
 0x4eb   :  { %2644 = vmatprep.subr.mxu0 %v7683_v56  ;;  %2715 = vmatprep.subr.mxu1 %v7686_v5 }
 0x4ec   :  { %2645 = vmatpush1.msra.mxu0 %v7425_v11  ;;  %2716 = vmatpush1.msra.mxu1 %v10390_v10  ;;  %v10400_v11 = vld [vmem:[#allocation147_spill] sm:$0xff]  ;;  %v7833_v10 = vld [vmem:[#allocation8 + $0x10] sm:$0xff] }
 0x4ed   :  { %2646 = vmatprep.subr.mxu0 %v10391_v30  ;;  %2717 = vmatprep.subr.mxu1 %v10392_v37  ;;  %10409 = vst [vmem:[#allocation23_spill] sm:$0xff] %v7833_v10  ;;  %v7839_v30 = vld [vmem:[#allocation11 + $0x1e8] sm:$0xff]  ;;  %v7842_v37 = vld [vmem:[#allocation11 + $0x1f8] sm:$0xff] }
 0x4ee   :  { %2647 = vmatpush1.msra.mxu0 %v10393_v40  ;;  %2718 = vmatpush1.msra.mxu1 %v10394_v41  ;;  %10410 = vst [vmem:[#allocation24_spill] sm:$0xff] %v7839_v30  ;;  %10411 = vst [vmem:[#allocation25_spill] sm:$0xff] %v7842_v37  ;;  %v7845_v40 = vld [vmem:[#allocation11 + $0x1e0] sm:$0xff]  ;;  %v7848_v41 = vld [vmem:[#allocation11 + $0x1f0] sm:$0xff] }
 0x4ef   :  { %2648 = vmatprep.subr.mxu0 %v10395_v42  ;;  %2719 = vmatprep.subr.mxu1 %v10396_v43  ;;  %10412 = vst [vmem:[#allocation26_spill] sm:$0xff] %v7845_v40  ;;  %10413 = vst [vmem:[#allocation27_spill] sm:$0xff] %v7848_v41  ;;  %v7851_v42 = vld [vmem:[#allocation11 + $0x1c8] sm:$0xff]  ;;  %v7857_v43 = vld [vmem:[#allocation11 + $0x1c0] sm:$0xff] }
 0x4f0   :  { %2649 = vmatpush1.msra.mxu0 %v10397_v44  ;;  %2720 = vmatpush1.msra.mxu1 %v10398_v45  ;;  %10414 = vst [vmem:[#allocation28_spill] sm:$0xff] %v7851_v42  ;;  %10416 = vst [vmem:[#allocation30_spill] sm:$0xff] %v7857_v43  ;;  %v7860_v44 = vld [vmem:[#allocation11 + $0x1d0] sm:$0xff]  ;;  %v7863_v45 = vld [vmem:[#allocation11 + $0x1a8] sm:$0xff] }
 0x4f1   :  { %2650 = vmatprep.subr.mxu0 %v10399_v46  ;;  %2721 = vmatprep.subr.mxu1 %v10400_v11  ;;  %10417 = vst [vmem:[#allocation31_spill] sm:$0xff] %v7860_v44  ;;  %10418 = vst [vmem:[#allocation32_spill] sm:$0xff] %v7863_v45  ;;  %v7866_v46 = vld [vmem:[#allocation11 + $0x1b8] sm:$0xff]  ;;  %v7869_v11 = vld [vmem:[#allocation11 + $0x1a0] sm:$0xff] }
 0x4f2   :  { %2651 = vmatpush1.msra.mxu0 %v10401_v61  ;;  %2722 = vmatpush1.msra.mxu1 %v10402_v49  ;;  %10419 = vst [vmem:[#allocation33_spill] sm:$0xff] %v7866_v46  ;;  %10420 = vst [vmem:[#allocation34_spill] sm:$0xff] %v7869_v11  ;;  %v7872_v61 = vld [vmem:[#allocation11 + $0x1b0] sm:$0xff]  ;;  %v7875_v49 = vld [vmem:[#allocation11 + $0x188] sm:$0xff] }
 0x4f3   :  { %2652 = vmatprep.subr.mxu0 %v7467_v60  ;;  %2723 = vmatprep.subr.mxu1 %v7470_v6  ;;  %v7718_v6 = vld [vmem:[#allocation8 + $0x138] sm:$0xff]  ;;  %v7724_v60 = vld [vmem:[#allocation8 + $0x130] sm:$0xff]  ;;  %10421 = vst [vmem:[#allocation35_spill] sm:$0xff] %v7872_v61  ;;  %10422 = vst [vmem:[#allocation36_spill] sm:$0xff] %v7875_v49 }
 0x4f4   :  { %2653 = vmatpush1.msra.mxu0 %v7473_v1  ;;  %2724 = vmatpush1.msra.mxu1 %v7476_v4  ;;  %v7721_v1 = vld [vmem:[#allocation8 + $0x120] sm:$0xff]  ;;  %v7730_v4 = vld [vmem:[#allocation8 + $0x118] sm:$0xff] }
 0x4f5   :  { %2654 = vmatprep.subr.mxu0 %v7479_v36  ;;  %2725 = vmatprep.subr.mxu1 %v7482_v9  ;;  %v7727_v9 = vld [vmem:[#allocation8 + $0x108] sm:$0xff]  ;;  %v7733_v36 = vld [vmem:[#allocation8 + $0x100] sm:$0xff] }
 0x4f6   :  { %2655 = vmatpush1.msra.mxu0 %v7709_v50  ;;  %2726 = vmatpush1.msra.mxu1 %v7712_v51 }
 0x4f7   :  { %2656 = vmatprep.subr.mxu0 %v7715_v52  ;;  %2727 = vmatprep.subr.mxu1 %v7718_v6 }
 0x4f8   :  { %2657 = vmatpush1.msra.mxu0 %v7721_v1  ;;  %2728 = vmatpush1.msra.mxu1 %v7724_v60 }
 0x4f9   :  { %2658 = vmatprep.subr.mxu0 %v7727_v9  ;;  %2729 = vmatprep.subr.mxu1 %v7730_v4 }
 0x4fa   :  { %2659 = vmatpush1.msra.mxu0 %v7733_v36  ;;  %2730 = vmatpush1.msra.mxu1 %v7736_v7 }
 0x4fb   :  { %2660 = vmatprep.subr.mxu0 %v7739_v59  ;;  %2731 = vmatprep.subr.mxu1 %v7742_v62 }
 0x4fc   :  { %2661 = vmatpush1.msra.mxu0 %v7745_v24  ;;  %2732 = vmatpush1.msra.mxu1 %v7748_v53 }
 0x4fd   :  { %2662 = vmatprep.subr.mxu0 %v7751_v28  ;;  %2733 = vmatprep.subr.mxu1 %v7754_v47 }
 0x4fe   :  { %2663 = vmatpush1.msra.mxu0 %v7757_v20  ;;  %2734 = vmatpush1.msra.mxu1 %v7760_v13 }
 0x4ff   :  { %2664 = vmatprep.subr.mxu0 %v7763_v12  ;;  %2735 = vmatprep.subr.mxu1 %v7766_v26 }
 0x500   :  { %2665 = vmatpush1.msra.mxu0 %v7769_v21  ;;  %2736 = vmatpush1.msra.mxu1 %v7772_v23 }
 0x501   :  { %2666 = vmatprep.subr.mxu0 %v7775_v19  ;;  %2737 = vmatprep.subr.mxu1 %v7778_v38 }
 0x502   :  { %2667 = vmatpush1.msra.mxu0 %v7781_v0  ;;  %2738 = vmatpush1.msra.mxu1 %v7784_v17 }
 0x503   :  { %2668 = vmatprep.subr.mxu0 %v7787_v16  ;;  %2739 = vmatprep.subr.mxu1 %v7790_v25 }
 0x504   :  { %2669 = vmatpush1.msra.mxu0 %v7793_v35  ;;  %2740 = vmatpush1.msra.mxu1 %v7796_v15 }
 0x505   :  { %2670 = vmatprep.subr.mxu0 %v7799_v22  ;;  %2741 = vmatprep.subr.mxu1 %v7802_v18 }
 0x506   :  { %2671 = vmatpush1.msra.mxu0 %v7805_v3  ;;  %2742 = vmatpush1.msra.mxu1 %v7808_v14 }
 0x507   :  { %2672 = vmatprep.subr.mxu0 %v7811_v31  ;;  %2743 = vmatprep.subr.mxu1 %v7814_v32 }
 0x508   :  { %2673 = vmatpush1.msra.mxu0 %v7817_v33  ;;  %2744 = vmatpush1.msra.mxu1 %v7820_v58 }
 0x509   :  { %2674 = vmatprep.subr.mxu0 %v7823_v55  ;;  %2745 = vmatprep.subr.mxu1 %v7826_v57 }
 0x50a   :  { %2675 = vmatpush1.msra.mxu0 %v7829_v54  ;;  %2708 = vmatprep.mubr.f32.mxu0 %v9989_v27 }
 0x50b   :  { %2746 = vmatpush1.msra.mxu1 %v7833_v10  ;;  %2779 = vmatprep.mubr.f32.mxu1 %v9989_v27 }
 0x50c   :  { %2709 = vmatmul.mubr.f32.vlgmr.msra.gmra.mxu0 %v7675_v29  ;;  %2780 = vmatmul.mubr.f32.vlgmr.msra.gmra.mxu1 %v7675_v29  ;;  %v7854_v29 = vld [vmem:[#allocation11 + $0x1d8] sm:$0xff] }
 0x50d   :  { %2814 = vmatprep.subr.mxu0 %v7839_v30  ;;  %2885 = vmatprep.subr.mxu1 %v7842_v37  ;;  %10415 = vst [vmem:[#allocation29_spill] sm:$0xff] %v7854_v29 }
 0x50e   :  { %2815 = vmatpush1.msra.mxu0 %v7845_v40  ;;  %2886 = vmatpush1.msra.mxu1 %v7848_v41 }
 0x50f   :  { %2816 = vmatprep.subr.mxu0 %v7851_v42  ;;  %2887 = vmatprep.subr.mxu1 %v7854_v29 }
 0x510   :  { %2817 = vmatpush1.msra.mxu0 %v7857_v43  ;;  %2888 = vmatpush1.msra.mxu1 %v7860_v44  ;;  %v7878_v44 = vld [vmem:[#allocation11 + $0x198] sm:$0xff] }
 0x511   :  { %2818 = vmatprep.subr.mxu0 %v7863_v45  ;;  %2889 = vmatprep.subr.mxu1 %v7866_v46  ;;  %10423 = vst [vmem:[#allocation37_spill] sm:$0xff] %v7878_v44  ;;  %v7881_v45 = vld [vmem:[#allocation11 + $0x180] sm:$0xff]  ;;  %v7884_v46 = vld [vmem:[#allocation11 + $0x190] sm:$0xff] }
 0x512   :  { %2819 = vmatpush1.msra.mxu0 %v7869_v11  ;;  %2890 = vmatpush1.msra.mxu1 %v7872_v61  ;;  %10424 = vst [vmem:[#allocation38_spill] sm:$0xff] %v7881_v45  ;;  %10425 = vst [vmem:[#allocation39_spill] sm:$0xff] %v7884_v46  ;;  %v7887_v11 = vld [vmem:[#allocation11 + $0x168] sm:$0xff]  ;;  %v7890_v61 = vld [vmem:[#allocation11 + $0x178] sm:$0xff] }
 0x513   :  { %2820 = vmatprep.subr.mxu0 %v7875_v49  ;;  %2891 = vmatprep.subr.mxu1 %v7878_v44  ;;  %10426 = vst [vmem:[#allocation40_spill] sm:$0xff] %v7887_v11  ;;  %10427 = vst [vmem:[#allocation41_spill] sm:$0xff] %v7890_v61  ;;  %v7893_v49 = vld [vmem:[#allocation11 + $0x160] sm:$0xff]  ;;  %v7896_v44 = vld [vmem:[#allocation11 + $0x170] sm:$0xff] }
 0x514   :  { %2821 = vmatpush1.msra.mxu0 %v7881_v45  ;;  %2892 = vmatpush1.msra.mxu1 %v7884_v46  ;;  %10428 = vst [vmem:[#allocation42_spill] sm:$0xff] %v7893_v49  ;;  %10429 = vst [vmem:[#allocation43_spill] sm:$0xff] %v7896_v44  ;;  %v7899_v45 = vld [vmem:[#allocation11 + $0x148] sm:$0xff]  ;;  %v7902_v46 = vld [vmem:[#allocation11 + $0x158] sm:$0xff] }
 0x515   :  { %2822 = vmatprep.subr.mxu0 %v7887_v11  ;;  %2893 = vmatprep.subr.mxu1 %v7890_v61  ;;  %10430 = vst [vmem:[#allocation44_spill] sm:$0xff] %v7899_v45  ;;  %10431 = vst [vmem:[#allocation45_spill] sm:$0xff] %v7902_v46  ;;  %v7905_v11 = vld [vmem:[#allocation11 + $0x140] sm:$0xff]  ;;  %v7908_v61 = vld [vmem:[#allocation11 + $0x150] sm:$0xff] }
 0x516   :  { %2823 = vmatpush1.msra.mxu0 %v7893_v49  ;;  %2894 = vmatpush1.msra.mxu1 %v7896_v44  ;;  %10432 = vst [vmem:[#allocation46_spill] sm:$0xff] %v7905_v11  ;;  %10433 = vst [vmem:[#allocation47_spill] sm:$0xff] %v7908_v61  ;;  %v7911_v49 = vld [vmem:[#allocation11 + $0x128] sm:$0xff]  ;;  %v7914_v44 = vld [vmem:[#allocation11 + $0x138] sm:$0xff] }
 0x517   :  { %2824 = vmatprep.subr.mxu0 %v7899_v45  ;;  %2895 = vmatprep.subr.mxu1 %v7902_v46  ;;  %10434 = vst [vmem:[#allocation48_spill] sm:$0xff] %v7911_v49  ;;  %10435 = vst [vmem:[#allocation49_spill] sm:$0xff] %v7914_v44  ;;  %v7917_v45 = vld [vmem:[#allocation11 + $0x120] sm:$0xff]  ;;  %v7920_v46 = vld [vmem:[#allocation11 + $0x130] sm:$0xff] }
 0x518   :  { %2825 = vmatpush1.msra.mxu0 %v7905_v11  ;;  %2896 = vmatpush1.msra.mxu1 %v7908_v61  ;;  %10436 = vst [vmem:[#allocation50_spill] sm:$0xff] %v7917_v45  ;;  %10437 = vst [vmem:[#allocation51_spill] sm:$0xff] %v7920_v46  ;;  %v7923_v11 = vld [vmem:[#allocation11 + $0x108] sm:$0xff]  ;;  %v7926_v61 = vld [vmem:[#allocation11 + $0x118] sm:$0xff] }
 0x519   :  { %2826 = vmatprep.subr.mxu0 %v7911_v49  ;;  %2897 = vmatprep.subr.mxu1 %v7914_v44  ;;  %10438 = vst [vmem:[#allocation52_spill] sm:$0xff] %v7923_v11  ;;  %10439 = vst [vmem:[#allocation53_spill] sm:$0xff] %v7926_v61  ;;  %v7929_v49 = vld [vmem:[#allocation11 + $0x100] sm:$0xff]  ;;  %v7932_v44 = vld [vmem:[#allocation11 + $0x110] sm:$0xff] }
 0x51a   :  { %2827 = vmatpush1.msra.mxu0 %v7917_v45  ;;  %2898 = vmatpush1.msra.mxu1 %v7920_v46  ;;  %10440 = vst [vmem:[#allocation54_spill] sm:$0xff] %v7929_v49  ;;  %10441 = vst [vmem:[#allocation55_spill] sm:$0xff] %v7932_v44  ;;  %v7935_v45 = vld [vmem:[#allocation11 + $0xe8] sm:$0xff]  ;;  %v7938_v46 = vld [vmem:[#allocation11 + $0xf8] sm:$0xff] }
 0x51b   :  { %2828 = vmatprep.subr.mxu0 %v7923_v11  ;;  %2899 = vmatprep.subr.mxu1 %v7926_v61  ;;  %10442 = vst [vmem:[#allocation56_spill] sm:$0xff] %v7935_v45  ;;  %10443 = vst [vmem:[#allocation57_spill] sm:$0xff] %v7938_v46  ;;  %v7941_v11 = vld [vmem:[#allocation11 + $0xe0] sm:$0xff]  ;;  %v7944_v61 = vld [vmem:[#allocation11 + $0xf0] sm:$0xff] }
 0x51c   :  { %2829 = vmatpush1.msra.mxu0 %v7929_v49  ;;  %2900 = vmatpush1.msra.mxu1 %v7932_v44  ;;  %10444 = vst [vmem:[#allocation58_spill] sm:$0xff] %v7941_v11  ;;  %10445 = vst [vmem:[#allocation59_spill] sm:$0xff] %v7944_v61  ;;  %v7947_v49 = vld [vmem:[#allocation11 + $0xc8] sm:$0xff]  ;;  %v7950_v44 = vld [vmem:[#allocation11 + $0xd8] sm:$0xff] }
 0x51d   :  { %2830 = vmatprep.subr.mxu0 %v7935_v45  ;;  %2901 = vmatprep.subr.mxu1 %v7938_v46  ;;  %10446 = vst [vmem:[#allocation60_spill] sm:$0xff] %v7947_v49  ;;  %10447 = vst [vmem:[#allocation61_spill] sm:$0xff] %v7950_v44  ;;  %v7953_v45 = vld [vmem:[#allocation11 + $0xc0] sm:$0xff]  ;;  %v7956_v46 = vld [vmem:[#allocation11 + $0xd0] sm:$0xff] }
 0x51e   :  { %2831 = vmatpush1.msra.mxu0 %v7941_v11  ;;  %2902 = vmatpush1.msra.mxu1 %v7944_v61  ;;  %10448 = vst [vmem:[#allocation62_spill] sm:$0xff] %v7953_v45  ;;  %10449 = vst [vmem:[#allocation63_spill] sm:$0xff] %v7956_v46  ;;  %v7959_v11 = vld [vmem:[#allocation11 + $0xa8] sm:$0xff]  ;;  %v7962_v61 = vld [vmem:[#allocation11 + $0xb8] sm:$0xff] }
 0x51f   :  { %2832 = vmatprep.subr.mxu0 %v7947_v49  ;;  %2903 = vmatprep.subr.mxu1 %v7950_v44  ;;  %10450 = vst [vmem:[#allocation64_spill] sm:$0xff] %v7959_v11  ;;  %10451 = vst [vmem:[#allocation65_spill] sm:$0xff] %v7962_v61  ;;  %v7965_v49 = vld [vmem:[#allocation11 + $0xa0] sm:$0xff]  ;;  %v7968_v44 = vld [vmem:[#allocation11 + $0xb0] sm:$0xff] }
 0x520   :  { %2833 = vmatpush1.msra.mxu0 %v7953_v45  ;;  %2904 = vmatpush1.msra.mxu1 %v7956_v46  ;;  %10452 = vst [vmem:[#allocation66_spill] sm:$0xff] %v7965_v49  ;;  %10453 = vst [vmem:[#allocation67_spill] sm:$0xff] %v7968_v44  ;;  %v7971_v45 = vld [vmem:[#allocation11 + $0x88] sm:$0xff]  ;;  %v7974_v46 = vld [vmem:[#allocation11 + $0x98] sm:$0xff] }
 0x521   :  { %2834 = vmatprep.subr.mxu0 %v7959_v11  ;;  %2905 = vmatprep.subr.mxu1 %v7962_v61  ;;  %10454 = vst [vmem:[#allocation68_spill] sm:$0xff] %v7971_v45  ;;  %10455 = vst [vmem:[#allocation69_spill] sm:$0xff] %v7974_v46  ;;  %v7977_v11 = vld [vmem:[#allocation11 + $0x80] sm:$0xff]  ;;  %v7980_v61 = vld [vmem:[#allocation11 + $0x90] sm:$0xff] }
 0x522   :  { %2835 = vmatpush1.msra.mxu0 %v7965_v49  ;;  %2906 = vmatpush1.msra.mxu1 %v7968_v44  ;;  %10456 = vst [vmem:[#allocation70_spill] sm:$0xff] %v7977_v11  ;;  %10457 = vst [vmem:[#allocation71_spill] sm:$0xff] %v7980_v61  ;;  %v7983_v49 = vld [vmem:[#allocation11 + $0x68] sm:$0xff]  ;;  %v7986_v44 = vld [vmem:[#allocation11 + $0x78] sm:$0xff] }
 0x523   :  { %2836 = vmatprep.subr.mxu0 %v7971_v45  ;;  %2907 = vmatprep.subr.mxu1 %v7974_v46  ;;  %10458 = vst [vmem:[#allocation72_spill] sm:$0xff] %v7983_v49  ;;  %10459 = vst [vmem:[#allocation73_spill] sm:$0xff] %v7986_v44  ;;  %v7989_v45 = vld [vmem:[#allocation11 + $0x60] sm:$0xff]  ;;  %v7992_v46 = vld [vmem:[#allocation11 + $0x70] sm:$0xff] }
 0x524   :  { %2837 = vmatpush1.msra.mxu0 %v7977_v11  ;;  %2908 = vmatpush1.msra.mxu1 %v7980_v61  ;;  %10460 = vst [vmem:[#allocation74_spill] sm:$0xff] %v7989_v45  ;;  %10461 = vst [vmem:[#allocation75_spill] sm:$0xff] %v7992_v46  ;;  %v7995_v11 = vld [vmem:[#allocation11 + $0x48] sm:$0xff]  ;;  %v7998_v61 = vld [vmem:[#allocation11 + $0x58] sm:$0xff] }
 0x525   :  { %2838 = vmatprep.subr.mxu0 %v7983_v49  ;;  %2909 = vmatprep.subr.mxu1 %v7986_v44  ;;  %10462 = vst [vmem:[#allocation76_spill] sm:$0xff] %v7995_v11  ;;  %10463 = vst [vmem:[#allocation77_spill] sm:$0xff] %v7998_v61  ;;  %v8001_v49 = vld [vmem:[#allocation11 + $0x40] sm:$0xff]  ;;  %v8004_v44 = vld [vmem:[#allocation11 + $0x50] sm:$0xff] }
 0x526   :  { %2839 = vmatpush1.msra.mxu0 %v7989_v45  ;;  %2910 = vmatpush1.msra.mxu1 %v7992_v46  ;;  %10464 = vst [vmem:[#allocation78_spill] sm:$0xff] %v8001_v49  ;;  %10465 = vst [vmem:[#allocation79_spill] sm:$0xff] %v8004_v44  ;;  %v8007_v45 = vld [vmem:[#allocation11 + $0x28] sm:$0xff]  ;;  %v8010_v46 = vld [vmem:[#allocation11 + $0x38] sm:$0xff] }
 0x527   :  { %2840 = vmatprep.subr.mxu0 %v7995_v11  ;;  %2911 = vmatprep.subr.mxu1 %v7998_v61  ;;  %10466 = vst [vmem:[#allocation80_spill] sm:$0xff] %v8007_v45  ;;  %10467 = vst [vmem:[#allocation81_spill] sm:$0xff] %v8010_v46  ;;  %v8013_v11 = vld [vmem:[#allocation11 + $0x20] sm:$0xff]  ;;  %v8016_v61 = vld [vmem:[#allocation11 + $0x30] sm:$0xff] }
 0x528   :  { %2841 = vmatpush1.msra.mxu0 %v8001_v49  ;;  %2912 = vmatpush1.msra.mxu1 %v8004_v44  ;;  %10468 = vst [vmem:[#allocation82_spill] sm:$0xff] %v8013_v11  ;;  %10469 = vst [vmem:[#allocation83_spill] sm:$0xff] %v8016_v61  ;;  %v8019_v49 = vld [vmem:[#allocation11 + $0x8] sm:$0xff]  ;;  %v8022_v44 = vld [vmem:[#allocation11 + $0x18] sm:$0xff] }
 0x529   :  { %2842 = vmatprep.subr.mxu0 %v8007_v45  ;;  %2913 = vmatprep.subr.mxu1 %v8010_v46  ;;  %10470 = vst [vmem:[#allocation84_spill] sm:$0xff] %v8019_v49  ;;  %10471 = vst [vmem:[#allocation85_spill] sm:$0xff] %v8022_v44  ;;  %v8025_v45 = vld [vmem:[#allocation11] sm:$0xff]  ;;  %v8028_v46 = vld [vmem:[#allocation11 + $0x10] sm:$0xff] }
 0x52a   :  { %2843 = vmatpush1.msra.mxu0 %v8013_v11  ;;  %2914 = vmatpush1.msra.mxu1 %v8016_v61  ;;  %10472 = vst [vmem:[#allocation86_spill] sm:$0xff] %v8025_v45  ;;  %10473 = vst [vmem:[#allocation149_spill] sm:$0xff] %v8028_v46  ;;  %v8033_v61 = vld [vmem:[#allocation9 + $0x1e8] sm:$0xff] }
 0x52b   :  { %2844 = vmatprep.subr.mxu0 %v8019_v49  ;;  %2915 = vmatprep.subr.mxu1 %v8022_v44  ;;  %10474 = vst [vmem:[#allocation151_spill] sm:$0xff] %v8033_v61  ;;  %v8036_v49 = vld [vmem:[#allocation9 + $0x1f8] sm:$0xff] }
 0x52c   :  { %2845 = vmatpush1.msra.mxu0 %v8025_v45  ;;  %2916 = vmatpush1.msra.mxu1 %v8028_v46  ;;  %10475 = vst [vmem:[#allocation152_spill] sm:$0xff] %v8036_v49 }
 0x52d   :  { %2878 = vmatprep.mubr.f32.mxu0 %v9989_v27  ;;  %2949 = vmatprep.mubr.f32.mxu1 %v9989_v27 }
 0x52e   :  { %2956 = vmatprep.subr.mxu0 %v8033_v61  ;;  %3027 = vmatprep.subr.mxu1 %v8036_v49 }
 0x589   :  { %v2391_v44 = vpop.f32.mrf.mxu0  ;;  %v2462_v11 = vpop.f32.mrf.mxu1 }
 0x58b   :  { %v2393_v43 = vpop.f32.mrf.mxu0  ;;  %v2464_v29 = vpop.f32.mrf.mxu1 }
 0x5aa   :  { %v2533_v45 = vpop.f32.mrf.mxu0  ;;  %v2604_v40 = vpop.f32.mrf.mxu1 }
 0x5ab   :  { %v2534_v42 = vadd.f32 %v2533_v45, %v2391_v44  ;;  %v2605_v55 = vadd.f32 %v2604_v40, %v2462_v11  ;;  %v10477_v40 = vld [vmem:[#allocation163_spill] sm:$0xff] }
 0x5ac   :  { %v2535_v41 = vpop.f32.mrf.mxu0  ;;  %v2606_v54 = vpop.f32.mrf.mxu1 }
 0x5ad   :  { %v2609_v46 = vadd.f32 %v2534_v42, %v6762_v63  ;;  %v2536_v37 = vadd.f32 %v2535_v41, %v2393_v43  ;;  %v2607_v57 = vadd.f32 %v2606_v54, %v2464_v29  ;;  %v2611_v44 = vadd.f32 %v2605_v55, %v6777_v39 }
 0x5af   :  { %v4733_v30 = vmul.f32 -1.442695, %v2609_v46  ;;  %v2610_v10 = vadd.f32 %v2536_v37, %v6766_v8  ;;  %v2612_v49 = vadd.f32 %v2607_v57, %v6772_v34 }
 0x5b1   :  { %4938 = vpow2.f32 %v4733_v30  ;;  %v4734_v61 = vmul.f32 -1.442695, %v2610_v10  ;;  %v4735_v58 = vmul.f32 -1.442695, %v2612_v49  ;;  %v10476_v10 = vld [vmem:[#allocation161_spill] sm:$0xff] }
 0x5b3   :  { %4940 = vpow2.f32 %v4734_v61 }
 0x5b4   :  { %4942 = vpow2.f32 %v4735_v58 }
 0x5be   :  { %v4939_v33 = vpop.eup %4938 }
 0x5bf   :  { %v2616_v45 = vadd.f32 1.0, %v4939_v33 }
 0x5c0   :  { %v4941_v32 = vpop.eup %4940 }
 0x5c1   :  { %4944 = vrcp.f32 %v2616_v45  ;;  %v2622_v41 = vadd.f32 1.0, %v4941_v32  ;;  %v4943_v30 = vpop.eup %4942  ;;  %v10478_v45 = vld [vmem:[#allocation164_spill] sm:$0xff] }
 0x5c2   :  { %4946 = vtanh.f32 %v2611_v44  ;;  %v2629_v61 = vadd.f32 1.0, %v4943_v30 }
 0x5c3   :  { %4948 = vrcp.f32 %v2622_v41 }
 0x5cc   :  { %v2710_v37 = vpop.f32.mrf.mxu0  ;;  %v2781_v58 = vpop.f32.mrf.mxu1 }
 0x5cd   :  { %v2786_v42 = vadd.f32 %v2710_v37, %v10476_v10  ;;  %v10479_v37 = vld [vmem:[#allocation162_spill] sm:$0xff] }
 0x5ce   :  { %v4945_v43 = vpop.eup %4944  ;;  %v2712_v54 = vpop.f32.mrf.mxu0  ;;  %v2788_v10 = vadd.f32 %v2781_v58, %v10479_v37  ;;  %v8066_v58 = vld [vmem:[#allocation9 + $0x1d0] sm:$0xff]  ;;  %v8081_v37 = vld [vmem:[#allocation9 + $0x188] sm:$0xff] }
 0x5cf   :  { %v4947_v29 = vpop.eup %4946  ;;  %v4736_v57 = vmul.f32 -1.442695, %v2786_v42  ;;  %v2787_v46 = vadd.f32 %v2712_v54, %v10477_v40  ;;  %v2783_v44 = vpop.f32.mrf.mxu1  ;;  %10481 = vst [vmem:[#allocation87_spill] sm:$0xff] %v8081_v37 }
 0x5d0   :  { %v4949_v11 = vpop.eup %4948  ;;  %v2633_v55 = vmul.f32 %v4947_v29, %v4945_v43  ;;  %v2789_v41 = vadd.f32 %v2783_v44, %v10478_v45  ;;  %v8072_v44 = vld [vmem:[#allocation9 + $0x1b8] sm:$0xff]  ;;  %v8075_v45 = vld [vmem:[#allocation9 + $0x1a0] sm:$0xff] }
 0x5d1   :  { %v2632_v33 = vmul.f32 %v4949_v11, %v7606_v2  ;;  %4950 = vpow2.f32 %v4736_v57  ;;  %v4737_v32 = vmul.f32 -1.442695, %v2787_v46  ;;  %v8051_v46 = vld [vmem:[#allocation9 + $0x1e0] sm:$0xff]  ;;  %v8054_v11 = vld [vmem:[#allocation9 + $0x1f0] sm:$0xff] }
 0x5d2   :  { %v4738_v42 = vmul.f32 -1.442695, %v2789_v41  ;;  %v8078_v41 = vld [vmem:[#allocation9 + $0x1b0] sm:$0xff] }
 0x5d3   :  { %4952 = vpow2.f32 %v4737_v32  ;;  %v8046_v49 = vadd.f32 %v2633_v55, %v2632_v33  ;;  %v8060_v55 = vld [vmem:[#allocation9 + $0x1d8] sm:$0xff]  ;;  %v8063_v33 = vld [vmem:[#allocation9 + $0x1c0] sm:$0xff]  ;;  %v8069_v32 = vld [vmem:[#allocation9 + $0x1a8] sm:$0xff]  ;;  %10480 = vst [vmem:[#allocation150_spill] sm:$0xff] %v8078_v41 }
 0x5d4   :  { %4954 = vrcp.f32 %v2629_v61  ;;  %v8057_v61 = vld [vmem:[#allocation9 + $0x1c8] sm:$0xff] }
 0x5d5   :  { %4956 = vtanh.f32 %v8046_v49 }
 0x5d6   :  { %4958 = vtanh.f32 %v2788_v10  ;;  %v8084_v10 = vld [vmem:[#allocation9 + $0x198] sm:$0xff] }
 0x5d7   :  { %4960 = vpow2.f32 %v4738_v42  ;;  %10482 = vst [vmem:[#allocation88_spill] sm:$0xff] %v8084_v10 }
 0x5de   :  { %v4951_v54 = vpop.eup %4950 }
 0x5df   :  { %v2793_v30 = vadd.f32 1.0, %v4951_v54  ;;  %v8087_v54 = vld [vmem:[#allocation9 + $0x180] sm:$0xff] }
 0x5e0   :  { %v4953_v43 = vpop.eup %4952  ;;  %10483 = vst [vmem:[#allocation157_spill] sm:$0xff] %v8087_v54 }
 0x5e1   :  { %v4955_v2 = vpop.eup %4954  ;;  %4962 = vrcp.f32 %v2793_v30  ;;  %v2799_v29 = vadd.f32 1.0, %v4953_v43  ;;  %v8090_v30 = vld [vmem:[#allocation9 + $0x190] sm:$0xff] }
 0x5e2   :  { %v4957_v57 = vpop.eup %4956  ;;  %10484 = vst [vmem:[#allocation159_spill] sm:$0xff] %v8090_v30 }
 0x5e3   :  { %4964 = vrcp.f32 %v2799_v29  ;;  %v2636_v40 = vmul.f32 %v4957_v57, %v4955_v2  ;;  %v4959_v42 = vpop.eup %4958  ;;  %v8093_v2 = vld [vmem:[#allocation9 + $0x168] sm:$0xff]  ;;  %v8096_v29 = vld [vmem:[#allocation9 + $0x178] sm:$0xff] }
 0x5e4   :  { %v4961_v43 = vpop.eup %4960  ;;  %10485 = vst [vmem:[#allocation160_spill] sm:$0xff] %v8093_v2  ;;  %10486 = vst [vmem:[#allocation158_spill] sm:$0xff] %v8096_v29 }
 0x5e5   :  { %2879 = vmatmul.mubr.f32.vlgmr.msra.gmra.mxu0 %v2636_v40  ;;  %2950 = vmatmul.mubr.f32.vlgmr.msra.gmra.mxu1 %v2636_v40  ;;  %v8099_v40 = vld [vmem:[#allocation9 + $0x160] sm:$0xff] }
 0x5e6   :  { %2957 = vmatpush1.msra.mxu0 %v8051_v46  ;;  %3028 = vmatpush1.msra.mxu1 %v8054_v11  ;;  %10487 = vst [vmem:[#allocation89_spill] sm:$0xff] %v8099_v40 }
 0x5e7   :  { %2958 = vmatprep.subr.mxu0 %v8057_v61  ;;  %3029 = vmatprep.subr.mxu1 %v8060_v55 }
 0x5e8   :  { %2959 = vmatpush1.msra.mxu0 %v8063_v33  ;;  %3030 = vmatpush1.msra.mxu1 %v8066_v58 }
 0x5e9   :  { %2960 = vmatprep.subr.mxu0 %v8069_v32  ;;  %3031 = vmatprep.subr.mxu1 %v8072_v44 }
 0x5ea   :  { %2961 = vmatpush1.msra.mxu0 %v8075_v45  ;;  %3032 = vmatpush1.msra.mxu1 %v8078_v41  ;;  %v8111_v41 = vld [vmem:[#allocation9 + $0x140] sm:$0xff] }
 0x5eb   :  { %2962 = vmatprep.subr.mxu0 %v8081_v37  ;;  %3033 = vmatprep.subr.mxu1 %v8084_v10  ;;  %v8102_v10 = vld [vmem:[#allocation9 + $0x170] sm:$0xff]  ;;  %v8108_v37 = vld [vmem:[#allocation9 + $0x158] sm:$0xff]  ;;  %10490 = vst [vmem:[#allocation92_spill] sm:$0xff] %v8111_v41 }
 0x5ec   :  { %2963 = vmatpush1.msra.mxu0 %v8087_v54  ;;  %3034 = vmatpush1.msra.mxu1 %v8090_v30  ;;  %v8105_v30 = vld [vmem:[#allocation9 + $0x148] sm:$0xff]  ;;  %10489 = vst [vmem:[#allocation91_spill] sm:$0xff] %v8108_v37 }
 0x5ed   :  { %2964 = vmatprep.subr.mxu0 %v8093_v2  ;;  %3035 = vmatprep.subr.mxu1 %v8096_v29  ;;  %10488 = vst [vmem:[#allocation90_spill] sm:$0xff] %v8105_v30  ;;  %v2806_v29 = vadd.f32 1.0, %v4961_v43  ;;  %v8127_v43 = vld [vmem:[#allocation9 + $0x130] sm:$0xff] }
 0x5ee   :  { %v4963_v57 = vpop.eup %4962  ;;  %2965 = vmatpush1.msra.mxu0 %v8099_v40  ;;  %3036 = vmatpush1.msra.mxu1 %v8102_v10  ;;  %v8114_v40 = vld [vmem:[#allocation9 + $0x150] sm:$0xff]  ;;  %10493 = vst [vmem:[#allocation95_spill] sm:$0xff] %v8127_v43 }
 0x5ef   :  { %v2810_v54 = vmul.f32 %v4963_v57, %v4959_v42  ;;  %2966 = vmatprep.subr.mxu0 %v8105_v30  ;;  %3037 = vmatprep.subr.mxu1 %v8108_v37  ;;  %10491 = vst [vmem:[#allocation93_spill] sm:$0xff] %v8114_v40  ;;  %v8118_v57 = vld [vmem:[#allocation9 + $0x128] sm:$0xff]  ;;  %v8121_v30 = vld [vmem:[#allocation9 + $0x138] sm:$0xff]  ;;  %v8124_v37 = vld [vmem:[#allocation9 + $0x120] sm:$0xff]  ;;  %4966 = vrcp.f32 %v2806_v29 }
 0x5f0   :  { %v4965_v2 = vpop.eup %4964  ;;  %2967 = vmatpush1.msra.mxu0 %v8111_v41  ;;  %3038 = vmatpush1.msra.mxu1 %v8114_v40  ;;  %10492 = vst [vmem:[#allocation94_spill] sm:$0xff] %v8124_v37  ;;  %v8132_v40 = vld [vmem:[#allocation9 + $0x108] sm:$0xff]  ;;  %v8154_v29 = vld [vmem:[#allocation9 + $0xf0] sm:$0xff] }
 0x5f1   :  { %v2809_v42 = vmul.f32 %v4965_v2, %v7638_v48  ;;  %2968 = vmatprep.subr.mxu0 %v8118_v57  ;;  %3039 = vmatprep.subr.mxu1 %v8121_v30  ;;  %10494 = vst [vmem:[#allocation96_spill] sm:$0xff] %v8132_v40  ;;  %v8135_v48 = vld [vmem:[#allocation9 + $0x118] sm:$0xff]  ;;  %v8138_v2 = vld [vmem:[#allocation9 + $0x100] sm:$0xff]  ;;  %10501 = vst [vmem:[#allocation103_spill] sm:$0xff] %v8154_v29 }
 0x5f2   :  { %2969 = vmatpush1.msra.mxu0 %v8124_v37  ;;  %3040 = vmatpush1.msra.mxu1 %v8127_v43  ;;  %10495 = vst [vmem:[#allocation97_spill] sm:$0xff] %v8135_v48  ;;  %10496 = vst [vmem:[#allocation98_spill] sm:$0xff] %v8138_v2  ;;  %v8141_v37 = vld [vmem:[#allocation9 + $0x110] sm:$0xff]  ;;  %v8144_v43 = vld [vmem:[#allocation9 + $0xe8] sm:$0xff] }
 0x5f3   :  { %v8130_v41 = vadd.f32 %v2810_v54, %v2809_v42  ;;  %2970 = vmatprep.subr.mxu0 %v8132_v40  ;;  %3041 = vmatprep.subr.mxu1 %v8135_v48  ;;  %10497 = vst [vmem:[#allocation99_spill] sm:$0xff] %v8141_v37  ;;  %10498 = vst [vmem:[#allocation100_spill] sm:$0xff] %v8144_v43  ;;  %v8147_v54 = vld [vmem:[#allocation9 + $0xf8] sm:$0xff]  ;;  %v8151_v42 = vld [vmem:[#allocation9 + $0xe0] sm:$0xff] }
 0x5f4   :  { %2971 = vmatpush1.msra.mxu0 %v8138_v2  ;;  %3042 = vmatpush1.msra.mxu1 %v8141_v37  ;;  %10499 = vst [vmem:[#allocation101_spill] sm:$0xff] %v8147_v54  ;;  %10500 = vst [vmem:[#allocation102_spill] sm:$0xff] %v8151_v42  ;;  %v8157_v2 = vld [vmem:[#allocation9 + $0xc8] sm:$0xff]  ;;  %v8160_v37 = vld [vmem:[#allocation9 + $0xd8] sm:$0xff] }
 0x5f5   :  { %2972 = vmatprep.subr.mxu0 %v8144_v43  ;;  %3043 = vmatprep.subr.mxu1 %v8147_v54  ;;  %4968 = vtanh.f32 %v8130_v41  ;;  %10502 = vst [vmem:[#allocation104_spill] sm:$0xff] %v8157_v2  ;;  %10503 = vst [vmem:[#allocation105_spill] sm:$0xff] %v8160_v37  ;;  %v8163_v43 = vld [vmem:[#allocation9 + $0xc0] sm:$0xff]  ;;  %v8166_v54 = vld [vmem:[#allocation9 + $0xd0] sm:$0xff] }
 0x5f6   :  { %2973 = vmatpush1.msra.mxu0 %v8151_v42  ;;  %3044 = vmatpush1.msra.mxu1 %v8154_v29  ;;  %10504 = vst [vmem:[#allocation106_spill] sm:$0xff] %v8163_v43  ;;  %10505 = vst [vmem:[#allocation107_spill] sm:$0xff] %v8166_v54  ;;  %v8169_v42 = vld [vmem:[#allocation9 + $0xa8] sm:$0xff]  ;;  %v8172_v29 = vld [vmem:[#allocation9 + $0xb8] sm:$0xff] }
 0x5f7   :  { %2974 = vmatprep.subr.mxu0 %v8157_v2  ;;  %3045 = vmatprep.subr.mxu1 %v8160_v37  ;;  %10506 = vst [vmem:[#allocation108_spill] sm:$0xff] %v8169_v42  ;;  %10507 = vst [vmem:[#allocation109_spill] sm:$0xff] %v8172_v29  ;;  %v8175_v2 = vld [vmem:[#allocation9 + $0xa0] sm:$0xff]  ;;  %v8178_v37 = vld [vmem:[#allocation9 + $0xb0] sm:$0xff] }
 0x5f8   :  { %2975 = vmatpush1.msra.mxu0 %v8163_v43  ;;  %3046 = vmatpush1.msra.mxu1 %v8166_v54  ;;  %10508 = vst [vmem:[#allocation110_spill] sm:$0xff] %v8175_v2  ;;  %10509 = vst [vmem:[#allocation111_spill] sm:$0xff] %v8178_v37  ;;  %v8181_v43 = vld [vmem:[#allocation9 + $0x88] sm:$0xff]  ;;  %v8184_v54 = vld [vmem:[#allocation9 + $0x98] sm:$0xff] }
 0x5f9   :  { %2976 = vmatprep.subr.mxu0 %v8169_v42  ;;  %3047 = vmatprep.subr.mxu1 %v8172_v29  ;;  %10510 = vst [vmem:[#allocation112_spill] sm:$0xff] %v8181_v43  ;;  %10511 = vst [vmem:[#allocation113_spill] sm:$0xff] %v8184_v54  ;;  %v8187_v42 = vld [vmem:[#allocation9 + $0x80] sm:$0xff]  ;;  %v8190_v29 = vld [vmem:[#allocation9 + $0x90] sm:$0xff] }
 0x5fa   :  { %2977 = vmatpush1.msra.mxu0 %v8175_v2  ;;  %3048 = vmatpush1.msra.mxu1 %v8178_v37  ;;  %10512 = vst [vmem:[#allocation114_spill] sm:$0xff] %v8187_v42  ;;  %10513 = vst [vmem:[#allocation115_spill] sm:$0xff] %v8190_v29  ;;  %v8193_v2 = vld [vmem:[#allocation9 + $0x68] sm:$0xff]  ;;  %v8196_v37 = vld [vmem:[#allocation9 + $0x78] sm:$0xff] }
 0x5fb   :  { %2978 = vmatprep.subr.mxu0 %v8181_v43  ;;  %3049 = vmatprep.subr.mxu1 %v8184_v54  ;;  %10514 = vst [vmem:[#allocation116_spill] sm:$0xff] %v8193_v2  ;;  %10515 = vst [vmem:[#allocation117_spill] sm:$0xff] %v8196_v37  ;;  %v8199_v43 = vld [vmem:[#allocation9 + $0x60] sm:$0xff]  ;;  %v8202_v54 = vld [vmem:[#allocation9 + $0x70] sm:$0xff] }
 0x5fc   :  { %2979 = vmatpush1.msra.mxu0 %v8187_v42  ;;  %3050 = vmatpush1.msra.mxu1 %v8190_v29  ;;  %10516 = vst [vmem:[#allocation118_spill] sm:$0xff] %v8199_v43  ;;  %10517 = vst [vmem:[#allocation119_spill] sm:$0xff] %v8202_v54  ;;  %v8205_v42 = vld [vmem:[#allocation9 + $0x48] sm:$0xff]  ;;  %v8208_v29 = vld [vmem:[#allocation9 + $0x58] sm:$0xff] }
 0x5fd   :  { %2980 = vmatprep.subr.mxu0 %v8193_v2  ;;  %3051 = vmatprep.subr.mxu1 %v8196_v37  ;;  %10518 = vst [vmem:[#allocation120_spill] sm:$0xff] %v8205_v42  ;;  %10519 = vst [vmem:[#allocation121_spill] sm:$0xff] %v8208_v29  ;;  %v8211_v2 = vld [vmem:[#allocation9 + $0x40] sm:$0xff]  ;;  %v8214_v37 = vld [vmem:[#allocation9 + $0x50] sm:$0xff] }
 0x5fe   :  { %2981 = vmatpush1.msra.mxu0 %v8199_v43  ;;  %3052 = vmatpush1.msra.mxu1 %v8202_v54  ;;  %10520 = vst [vmem:[#allocation122_spill] sm:$0xff] %v8211_v2  ;;  %10521 = vst [vmem:[#allocation123_spill] sm:$0xff] %v8214_v37  ;;  %v4967_v43 = vpop.eup %4966  ;;  %v8217_v48 = vld [vmem:[#allocation9 + $0x28] sm:$0xff]  ;;  %v8220_v54 = vld [vmem:[#allocation9 + $0x38] sm:$0xff] }
 0x5ff   :  { %2982 = vmatprep.subr.mxu0 %v8205_v42  ;;  %3053 = vmatprep.subr.mxu1 %v8208_v29  ;;  %10522 = vst [vmem:[#allocation124_spill] sm:$0xff] %v8217_v48  ;;  %10523 = vst [vmem:[#allocation125_spill] sm:$0xff] %v8220_v54  ;;  %v8223_v40 = vld [vmem:[#allocation9 + $0x20] sm:$0xff]  ;;  %v8226_v29 = vld [vmem:[#allocation9 + $0x30] sm:$0xff] }
 0x600   :  { %2983 = vmatpush1.msra.mxu0 %v8211_v2  ;;  %3054 = vmatpush1.msra.mxu1 %v8214_v37  ;;  %10524 = vst [vmem:[#allocation126_spill] sm:$0xff] %v8223_v40  ;;  %v8229_v2 = vld [vmem:[#allocation9 + $0x8] sm:$0xff]  ;;  %v8232_v37 = vld [vmem:[#allocation9 + $0x18] sm:$0xff] }
 0x601   :  { %2984 = vmatprep.subr.mxu0 %v8217_v48  ;;  %3055 = vmatprep.subr.mxu1 %v8220_v54  ;;  %10525 = vst [vmem:[#allocation127_spill] sm:$0xff] %v8232_v37  ;;  %v8237_v54 = vld [vmem:[#allocation9] sm:$0xff] }
 0x602   :  { %v4969_v42 = vpop.eup %4968  ;;  %2985 = vmatpush1.msra.mxu0 %v8223_v40  ;;  %3056 = vmatpush1.msra.mxu1 %v8226_v29  ;;  %10526 = vst [vmem:[#allocation128_spill] sm:$0xff] %v8237_v54  ;;  %v8241_v40 = vld [vmem:[#allocation9 + $0x10] sm:$0xff] }
 0x603   :  { %2986 = vmatprep.subr.mxu0 %v8229_v2  ;;  %3057 = vmatprep.subr.mxu1 %v8232_v37  ;;  %v8235_v48 = vmul.f32 %v4969_v42, %v4967_v43  ;;  %10527 = vst [vmem:[#allocation129_spill] sm:$0xff] %v8241_v40  ;;  %v8249_v43 = vld [vmem:[#allocation8 + $0x1e0] sm:$0xff]  ;;  %v8252_v42 = vld [vmem:[#allocation8 + $0x1f0] sm:$0xff] }
 0x604   :  { %2987 = vmatpush1.msra.mxu0 %v8237_v54  ;;  %3020 = vmatprep.mubr.f32.mxu0 %v9989_v27  ;;  %10528 = vst [vmem:[#allocation130_spill] sm:$0xff] %v8252_v42  ;;  %v8255_v54 = vld [vmem:[#allocation8 + $0x1c8] sm:$0xff]  ;;  %v8261_v37 = vld [vmem:[#allocation8 + $0x1c0] sm:$0xff] }
 0x605   :  { %3058 = vmatpush1.msra.mxu1 %v8241_v40  ;;  %3091 = vmatprep.mubr.f32.mxu1 %v9989_v27  ;;  %10529 = vst [vmem:[#allocation131_spill] sm:$0xff] %v8255_v54  ;;  %v8258_v40 = vld [vmem:[#allocation8 + $0x1d8] sm:$0xff]  ;;  %10531 = vst [vmem:[#allocation133_spill] sm:$0xff] %v8261_v37 }
 0x606   :  { %3021 = vmatmul.mubr.f32.vlgmr.msra.gmra.mxu0 %v8235_v48  ;;  %3092 = vmatmul.mubr.f32.vlgmr.msra.gmra.mxu1 %v8235_v48  ;;  %10530 = vst [vmem:[#allocation132_spill] sm:$0xff] %v8258_v40 }
 0x607   :  { %3133 = vmatprep.subr.mxu0 %v7683_v56  ;;  %3204 = vmatprep.subr.mxu1 %v7686_v5  ;;  %v8264_v56 = vld [vmem:[#allocation8 + $0x1d0] sm:$0xff]  ;;  %v8267_v5 = vld [vmem:[#allocation8 + $0x1a8] sm:$0xff] }
 0x608   :  { %3134 = vmatpush1.msra.mxu0 %v8249_v43  ;;  %3205 = vmatpush1.msra.mxu1 %v8252_v42  ;;  %10532 = vst [vmem:[#allocation134_spill] sm:$0xff] %v8264_v56  ;;  %10533 = vst [vmem:[#allocation135_spill] sm:$0xff] %v8267_v5  ;;  %v8270_v42 = vld [vmem:[#allocation8 + $0x1b8] sm:$0xff] }
 0x609   :  { %3135 = vmatprep.subr.mxu0 %v8255_v54  ;;  %3206 = vmatprep.subr.mxu1 %v8258_v40  ;;  %10534 = vst [vmem:[#allocation136_spill] sm:$0xff] %v8270_v42  ;;  %v8273_v54 = vld [vmem:[#allocation8 + $0x1a0] sm:$0xff]  ;;  %v8276_v40 = vld [vmem:[#allocation8 + $0x1b0] sm:$0xff] }
 0x60a   :  { %3136 = vmatpush1.msra.mxu0 %v8261_v37  ;;  %3207 = vmatpush1.msra.mxu1 %v8264_v56  ;;  %10535 = vst [vmem:[#allocation137_spill] sm:$0xff] %v8273_v54  ;;  %10536 = vst [vmem:[#allocation138_spill] sm:$0xff] %v8276_v40  ;;  %v8279_v37 = vld [vmem:[#allocation8 + $0x188] sm:$0xff]  ;;  %v8282_v56 = vld [vmem:[#allocation8 + $0x198] sm:$0xff] }
 0x60b   :  { %3137 = vmatprep.subr.mxu0 %v8267_v5  ;;  %3208 = vmatprep.subr.mxu1 %v8270_v42  ;;  %10537 = vst [vmem:[#allocation139_spill] sm:$0xff] %v8279_v37  ;;  %10538 = vst [vmem:[#allocation140_spill] sm:$0xff] %v8282_v56  ;;  %v8285_v5 = vld [vmem:[#allocation8 + $0x180] sm:$0xff]  ;;  %v8288_v42 = vld [vmem:[#allocation8 + $0x190] sm:$0xff] }
 0x60c   :  { %3138 = vmatpush1.msra.mxu0 %v8273_v54  ;;  %3209 = vmatpush1.msra.mxu1 %v8276_v40  ;;  %10539 = vst [vmem:[#allocation141_spill] sm:$0xff] %v8285_v5  ;;  %10540 = vst [vmem:[#allocation142_spill] sm:$0xff] %v8288_v42  ;;  %v8291_v54 = vld [vmem:[#allocation8 + $0x168] sm:$0xff]  ;;  %v8294_v40 = vld [vmem:[#allocation8 + $0x178] sm:$0xff] }
 0x60d   :  { %3139 = vmatprep.subr.mxu0 %v8279_v37  ;;  %3210 = vmatprep.subr.mxu1 %v8282_v56  ;;  %v8297_v37 = vld [vmem:[#allocation8 + $0x160] sm:$0xff]  ;;  %v8300_v56 = vld [vmem:[#allocation8 + $0x170] sm:$0xff] }
 0x60e   :  { %3140 = vmatpush1.msra.mxu0 %v8285_v5  ;;  %3211 = vmatpush1.msra.mxu1 %v8288_v42  ;;  %v8303_v5 = vld [vmem:[#allocation8 + $0x148] sm:$0xff]  ;;  %v8306_v42 = vld [vmem:[#allocation8 + $0x158] sm:$0xff] }
 0x60f   :  { %3141 = vmatprep.subr.mxu0 %v8291_v54  ;;  %3212 = vmatprep.subr.mxu1 %v8294_v40 }
 0x610   :  { %3142 = vmatpush1.msra.mxu0 %v8297_v37  ;;  %3213 = vmatpush1.msra.mxu1 %v8300_v56 }
 0x611   :  { %3143 = vmatprep.subr.mxu0 %v8303_v5  ;;  %3214 = vmatprep.subr.mxu1 %v8306_v42 }
 0x612   :  { %3144 = vmatpush1.msra.mxu0 %v7709_v50  ;;  %3215 = vmatpush1.msra.mxu1 %v7712_v51  ;;  %v10541_v50 = vld [vmem:[#allocation155_spill] sm:$0xff]  ;;  %v10542_v51 = vld [vmem:[#allocation156_spill] sm:$0xff] }
 0x613   :  { %3145 = vmatprep.subr.mxu0 %v7715_v52  ;;  %3216 = vmatprep.subr.mxu1 %v7718_v6  ;;  %v10543_v52 = vld [vmem:[#allocation154_spill] sm:$0xff]  ;;  %v10544_v6 = vld [vmem:[#allocation20_spill] sm:$0xff] }
 0x614   :  { %3146 = vmatpush1.msra.mxu0 %v7721_v1  ;;  %3217 = vmatpush1.msra.mxu1 %v7724_v60  ;;  %v10545_v1 = vld [vmem:[#allocation21_spill] sm:$0xff]  ;;  %v10546_v60 = vld [vmem:[#allocation22_spill] sm:$0xff] }
 0x615   :  { %3147 = vmatprep.subr.mxu0 %v7727_v9  ;;  %3218 = vmatprep.subr.mxu1 %v7730_v4  ;;  %v10547_v9 = vld [vmem:[#allocation23_spill] sm:$0xff]  ;;  %v10548_v4 = vld [vmem:[#allocation24_spill] sm:$0xff] }
 0x616   :  { %3148 = vmatpush1.msra.mxu0 %v7733_v36  ;;  %3219 = vmatpush1.msra.mxu1 %v7736_v7  ;;  %v10549_v36 = vld [vmem:[#allocation25_spill] sm:$0xff]  ;;  %v10550_v7 = vld [vmem:[#allocation26_spill] sm:$0xff] }
 0x617   :  { %3149 = vmatprep.subr.mxu0 %v7739_v59  ;;  %3220 = vmatprep.subr.mxu1 %v7742_v62  ;;  %v10551_v59 = vld [vmem:[#allocation27_spill] sm:$0xff]  ;;  %v10552_v62 = vld [vmem:[#allocation28_spill] sm:$0xff] }
 0x618   :  { %3150 = vmatpush1.msra.mxu0 %v7745_v24  ;;  %3221 = vmatpush1.msra.mxu1 %v7748_v53  ;;  %v10553_v24 = vld [vmem:[#allocation29_spill] sm:$0xff]  ;;  %v10554_v53 = vld [vmem:[#allocation30_spill] sm:$0xff] }
 0x619   :  { %3151 = vmatprep.subr.mxu0 %v7751_v28  ;;  %3222 = vmatprep.subr.mxu1 %v7754_v47  ;;  %v10555_v28 = vld [vmem:[#allocation31_spill] sm:$0xff]  ;;  %v10556_v47 = vld [vmem:[#allocation32_spill] sm:$0xff] }
 0x61a   :  { %3152 = vmatpush1.msra.mxu0 %v7757_v20  ;;  %3223 = vmatpush1.msra.mxu1 %v7760_v13  ;;  %v10557_v20 = vld [vmem:[#allocation33_spill] sm:$0xff]  ;;  %v10558_v13 = vld [vmem:[#allocation34_spill] sm:$0xff] }
 0x61b   :  { %3153 = vmatprep.subr.mxu0 %v7763_v12  ;;  %3224 = vmatprep.subr.mxu1 %v7766_v26  ;;  %v10559_v12 = vld [vmem:[#allocation35_spill] sm:$0xff]  ;;  %v10560_v26 = vld [vmem:[#allocation36_spill] sm:$0xff] }
 0x61c   :  { %3154 = vmatpush1.msra.mxu0 %v7769_v21  ;;  %3225 = vmatpush1.msra.mxu1 %v7772_v23  ;;  %v10561_v21 = vld [vmem:[#allocation37_spill] sm:$0xff]  ;;  %v10562_v23 = vld [vmem:[#allocation38_spill] sm:$0xff] }
 0x61d   :  { %3155 = vmatprep.subr.mxu0 %v7775_v19  ;;  %3226 = vmatprep.subr.mxu1 %v7778_v38  ;;  %v10563_v19 = vld [vmem:[#allocation39_spill] sm:$0xff]  ;;  %v10564_v38 = vld [vmem:[#allocation40_spill] sm:$0xff] }
 0x61e   :  { %3156 = vmatpush1.msra.mxu0 %v7781_v0  ;;  %3227 = vmatpush1.msra.mxu1 %v7784_v17  ;;  %v10565_v0 = vld [vmem:[#allocation41_spill] sm:$0xff]  ;;  %v10566_v17 = vld [vmem:[#allocation42_spill] sm:$0xff] }
 0x61f   :  { %3157 = vmatprep.subr.mxu0 %v7787_v16  ;;  %3228 = vmatprep.subr.mxu1 %v7790_v25  ;;  %v10567_v16 = vld [vmem:[#allocation43_spill] sm:$0xff]  ;;  %v10568_v25 = vld [vmem:[#allocation44_spill] sm:$0xff] }
 0x620   :  { %3158 = vmatpush1.msra.mxu0 %v7793_v35  ;;  %3229 = vmatpush1.msra.mxu1 %v7796_v15  ;;  %v10569_v35 = vld [vmem:[#allocation45_spill] sm:$0xff]  ;;  %v10570_v15 = vld [vmem:[#allocation46_spill] sm:$0xff] }
 0x621   :  { %3159 = vmatprep.subr.mxu0 %v7799_v22  ;;  %3230 = vmatprep.subr.mxu1 %v7802_v18  ;;  %v10571_v22 = vld [vmem:[#allocation47_spill] sm:$0xff]  ;;  %v10572_v18 = vld [vmem:[#allocation48_spill] sm:$0xff] }
 0x622   :  { %3160 = vmatpush1.msra.mxu0 %v7805_v3  ;;  %3231 = vmatpush1.msra.mxu1 %v7808_v14  ;;  %v10573_v3 = vld [vmem:[#allocation49_spill] sm:$0xff]  ;;  %v10574_v14 = vld [vmem:[#allocation50_spill] sm:$0xff] }
 0x623   :  { %3161 = vmatprep.subr.mxu0 %v7811_v31  ;;  %3232 = vmatprep.subr.mxu1 %v10541_v50  ;;  %v10575_v31 = vld [vmem:[#allocation51_spill] sm:$0xff]  ;;  %v10577_v50 = vld [vmem:[#allocation53_spill] sm:$0xff] }
 0x624   :  { %3162 = vmatpush1.msra.mxu0 %v10542_v51  ;;  %3233 = vmatpush1.msra.mxu1 %v10543_v52  ;;  %v10578_v51 = vld [vmem:[#allocation54_spill] sm:$0xff]  ;;  %v10579_v52 = vld [vmem:[#allocation55_spill] sm:$0xff] }
 0x625   :  { %3163 = vmatprep.subr.mxu0 %v10544_v6  ;;  %3234 = vmatprep.subr.mxu1 %v10545_v1  ;;  %v10580_v6 = vld [vmem:[#allocation56_spill] sm:$0xff]  ;;  %v10581_v1 = vld [vmem:[#allocation57_spill] sm:$0xff] }
 0x626   :  { %3164 = vmatpush1.msra.mxu0 %v10546_v60  ;;  %3197 = vmatprep.mubr.f32.mxu0 %v9989_v27  ;;  %v10582_v60 = vld [vmem:[#allocation58_spill] sm:$0xff] }
 0x627   :  { %3235 = vmatpush1.msra.mxu1 %v10547_v9  ;;  %3268 = vmatprep.mubr.f32.mxu1 %v9989_v27  ;;  %v10583_v9 = vld [vmem:[#allocation59_spill] sm:$0xff] }
 0x628   :  { %3198 = vmatmul.mubr.f32.vlgmr.msra.gmra.mxu0 %v8235_v48  ;;  %3269 = vmatmul.mubr.f32.vlgmr.msra.gmra.mxu1 %v8235_v48  ;;  %v10576_v48 = vld [vmem:[#allocation52_spill] sm:$0xff] }
 0x629   :  { %3303 = vmatprep.subr.mxu0 %v10548_v4  ;;  %3374 = vmatprep.subr.mxu1 %v10549_v36  ;;  %v10584_v4 = vld [vmem:[#allocation60_spill] sm:$0xff]  ;;  %v10585_v36 = vld [vmem:[#allocation61_spill] sm:$0xff] }
 0x62a   :  { %3304 = vmatpush1.msra.mxu0 %v10550_v7  ;;  %3375 = vmatpush1.msra.mxu1 %v10551_v59  ;;  %v10586_v7 = vld [vmem:[#allocation62_spill] sm:$0xff]  ;;  %v10587_v59 = vld [vmem:[#allocation63_spill] sm:$0xff] }
 0x62b   :  { %3305 = vmatprep.subr.mxu0 %v10552_v62  ;;  %3376 = vmatprep.subr.mxu1 %v10553_v24  ;;  %v10588_v62 = vld [vmem:[#allocation64_spill] sm:$0xff]  ;;  %v10589_v24 = vld [vmem:[#allocation65_spill] sm:$0xff] }
 0x62c   :  { %3306 = vmatpush1.msra.mxu0 %v10554_v53  ;;  %3377 = vmatpush1.msra.mxu1 %v10555_v28  ;;  %v10590_v53 = vld [vmem:[#allocation66_spill] sm:$0xff]  ;;  %v10591_v28 = vld [vmem:[#allocation67_spill] sm:$0xff] }
 0x62d   :  { %3307 = vmatprep.subr.mxu0 %v10556_v47  ;;  %3378 = vmatprep.subr.mxu1 %v10557_v20  ;;  %v10592_v47 = vld [vmem:[#allocation68_spill] sm:$0xff]  ;;  %v10593_v20 = vld [vmem:[#allocation69_spill] sm:$0xff] }
 0x62e   :  { %3308 = vmatpush1.msra.mxu0 %v10558_v13  ;;  %3379 = vmatpush1.msra.mxu1 %v10559_v12  ;;  %v10594_v13 = vld [vmem:[#allocation70_spill] sm:$0xff]  ;;  %v10595_v12 = vld [vmem:[#allocation71_spill] sm:$0xff] }
 0x62f   :  { %3309 = vmatprep.subr.mxu0 %v10560_v26  ;;  %3380 = vmatprep.subr.mxu1 %v10561_v21  ;;  %v10596_v26 = vld [vmem:[#allocation72_spill] sm:$0xff]  ;;  %v10597_v21 = vld [vmem:[#allocation73_spill] sm:$0xff] }
 0x630   :  { %3310 = vmatpush1.msra.mxu0 %v10562_v23  ;;  %3381 = vmatpush1.msra.mxu1 %v10563_v19  ;;  %v10598_v23 = vld [vmem:[#allocation74_spill] sm:$0xff]  ;;  %v10599_v19 = vld [vmem:[#allocation75_spill] sm:$0xff] }
 0x631   :  { %3311 = vmatprep.subr.mxu0 %v10564_v38  ;;  %3382 = vmatprep.subr.mxu1 %v10565_v0  ;;  %v10600_v38 = vld [vmem:[#allocation76_spill] sm:$0xff]  ;;  %v10601_v0 = vld [vmem:[#allocation77_spill] sm:$0xff] }
 0x632   :  { %3312 = vmatpush1.msra.mxu0 %v10566_v17  ;;  %3383 = vmatpush1.msra.mxu1 %v10567_v16  ;;  %v10602_v17 = vld [vmem:[#allocation78_spill] sm:$0xff]  ;;  %v10603_v16 = vld [vmem:[#allocation79_spill] sm:$0xff] }
 0x633   :  { %3313 = vmatprep.subr.mxu0 %v10568_v25  ;;  %3384 = vmatprep.subr.mxu1 %v10569_v35  ;;  %v10604_v25 = vld [vmem:[#allocation80_spill] sm:$0xff]  ;;  %v10605_v35 = vld [vmem:[#allocation81_spill] sm:$0xff] }
 0x634   :  { %3314 = vmatpush1.msra.mxu0 %v10570_v15  ;;  %3385 = vmatpush1.msra.mxu1 %v10571_v22  ;;  %v10606_v15 = vld [vmem:[#allocation82_spill] sm:$0xff]  ;;  %v10607_v22 = vld [vmem:[#allocation83_spill] sm:$0xff] }
 0x635   :  { %3315 = vmatprep.subr.mxu0 %v10572_v18  ;;  %3386 = vmatprep.subr.mxu1 %v10573_v3  ;;  %v10608_v18 = vld [vmem:[#allocation84_spill] sm:$0xff]  ;;  %v10609_v3 = vld [vmem:[#allocation85_spill] sm:$0xff] }
 0x636   :  { %3316 = vmatpush1.msra.mxu0 %v10574_v14  ;;  %3387 = vmatpush1.msra.mxu1 %v10575_v31  ;;  %v10610_v14 = vld [vmem:[#allocation86_spill] sm:$0xff]  ;;  %v10611_v31 = vld [vmem:[#allocation149_spill] sm:$0xff] }
 0x637   :  { %3317 = vmatprep.subr.mxu0 %v10576_v48  ;;  %3388 = vmatprep.subr.mxu1 %v10577_v50  ;;  %v10612_v48 = vld [vmem:[#allocation151_spill] sm:$0xff]  ;;  %v10613_v50 = vld [vmem:[#allocation152_spill] sm:$0xff] }
 0x638   :  { %3318 = vmatpush1.msra.mxu0 %v10578_v51  ;;  %3389 = vmatpush1.msra.mxu1 %v10579_v52 }
 0x639   :  { %3319 = vmatprep.subr.mxu0 %v10580_v6  ;;  %3390 = vmatprep.subr.mxu1 %v10581_v1 }
 0x63a   :  { %3320 = vmatpush1.msra.mxu0 %v10582_v60  ;;  %3391 = vmatpush1.msra.mxu1 %v10583_v9 }
 0x63b   :  { %3321 = vmatprep.subr.mxu0 %v10584_v4  ;;  %3392 = vmatprep.subr.mxu1 %v10585_v36 }
 0x63c   :  { %3322 = vmatpush1.msra.mxu0 %v10586_v7  ;;  %3393 = vmatpush1.msra.mxu1 %v10587_v59 }
 0x63d   :  { %3323 = vmatprep.subr.mxu0 %v10588_v62  ;;  %3394 = vmatprep.subr.mxu1 %v10589_v24 }
 0x63e   :  { %3324 = vmatpush1.msra.mxu0 %v10590_v53  ;;  %3395 = vmatpush1.msra.mxu1 %v10591_v28 }
 0x63f   :  { %3325 = vmatprep.subr.mxu0 %v10592_v47  ;;  %3396 = vmatprep.subr.mxu1 %v10593_v20 }
 0x640   :  { %3326 = vmatpush1.msra.mxu0 %v10594_v13  ;;  %3397 = vmatpush1.msra.mxu1 %v10595_v12 }
 0x641   :  { %3327 = vmatprep.subr.mxu0 %v10596_v26  ;;  %3398 = vmatprep.subr.mxu1 %v10597_v21 }
 0x642   :  { %3328 = vmatpush1.msra.mxu0 %v10598_v23  ;;  %3399 = vmatpush1.msra.mxu1 %v10599_v19 }
 0x643   :  { %3329 = vmatprep.subr.mxu0 %v10600_v38  ;;  %3400 = vmatprep.subr.mxu1 %v10601_v0 }
 0x644   :  { %3330 = vmatpush1.msra.mxu0 %v10602_v17  ;;  %3401 = vmatpush1.msra.mxu1 %v10603_v16  ;;  %v10614_v16 = vld [vmem:[#allocation165_spill] sm:$0xff] }
 0x645   :  { %3331 = vmatprep.subr.mxu0 %v10604_v25  ;;  %3402 = vmatprep.subr.mxu1 %v10605_v35 }
 0x646   :  { %3332 = vmatpush1.msra.mxu0 %v10606_v15  ;;  %3403 = vmatpush1.msra.mxu1 %v10607_v22 }
 0x647   :  { %3333 = vmatprep.subr.mxu0 %v10608_v18  ;;  %3404 = vmatprep.subr.mxu1 %v10609_v3  ;;  %v10615_v3 = vld [vmem:[#allocation167_spill] sm:$0xff] }
 0x648   :  { %3334 = vmatpush1.msra.mxu0 %v10610_v14  ;;  %3405 = vmatpush1.msra.mxu1 %v10611_v31 }
 0x649   :  { %3367 = vmatprep.mubr.f32.mxu0 %v9989_v27  ;;  %3438 = vmatprep.mubr.f32.mxu1 %v9989_v27 }
 0x64a   :  { %3445 = vmatprep.subr.mxu0 %v10612_v48  ;;  %3516 = vmatprep.subr.mxu1 %v10613_v50 }
 0x6a5   :  { %v2880_v51 = vpop.f32.mrf.mxu0  ;;  %v2951_v52 = vpop.f32.mrf.mxu1 }
 0x6a7   :  { %v2882_v6 = vpop.f32.mrf.mxu0  ;;  %v2953_v60 = vpop.f32.mrf.mxu1 }
 0x6c6   :  { %v3022_v1 = vpop.f32.mrf.mxu0  ;;  %v3093_v7 = vpop.f32.mrf.mxu1 }
 0x6c7   :  { %v3023_v9 = vadd.f32 %v3022_v1, %v2880_v51  ;;  %v3094_v13 = vadd.f32 %v3093_v7, %v2951_v52 }
 0x6c8   :  { %v3024_v4 = vpop.f32.mrf.mxu0  ;;  %v3095_v28 = vpop.f32.mrf.mxu1 }
 0x6c9   :  { %v3098_v36 = vadd.f32 %v3023_v9, %v6762_v63  ;;  %v3025_v59 = vadd.f32 %v3024_v4, %v2882_v6  ;;  %v3096_v47 = vadd.f32 %v3095_v28, %v2953_v60  ;;  %v3100_v21 = vadd.f32 %v3094_v13, %v6777_v39  ;;  %v10616_v9 = vld [vmem:[#allocation168_spill] sm:$0xff]  ;;  %v10618_v13 = vld [vmem:[#allocation150_spill] sm:$0xff] }
 0x6cb   :  { %v4739_v62 = vmul.f32 -1.442695, %v3098_v36  ;;  %v3099_v24 = vadd.f32 %v3025_v59, %v6766_v8  ;;  %v3101_v20 = vadd.f32 %v3096_v47, %v6772_v34  ;;  %v10617_v36 = vld [vmem:[#allocation166_spill] sm:$0xff] }
 0x6cd   :  { %4970 = vpow2.f32 %v4739_v62  ;;  %v4740_v53 = vmul.f32 -1.442695, %v3099_v24  ;;  %v4741_v12 = vmul.f32 -1.442695, %v3101_v20 }
 0x6cf   :  { %4972 = vpow2.f32 %v4740_v53 }
 0x6d0   :  { %4974 = vpow2.f32 %v4741_v12  ;;  %v10619_v12 = vld [vmem:[#allocation87_spill] sm:$0xff] }
 0x6da   :  { %v4971_v26 = vpop.eup %4970 }
 0x6db   :  { %v3105_v23 = vadd.f32 1.0, %v4971_v26  ;;  %v10623_v26 = vld [vmem:[#allocation160_spill] sm:$0xff] }
 0x6dc   :  { %v4973_v19 = vpop.eup %4972 }
 0x6dd   :  { %4976 = vrcp.f32 %v3105_v23  ;;  %v3111_v38 = vadd.f32 1.0, %v4973_v19  ;;  %v4975_v17 = vpop.eup %4974  ;;  %v10627_v23 = vld [vmem:[#allocation91_spill] sm:$0xff] }
 0x6de   :  { %4978 = vtanh.f32 %v3100_v21  ;;  %v3118_v48 = vadd.f32 1.0, %v4975_v17  ;;  %v10626_v21 = vld [vmem:[#allocation90_spill] sm:$0xff]  ;;  %v10629_v17 = vld [vmem:[#allocation93_spill] sm:$0xff] }
 0x6df   :  { %4980 = vrcp.f32 %v3111_v38 }
 0x6e8   :  { %v3199_v0 = vpop.f32.mrf.mxu0  ;;  %v3270_v52 = vpop.f32.mrf.mxu1 }
 0x6e9   :  { %v3275_v25 = vadd.f32 %v3199_v0, %v10614_v16  ;;  %v3277_v7 = vadd.f32 %v3270_v52, %v10617_v36  ;;  %v10628_v0 = vld [vmem:[#allocation92_spill] sm:$0xff]  ;;  %v10649_v36 = vld [vmem:[#allocation113_spill] sm:$0xff] }
 0x6ea   :  { %v4977_v35 = vpop.eup %4976  ;;  %v3201_v15 = vpop.f32.mrf.mxu0  ;;  %v10644_v52 = vld [vmem:[#allocation108_spill] sm:$0xff] }
 0x6eb   :  { %v4979_v22 = vpop.eup %4978  ;;  %v4742_v18 = vmul.f32 -1.442695, %v3275_v25  ;;  %v3276_v14 = vadd.f32 %v3201_v15, %v10615_v3  ;;  %v3272_v60 = vpop.f32.mrf.mxu1  ;;  %v10630_v25 = vld [vmem:[#allocation94_spill] sm:$0xff]  ;;  %v10632_v15 = vld [vmem:[#allocation96_spill] sm:$0xff]  ;;  %v10635_v3 = vld [vmem:[#allocation99_spill] sm:$0xff] }
 0x6ec   :  { %v4981_v31 = vpop.eup %4980  ;;  %v3122_v50 = vmul.f32 %v4979_v22, %v4977_v35  ;;  %v3278_v4 = vadd.f32 %v3272_v60, %v10616_v9  ;;  %v10633_v22 = vld [vmem:[#allocation97_spill] sm:$0xff]  ;;  %v10646_v60 = vld [vmem:[#allocation110_spill] sm:$0xff]  ;;  %v10647_v9 = vld [vmem:[#allocation111_spill] sm:$0xff] }
 0x6ed   :  { %v3121_v51 = vmul.f32 %v4981_v31, %v8046_v49  ;;  %4982 = vpow2.f32 %v4742_v18  ;;  %v4743_v6 = vmul.f32 -1.442695, %v3276_v14  ;;  %v10634_v18 = vld [vmem:[#allocation98_spill] sm:$0xff]  ;;  %v10639_v14 = vld [vmem:[#allocation103_spill] sm:$0xff]  ;;  %v10640_v31 = vld [vmem:[#allocation104_spill] sm:$0xff] }
 0x6ee   :  { %v4744_v59 = vmul.f32 -1.442695, %v3278_v4  ;;  %v10648_v4 = vld [vmem:[#allocation112_spill] sm:$0xff] }
 0x6ef   :  { %4984 = vpow2.f32 %v4743_v6  ;;  %v8430_v1 = vadd.f32 %v3122_v50, %v3121_v51  ;;  %v10642_v50 = vld [vmem:[#allocation106_spill] sm:$0xff]  ;;  %v10643_v51 = vld [vmem:[#allocation107_spill] sm:$0xff]  ;;  %v10645_v6 = vld [vmem:[#allocation109_spill] sm:$0xff] }
 0x6f0   :  { %4986 = vrcp.f32 %v3118_v48  ;;  %v10641_v48 = vld [vmem:[#allocation105_spill] sm:$0xff] }
 0x6f1   :  { %4988 = vtanh.f32 %v8430_v1 }
 0x6f2   :  { %4990 = vtanh.f32 %v3277_v7  ;;  %v10650_v7 = vld [vmem:[#allocation114_spill] sm:$0xff] }
 0x6f3   :  { %4992 = vpow2.f32 %v4744_v59  ;;  %v10651_v59 = vld [vmem:[#allocation115_spill] sm:$0xff] }
 0x6fa   :  { %v4983_v62 = vpop.eup %4982 }
 0x6fb   :  { %v3282_v24 = vadd.f32 1.0, %v4983_v62  ;;  %v10652_v62 = vld [vmem:[#allocation116_spill] sm:$0xff] }
 0x6fc   :  { %v4985_v53 = vpop.eup %4984 }
 0x6fd   :  { %v4987_v49 = vpop.eup %4986  ;;  %4994 = vrcp.f32 %v3282_v24  ;;  %v3288_v28 = vadd.f32 1.0, %v4985_v53  ;;  %v10653_v24 = vld [vmem:[#allocation117_spill] sm:$0xff]  ;;  %v10654_v53 = vld [vmem:[#allocation118_spill] sm:$0xff] }
 0x6fe   :  { %v4989_v47 = vpop.eup %4988 }
 0x6ff   :  { %4996 = vrcp.f32 %v3288_v28  ;;  %v3125_v20 = vmul.f32 %v4989_v47, %v4987_v49  ;;  %v10655_v49 = vld [vmem:[#allocation119_spill] sm:$0xff]  ;;  %v10656_v28 = vld [vmem:[#allocation120_spill] sm:$0xff]  ;;  %v10657_v47 = vld [vmem:[#allocation121_spill] sm:$0xff] }
 0x701   :  { %3368 = vmatmul.mubr.f32.vlgmr.msra.gmra.mxu0 %v3125_v20  ;;  %3439 = vmatmul.mubr.f32.vlgmr.msra.gmra.mxu1 %v3125_v20  ;;  %v10658_v20 = vld [vmem:[#allocation122_spill] sm:$0xff] }
 0x702   :  { %3446 = vmatpush1.msra.mxu0 %v8051_v46  ;;  %3517 = vmatpush1.msra.mxu1 %v8054_v11  ;;  %v10620_v46 = vld [vmem:[#allocation88_spill] sm:$0xff]  ;;  %v4991_v11 = vpop.eup %4990 }
 0x703   :  { %3447 = vmatprep.subr.mxu0 %v8057_v61  ;;  %3518 = vmatprep.subr.mxu1 %v8060_v55  ;;  %v10621_v61 = vld [vmem:[#allocation157_spill] sm:$0xff]  ;;  %v10622_v55 = vld [vmem:[#allocation159_spill] sm:$0xff] }
 0x704   :  { %3448 = vmatpush1.msra.mxu0 %v8063_v33  ;;  %3519 = vmatpush1.msra.mxu1 %v8066_v58  ;;  %v4993_v33 = vpop.eup %4992  ;;  %v10624_v58 = vld [vmem:[#allocation158_spill] sm:$0xff] }
 0x705   :  { %3449 = vmatprep.subr.mxu0 %v8069_v32  ;;  %3520 = vmatprep.subr.mxu1 %v8072_v44  ;;  %v10625_v44 = vld [vmem:[#allocation89_spill] sm:$0xff]  ;;  %v3295_v38 = vadd.f32 1.0, %v4993_v33  ;;  %v10663_v33 = vld [vmem:[#allocation127_spill] sm:$0xff] }
 0x706   :  { %3450 = vmatpush1.msra.mxu0 %v8075_v45  ;;  %3521 = vmatpush1.msra.mxu1 %v10618_v13  ;;  %v10659_v13 = vld [vmem:[#allocation123_spill] sm:$0xff] }
 0x707   :  { %3451 = vmatprep.subr.mxu0 %v10619_v12  ;;  %3522 = vmatprep.subr.mxu1 %v10620_v46  ;;  %4998 = vrcp.f32 %v3295_v38  ;;  %v10660_v46 = vld [vmem:[#allocation124_spill] sm:$0xff]  ;;  %v10671_v38 = vld [vmem:[#allocation135_spill] sm:$0xff] }
 0x708   :  { %3452 = vmatpush1.msra.mxu0 %v10621_v61  ;;  %3523 = vmatpush1.msra.mxu1 %v10622_v55  ;;  %v10662_v55 = vld [vmem:[#allocation126_spill] sm:$0xff] }
 0x709   :  { %3453 = vmatprep.subr.mxu0 %v10623_v26  ;;  %3524 = vmatprep.subr.mxu1 %v10624_v58  ;;  %v10664_v58 = vld [vmem:[#allocation128_spill] sm:$0xff] }
 0x70a   :  { %v4995_v32 = vpop.eup %4994  ;;  %3454 = vmatpush1.msra.mxu0 %v10625_v44  ;;  %3525 = vmatpush1.msra.mxu1 %v8102_v10  ;;  %v10631_v10 = vld [vmem:[#allocation95_spill] sm:$0xff]  ;;  %v8507_v44 = vld [vmem:[#allocation8 + $0x1e8] sm:$0xff] }
 0x70b   :  { %v3299_v45 = vmul.f32 %v4995_v32, %v4991_v11  ;;  %3455 = vmatprep.subr.mxu0 %v10626_v21  ;;  %3526 = vmatprep.subr.mxu1 %v10627_v23  ;;  %v10661_v11 = vld [vmem:[#allocation125_spill] sm:$0xff]  ;;  %v10668_v21 = vld [vmem:[#allocation132_spill] sm:$0xff] }
 0x70c   :  { %v4997_v19 = vpop.eup %4996  ;;  %3456 = vmatpush1.msra.mxu0 %v10628_v0  ;;  %3527 = vmatpush1.msra.mxu1 %v10629_v17  ;;  %v10665_v32 = vld [vmem:[#allocation129_spill] sm:$0xff]  ;;  %v10672_v0 = vld [vmem:[#allocation136_spill] sm:$0xff] }
 0x70d   :  { %v3298_v16 = vmul.f32 %v4997_v19, %v8130_v41  ;;  %3457 = vmatprep.subr.mxu0 %v8118_v57  ;;  %3528 = vmatprep.subr.mxu1 %v8121_v30  ;;  %v10636_v41 = vld [vmem:[#allocation100_spill] sm:$0xff]  ;;  %v10637_v57 = vld [vmem:[#allocation101_spill] sm:$0xff]  ;;  %v10638_v30 = vld [vmem:[#allocation102_spill] sm:$0xff] }
 0x70e   :  { %3458 = vmatpush1.msra.mxu0 %v10630_v25  ;;  %3529 = vmatpush1.msra.mxu1 %v10631_v10  ;;  %v10669_v23 = vld [vmem:[#allocation133_spill] sm:$0xff]  ;;  %v10670_v19 = vld [vmem:[#allocation134_spill] sm:$0xff]  ;;  %v10675_v25 = vld [vmem:[#allocation139_spill] sm:$0xff] }
 0x70f   :  { %v8462_v35 = vadd.f32 %v3299_v45, %v3298_v16  ;;  %3459 = vmatprep.subr.mxu0 %v10632_v15  ;;  %3530 = vmatprep.subr.mxu1 %v10633_v22  ;;  %v10667_v45 = vld [vmem:[#allocation131_spill] sm:$0xff]  ;;  %v10673_v17 = vld [vmem:[#allocation137_spill] sm:$0xff]  ;;  %v10674_v16 = vld [vmem:[#allocation138_spill] sm:$0xff] }
 0x710   :  { %3460 = vmatpush1.msra.mxu0 %v10634_v18  ;;  %3531 = vmatpush1.msra.mxu1 %v10635_v3  ;;  %v10677_v10 = vld [vmem:[#allocation141_spill] sm:$0xff]  ;;  %v10678_v15 = vld [vmem:[#allocation142_spill] sm:$0xff]  ;;  %v8533_v22 = vld [vmem:[#allocation8 + $0x140] sm:$0xff] }
 0x711   :  { %3461 = vmatprep.subr.mxu0 %v10636_v41  ;;  %3532 = vmatprep.subr.mxu1 %v10637_v57  ;;  %5000 = vtanh.f32 %v8462_v35  ;;  %v8536_v18 = vld [vmem:[#allocation8 + $0x150] sm:$0xff]  ;;  %v8539_v3 = vld [vmem:[#allocation8 + $0x128] sm:$0xff] }
 0x712   :  { %3462 = vmatpush1.msra.mxu0 %v10638_v30  ;;  %3533 = vmatpush1.msra.mxu1 %v10639_v14  ;;  %v8560_v41 = vld [vmem:[#allocation8 + $0x110] sm:$0xff]  ;;  %v8563_v57 = vld [vmem:[#allocation8 + $0xe8] sm:$0xff]  ;;  %v8566_v30 = vld [vmem:[#allocation8 + $0xf8] sm:$0xff] }
 0x713   :  { %3463 = vmatprep.subr.mxu0 %v10640_v31  ;;  %3534 = vmatprep.subr.mxu1 %v10641_v48  ;;  %v8569_v14 = vld [vmem:[#allocation8 + $0xe0] sm:$0xff]  ;;  %v8572_v31 = vld [vmem:[#allocation8 + $0xf0] sm:$0xff]  ;;  %v8575_v48 = vld [vmem:[#allocation8 + $0xc8] sm:$0xff] }
 0x714   :  { %3464 = vmatpush1.msra.mxu0 %v10642_v50  ;;  %3535 = vmatpush1.msra.mxu1 %v10643_v51  ;;  %v4999_v12 = vpop.eup %4998  ;;  %v8578_v50 = vld [vmem:[#allocation8 + $0xd8] sm:$0xff]  ;;  %v8581_v51 = vld [vmem:[#allocation8 + $0xc0] sm:$0xff] }
 0x715   :  { %3465 = vmatprep.subr.mxu0 %v10644_v52  ;;  %3536 = vmatprep.subr.mxu1 %v10645_v6  ;;  %v8584_v52 = vld [vmem:[#allocation8 + $0xd0] sm:$0xff]  ;;  %v8587_v6 = vld [vmem:[#allocation8 + $0xa8] sm:$0xff] }
 0x716   :  { %3466 = vmatpush1.msra.mxu0 %v10646_v60  ;;  %3537 = vmatpush1.msra.mxu1 %v10647_v9  ;;  %v8590_v60 = vld [vmem:[#allocation8 + $0xb8] sm:$0xff]  ;;  %v8593_v9 = vld [vmem:[#allocation8 + $0xa0] sm:$0xff] }
 0x717   :  { %3467 = vmatprep.subr.mxu0 %v10648_v4  ;;  %3538 = vmatprep.subr.mxu1 %v10649_v36  ;;  %v8596_v4 = vld [vmem:[#allocation8 + $0xb0] sm:$0xff]  ;;  %v8599_v36 = vld [vmem:[#allocation8 + $0x88] sm:$0xff] }
 0x718   :  { %3468 = vmatpush1.msra.mxu0 %v10650_v7  ;;  %3539 = vmatpush1.msra.mxu1 %v10651_v59  ;;  %v8602_v7 = vld [vmem:[#allocation8 + $0x98] sm:$0xff]  ;;  %v8605_v59 = vld [vmem:[#allocation8 + $0x80] sm:$0xff] }
 0x719   :  { %3469 = vmatprep.subr.mxu0 %v10652_v62  ;;  %3540 = vmatprep.subr.mxu1 %v10653_v24  ;;  %v8608_v62 = vld [vmem:[#allocation8 + $0x90] sm:$0xff]  ;;  %v8611_v24 = vld [vmem:[#allocation8 + $0x68] sm:$0xff] }
 0x71a   :  { %3470 = vmatpush1.msra.mxu0 %v10654_v53  ;;  %3541 = vmatpush1.msra.mxu1 %v10655_v49  ;;  %v8614_v53 = vld [vmem:[#allocation8 + $0x78] sm:$0xff]  ;;  %v8617_v49 = vld [vmem:[#allocation8 + $0x60] sm:$0xff] }
 0x71b   :  { %3471 = vmatprep.subr.mxu0 %v10656_v28  ;;  %3542 = vmatprep.subr.mxu1 %v10657_v47  ;;  %v8620_v28 = vld [vmem:[#allocation8 + $0x70] sm:$0xff]  ;;  %v8623_v47 = vld [vmem:[#allocation8 + $0x48] sm:$0xff] }
 0x71c   :  { %3472 = vmatpush1.msra.mxu0 %v10658_v20  ;;  %3543 = vmatpush1.msra.mxu1 %v10659_v13  ;;  %v8626_v20 = vld [vmem:[#allocation8 + $0x58] sm:$0xff]  ;;  %v8629_v13 = vld [vmem:[#allocation8 + $0x40] sm:$0xff] }
 0x71d   :  { %3473 = vmatprep.subr.mxu0 %v10660_v46  ;;  %3544 = vmatprep.subr.mxu1 %v10661_v11  ;;  %v8635_v46 = vld [vmem:[#allocation8 + $0x28] sm:$0xff]  ;;  %v8638_v11 = vld [vmem:[#allocation8 + $0x38] sm:$0xff] }
 0x71e   :  { %v5001_v61 = vpop.eup %5000  ;;  %3474 = vmatpush1.msra.mxu0 %v10662_v55  ;;  %3545 = vmatpush1.msra.mxu1 %v8226_v29  ;;  %v10666_v29 = vld [vmem:[#allocation130_spill] sm:$0xff]  ;;  %10679 = vst [vmem:[#allocation143_spill] sm:$0xff] %v8638_v11  ;;  %v8644_v55 = vld [vmem:[#allocation8 + $0x30] sm:$0xff] }
 0x71f   :  { %3475 = vmatprep.subr.mxu0 %v8229_v2  ;;  %3546 = vmatprep.subr.mxu1 %v10663_v33  ;;  %v8499_v26 = vmul.f32 %v5001_v61, %v4999_v12  ;;  %v8510_v2 = vld [vmem:[#allocation8 + $0x1f8] sm:$0xff]  ;;  %v8632_v12 = vld [vmem:[#allocation8 + $0x50] sm:$0xff]  ;;  %v8641_v61 = vld [vmem:[#allocation8 + $0x20] sm:$0xff]  ;;  %10681 = vst [vmem:[#allocation145_spill] sm:$0xff] %v8644_v55 }
 0x720   :  { %3476 = vmatpush1.msra.mxu0 %v10664_v58  ;;  %3509 = vmatprep.mubr.f32.mxu0 %v9989_v27  ;;  %10680 = vst [vmem:[#allocation144_spill] sm:$0xff] %v8641_v61  ;;  %v8647_v33 = vld [vmem:[#allocation8 + $0x8] sm:$0xff]  ;;  %v8650_v58 = vld [vmem:[#allocation8 + $0x18] sm:$0xff] }
 0x721   :  { %3547 = vmatpush1.msra.mxu1 %v10665_v32  ;;  %3580 = vmatprep.mubr.f32.mxu1 %v9989_v27  ;;  %10682 = vst [vmem:[#allocation146_spill] sm:$0xff] %v8647_v33  ;;  %10683 = vst [vmem:[#allocation147_spill] sm:$0xff] %v8650_v58  ;;  %v8653_v32 = vld [vmem:[#allocation8] sm:$0xff] }
 0x722   :  { %3510 = vmatmul.mubr.f32.vlgmr.msra.gmra.mxu0 %v8499_v26  ;;  %3581 = vmatmul.mubr.f32.vlgmr.msra.gmra.mxu1 %v8499_v26  ;;  %10684 = vst [vmem:[#allocation148_spill] sm:$0xff] %v8653_v32 }
 0x723   :  { %3622 = vmatprep.subr.mxu0 %v8507_v44  ;;  %3693 = vmatprep.subr.mxu1 %v8510_v2 }
 0x724   :  { %3623 = vmatpush1.msra.mxu0 %v8249_v43  ;;  %3694 = vmatpush1.msra.mxu1 %v10666_v29  ;;  %v10676_v43 = vld [vmem:[#allocation140_spill] sm:$0xff]  ;;  %v8657_v29 = vld [vmem:[#allocation8 + $0x10] sm:$0xff] }
 0x725   :  { %3624 = vmatprep.subr.mxu0 %v10667_v45  ;;  %3695 = vmatprep.subr.mxu1 %v10668_v21  ;;  %10685 = vst [vmem:[#allocation153_spill] sm:$0xff] %v8657_v29  ;;  %v8663_v45 = vld [vmem:[#allocation11 + $0x1e8] sm:$0xff]  ;;  %v8666_v21 = vld [vmem:[#allocation11 + $0x1f8] sm:$0xff] }
 0x726   :  { %3625 = vmatpush1.msra.mxu0 %v10669_v23  ;;  %3696 = vmatpush1.msra.mxu1 %v10670_v19  ;;  %10686 = vst [vmem:[#allocation161_spill] sm:$0xff] %v8663_v45  ;;  %10687 = vst [vmem:[#allocation163_spill] sm:$0xff] %v8666_v21  ;;  %v8669_v23 = vld [vmem:[#allocation11 + $0x1e0] sm:$0xff]  ;;  %v8672_v19 = vld [vmem:[#allocation11 + $0x1f0] sm:$0xff] }
 0x727   :  { %3626 = vmatprep.subr.mxu0 %v10671_v38  ;;  %3697 = vmatprep.subr.mxu1 %v10672_v0  ;;  %10688 = vst [vmem:[#allocation164_spill] sm:$0xff] %v8669_v23  ;;  %10689 = vst [vmem:[#allocation162_spill] sm:$0xff] %v8672_v19  ;;  %v8675_v38 = vld [vmem:[#allocation11 + $0x1c8] sm:$0xff]  ;;  %v8681_v0 = vld [vmem:[#allocation11 + $0x1c0] sm:$0xff] }
 0x728   :  { %3627 = vmatpush1.msra.mxu0 %v10673_v17  ;;  %3698 = vmatpush1.msra.mxu1 %v10674_v16  ;;  %10690 = vst [vmem:[#allocation155_spill] sm:$0xff] %v8675_v38  ;;  %10692 = vst [vmem:[#allocation154_spill] sm:$0xff] %v8681_v0  ;;  %v8684_v17 = vld [vmem:[#allocation11 + $0x1d0] sm:$0xff]  ;;  %v8687_v16 = vld [vmem:[#allocation11 + $0x1a8] sm:$0xff] }
 0x729   :  { %3628 = vmatprep.subr.mxu0 %v10675_v25  ;;  %3699 = vmatprep.subr.mxu1 %v10676_v43  ;;  %10693 = vst [vmem:[#allocation20_spill] sm:$0xff] %v8684_v17  ;;  %10694 = vst [vmem:[#allocation21_spill] sm:$0xff] %v8687_v16  ;;  %v8690_v25 = vld [vmem:[#allocation11 + $0x1b8] sm:$0xff]  ;;  %v8693_v43 = vld [vmem:[#allocation11 + $0x1a0] sm:$0xff] }
 0x72a   :  { %3629 = vmatpush1.msra.mxu0 %v10677_v10  ;;  %3700 = vmatpush1.msra.mxu1 %v10678_v15  ;;  %10695 = vst [vmem:[#allocation22_spill] sm:$0xff] %v8690_v25  ;;  %10696 = vst [vmem:[#allocation23_spill] sm:$0xff] %v8693_v43  ;;  %v8696_v10 = vld [vmem:[#allocation11 + $0x1b0] sm:$0xff]  ;;  %v8699_v15 = vld [vmem:[#allocation11 + $0x188] sm:$0xff] }
 0x72b   :  { %3630 = vmatprep.subr.mxu0 %v8291_v54  ;;  %3701 = vmatprep.subr.mxu1 %v8294_v40  ;;  %v8542_v40 = vld [vmem:[#allocation8 + $0x138] sm:$0xff]  ;;  %v8548_v54 = vld [vmem:[#allocation8 + $0x130] sm:$0xff]  ;;  %10697 = vst [vmem:[#allocation24_spill] sm:$0xff] %v8696_v10  ;;  %10698 = vst [vmem:[#allocation25_spill] sm:$0xff] %v8699_v15 }
 0x72c   :  { %3631 = vmatpush1.msra.mxu0 %v8297_v37  ;;  %3702 = vmatpush1.msra.mxu1 %v8300_v56  ;;  %v8545_v37 = vld [vmem:[#allocation8 + $0x120] sm:$0xff]  ;;  %v8554_v56 = vld [vmem:[#allocation8 + $0x118] sm:$0xff] }
 0x72d   :  { %3632 = vmatprep.subr.mxu0 %v8303_v5  ;;  %3703 = vmatprep.subr.mxu1 %v8306_v42  ;;  %v8551_v42 = vld [vmem:[#allocation8 + $0x108] sm:$0xff]  ;;  %v8557_v5 = vld [vmem:[#allocation8 + $0x100] sm:$0xff] }
 0x72e   :  { %3633 = vmatpush1.msra.mxu0 %v8533_v22  ;;  %3704 = vmatpush1.msra.mxu1 %v8536_v18 }
 0x72f   :  { %3634 = vmatprep.subr.mxu0 %v8539_v3  ;;  %3705 = vmatprep.subr.mxu1 %v8542_v40 }
 0x730   :  { %3635 = vmatpush1.msra.mxu0 %v8545_v37  ;;  %3706 = vmatpush1.msra.mxu1 %v8548_v54 }
 0x731   :  { %3636 = vmatprep.subr.mxu0 %v8551_v42  ;;  %3707 = vmatprep.subr.mxu1 %v8554_v56 }
 0x732   :  { %3637 = vmatpush1.msra.mxu0 %v8557_v5  ;;  %3708 = vmatpush1.msra.mxu1 %v8560_v41 }
 0x733   :  { %3638 = vmatprep.subr.mxu0 %v8563_v57  ;;  %3709 = vmatprep.subr.mxu1 %v8566_v30 }
 0x734   :  { %3639 = vmatpush1.msra.mxu0 %v8569_v14  ;;  %3710 = vmatpush1.msra.mxu1 %v8572_v31 }
 0x735   :  { %3640 = vmatprep.subr.mxu0 %v8575_v48  ;;  %3711 = vmatprep.subr.mxu1 %v8578_v50 }
 0x736   :  { %3641 = vmatpush1.msra.mxu0 %v8581_v51  ;;  %3712 = vmatpush1.msra.mxu1 %v8584_v52 }
 0x737   :  { %3642 = vmatprep.subr.mxu0 %v8587_v6  ;;  %3713 = vmatprep.subr.mxu1 %v8590_v60 }
 0x738   :  { %3643 = vmatpush1.msra.mxu0 %v8593_v9  ;;  %3714 = vmatpush1.msra.mxu1 %v8596_v4 }
 0x739   :  { %3644 = vmatprep.subr.mxu0 %v8599_v36  ;;  %3715 = vmatprep.subr.mxu1 %v8602_v7 }
 0x73a   :  { %3645 = vmatpush1.msra.mxu0 %v8605_v59  ;;  %3716 = vmatpush1.msra.mxu1 %v8608_v62 }
 0x73b   :  { %3646 = vmatprep.subr.mxu0 %v8611_v24  ;;  %3717 = vmatprep.subr.mxu1 %v8614_v53 }
 0x73c   :  { %3647 = vmatpush1.msra.mxu0 %v8617_v49  ;;  %3718 = vmatpush1.msra.mxu1 %v8620_v28 }
 0x73d   :  { %3648 = vmatprep.subr.mxu0 %v8623_v47  ;;  %3719 = vmatprep.subr.mxu1 %v8626_v20 }
 0x73e   :  { %3649 = vmatpush1.msra.mxu0 %v8629_v13  ;;  %3720 = vmatpush1.msra.mxu1 %v8632_v12 }
 0x73f   :  { %3650 = vmatprep.subr.mxu0 %v8635_v46  ;;  %3721 = vmatprep.subr.mxu1 %v8638_v11 }
 0x740   :  { %3651 = vmatpush1.msra.mxu0 %v8641_v61  ;;  %3722 = vmatpush1.msra.mxu1 %v8644_v55 }
 0x741   :  { %3652 = vmatprep.subr.mxu0 %v8647_v33  ;;  %3723 = vmatprep.subr.mxu1 %v8650_v58 }
 0x742   :  { %3653 = vmatpush1.msra.mxu0 %v8653_v32  ;;  %3686 = vmatprep.mubr.f32.mxu0 %v9989_v27 }
 0x743   :  { %3724 = vmatpush1.msra.mxu1 %v8657_v29  ;;  %3757 = vmatprep.mubr.f32.mxu1 %v9989_v27 }
 0x744   :  { %3687 = vmatmul.mubr.f32.vlgmr.msra.gmra.mxu0 %v8499_v26  ;;  %3758 = vmatmul.mubr.f32.vlgmr.msra.gmra.mxu1 %v8499_v26  ;;  %v8678_v26 = vld [vmem:[#allocation11 + $0x1d8] sm:$0xff] }
 0x745   :  { %3792 = vmatprep.subr.mxu0 %v8663_v45  ;;  %3863 = vmatprep.subr.mxu1 %v8666_v21  ;;  %10691 = vst [vmem:[#allocation156_spill] sm:$0xff] %v8678_v26 }
 0x746   :  { %3793 = vmatpush1.msra.mxu0 %v8669_v23  ;;  %3864 = vmatpush1.msra.mxu1 %v8672_v19 }
 0x747   :  { %3794 = vmatprep.subr.mxu0 %v8675_v38  ;;  %3865 = vmatprep.subr.mxu1 %v8678_v26 }
 0x748   :  { %3795 = vmatpush1.msra.mxu0 %v8681_v0  ;;  %3866 = vmatpush1.msra.mxu1 %v8684_v17  ;;  %v8702_v17 = vld [vmem:[#allocation11 + $0x198] sm:$0xff] }
 0x749   :  { %3796 = vmatprep.subr.mxu0 %v8687_v16  ;;  %3867 = vmatprep.subr.mxu1 %v8690_v25  ;;  %10699 = vst [vmem:[#allocation26_spill] sm:$0xff] %v8702_v17  ;;  %v8705_v16 = vld [vmem:[#allocation11 + $0x180] sm:$0xff]  ;;  %v8708_v25 = vld [vmem:[#allocation11 + $0x190] sm:$0xff] }
 0x74a   :  { %3797 = vmatpush1.msra.mxu0 %v8693_v43  ;;  %3868 = vmatpush1.msra.mxu1 %v8696_v10  ;;  %10700 = vst [vmem:[#allocation27_spill] sm:$0xff] %v8705_v16  ;;  %10701 = vst [vmem:[#allocation28_spill] sm:$0xff] %v8708_v25  ;;  %v8711_v43 = vld [vmem:[#allocation11 + $0x168] sm:$0xff]  ;;  %v8714_v10 = vld [vmem:[#allocation11 + $0x178] sm:$0xff] }
 0x74b   :  { %3798 = vmatprep.subr.mxu0 %v8699_v15  ;;  %3869 = vmatprep.subr.mxu1 %v8702_v17  ;;  %10702 = vst [vmem:[#allocation29_spill] sm:$0xff] %v8711_v43  ;;  %10703 = vst [vmem:[#allocation30_spill] sm:$0xff] %v8714_v10  ;;  %v8717_v15 = vld [vmem:[#allocation11 + $0x160] sm:$0xff]  ;;  %v8720_v17 = vld [vmem:[#allocation11 + $0x170] sm:$0xff] }
 0x74c   :  { %3799 = vmatpush1.msra.mxu0 %v8705_v16  ;;  %3870 = vmatpush1.msra.mxu1 %v8708_v25  ;;  %10704 = vst [vmem:[#allocation31_spill] sm:$0xff] %v8717_v15  ;;  %10705 = vst [vmem:[#allocation32_spill] sm:$0xff] %v8720_v17  ;;  %v8723_v16 = vld [vmem:[#allocation11 + $0x148] sm:$0xff]  ;;  %v8726_v25 = vld [vmem:[#allocation11 + $0x158] sm:$0xff] }
 0x74d   :  { %3800 = vmatprep.subr.mxu0 %v8711_v43  ;;  %3871 = vmatprep.subr.mxu1 %v8714_v10  ;;  %10706 = vst [vmem:[#allocation33_spill] sm:$0xff] %v8723_v16  ;;  %10707 = vst [vmem:[#allocation34_spill] sm:$0xff] %v8726_v25  ;;  %v8729_v43 = vld [vmem:[#allocation11 + $0x140] sm:$0xff]  ;;  %v8732_v10 = vld [vmem:[#allocation11 + $0x150] sm:$0xff] }
 0x74e   :  { %3801 = vmatpush1.msra.mxu0 %v8717_v15  ;;  %3872 = vmatpush1.msra.mxu1 %v8720_v17  ;;  %10708 = vst [vmem:[#allocation35_spill] sm:$0xff] %v8729_v43  ;;  %10709 = vst [vmem:[#allocation36_spill] sm:$0xff] %v8732_v10  ;;  %v8735_v15 = vld [vmem:[#allocation11 + $0x128] sm:$0xff]  ;;  %v8738_v17 = vld [vmem:[#allocation11 + $0x138] sm:$0xff] }
 0x74f   :  { %3802 = vmatprep.subr.mxu0 %v8723_v16  ;;  %3873 = vmatprep.subr.mxu1 %v8726_v25  ;;  %10710 = vst [vmem:[#allocation37_spill] sm:$0xff] %v8735_v15  ;;  %10711 = vst [vmem:[#allocation38_spill] sm:$0xff] %v8738_v17  ;;  %v8741_v16 = vld [vmem:[#allocation11 + $0x120] sm:$0xff]  ;;  %v8744_v25 = vld [vmem:[#allocation11 + $0x130] sm:$0xff] }
 0x750   :  { %3803 = vmatpush1.msra.mxu0 %v8729_v43  ;;  %3874 = vmatpush1.msra.mxu1 %v8732_v10  ;;  %10712 = vst [vmem:[#allocation39_spill] sm:$0xff] %v8741_v16  ;;  %10713 = vst [vmem:[#allocation40_spill] sm:$0xff] %v8744_v25  ;;  %v8747_v43 = vld [vmem:[#allocation11 + $0x108] sm:$0xff]  ;;  %v8750_v10 = vld [vmem:[#allocation11 + $0x118] sm:$0xff] }
 0x751   :  { %3804 = vmatprep.subr.mxu0 %v8735_v15  ;;  %3875 = vmatprep.subr.mxu1 %v8738_v17  ;;  %10714 = vst [vmem:[#allocation41_spill] sm:$0xff] %v8747_v43  ;;  %10715 = vst [vmem:[#allocation42_spill] sm:$0xff] %v8750_v10  ;;  %v8753_v15 = vld [vmem:[#allocation11 + $0x100] sm:$0xff]  ;;  %v8756_v17 = vld [vmem:[#allocation11 + $0x110] sm:$0xff] }
 0x752   :  { %3805 = vmatpush1.msra.mxu0 %v8741_v16  ;;  %3876 = vmatpush1.msra.mxu1 %v8744_v25  ;;  %10716 = vst [vmem:[#allocation43_spill] sm:$0xff] %v8753_v15  ;;  %10717 = vst [vmem:[#allocation44_spill] sm:$0xff] %v8756_v17  ;;  %v8759_v16 = vld [vmem:[#allocation11 + $0xe8] sm:$0xff]  ;;  %v8762_v25 = vld [vmem:[#allocation11 + $0xf8] sm:$0xff] }
 0x753   :  { %3806 = vmatprep.subr.mxu0 %v8747_v43  ;;  %3877 = vmatprep.subr.mxu1 %v8750_v10  ;;  %10718 = vst [vmem:[#allocation45_spill] sm:$0xff] %v8759_v16  ;;  %10719 = vst [vmem:[#allocation46_spill] sm:$0xff] %v8762_v25  ;;  %v8765_v43 = vld [vmem:[#allocation11 + $0xe0] sm:$0xff]  ;;  %v8768_v10 = vld [vmem:[#allocation11 + $0xf0] sm:$0xff] }
 0x754   :  { %3807 = vmatpush1.msra.mxu0 %v8753_v15  ;;  %3878 = vmatpush1.msra.mxu1 %v8756_v17  ;;  %10720 = vst [vmem:[#allocation47_spill] sm:$0xff] %v8765_v43  ;;  %10721 = vst [vmem:[#allocation48_spill] sm:$0xff] %v8768_v10  ;;  %v8771_v15 = vld [vmem:[#allocation11 + $0xc8] sm:$0xff]  ;;  %v8774_v17 = vld [vmem:[#allocation11 + $0xd8] sm:$0xff] }
 0x755   :  { %3808 = vmatprep.subr.mxu0 %v8759_v16  ;;  %3879 = vmatprep.subr.mxu1 %v8762_v25  ;;  %10722 = vst [vmem:[#allocation49_spill] sm:$0xff] %v8771_v15  ;;  %10723 = vst [vmem:[#allocation50_spill] sm:$0xff] %v8774_v17  ;;  %v8777_v16 = vld [vmem:[#allocation11 + $0xc0] sm:$0xff]  ;;  %v8780_v25 = vld [vmem:[#allocation11 + $0xd0] sm:$0xff] }
 0x756   :  { %3809 = vmatpush1.msra.mxu0 %v8765_v43  ;;  %3880 = vmatpush1.msra.mxu1 %v8768_v10  ;;  %10724 = vst [vmem:[#allocation51_spill] sm:$0xff] %v8777_v16  ;;  %10725 = vst [vmem:[#allocation52_spill] sm:$0xff] %v8780_v25  ;;  %v8783_v43 = vld [vmem:[#allocation11 + $0xa8] sm:$0xff]  ;;  %v8786_v10 = vld [vmem:[#allocation11 + $0xb8] sm:$0xff] }
 0x757   :  { %3810 = vmatprep.subr.mxu0 %v8771_v15  ;;  %3881 = vmatprep.subr.mxu1 %v8774_v17  ;;  %10726 = vst [vmem:[#allocation53_spill] sm:$0xff] %v8783_v43  ;;  %10727 = vst [vmem:[#allocation54_spill] sm:$0xff] %v8786_v10  ;;  %v8789_v15 = vld [vmem:[#allocation11 + $0xa0] sm:$0xff]  ;;  %v8792_v17 = vld [vmem:[#allocation11 + $0xb0] sm:$0xff] }
 0x758   :  { %3811 = vmatpush1.msra.mxu0 %v8777_v16  ;;  %3882 = vmatpush1.msra.mxu1 %v8780_v25  ;;  %10728 = vst [vmem:[#allocation55_spill] sm:$0xff] %v8789_v15  ;;  %10729 = vst [vmem:[#allocation56_spill] sm:$0xff] %v8792_v17  ;;  %v8795_v16 = vld [vmem:[#allocation11 + $0x88] sm:$0xff]  ;;  %v8798_v25 = vld [vmem:[#allocation11 + $0x98] sm:$0xff] }
 0x759   :  { %3812 = vmatprep.subr.mxu0 %v8783_v43  ;;  %3883 = vmatprep.subr.mxu1 %v8786_v10  ;;  %10730 = vst [vmem:[#allocation57_spill] sm:$0xff] %v8795_v16  ;;  %10731 = vst [vmem:[#allocation58_spill] sm:$0xff] %v8798_v25  ;;  %v8801_v43 = vld [vmem:[#allocation11 + $0x80] sm:$0xff]  ;;  %v8804_v10 = vld [vmem:[#allocation11 + $0x90] sm:$0xff] }
 0x75a   :  { %3813 = vmatpush1.msra.mxu0 %v8789_v15  ;;  %3884 = vmatpush1.msra.mxu1 %v8792_v17  ;;  %10732 = vst [vmem:[#allocation59_spill] sm:$0xff] %v8801_v43  ;;  %10733 = vst [vmem:[#allocation60_spill] sm:$0xff] %v8804_v10  ;;  %v8807_v15 = vld [vmem:[#allocation11 + $0x68] sm:$0xff]  ;;  %v8810_v17 = vld [vmem:[#allocation11 + $0x78] sm:$0xff] }
 0x75b   :  { %3814 = vmatprep.subr.mxu0 %v8795_v16  ;;  %3885 = vmatprep.subr.mxu1 %v8798_v25  ;;  %10734 = vst [vmem:[#allocation61_spill] sm:$0xff] %v8807_v15  ;;  %10735 = vst [vmem:[#allocation62_spill] sm:$0xff] %v8810_v17  ;;  %v8813_v16 = vld [vmem:[#allocation11 + $0x60] sm:$0xff]  ;;  %v8816_v25 = vld [vmem:[#allocation11 + $0x70] sm:$0xff] }
 0x75c   :  { %3815 = vmatpush1.msra.mxu0 %v8801_v43  ;;  %3886 = vmatpush1.msra.mxu1 %v8804_v10  ;;  %10736 = vst [vmem:[#allocation63_spill] sm:$0xff] %v8813_v16  ;;  %10737 = vst [vmem:[#allocation64_spill] sm:$0xff] %v8816_v25  ;;  %v8819_v43 = vld [vmem:[#allocation11 + $0x48] sm:$0xff]  ;;  %v8822_v10 = vld [vmem:[#allocation11 + $0x58] sm:$0xff] }
 0x75d   :  { %3816 = vmatprep.subr.mxu0 %v8807_v15  ;;  %3887 = vmatprep.subr.mxu1 %v8810_v17  ;;  %10738 = vst [vmem:[#allocation65_spill] sm:$0xff] %v8819_v43  ;;  %10739 = vst [vmem:[#allocation66_spill] sm:$0xff] %v8822_v10  ;;  %v8825_v15 = vld [vmem:[#allocation11 + $0x40] sm:$0xff]  ;;  %v8828_v17 = vld [vmem:[#allocation11 + $0x50] sm:$0xff] }
 0x75e   :  { %3817 = vmatpush1.msra.mxu0 %v8813_v16  ;;  %3888 = vmatpush1.msra.mxu1 %v8816_v25  ;;  %10740 = vst [vmem:[#allocation67_spill] sm:$0xff] %v8825_v15  ;;  %10741 = vst [vmem:[#allocation68_spill] sm:$0xff] %v8828_v17  ;;  %v8831_v16 = vld [vmem:[#allocation11 + $0x28] sm:$0xff]  ;;  %v8834_v25 = vld [vmem:[#allocation11 + $0x38] sm:$0xff] }
 0x75f   :  { %3818 = vmatprep.subr.mxu0 %v8819_v43  ;;  %3889 = vmatprep.subr.mxu1 %v8822_v10  ;;  %10742 = vst [vmem:[#allocation69_spill] sm:$0xff] %v8831_v16  ;;  %10743 = vst [vmem:[#allocation70_spill] sm:$0xff] %v8834_v25  ;;  %v8837_v43 = vld [vmem:[#allocation11 + $0x20] sm:$0xff]  ;;  %v8840_v10 = vld [vmem:[#allocation11 + $0x30] sm:$0xff] }
 0x760   :  { %3819 = vmatpush1.msra.mxu0 %v8825_v15  ;;  %3890 = vmatpush1.msra.mxu1 %v8828_v17  ;;  %10744 = vst [vmem:[#allocation71_spill] sm:$0xff] %v8837_v43  ;;  %10745 = vst [vmem:[#allocation72_spill] sm:$0xff] %v8840_v10  ;;  %v8843_v15 = vld [vmem:[#allocation11 + $0x8] sm:$0xff]  ;;  %v8846_v17 = vld [vmem:[#allocation11 + $0x18] sm:$0xff] }
 0x761   :  { %3820 = vmatprep.subr.mxu0 %v8831_v16  ;;  %3891 = vmatprep.subr.mxu1 %v8834_v25  ;;  %10746 = vst [vmem:[#allocation73_spill] sm:$0xff] %v8843_v15  ;;  %10747 = vst [vmem:[#allocation74_spill] sm:$0xff] %v8846_v17  ;;  %v8849_v16 = vld [vmem:[#allocation11] sm:$0xff]  ;;  %v8852_v25 = vld [vmem:[#allocation11 + $0x10] sm:$0xff] }
 0x762   :  { %3821 = vmatpush1.msra.mxu0 %v8837_v43  ;;  %3892 = vmatpush1.msra.mxu1 %v8840_v10  ;;  %10748 = vst [vmem:[#allocation75_spill] sm:$0xff] %v8849_v16  ;;  %10749 = vst [vmem:[#allocation76_spill] sm:$0xff] %v8852_v25  ;;  %v8857_v10 = vld [vmem:[#allocation9 + $0x1e8] sm:$0xff] }
 0x763   :  { %3822 = vmatprep.subr.mxu0 %v8843_v15  ;;  %3893 = vmatprep.subr.mxu1 %v8846_v17  ;;  %10750 = vst [vmem:[#allocation77_spill] sm:$0xff] %v8857_v10  ;;  %v8860_v15 = vld [vmem:[#allocation9 + $0x1f8] sm:$0xff] }
 0x764   :  { %3823 = vmatpush1.msra.mxu0 %v8849_v16  ;;  %3894 = vmatpush1.msra.mxu1 %v8852_v25  ;;  %10751 = vst [vmem:[#allocation78_spill] sm:$0xff] %v8860_v15 }
 0x765   :  { %3856 = vmatprep.mubr.f32.mxu0 %v9989_v27  ;;  %3927 = vmatprep.mubr.f32.mxu1 %v9989_v27 }
 0x766   :  { %3934 = vmatprep.subr.mxu0 %v8857_v10  ;;  %4005 = vmatprep.subr.mxu1 %v8860_v15 }
 0x7c1   :  { %v3369_v17 = vpop.f32.mrf.mxu0  ;;  %v3440_v43 = vpop.f32.mrf.mxu1 }
 0x7c3   :  { %v3371_v0 = vpop.f32.mrf.mxu0  ;;  %v3442_v26 = vpop.f32.mrf.mxu1 }
 0x7e2   :  { %v3511_v16 = vpop.f32.mrf.mxu0  ;;  %v3582_v23 = vpop.f32.mrf.mxu1 }
 0x7e3   :  { %v3512_v38 = vadd.f32 %v3511_v16, %v3369_v17  ;;  %v3583_v33 = vadd.f32 %v3582_v23, %v3440_v43  ;;  %v10753_v23 = vld [vmem:[#allocation171_spill] sm:$0xff] }
 0x7e4   :  { %v3513_v19 = vpop.f32.mrf.mxu0  ;;  %v3584_v32 = vpop.f32.mrf.mxu1 }
 0x7e5   :  { %v3587_v25 = vadd.f32 %v3512_v38, %v6762_v63  ;;  %v3514_v21 = vadd.f32 %v3513_v19, %v3371_v0  ;;  %v3585_v58 = vadd.f32 %v3584_v32, %v3442_v26  ;;  %v3589_v17 = vadd.f32 %v3583_v33, %v6777_v39 }
 0x7e7   :  { %v4745_v45 = vmul.f32 -1.442695, %v3587_v25  ;;  %v3588_v29 = vadd.f32 %v3514_v21, %v6766_v8  ;;  %v3590_v15 = vadd.f32 %v3585_v58, %v6772_v34 }
 0x7e9   :  { %5002 = vpow2.f32 %v4745_v45  ;;  %v4746_v10 = vmul.f32 -1.442695, %v3588_v29  ;;  %v4747_v55 = vmul.f32 -1.442695, %v3590_v15  ;;  %v10752_v29 = vld [vmem:[#allocation169_spill] sm:$0xff] }
 0x7eb   :  { %5004 = vpow2.f32 %v4746_v10 }
 0x7ec   :  { %5006 = vpow2.f32 %v4747_v55 }
 0x7f6   :  { %v5003_v61 = vpop.eup %5002 }
 0x7f7   :  { %v3594_v16 = vadd.f32 1.0, %v5003_v61 }
 0x7f8   :  { %v5005_v11 = vpop.eup %5004 }
 0x7f9   :  { %5008 = vrcp.f32 %v3594_v16  ;;  %v3600_v19 = vadd.f32 1.0, %v5005_v11  ;;  %v5007_v45 = vpop.eup %5006  ;;  %v10754_v16 = vld [vmem:[#allocation172_spill] sm:$0xff] }
 0x7fa   :  { %5010 = vtanh.f32 %v3589_v17  ;;  %v3607_v10 = vadd.f32 1.0, %v5007_v45 }
 0x7fb   :  { %5012 = vrcp.f32 %v3600_v19 }
 0x804   :  { %v3688_v21 = vpop.f32.mrf.mxu0  ;;  %v3759_v55 = vpop.f32.mrf.mxu1 }
 0x805   :  { %v3764_v38 = vadd.f32 %v3688_v21, %v10752_v29  ;;  %v10755_v21 = vld [vmem:[#allocation170_spill] sm:$0xff] }
 0x806   :  { %v5009_v0 = vpop.eup %5008  ;;  %v3690_v32 = vpop.f32.mrf.mxu0  ;;  %v3766_v29 = vadd.f32 %v3759_v55, %v10755_v21  ;;  %v8890_v55 = vld [vmem:[#allocation9 + $0x1d0] sm:$0xff]  ;;  %v8905_v21 = vld [vmem:[#allocation9 + $0x188] sm:$0xff] }
 0x807   :  { %v5011_v26 = vpop.eup %5010  ;;  %v4748_v58 = vmul.f32 -1.442695, %v3764_v38  ;;  %v3765_v25 = vadd.f32 %v3690_v32, %v10753_v23  ;;  %v3761_v17 = vpop.f32.mrf.mxu1  ;;  %10757 = vst [vmem:[#allocation80_spill] sm:$0xff] %v8905_v21 }
 0x808   :  { %v5013_v43 = vpop.eup %5012  ;;  %v3611_v33 = vmul.f32 %v5011_v26, %v5009_v0  ;;  %v3767_v19 = vadd.f32 %v3761_v17, %v10754_v16  ;;  %v8896_v17 = vld [vmem:[#allocation9 + $0x1b8] sm:$0xff]  ;;  %v8899_v16 = vld [vmem:[#allocation9 + $0x1a0] sm:$0xff] }
 0x809   :  { %v3610_v61 = vmul.f32 %v5013_v43, %v8430_v1  ;;  %5014 = vpow2.f32 %v4748_v58  ;;  %v4749_v11 = vmul.f32 -1.442695, %v3765_v25  ;;  %v8875_v25 = vld [vmem:[#allocation9 + $0x1e0] sm:$0xff]  ;;  %v8878_v43 = vld [vmem:[#allocation9 + $0x1f0] sm:$0xff] }
 0x80a   :  { %v4750_v38 = vmul.f32 -1.442695, %v3767_v19  ;;  %v8902_v19 = vld [vmem:[#allocation9 + $0x1b0] sm:$0xff] }
 0x80b   :  { %5016 = vpow2.f32 %v4749_v11  ;;  %v8870_v15 = vadd.f32 %v3611_v33, %v3610_v61  ;;  %v8884_v33 = vld [vmem:[#allocation9 + $0x1d8] sm:$0xff]  ;;  %v8887_v61 = vld [vmem:[#allocation9 + $0x1c0] sm:$0xff]  ;;  %v8893_v11 = vld [vmem:[#allocation9 + $0x1a8] sm:$0xff]  ;;  %10756 = vst [vmem:[#allocation79_spill] sm:$0xff] %v8902_v19 }
 0x80c   :  { %5018 = vrcp.f32 %v3607_v10  ;;  %v8881_v10 = vld [vmem:[#allocation9 + $0x1c8] sm:$0xff] }
 0x80d   :  { %5020 = vtanh.f32 %v8870_v15 }
 0x80e   :  { %5022 = vtanh.f32 %v3766_v29  ;;  %v8908_v29 = vld [vmem:[#allocation9 + $0x198] sm:$0xff] }
 0x80f   :  { %5024 = vpow2.f32 %v4750_v38  ;;  %10758 = vst [vmem:[#allocation81_spill] sm:$0xff] %v8908_v29 }
 0x816   :  { %v5015_v32 = vpop.eup %5014 }
 0x817   :  { %v3771_v45 = vadd.f32 1.0, %v5015_v32  ;;  %v8911_v32 = vld [vmem:[#allocation9 + $0x180] sm:$0xff] }
 0x818   :  { %v5017_v0 = vpop.eup %5016  ;;  %10759 = vst [vmem:[#allocation82_spill] sm:$0xff] %v8911_v32 }
 0x819   :  { %v5019_v1 = vpop.eup %5018  ;;  %5026 = vrcp.f32 %v3771_v45  ;;  %v3777_v26 = vadd.f32 1.0, %v5017_v0  ;;  %v8914_v45 = vld [vmem:[#allocation9 + $0x190] sm:$0xff] }
 0x81a   :  { %v5021_v58 = vpop.eup %5020  ;;  %10760 = vst [vmem:[#allocation83_spill] sm:$0xff] %v8914_v45 }
 0x81b   :  { %5028 = vrcp.f32 %v3777_v26  ;;  %v3614_v23 = vmul.f32 %v5021_v58, %v5019_v1  ;;  %v5023_v38 = vpop.eup %5022  ;;  %v8917_v1 = vld [vmem:[#allocation9 + $0x168] sm:$0xff]  ;;  %v8920_v26 = vld [vmem:[#allocation9 + $0x178] sm:$0xff] }
 0x81c   :  { %v5025_v0 = vpop.eup %5024  ;;  %10761 = vst [vmem:[#allocation84_spill] sm:$0xff] %v8917_v1  ;;  %10762 = vst [vmem:[#allocation85_spill] sm:$0xff] %v8920_v26 }
 0x81d   :  { %3857 = vmatmul.mubr.f32.vlgmr.msra.gmra.mxu0 %v3614_v23  ;;  %3928 = vmatmul.mubr.f32.vlgmr.msra.gmra.mxu1 %v3614_v23  ;;  %v8923_v23 = vld [vmem:[#allocation9 + $0x160] sm:$0xff] }
 0x81e   :  { %3935 = vmatpush1.msra.mxu0 %v8875_v25  ;;  %4006 = vmatpush1.msra.mxu1 %v8878_v43  ;;  %10763 = vst [vmem:[#allocation86_spill] sm:$0xff] %v8923_v23 }
 0x81f   :  { %3936 = vmatprep.subr.mxu0 %v8881_v10  ;;  %4007 = vmatprep.subr.mxu1 %v8884_v33 }
 0x820   :  { %3937 = vmatpush1.msra.mxu0 %v8887_v61  ;;  %4008 = vmatpush1.msra.mxu1 %v8890_v55 }
 0x821   :  { %3938 = vmatprep.subr.mxu0 %v8893_v11  ;;  %4009 = vmatprep.subr.mxu1 %v8896_v17 }
 0x822   :  { %3939 = vmatpush1.msra.mxu0 %v8899_v16  ;;  %4010 = vmatpush1.msra.mxu1 %v8902_v19  ;;  %v8935_v19 = vld [vmem:[#allocation9 + $0x140] sm:$0xff] }
 0x823   :  { %3940 = vmatprep.subr.mxu0 %v8905_v21  ;;  %4011 = vmatprep.subr.mxu1 %v8908_v29  ;;  %v8926_v29 = vld [vmem:[#allocation9 + $0x170] sm:$0xff]  ;;  %v8932_v21 = vld [vmem:[#allocation9 + $0x158] sm:$0xff]  ;;  %10766 = vst [vmem:[#allocation152_spill] sm:$0xff] %v8935_v19 }
 0x824   :  { %3941 = vmatpush1.msra.mxu0 %v8911_v32  ;;  %4012 = vmatpush1.msra.mxu1 %v8914_v45  ;;  %v8929_v45 = vld [vmem:[#allocation9 + $0x148] sm:$0xff]  ;;  %10765 = vst [vmem:[#allocation151_spill] sm:$0xff] %v8932_v21 }
 0x825   :  { %3942 = vmatprep.subr.mxu0 %v8917_v1  ;;  %4013 = vmatprep.subr.mxu1 %v8920_v26  ;;  %10764 = vst [vmem:[#allocation149_spill] sm:$0xff] %v8929_v45  ;;  %v3784_v26 = vadd.f32 1.0, %v5025_v0  ;;  %v8951_v0 = vld [vmem:[#allocation9 + $0x130] sm:$0xff] }
 0x826   :  { %v5027_v58 = vpop.eup %5026  ;;  %3943 = vmatpush1.msra.mxu0 %v8923_v23  ;;  %4014 = vmatpush1.msra.mxu1 %v8926_v29  ;;  %v8938_v23 = vld [vmem:[#allocation9 + $0x150] sm:$0xff]  ;;  %10771 = vst [vmem:[#allocation150_spill] sm:$0xff] %v8951_v0 }
 0x827   :  { %v3788_v32 = vmul.f32 %v5027_v58, %v5023_v38  ;;  %3944 = vmatprep.subr.mxu0 %v8929_v45  ;;  %4015 = vmatprep.subr.mxu1 %v8932_v21  ;;  %10767 = vst [vmem:[#allocation165_spill] sm:$0xff] %v8938_v23  ;;  %v8942_v58 = vld [vmem:[#allocation9 + $0x128] sm:$0xff]  ;;  %v8945_v45 = vld [vmem:[#allocation9 + $0x138] sm:$0xff]  ;;  %v8948_v21 = vld [vmem:[#allocation9 + $0x120] sm:$0xff]  ;;  %5030 = vrcp.f32 %v3784_v26 }
 0x828   :  { %v5029_v1 = vpop.eup %5028  ;;  %3945 = vmatpush1.msra.mxu0 %v8935_v19  ;;  %4016 = vmatpush1.msra.mxu1 %v8938_v23  ;;  %10768 = vst [vmem:[#allocation167_spill] sm:$0xff] %v8942_v58  ;;  %10769 = vst [vmem:[#allocation168_spill] sm:$0xff] %v8945_v45  ;;  %v8956_v23 = vld [vmem:[#allocation9 + $0x108] sm:$0xff]  ;;  %v8978_v26 = vld [vmem:[#allocation9 + $0xf0] sm:$0xff] }
 0x829   :  { %v3787_v38 = vmul.f32 %v5029_v1, %v8462_v35  ;;  %3946 = vmatprep.subr.mxu0 %v8942_v58  ;;  %4017 = vmatprep.subr.mxu1 %v8945_v45  ;;  %10770 = vst [vmem:[#allocation166_spill] sm:$0xff] %v8948_v21  ;;  %10772 = vst [vmem:[#allocation87_spill] sm:$0xff] %v8956_v23  ;;  %v8959_v35 = vld [vmem:[#allocation9 + $0x118] sm:$0xff]  ;;  %v8962_v1 = vld [vmem:[#allocation9 + $0x100] sm:$0xff] }
 0x82a   :  { %3947 = vmatpush1.msra.mxu0 %v8948_v21  ;;  %4018 = vmatpush1.msra.mxu1 %v8951_v0  ;;  %10773 = vst [vmem:[#allocation88_spill] sm:$0xff] %v8959_v35  ;;  %10774 = vst [vmem:[#allocation157_spill] sm:$0xff] %v8962_v1  ;;  %v8965_v21 = vld [vmem:[#allocation9 + $0x110] sm:$0xff]  ;;  %v8968_v0 = vld [vmem:[#allocation9 + $0xe8] sm:$0xff] }
 0x82b   :  { %v8954_v19 = vadd.f32 %v3788_v32, %v3787_v38  ;;  %3948 = vmatprep.subr.mxu0 %v8956_v23  ;;  %4019 = vmatprep.subr.mxu1 %v8959_v35  ;;  %10775 = vst [vmem:[#allocation159_spill] sm:$0xff] %v8965_v21  ;;  %10776 = vst [vmem:[#allocation160_spill] sm:$0xff] %v8968_v0  ;;  %v8971_v32 = vld [vmem:[#allocation9 + $0xf8] sm:$0xff]  ;;  %v8975_v38 = vld [vmem:[#allocation9 + $0xe0] sm:$0xff] }
 0x82c   :  { %3949 = vmatpush1.msra.mxu0 %v8962_v1  ;;  %4020 = vmatpush1.msra.mxu1 %v8965_v21  ;;  %10777 = vst [vmem:[#allocation158_spill] sm:$0xff] %v8971_v32  ;;  %10778 = vst [vmem:[#allocation89_spill] sm:$0xff] %v8975_v38  ;;  %v8981_v1 = vld [vmem:[#allocation9 + $0xc8] sm:$0xff]  ;;  %v8984_v21 = vld [vmem:[#allocation9 + $0xd8] sm:$0xff] }
 0x82d   :  { %3950 = vmatprep.subr.mxu0 %v8968_v0  ;;  %4021 = vmatprep.subr.mxu1 %v8971_v32  ;;  %5032 = vtanh.f32 %v8954_v19  ;;  %10779 = vst [vmem:[#allocation90_spill] sm:$0xff] %v8978_v26  ;;  %10780 = vst [vmem:[#allocation91_spill] sm:$0xff] %v8981_v1  ;;  %v8987_v0 = vld [vmem:[#allocation9 + $0xc0] sm:$0xff]  ;;  %v8990_v32 = vld [vmem:[#allocation9 + $0xd0] sm:$0xff] }
 0x82e   :  { %3951 = vmatpush1.msra.mxu0 %v8975_v38  ;;  %4022 = vmatpush1.msra.mxu1 %v8978_v26  ;;  %10781 = vst [vmem:[#allocation92_spill] sm:$0xff] %v8984_v21  ;;  %10782 = vst [vmem:[#allocation93_spill] sm:$0xff] %v8987_v0  ;;  %v8993_v38 = vld [vmem:[#allocation9 + $0xa8] sm:$0xff]  ;;  %v8996_v26 = vld [vmem:[#allocation9 + $0xb8] sm:$0xff] }
 0x82f   :  { %3952 = vmatprep.subr.mxu0 %v8981_v1  ;;  %4023 = vmatprep.subr.mxu1 %v8984_v21  ;;  %10783 = vst [vmem:[#allocation94_spill] sm:$0xff] %v8990_v32  ;;  %10784 = vst [vmem:[#allocation95_spill] sm:$0xff] %v8993_v38  ;;  %v8999_v1 = vld [vmem:[#allocation9 + $0xa0] sm:$0xff]  ;;  %v9002_v21 = vld [vmem:[#allocation9 + $0xb0] sm:$0xff] }
 0x830   :  { %3953 = vmatpush1.msra.mxu0 %v8987_v0  ;;  %4024 = vmatpush1.msra.mxu1 %v8990_v32  ;;  %10785 = vst [vmem:[#allocation96_spill] sm:$0xff] %v8996_v26  ;;  %10786 = vst [vmem:[#allocation97_spill] sm:$0xff] %v8999_v1  ;;  %v9005_v0 = vld [vmem:[#allocation9 + $0x88] sm:$0xff]  ;;  %v9008_v32 = vld [vmem:[#allocation9 + $0x98] sm:$0xff] }
 0x831   :  { %3954 = vmatprep.subr.mxu0 %v8993_v38  ;;  %4025 = vmatprep.subr.mxu1 %v8996_v26  ;;  %10787 = vst [vmem:[#allocation98_spill] sm:$0xff] %v9002_v21  ;;  %10788 = vst [vmem:[#allocation99_spill] sm:$0xff] %v9005_v0  ;;  %v9011_v38 = vld [vmem:[#allocation9 + $0x80] sm:$0xff]  ;;  %v9014_v26 = vld [vmem:[#allocation9 + $0x90] sm:$0xff] }
 0x832   :  { %3955 = vmatpush1.msra.mxu0 %v8999_v1  ;;  %4026 = vmatpush1.msra.mxu1 %v9002_v21  ;;  %10789 = vst [vmem:[#allocation100_spill] sm:$0xff] %v9008_v32  ;;  %10790 = vst [vmem:[#allocation101_spill] sm:$0xff] %v9011_v38  ;;  %v9017_v1 = vld [vmem:[#allocation9 + $0x68] sm:$0xff]  ;;  %v9020_v21 = vld [vmem:[#allocation9 + $0x78] sm:$0xff] }
 0x833   :  { %3956 = vmatprep.subr.mxu0 %v9005_v0  ;;  %4027 = vmatprep.subr.mxu1 %v9008_v32  ;;  %10791 = vst [vmem:[#allocation102_spill] sm:$0xff] %v9014_v26  ;;  %10792 = vst [vmem:[#allocation103_spill] sm:$0xff] %v9017_v1  ;;  %v9023_v0 = vld [vmem:[#allocation9 + $0x60] sm:$0xff]  ;;  %v9026_v32 = vld [vmem:[#allocation9 + $0x70] sm:$0xff] }
 0x834   :  { %3957 = vmatpush1.msra.mxu0 %v9011_v38  ;;  %4028 = vmatpush1.msra.mxu1 %v9014_v26  ;;  %10793 = vst [vmem:[#allocation104_spill] sm:$0xff] %v9020_v21  ;;  %10794 = vst [vmem:[#allocation105_spill] sm:$0xff] %v9023_v0  ;;  %v9029_v38 = vld [vmem:[#allocation9 + $0x48] sm:$0xff]  ;;  %v9032_v26 = vld [vmem:[#allocation9 + $0x58] sm:$0xff] }
 0x835   :  { %3958 = vmatprep.subr.mxu0 %v9017_v1  ;;  %4029 = vmatprep.subr.mxu1 %v9020_v21  ;;  %10795 = vst [vmem:[#allocation106_spill] sm:$0xff] %v9026_v32  ;;  %10796 = vst [vmem:[#allocation107_spill] sm:$0xff] %v9029_v38  ;;  %v9035_v1 = vld [vmem:[#allocation9 + $0x40] sm:$0xff]  ;;  %v9038_v21 = vld [vmem:[#allocation9 + $0x50] sm:$0xff] }
 0x836   :  { %3959 = vmatpush1.msra.mxu0 %v9023_v0  ;;  %4030 = vmatpush1.msra.mxu1 %v9026_v32  ;;  %10797 = vst [vmem:[#allocation108_spill] sm:$0xff] %v9032_v26  ;;  %10798 = vst [vmem:[#allocation109_spill] sm:$0xff] %v9035_v1  ;;  %v5031_v0 = vpop.eup %5030  ;;  %v9041_v35 = vld [vmem:[#allocation9 + $0x28] sm:$0xff]  ;;  %v9044_v32 = vld [vmem:[#allocation9 + $0x38] sm:$0xff] }
 0x837   :  { %3960 = vmatprep.subr.mxu0 %v9029_v38  ;;  %4031 = vmatprep.subr.mxu1 %v9032_v26  ;;  %10799 = vst [vmem:[#allocation110_spill] sm:$0xff] %v9038_v21  ;;  %10800 = vst [vmem:[#allocation111_spill] sm:$0xff] %v9041_v35  ;;  %v9047_v23 = vld [vmem:[#allocation9 + $0x20] sm:$0xff]  ;;  %v9050_v26 = vld [vmem:[#allocation9 + $0x30] sm:$0xff] }
 0x838   :  { %3961 = vmatpush1.msra.mxu0 %v9035_v1  ;;  %4032 = vmatpush1.msra.mxu1 %v9038_v21  ;;  %10801 = vst [vmem:[#allocation112_spill] sm:$0xff] %v9044_v32  ;;  %10802 = vst [vmem:[#allocation113_spill] sm:$0xff] %v9047_v23  ;;  %v9053_v1 = vld [vmem:[#allocation9 + $0x8] sm:$0xff]  ;;  %v9056_v21 = vld [vmem:[#allocation9 + $0x18] sm:$0xff] }
 0x839   :  { %3962 = vmatprep.subr.mxu0 %v9041_v35  ;;  %4033 = vmatprep.subr.mxu1 %v9044_v32  ;;  %10803 = vst [vmem:[#allocation114_spill] sm:$0xff] %v9050_v26  ;;  %10804 = vst [vmem:[#allocation115_spill] sm:$0xff] %v9053_v1  ;;  %v9061_v32 = vld [vmem:[#allocation9] sm:$0xff]  ;;  %v5665_v45 = vld [vmem:[#allocation8 + $0x1b8] sm:$0xff] }
 0x83a   :  { %v5033_v38 = vpop.eup %5032  ;;  %3963 = vmatpush1.msra.mxu0 %v9047_v23  ;;  %4034 = vmatpush1.msra.mxu1 %v9050_v26  ;;  %10805 = vst [vmem:[#allocation116_spill] sm:$0xff] %v9056_v21  ;;  %10806 = vst [vmem:[#allocation117_spill] sm:$0xff] %v9061_v32  ;;  %v9065_v23 = vld [vmem:[#allocation9 + $0x10] sm:$0xff]  ;;  %v5664_v26 = vld [vmem:[#allocation8 + $0x1a8] sm:$0xff] }
 0x83b   :  { %3964 = vmatprep.subr.mxu0 %v9053_v1  ;;  %4035 = vmatprep.subr.mxu1 %v9056_v21  ;;  %v9059_v35 = vmul.f32 %v5033_v38, %v5031_v0  ;;  %10807 = vst [vmem:[#allocation118_spill] sm:$0xff] %v9065_v23  ;;  %v5658_v0 = vld [vmem:[#allocation8 + $0x1e0] sm:$0xff]  ;;  %v5659_v38 = vld [vmem:[#allocation8 + $0x1f0] sm:$0xff]  ;;  %v5661_v21 = vld [vmem:[#allocation8 + $0x1d8] sm:$0xff] }
 0x83c   :  { %3965 = vmatpush1.msra.mxu0 %v9061_v32  ;;  %3998 = vmatprep.mubr.f32.mxu0 %v9989_v27  ;;  %v5660_v32 = vld [vmem:[#allocation8 + $0x1c8] sm:$0xff]  ;;  %v5662_v1 = vld [vmem:[#allocation8 + $0x1c0] sm:$0xff] }
 0x83d   :  { %4036 = vmatpush1.msra.mxu1 %v9065_v23  ;;  %4069 = vmatprep.mubr.f32.mxu1 %v9989_v27  ;;  %v5663_v23 = vld [vmem:[#allocation8 + $0x1d0] sm:$0xff]  ;;  %v5666_v58 = vld [vmem:[#allocation8 + $0x1a0] sm:$0xff] }
 0x83e   :  { %3999 = vmatmul.mubr.f32.vlgmr.msra.gmra.mxu0 %v9059_v35  ;;  %4070 = vmatmul.mubr.f32.vlgmr.msra.gmra.mxu1 %v9059_v35 }
 0x83f   :  { %4111 = vmatprep.subr.mxu0 %v8507_v44  ;;  %4182 = vmatprep.subr.mxu1 %v8510_v2  ;;  %v5667_v44 = vld [vmem:[#allocation8 + $0x1b0] sm:$0xff]  ;;  %v5668_v2 = vld [vmem:[#allocation8 + $0x188] sm:$0xff] }
 0x840   :  { %4112 = vmatpush1.msra.mxu0 %v5658_v0  ;;  %4183 = vmatpush1.msra.mxu1 %v5659_v38  ;;  %v5669_v0 = vld [vmem:[#allocation8 + $0x198] sm:$0xff]  ;;  %v5670_v38 = vld [vmem:[#allocation8 + $0x180] sm:$0xff] }
 0x841   :  { %4113 = vmatprep.subr.mxu0 %v5660_v32  ;;  %4184 = vmatprep.subr.mxu1 %v5661_v21  ;;  %v5671_v32 = vld [vmem:[#allocation8 + $0x190] sm:$0xff]  ;;  %v5672_v21 = vld [vmem:[#allocation8 + $0x168] sm:$0xff] }
 0x842   :  { %4114 = vmatpush1.msra.mxu0 %v5662_v1  ;;  %4185 = vmatpush1.msra.mxu1 %v5663_v23  ;;  %v5673_v1 = vld [vmem:[#allocation8 + $0x178] sm:$0xff]  ;;  %v5674_v23 = vld [vmem:[#allocation8 + $0x160] sm:$0xff] }
 0x843   :  { %4115 = vmatprep.subr.mxu0 %v5664_v26  ;;  %4186 = vmatprep.subr.mxu1 %v5665_v45  ;;  %v5675_v26 = vld [vmem:[#allocation8 + $0x170] sm:$0xff]  ;;  %v5676_v45 = vld [vmem:[#allocation8 + $0x148] sm:$0xff] }
 0x844   :  { %4116 = vmatpush1.msra.mxu0 %v5666_v58  ;;  %4187 = vmatpush1.msra.mxu1 %v5667_v44  ;;  %v5677_v58 = vld [vmem:[#allocation8 + $0x158] sm:$0xff] }
 0x845   :  { %4117 = vmatprep.subr.mxu0 %v5668_v2  ;;  %4188 = vmatprep.subr.mxu1 %v5669_v0  ;;  %v10844_v44 = vld [vmem:[#allocation42_spill] sm:$0xff]  ;;  %v10845_v2 = vld [vmem:[#allocation43_spill] sm:$0xff]  ;;  %v10846_v0 = vld [vmem:[#allocation44_spill] sm:$0xff] }
 0x846   :  { %4118 = vmatpush1.msra.mxu0 %v5670_v38  ;;  %4189 = vmatpush1.msra.mxu1 %v5671_v32  ;;  %v10847_v38 = vld [vmem:[#allocation45_spill] sm:$0xff]  ;;  %v10848_v32 = vld [vmem:[#allocation46_spill] sm:$0xff] }
 0x847   :  { %4119 = vmatprep.subr.mxu0 %v5672_v21  ;;  %4190 = vmatprep.subr.mxu1 %v5673_v1  ;;  %v10849_v21 = vld [vmem:[#allocation47_spill] sm:$0xff]  ;;  %v10850_v1 = vld [vmem:[#allocation48_spill] sm:$0xff] }
 0x848   :  { %4120 = vmatpush1.msra.mxu0 %v5674_v23  ;;  %4191 = vmatpush1.msra.mxu1 %v5675_v26  ;;  %v10851_v23 = vld [vmem:[#allocation49_spill] sm:$0xff]  ;;  %v10852_v26 = vld [vmem:[#allocation50_spill] sm:$0xff] }
 0x849   :  { %4121 = vmatprep.subr.mxu0 %v5676_v45  ;;  %4192 = vmatprep.subr.mxu1 %v5677_v58  ;;  %v10853_v45 = vld [vmem:[#allocation51_spill] sm:$0xff]  ;;  %v10854_v58 = vld [vmem:[#allocation52_spill] sm:$0xff] }
 0x84a   :  { %4122 = vmatpush1.msra.mxu0 %v8533_v22  ;;  %4193 = vmatpush1.msra.mxu1 %v8536_v18  ;;  %v10808_v22 = vld [vmem:[#allocation143_spill] sm:$0xff]  ;;  %v10809_v18 = vld [vmem:[#allocation144_spill] sm:$0xff] }
 0x84b   :  { %4123 = vmatprep.subr.mxu0 %v8539_v3  ;;  %4194 = vmatprep.subr.mxu1 %v8542_v40  ;;  %v10810_v3 = vld [vmem:[#allocation145_spill] sm:$0xff]  ;;  %v10811_v40 = vld [vmem:[#allocation146_spill] sm:$0xff] }
 0x84c   :  { %4124 = vmatpush1.msra.mxu0 %v8545_v37  ;;  %4195 = vmatpush1.msra.mxu1 %v8548_v54  ;;  %v10812_v37 = vld [vmem:[#allocation147_spill] sm:$0xff]  ;;  %v10813_v54 = vld [vmem:[#allocation148_spill] sm:$0xff] }
 0x84d   :  { %4125 = vmatprep.subr.mxu0 %v8551_v42  ;;  %4196 = vmatprep.subr.mxu1 %v8554_v56  ;;  %v10814_v42 = vld [vmem:[#allocation153_spill] sm:$0xff] }
 0x84e   :  { %4126 = vmatpush1.msra.mxu0 %v8557_v5  ;;  %4197 = vmatpush1.msra.mxu1 %v8560_v41  ;;  %v10815_v56 = vld [vmem:[#allocation161_spill] sm:$0xff]  ;;  %v10816_v5 = vld [vmem:[#allocation163_spill] sm:$0xff]  ;;  %v10817_v41 = vld [vmem:[#allocation164_spill] sm:$0xff] }
 0x84f   :  { %4127 = vmatprep.subr.mxu0 %v8563_v57  ;;  %4198 = vmatprep.subr.mxu1 %v8566_v30  ;;  %v10818_v57 = vld [vmem:[#allocation162_spill] sm:$0xff]  ;;  %v10819_v30 = vld [vmem:[#allocation155_spill] sm:$0xff] }
 0x850   :  { %4128 = vmatpush1.msra.mxu0 %v8569_v14  ;;  %4199 = vmatpush1.msra.mxu1 %v8572_v31  ;;  %v10820_v14 = vld [vmem:[#allocation156_spill] sm:$0xff]  ;;  %v10821_v31 = vld [vmem:[#allocation154_spill] sm:$0xff] }
 0x851   :  { %4129 = vmatprep.subr.mxu0 %v8575_v48  ;;  %4200 = vmatprep.subr.mxu1 %v8578_v50  ;;  %v10822_v48 = vld [vmem:[#allocation20_spill] sm:$0xff]  ;;  %v10823_v50 = vld [vmem:[#allocation21_spill] sm:$0xff] }
 0x852   :  { %4130 = vmatpush1.msra.mxu0 %v8581_v51  ;;  %4201 = vmatpush1.msra.mxu1 %v8584_v52  ;;  %v10824_v51 = vld [vmem:[#allocation22_spill] sm:$0xff]  ;;  %v10825_v52 = vld [vmem:[#allocation23_spill] sm:$0xff] }
 0x853   :  { %4131 = vmatprep.subr.mxu0 %v8587_v6  ;;  %4202 = vmatprep.subr.mxu1 %v8590_v60  ;;  %v10826_v6 = vld [vmem:[#allocation24_spill] sm:$0xff]  ;;  %v10827_v60 = vld [vmem:[#allocation25_spill] sm:$0xff] }
 0x854   :  { %4132 = vmatpush1.msra.mxu0 %v8593_v9  ;;  %4203 = vmatpush1.msra.mxu1 %v8596_v4  ;;  %v10828_v9 = vld [vmem:[#allocation26_spill] sm:$0xff]  ;;  %v10829_v4 = vld [vmem:[#allocation27_spill] sm:$0xff] }
 0x855   :  { %4133 = vmatprep.subr.mxu0 %v8599_v36  ;;  %4204 = vmatprep.subr.mxu1 %v8602_v7  ;;  %v10830_v36 = vld [vmem:[#allocation28_spill] sm:$0xff]  ;;  %v10831_v7 = vld [vmem:[#allocation29_spill] sm:$0xff] }
 0x856   :  { %4134 = vmatpush1.msra.mxu0 %v8605_v59  ;;  %4205 = vmatpush1.msra.mxu1 %v8608_v62  ;;  %v10832_v59 = vld [vmem:[#allocation30_spill] sm:$0xff]  ;;  %v10833_v62 = vld [vmem:[#allocation31_spill] sm:$0xff] }
 0x857   :  { %4135 = vmatprep.subr.mxu0 %v8611_v24  ;;  %4206 = vmatprep.subr.mxu1 %v8614_v53  ;;  %v10834_v24 = vld [vmem:[#allocation32_spill] sm:$0xff]  ;;  %v10835_v53 = vld [vmem:[#allocation33_spill] sm:$0xff] }
 0x858   :  { %4136 = vmatpush1.msra.mxu0 %v8617_v49  ;;  %4207 = vmatpush1.msra.mxu1 %v8620_v28  ;;  %v10836_v49 = vld [vmem:[#allocation34_spill] sm:$0xff]  ;;  %v10837_v28 = vld [vmem:[#allocation35_spill] sm:$0xff] }
 0x859   :  { %4137 = vmatprep.subr.mxu0 %v8623_v47  ;;  %4208 = vmatprep.subr.mxu1 %v8626_v20  ;;  %v10838_v47 = vld [vmem:[#allocation36_spill] sm:$0xff]  ;;  %v10839_v20 = vld [vmem:[#allocation37_spill] sm:$0xff] }
 0x85a   :  { %4138 = vmatpush1.msra.mxu0 %v8629_v13  ;;  %4209 = vmatpush1.msra.mxu1 %v8632_v12  ;;  %v10840_v13 = vld [vmem:[#allocation38_spill] sm:$0xff]  ;;  %v10841_v12 = vld [vmem:[#allocation39_spill] sm:$0xff] }
 0x85b   :  { %4139 = vmatprep.subr.mxu0 %v8635_v46  ;;  %4210 = vmatprep.subr.mxu1 %v10808_v22  ;;  %v10842_v46 = vld [vmem:[#allocation40_spill] sm:$0xff]  ;;  %v10855_v22 = vld [vmem:[#allocation53_spill] sm:$0xff] }
 0x85c   :  { %4140 = vmatpush1.msra.mxu0 %v10809_v18  ;;  %4211 = vmatpush1.msra.mxu1 %v10810_v3  ;;  %v10856_v18 = vld [vmem:[#allocation54_spill] sm:$0xff]  ;;  %v10857_v3 = vld [vmem:[#allocation55_spill] sm:$0xff] }
 0x85d   :  { %4141 = vmatprep.subr.mxu0 %v10811_v40  ;;  %4212 = vmatprep.subr.mxu1 %v10812_v37  ;;  %v10858_v40 = vld [vmem:[#allocation56_spill] sm:$0xff]  ;;  %v10859_v37 = vld [vmem:[#allocation57_spill] sm:$0xff] }
 0x85e   :  { %4142 = vmatpush1.msra.mxu0 %v10813_v54  ;;  %4175 = vmatprep.mubr.f32.mxu0 %v9989_v27  ;;  %v10860_v54 = vld [vmem:[#allocation58_spill] sm:$0xff] }
 0x85f   :  { %4213 = vmatpush1.msra.mxu1 %v10814_v42  ;;  %4246 = vmatprep.mubr.f32.mxu1 %v9989_v27  ;;  %v10861_v42 = vld [vmem:[#allocation59_spill] sm:$0xff] }
 0x860   :  { %4176 = vmatmul.mubr.f32.vlgmr.msra.gmra.mxu0 %v9059_v35  ;;  %4247 = vmatmul.mubr.f32.vlgmr.msra.gmra.mxu1 %v9059_v35  ;;  %v10843_v35 = vld [vmem:[#allocation41_spill] sm:$0xff] }
 0x861   :  { %4281 = vmatprep.subr.mxu0 %v10815_v56  ;;  %4352 = vmatprep.subr.mxu1 %v10816_v5  ;;  %v10862_v56 = vld [vmem:[#allocation60_spill] sm:$0xff]  ;;  %v10863_v5 = vld [vmem:[#allocation61_spill] sm:$0xff] }
 0x862   :  { %4282 = vmatpush1.msra.mxu0 %v10817_v41  ;;  %4353 = vmatpush1.msra.mxu1 %v10818_v57  ;;  %v10864_v41 = vld [vmem:[#allocation62_spill] sm:$0xff]  ;;  %v10865_v57 = vld [vmem:[#allocation63_spill] sm:$0xff] }
 0x863   :  { %4283 = vmatprep.subr.mxu0 %v10819_v30  ;;  %4354 = vmatprep.subr.mxu1 %v10820_v14  ;;  %v10866_v30 = vld [vmem:[#allocation64_spill] sm:$0xff]  ;;  %v10867_v14 = vld [vmem:[#allocation65_spill] sm:$0xff] }
 0x864   :  { %4284 = vmatpush1.msra.mxu0 %v10821_v31  ;;  %4355 = vmatpush1.msra.mxu1 %v10822_v48  ;;  %v10868_v31 = vld [vmem:[#allocation66_spill] sm:$0xff]  ;;  %v10869_v48 = vld [vmem:[#allocation67_spill] sm:$0xff] }
 0x865   :  { %4285 = vmatprep.subr.mxu0 %v10823_v50  ;;  %4356 = vmatprep.subr.mxu1 %v10824_v51  ;;  %v10870_v50 = vld [vmem:[#allocation68_spill] sm:$0xff]  ;;  %v10871_v51 = vld [vmem:[#allocation69_spill] sm:$0xff] }
 0x866   :  { %4286 = vmatpush1.msra.mxu0 %v10825_v52  ;;  %4357 = vmatpush1.msra.mxu1 %v10826_v6  ;;  %v10872_v52 = vld [vmem:[#allocation70_spill] sm:$0xff]  ;;  %v10873_v6 = vld [vmem:[#allocation71_spill] sm:$0xff] }
 0x867   :  { %4287 = vmatprep.subr.mxu0 %v10827_v60  ;;  %4358 = vmatprep.subr.mxu1 %v10828_v9  ;;  %v10874_v60 = vld [vmem:[#allocation72_spill] sm:$0xff]  ;;  %v10875_v9 = vld [vmem:[#allocation73_spill] sm:$0xff] }
 0x868   :  { %4288 = vmatpush1.msra.mxu0 %v10829_v4  ;;  %4359 = vmatpush1.msra.mxu1 %v10830_v36  ;;  %v10876_v4 = vld [vmem:[#allocation74_spill] sm:$0xff]  ;;  %v10877_v36 = vld [vmem:[#allocation75_spill] sm:$0xff] }
 0x869   :  { %4289 = vmatprep.subr.mxu0 %v10831_v7  ;;  %4360 = vmatprep.subr.mxu1 %v10832_v59  ;;  %v10878_v7 = vld [vmem:[#allocation76_spill] sm:$0xff]  ;;  %v10879_v59 = vld [vmem:[#allocation77_spill] sm:$0xff] }
 0x86a   :  { %4290 = vmatpush1.msra.mxu0 %v10833_v62  ;;  %4361 = vmatpush1.msra.mxu1 %v10834_v24  ;;  %v10880_v62 = vld [vmem:[#allocation78_spill] sm:$0xff] }
 0x86b   :  { %4291 = vmatprep.subr.mxu0 %v10835_v53  ;;  %4362 = vmatprep.subr.mxu1 %v10836_v49 }
 0x86c   :  { %4292 = vmatpush1.msra.mxu0 %v10837_v28  ;;  %4363 = vmatpush1.msra.mxu1 %v10838_v47 }
 0x86d   :  { %4293 = vmatprep.subr.mxu0 %v10839_v20  ;;  %4364 = vmatprep.subr.mxu1 %v10840_v13 }
 0x86e   :  { %4294 = vmatpush1.msra.mxu0 %v10841_v12  ;;  %4365 = vmatpush1.msra.mxu1 %v10842_v46 }
 0x86f   :  { %4295 = vmatprep.subr.mxu0 %v10843_v35  ;;  %4366 = vmatprep.subr.mxu1 %v10844_v44 }
 0x870   :  { %4296 = vmatpush1.msra.mxu0 %v10845_v2  ;;  %4367 = vmatpush1.msra.mxu1 %v10846_v0 }
 0x871   :  { %4297 = vmatprep.subr.mxu0 %v10847_v38  ;;  %4368 = vmatprep.subr.mxu1 %v10848_v32 }
 0x872   :  { %4298 = vmatpush1.msra.mxu0 %v10849_v21  ;;  %4369 = vmatpush1.msra.mxu1 %v10850_v1 }
 0x873   :  { %4299 = vmatprep.subr.mxu0 %v10851_v23  ;;  %4370 = vmatprep.subr.mxu1 %v10852_v26 }
 0x874   :  { %4300 = vmatpush1.msra.mxu0 %v10853_v45  ;;  %4371 = vmatpush1.msra.mxu1 %v10854_v58 }
 0x875   :  { %4301 = vmatprep.subr.mxu0 %v10855_v22  ;;  %4372 = vmatprep.subr.mxu1 %v10856_v18 }
 0x876   :  { %4302 = vmatpush1.msra.mxu0 %v10857_v3  ;;  %4373 = vmatpush1.msra.mxu1 %v10858_v40 }
 0x877   :  { %4303 = vmatprep.subr.mxu0 %v10859_v37  ;;  %4374 = vmatprep.subr.mxu1 %v10860_v54  ;;  %v10881_v37 = vld [vmem:[#allocation173_spill] sm:$0xff] }
 0x878   :  { %4304 = vmatpush1.msra.mxu0 %v10861_v42  ;;  %4375 = vmatpush1.msra.mxu1 %v10862_v56 }
 0x879   :  { %4305 = vmatprep.subr.mxu0 %v10863_v5  ;;  %4376 = vmatprep.subr.mxu1 %v10864_v41 }
 0x87a   :  { %4306 = vmatpush1.msra.mxu0 %v10865_v57  ;;  %4377 = vmatpush1.msra.mxu1 %v10866_v30  ;;  %v10882_v57 = vld [vmem:[#allocation175_spill] sm:$0xff] }
 0x87b   :  { %4307 = vmatprep.subr.mxu0 %v10867_v14  ;;  %4378 = vmatprep.subr.mxu1 %v10868_v31 }
 0x87c   :  { %4308 = vmatpush1.msra.mxu0 %v10869_v48  ;;  %4379 = vmatpush1.msra.mxu1 %v10870_v50 }
 0x87d   :  { %4309 = vmatprep.subr.mxu0 %v10871_v51  ;;  %4380 = vmatprep.subr.mxu1 %v10872_v52 }
 0x87e   :  { %4310 = vmatpush1.msra.mxu0 %v10873_v6  ;;  %4381 = vmatpush1.msra.mxu1 %v10874_v60 }
 0x87f   :  { %4311 = vmatprep.subr.mxu0 %v10875_v9  ;;  %4382 = vmatprep.subr.mxu1 %v10876_v4  ;;  %v10883_v9 = vld [vmem:[#allocation176_spill] sm:$0xff] }
 0x880   :  { %4312 = vmatpush1.msra.mxu0 %v10877_v36  ;;  %4383 = vmatpush1.msra.mxu1 %v10878_v7  ;;  %v10884_v36 = vld [vmem:[#allocation174_spill] sm:$0xff] }
 0x881   :  { %4345 = vmatprep.mubr.f32.mxu0 %v9989_v27  ;;  %4416 = vmatprep.mubr.f32.mxu1 %v9989_v27 }
 0x882   :  { %4423 = vmatprep.subr.mxu0 %v10879_v59  ;;  %4494 = vmatprep.subr.mxu1 %v10880_v62 }
 0x8dd   :  { %v3858_v24 = vpop.f32.mrf.mxu0  ;;  %v3929_v53 = vpop.f32.mrf.mxu1 }
 0x8df   :  { %v3860_v49 = vpop.f32.mrf.mxu0  ;;  %v3931_v47 = vpop.f32.mrf.mxu1 }
 0x8fe   :  { %v4000_v28 = vpop.f32.mrf.mxu0  ;;  %v4071_v46 = vpop.f32.mrf.mxu1 }
 0x8ff   :  { %v4001_v20 = vadd.f32 %v4000_v28, %v3858_v24  ;;  %v4072_v1 = vadd.f32 %v4071_v46, %v3929_v53  ;;  %v10893_v46 = vld [vmem:[#allocation149_spill] sm:$0xff] }
 0x900   :  { %v4002_v13 = vpop.f32.mrf.mxu0  ;;  %v4073_v38 = vpop.f32.mrf.mxu1 }
 0x901   :  { %v4076_v12 = vadd.f32 %v4001_v20, %v6762_v63  ;;  %v4003_v35 = vadd.f32 %v4002_v13, %v3860_v49  ;;  %v4074_v32 = vadd.f32 %v4073_v38, %v3931_v47  ;;  %v4078_v45 = vadd.f32 %v4072_v1, %v6777_v39  ;;  %v10885_v20 = vld [vmem:[#allocation79_spill] sm:$0xff]  ;;  %v10886_v13 = vld [vmem:[#allocation80_spill] sm:$0xff]  ;;  %v10896_v38 = vld [vmem:[#allocation165_spill] sm:$0xff] }
 0x902   :  { %v10898_v1 = vld [vmem:[#allocation168_spill] sm:$0xff] }
 0x903   :  { %v4751_v44 = vmul.f32 -1.442695, %v4076_v12  ;;  %v4077_v2 = vadd.f32 %v4003_v35, %v6766_v8  ;;  %v4079_v21 = vadd.f32 %v4074_v32, %v6772_v34  ;;  %v10890_v12 = vld [vmem:[#allocation84_spill] sm:$0xff]  ;;  %v10894_v35 = vld [vmem:[#allocation151_spill] sm:$0xff] }
 0x905   :  { %5034 = vpow2.f32 %v4751_v44  ;;  %v4752_v0 = vmul.f32 -1.442695, %v4077_v2  ;;  %v4753_v23 = vmul.f32 -1.442695, %v4079_v21  ;;  %v10897_v21 = vld [vmem:[#allocation167_spill] sm:$0xff] }
 0x907   :  { %5036 = vpow2.f32 %v4752_v0  ;;  %v10895_v0 = vld [vmem:[#allocation152_spill] sm:$0xff] }
 0x908   :  { %5038 = vpow2.f32 %v4753_v23  ;;  %v10899_v23 = vld [vmem:[#allocation166_spill] sm:$0xff] }
 0x912   :  { %v5035_v26 = vpop.eup %5034 }
 0x913   :  { %v4083_v58 = vadd.f32 1.0, %v5035_v26 }
 0x914   :  { %v5037_v22 = vpop.eup %5036 }
 0x915   :  { %5040 = vrcp.f32 %v4083_v58  ;;  %v4089_v18 = vadd.f32 1.0, %v5037_v22  ;;  %v5039_v40 = vpop.eup %5038  ;;  %v10902_v58 = vld [vmem:[#allocation88_spill] sm:$0xff]  ;;  %v10903_v22 = vld [vmem:[#allocation157_spill] sm:$0xff] }
 0x916   :  { %5042 = vtanh.f32 %v4078_v45  ;;  %v4096_v31 = vadd.f32 1.0, %v5039_v40  ;;  %v10901_v45 = vld [vmem:[#allocation87_spill] sm:$0xff]  ;;  %v10907_v40 = vld [vmem:[#allocation89_spill] sm:$0xff] }
 0x917   :  { %5044 = vrcp.f32 %v4089_v18  ;;  %v10904_v18 = vld [vmem:[#allocation159_spill] sm:$0xff] }
 0x920   :  { %v4177_v3 = vpop.f32.mrf.mxu0  ;;  %v4248_v51 = vpop.f32.mrf.mxu1 }
 0x921   :  { %v4253_v54 = vadd.f32 %v4177_v3, %v10881_v37  ;;  %v4255_v7 = vadd.f32 %v4248_v51, %v10884_v36  ;;  %v10905_v3 = vld [vmem:[#allocation160_spill] sm:$0xff]  ;;  %v10908_v37 = vld [vmem:[#allocation90_spill] sm:$0xff]  ;;  %v10925_v36 = vld [vmem:[#allocation107_spill] sm:$0xff] }
 0x922   :  { %v5041_v42 = vpop.eup %5040  ;;  %v4179_v56 = vpop.f32.mrf.mxu0  ;;  %v10920_v51 = vld [vmem:[#allocation102_spill] sm:$0xff] }
 0x923   :  { %v5043_v5 = vpop.eup %5042  ;;  %v4754_v41 = vmul.f32 -1.442695, %v4253_v54  ;;  %v4254_v30 = vadd.f32 %v4179_v56, %v10882_v57  ;;  %v4250_v60 = vpop.f32.mrf.mxu1  ;;  %v10909_v54 = vld [vmem:[#allocation91_spill] sm:$0xff]  ;;  %v10911_v56 = vld [vmem:[#allocation93_spill] sm:$0xff]  ;;  %v10914_v57 = vld [vmem:[#allocation96_spill] sm:$0xff] }
 0x924   :  { %v5045_v14 = vpop.eup %5044  ;;  %v4100_v48 = vmul.f32 %v5043_v5, %v5041_v42  ;;  %v4256_v4 = vadd.f32 %v4250_v60, %v10883_v9  ;;  %v10910_v42 = vld [vmem:[#allocation92_spill] sm:$0xff]  ;;  %v10912_v5 = vld [vmem:[#allocation94_spill] sm:$0xff]  ;;  %v10923_v9 = vld [vmem:[#allocation105_spill] sm:$0xff] }
 0x925   :  { %v4099_v50 = vmul.f32 %v5045_v14, %v8870_v15  ;;  %5046 = vpow2.f32 %v4754_v41  ;;  %v4755_v52 = vmul.f32 -1.442695, %v4254_v30  ;;  %v10913_v41 = vld [vmem:[#allocation95_spill] sm:$0xff]  ;;  %v10915_v30 = vld [vmem:[#allocation97_spill] sm:$0xff]  ;;  %v10916_v14 = vld [vmem:[#allocation98_spill] sm:$0xff] }
 0x926   :  { %v4756_v59 = vmul.f32 -1.442695, %v4256_v4  ;;  %v10922_v60 = vld [vmem:[#allocation104_spill] sm:$0xff]  ;;  %v10924_v4 = vld [vmem:[#allocation106_spill] sm:$0xff] }
 0x927   :  { %5048 = vpow2.f32 %v4755_v52  ;;  %v9194_v6 = vadd.f32 %v4100_v48, %v4099_v50  ;;  %v10918_v48 = vld [vmem:[#allocation100_spill] sm:$0xff]  ;;  %v10919_v50 = vld [vmem:[#allocation101_spill] sm:$0xff]  ;;  %v10921_v52 = vld [vmem:[#allocation103_spill] sm:$0xff] }
 0x928   :  { %5050 = vrcp.f32 %v4096_v31  ;;  %v10917_v31 = vld [vmem:[#allocation99_spill] sm:$0xff] }
 0x929   :  { %5052 = vtanh.f32 %v9194_v6 }
 0x92a   :  { %5054 = vtanh.f32 %v4255_v7  ;;  %v10926_v7 = vld [vmem:[#allocation108_spill] sm:$0xff] }
 0x92b   :  { %5056 = vpow2.f32 %v4756_v59  ;;  %v10927_v59 = vld [vmem:[#allocation109_spill] sm:$0xff] }
 0x932   :  { %v5047_v62 = vpop.eup %5046 }
 0x933   :  { %v4260_v24 = vadd.f32 1.0, %v5047_v62  ;;  %v10928_v62 = vld [vmem:[#allocation110_spill] sm:$0xff] }
 0x934   :  { %v5049_v53 = vpop.eup %5048 }
 0x935   :  { %v5051_v15 = vpop.eup %5050  ;;  %5058 = vrcp.f32 %v4260_v24  ;;  %v4266_v49 = vadd.f32 1.0, %v5049_v53  ;;  %v10929_v53 = vld [vmem:[#allocation111_spill] sm:$0xff] }
 0x936   :  { %v5053_v28 = vpop.eup %5052 }
 0x937   :  { %5060 = vrcp.f32 %v4266_v49  ;;  %v4103_v47 = vmul.f32 %v5053_v28, %v5051_v15  ;;  %v10930_v15 = vld [vmem:[#allocation112_spill] sm:$0xff]  ;;  %v10931_v28 = vld [vmem:[#allocation113_spill] sm:$0xff] }
 0x939   :  { %4346 = vmatmul.mubr.f32.vlgmr.msra.gmra.mxu0 %v4103_v47  ;;  %4417 = vmatmul.mubr.f32.vlgmr.msra.gmra.mxu1 %v4103_v47  ;;  %v10932_v47 = vld [vmem:[#allocation114_spill] sm:$0xff] }
 0x93a   :  { %4424 = vmatpush1.msra.mxu0 %v8875_v25  ;;  %4495 = vmatpush1.msra.mxu1 %v8878_v43  ;;  %v10887_v25 = vld [vmem:[#allocation81_spill] sm:$0xff]  ;;  %v5055_v43 = vpop.eup %5054 }
 0x93b   :  { %4425 = vmatprep.subr.mxu0 %v8881_v10  ;;  %4496 = vmatprep.subr.mxu1 %v8884_v33  ;;  %v10888_v10 = vld [vmem:[#allocation82_spill] sm:$0xff]  ;;  %v10889_v33 = vld [vmem:[#allocation83_spill] sm:$0xff] }
 0x93c   :  { %4426 = vmatpush1.msra.mxu0 %v8887_v61  ;;  %4497 = vmatpush1.msra.mxu1 %v8890_v55  ;;  %v5057_v61 = vpop.eup %5056  ;;  %v10891_v55 = vld [vmem:[#allocation85_spill] sm:$0xff] }
 0x93d   :  { %4427 = vmatprep.subr.mxu0 %v8893_v11  ;;  %4498 = vmatprep.subr.mxu1 %v8896_v17  ;;  %v10892_v17 = vld [vmem:[#allocation86_spill] sm:$0xff]  ;;  %v4273_v2 = vadd.f32 1.0, %v5057_v61  ;;  %v4607_v61 = vld [vmem:[#allocation12 + $0x70] sm:$0xff] }
 0x93e   :  { %4428 = vmatpush1.msra.mxu0 %v8899_v16  ;;  %4499 = vmatpush1.msra.mxu1 %v10885_v20  ;;  %v10933_v20 = vld [vmem:[#allocation115_spill] sm:$0xff] }
 0x93f   :  { %4429 = vmatprep.subr.mxu0 %v10886_v13  ;;  %4500 = vmatprep.subr.mxu1 %v10887_v25  ;;  %5062 = vrcp.f32 %v4273_v2  ;;  %v10934_v13 = vld [vmem:[#allocation116_spill] sm:$0xff] }
 0x940   :  { %4430 = vmatpush1.msra.mxu0 %v10888_v10  ;;  %4501 = vmatpush1.msra.mxu1 %v10889_v33  ;;  %v10936_v10 = vld [vmem:[#allocation118_spill] sm:$0xff]  ;;  %v4598_v2 = vld [vmem:[#allocation12 + $0x28] sm:$0xff] }
 0x941   :  { %4431 = vmatprep.subr.mxu0 %v10890_v12  ;;  %4502 = vmatprep.subr.mxu1 %v10891_v55  ;;  %v4608_v33 = vld [vmem:[#allocation12 + $0x78] sm:$0xff]  ;;  %v4606_v12 = vld [vmem:[#allocation12 + $0x68] sm:$0xff]  ;;  %v4605_v55 = vld [vmem:[#allocation12 + $0x60] sm:$0xff] }
 0x942   :  { %v5059_v11 = vpop.eup %5058  ;;  %4432 = vmatpush1.msra.mxu0 %v10892_v17  ;;  %4503 = vmatpush1.msra.mxu1 %v8926_v29  ;;  %v10900_v29 = vld [vmem:[#allocation150_spill] sm:$0xff]  ;;  %v4603_v17 = vld [vmem:[#allocation12 + $0x50] sm:$0xff] }
 0x943   :  { %v4277_v16 = vmul.f32 %v5059_v11, %v5055_v43  ;;  %4433 = vmatprep.subr.mxu0 %v10893_v46  ;;  %4504 = vmatprep.subr.mxu1 %v10894_v35  ;;  %v10935_v43 = vld [vmem:[#allocation117_spill] sm:$0xff]  ;;  %v4604_v11 = vld [vmem:[#allocation12 + $0x58] sm:$0xff]  ;;  %v4601_v46 = vld [vmem:[#allocation12 + $0x40] sm:$0xff] }
 0x944   :  { %v5061_v44 = vpop.eup %5060  ;;  %4434 = vmatpush1.msra.mxu0 %v10895_v0  ;;  %4505 = vmatpush1.msra.mxu1 %v10896_v38  ;;  %v4600_v35 = vld [vmem:[#allocation12 + $0x38] sm:$0xff]  ;;  %v4597_v0 = vld [vmem:[#allocation12 + $0x20] sm:$0xff] }
 0x945   :  { %v4276_v32 = vmul.f32 %v5061_v44, %v8954_v19  ;;  %4435 = vmatprep.subr.mxu0 %v10897_v21  ;;  %4506 = vmatprep.subr.mxu1 %v10898_v1  ;;  %v10906_v19 = vld [vmem:[#allocation158_spill] sm:$0xff]  ;;  %v4599_v44 = vld [vmem:[#allocation12 + $0x30] sm:$0xff]  ;;  %v4594_v21 = vld [vmem:[#allocation12 + $0x8] sm:$0xff] }
 0x946   :  { %4436 = vmatpush1.msra.mxu0 %v10899_v23  ;;  %4507 = vmatpush1.msra.mxu1 %v10900_v29  ;;  %v4596_v38 = vld [vmem:[#allocation12 + $0x18] sm:$0xff]  ;;  %v4593_v1 = vld [vmem:[#allocation12] sm:$0xff] }
 0x947   :  { %v4278_v26 = vadd.f32 %v4277_v16, %v4276_v32  ;;  %4437 = vmatprep.subr.mxu0 %v10901_v45  ;;  %4508 = vmatprep.subr.mxu1 %v10902_v58  ;;  %v4602_v16 = vld [vmem:[#allocation12 + $0x48] sm:$0xff]  ;;  %v4595_v32 = vld [vmem:[#allocation12 + $0x10] sm:$0xff] }
 0x948   :  { %4438 = vmatpush1.msra.mxu0 %v10903_v22  ;;  %4509 = vmatpush1.msra.mxu1 %v10904_v18 }
 0x949   :  { %4439 = vmatprep.subr.mxu0 %v10905_v3  ;;  %4510 = vmatprep.subr.mxu1 %v10906_v19  ;;  %5064 = vtanh.f32 %v4278_v26 }
 0x94a   :  { %4440 = vmatpush1.msra.mxu0 %v10907_v40  ;;  %4511 = vmatpush1.msra.mxu1 %v10908_v37 }
 0x94b   :  { %4441 = vmatprep.subr.mxu0 %v10909_v54  ;;  %4512 = vmatprep.subr.mxu1 %v10910_v42 }
 0x94c   :  { %4442 = vmatpush1.msra.mxu0 %v10911_v56  ;;  %4513 = vmatpush1.msra.mxu1 %v10912_v5  ;;  %v5063_v24 = vpop.eup %5062 }
 0x94d   :  { %4443 = vmatprep.subr.mxu0 %v10913_v41  ;;  %4514 = vmatprep.subr.mxu1 %v10914_v57 }
 0x94e   :  { %4444 = vmatpush1.msra.mxu0 %v10915_v30  ;;  %4515 = vmatpush1.msra.mxu1 %v10916_v14 }
 0x94f   :  { %4445 = vmatprep.subr.mxu0 %v10917_v31  ;;  %4516 = vmatprep.subr.mxu1 %v10918_v48 }
 0x950   :  { %4446 = vmatpush1.msra.mxu0 %v10919_v50  ;;  %4517 = vmatpush1.msra.mxu1 %v10920_v51 }
 0x951   :  { %4447 = vmatprep.subr.mxu0 %v10921_v52  ;;  %4518 = vmatprep.subr.mxu1 %v10922_v60 }
 0x952   :  { %4448 = vmatpush1.msra.mxu0 %v10923_v9  ;;  %4519 = vmatpush1.msra.mxu1 %v10924_v4 }
 0x953   :  { %4449 = vmatprep.subr.mxu0 %v10925_v36  ;;  %4520 = vmatprep.subr.mxu1 %v10926_v7 }
 0x954   :  { %4450 = vmatpush1.msra.mxu0 %v10927_v59  ;;  %4521 = vmatpush1.msra.mxu1 %v10928_v62  ;;  %v4760_v59 = vld [vmem:[%s9300_s8] ss:$0 sm:$0xff] }
 0x955   :  { %4451 = vmatprep.subr.mxu0 %v10929_v53  ;;  %4522 = vmatprep.subr.mxu1 %v10930_v15 }
 0x956   :  { %v5065_v49 = vpop.eup %5064  ;;  %4452 = vmatpush1.msra.mxu0 %v10931_v28  ;;  %4523 = vmatpush1.msra.mxu1 %v10932_v47 }
 0x957   :  { %4453 = vmatprep.subr.mxu0 %v10933_v20  ;;  %4524 = vmatprep.subr.mxu1 %v10934_v13  ;;  %v4280_v25 = vmul.f32 %v5065_v49, %v5063_v24 }
 0x958   :  { %4454 = vmatpush1.msra.mxu0 %v10935_v43  ;;  %4487 = vmatprep.mubr.f32.mxu0 %v9989_v27 }
 0x959   :  { %4525 = vmatpush1.msra.mxu1 %v10936_v10  ;;  %4558 = vmatprep.mubr.f32.mxu1 %v9989_v27 }
 0x95a   :  { %4488 = vmatmul.mubr.f32.vlgmr.msra.gmra.mxu0 %v4280_v25  ;;  %4559 = vmatmul.mubr.f32.vlgmr.msra.gmra.mxu1 %v4280_v25 }
 0x95b   :  { %4778 = vmatprep.subr.mxu0 %v9989_v27  ;;  %4810 = vmatprep.mubr.msk.f32.mxu0 %vm5839_vm0, %v9989_v27 }
 0x95c   :  { %4779 = vmatpush3.msra.mxu0 %v4608_v33 }
 0x95d   :  { %4780 = vmatprep.subr.mxu0 %v9989_v27 }
 0x95e   :  { %4781 = vmatpush3.msra.mxu0 %v4607_v61 }
 0x95f   :  { %4782 = vmatprep.subr.mxu0 %v9989_v27 }
 0x960   :  { %4783 = vmatpush3.msra.mxu0 %v4606_v12 }
 0x961   :  { %4784 = vmatprep.subr.mxu0 %v9989_v27 }
 0x962   :  { %4785 = vmatpush3.msra.mxu0 %v4605_v55 }
 0x963   :  { %4786 = vmatprep.subr.mxu0 %v9989_v27 }
 0x964   :  { %4787 = vmatpush3.msra.mxu0 %v4604_v11 }
 0x965   :  { %4788 = vmatprep.subr.mxu0 %v9989_v27 }
 0x966   :  { %4789 = vmatpush3.msra.mxu0 %v4603_v17 }
 0x967   :  { %4790 = vmatprep.subr.mxu0 %v9989_v27 }
 0x968   :  { %4791 = vmatpush3.msra.mxu0 %v4602_v16 }
 0x969   :  { %4792 = vmatprep.subr.mxu0 %v9989_v27 }
 0x96a   :  { %4793 = vmatpush3.msra.mxu0 %v4601_v46 }
 0x96b   :  { %4794 = vmatprep.subr.mxu0 %v9989_v27 }
 0x96c   :  { %4795 = vmatpush3.msra.mxu0 %v4600_v35 }
 0x96d   :  { %4796 = vmatprep.subr.mxu0 %v9989_v27 }
 0x96e   :  { %4797 = vmatpush3.msra.mxu0 %v4599_v44 }
 0x96f   :  { %4798 = vmatprep.subr.mxu0 %v9989_v27 }
 0x970   :  { %4799 = vmatpush3.msra.mxu0 %v4598_v2 }
 0x971   :  { %4800 = vmatprep.subr.mxu0 %v9989_v27 }
 0x972   :  { %4801 = vmatpush3.msra.mxu0 %v4597_v0 }
 0x973   :  { %4802 = vmatprep.subr.mxu0 %v9989_v27 }
 0x974   :  { %4803 = vmatpush3.msra.mxu0 %v4596_v38 }
 0x975   :  { %4804 = vmatprep.subr.mxu0 %v9989_v27 }
 0x976   :  { %4805 = vmatpush3.msra.mxu0 %v4595_v32 }
 0x977   :  { %4806 = vmatprep.subr.mxu0 %v9989_v27 }
 0x978   :  { %4807 = vmatpush3.msra.mxu0 %v4594_v21 }
 0x979   :  { %4808 = vmatprep.subr.mxu0 %v9989_v27 }
 0x97a   :  { %4809 = vmatpush3.msra.mxu0 %v4593_v1 }
 0x9f9   :  { %v4347_v23 = vpop.f32.mrf.mxu0  ;;  %v4418_v29 = vpop.f32.mrf.mxu1 }
 0x9fb   :  { %v4349_v26 = vpop.f32.mrf.mxu0  ;;  %v4420_v58 = vpop.f32.mrf.mxu1 }
 0xa1a   :  { %v4489_v45 = vpop.f32.mrf.mxu0  ;;  %v4560_v19 = vpop.f32.mrf.mxu1 }
 0xa1b   :  { %v4490_v22 = vadd.f32 %v4489_v45, %v4347_v23  ;;  %v4561_v41 = vadd.f32 %v4560_v19, %v4418_v29 }
 0xa1c   :  { %v4491_v18 = vpop.f32.mrf.mxu0  ;;  %v4562_v56 = vpop.f32.mrf.mxu1 }
 0xa1d   :  { %v4565_v3 = vadd.f32 %v4490_v22, %v6762_v63  ;;  %v4492_v40 = vadd.f32 %v4491_v18, %v4349_v26  ;;  %v4563_v27 = vadd.f32 %v4562_v56, %v4420_v58  ;;  %v4567_v14 = vadd.f32 %v4561_v41, %v6777_v39 }
 0xa1f   :  { %v4757_v37 = vmul.f32 -1.442695, %v4565_v3  ;;  %v4566_v54 = vadd.f32 %v4492_v40, %v6766_v8  ;;  %v4568_v5 = vadd.f32 %v4563_v27, %v6772_v34 }
 0xa21   :  { %5066 = vpow2.f32 %v4757_v37  ;;  %v4758_v42 = vmul.f32 -1.442695, %v4566_v54  ;;  %v4759_v57 = vmul.f32 -1.442695, %v4568_v5 }
 0xa23   :  { %5068 = vpow2.f32 %v4758_v42 }
 0xa24   :  { %5070 = vpow2.f32 %v4759_v57 }
 0xa2e   :  { %v5067_v30 = vpop.eup %5066 }
 0xa2f   :  { %v4572_v31 = vadd.f32 1.0, %v5067_v30 }
 0xa30   :  { %v5069_v48 = vpop.eup %5068 }
 0xa31   :  { %5072 = vrcp.f32 %v4572_v31  ;;  %v4578_v63 = vadd.f32 1.0, %v5069_v48  ;;  %v5071_v8 = vpop.eup %5070 }
 0xa32   :  { %5074 = vtanh.f32 %v4567_v14  ;;  %v4585_v60 = vadd.f32 1.0, %v5071_v8 }
 0xa33   :  { %5076 = vrcp.f32 %v4578_v63 }
 0xa34   :  { %5078 = vrcp.f32 %v4585_v60 }
 0xa3e   :  { %v5073_v50 = vpop.eup %5072 }
 0xa3f   :  { %v5075_v51 = vpop.eup %5074 }
 0xa40   :  { %v5077_v52 = vpop.eup %5076  ;;  %v4589_v9 = vmul.f32 %v5075_v51, %v5073_v50 }
 0xa41   :  { %v4588_v34 = vmul.f32 %v5077_v52, %v9194_v6  ;;  %v5079_v36 = vpop.eup %5078 }
 0xa43   :  { %v4590_v4 = vadd.f32 %v4589_v9, %v4588_v34 }
 0xa45   :  { %5080 = vtanh.f32 %v4590_v4 }
 0xa52   :  { %v5081_v39 = vpop.eup %5080 }
 0xa53   :  { %v4592_v7 = vmul.f32 %v5081_v39, %v5079_v36 }
 0xa55   :  { %4811 = vmatmul.mubr.f32.vlgmr.msra.gmra.mxu0 %v4592_v7 }
 0xb15   :  { %v4682_v62 = vpop.f32.mrf.mxu0 }
 0xb16   :  { %v4683_v24 = vadd.f32 %v4760_v59, %v4682_v62 }
 0xb17   :  { %v4812_v53 = vpop.f32.mrf.mxu0 }
 0xb18   :  { %4686 = vst [vmem:[#allocation14] sm:$0xff] %v4683_v24 }
 0xb19   :  { %5809 = shalt.err (!%p5806_p6)
}
 0xb1a   :  { %4696 = dma.vmem_to_hbm [thread:$0]  %s4694_s21, 128, %s9301_s9, [#allocation5]  }
 0xb1b   :  { %5826 = dma.done.wait [#allocation5], 128  }
 0xb1c   :  { %5827 = vsyncadd [#allocation5], 4294967168 }
 0xb1d   :  { %4700 = vsyncpa [#allocation4], 1 }
 0xb1e   :  { %4701 = vsyncpa [#allocation7], 1 }
 0xb1f   :  { %4702 = vsyncpa [#allocation10], 1 }
 0xb20   :  { %4703 = vsyncpa [#allocation13], 1 }
 0xb21   :  { %4704 = vsyncpa [#allocation5], 1 }

</bundles_post_ra>
